<compile_context>
chip_gen: v7x
topology: tpu7x:2x2x1
jax: 0.10.0
libtpu: 0.0.40
codegen_flags: <defaults>
</compile_context>

<pallas_src>
from functools import partial

import numpy as np
import jax
import jax.numpy as jnp
from jax import lax
from jax.experimental import pallas as pl
from jax.experimental.pallas import tpu as pltpu

ALPHA = 0.25
GAMMA = 2.0          # hard-coded as squares below
ROWPAD = 8           # sublane padding per anchor (>= num_classes and >= 4)


# --------------------------------------------------------------------------- #
# Fused train kernel: 1x1-conv heads + IoU assignment + focal loss, per
# (image, spatial-tile) grid step.  Loss partials accumulate in SMEM scratch.
# --------------------------------------------------------------------------- #
def _fused_loss_kernel(num_classes,
                       x_ref, wc_ref, bc_ref, wr_ref, br_ref, anch_ref, ann_ref,
                       cls_out_ref, reg_out_ref, acc_ref):
    b = pl.program_id(0)
    t = pl.program_id(1)
    n_t = pl.num_programs(1)

    nrow = wc_ref.shape[0]            # anchors_per_loc * ROWPAD
    thw = x_ref.shape[2]              # spatial tile width (lanes)
    m_ann = ann_ref.shape[1] // 5     # annotations flattened to [B, M*5] in SMEM

    @pl.when(t == 0)
    def _zero():
        acc_ref[0] = jnp.float32(0.0)   # sum of focal cls loss
        acc_ref[1] = jnp.float32(0.0)   # sum of smooth-L1 reg loss
        acc_ref[2] = jnp.float32(0.0)   # num positive anchors

    # ---- heads: tiny-K matmuls on the MXU, spatial axis stays on lanes ----
    x = x_ref[0]                                                      # [Cin, THW]
    cls_logit = (jnp.dot(wc_ref[...], x, preferred_element_type=jnp.float32)
                 + bc_ref[...])                                       # [NROW, THW]
    reg_pred = (jnp.dot(wr_ref[...], x, preferred_element_type=jnp.float32)
                + br_ref[...])                                        # [NROW, THW]

    cls = 1.0 / (1.0 + jnp.exp(-cls_logit))                           # sigmoid (EUP exp)
    cls = jnp.clip(cls, 1e-4, 1.0 - 1e-4)

    # anchors expanded to the padded row grid: [4, NROW, THW] (y1, x1, y2, x2)
    ay1 = anch_ref[0]
    ax1 = anch_ref[1]
    ay2 = anch_ref[2]
    ax2 = anch_ref[3]
    a_w = ax2 - ax1
    a_h = ay2 - ay1
    a_area = a_w * a_h

    shape = (nrow, thw)
    iou_best = jnp.full(shape, -2.0, jnp.float32)
    gx1 = jnp.zeros(shape, jnp.float32)
    gy1 = jnp.zeros(shape, jnp.float32)
    gx2 = jnp.zeros(shape, jnp.float32)
    gy2 = jnp.zeros(shape, jnp.float32)
    glab = jnp.full(shape, -1.0, jnp.float32)

    # ---- online IoU-argmax over the (few) annotations of image b (SMEM scalars) ----
    for m in range(m_ann):
        bx1 = ann_ref[b, m * 5 + 0]
        by1 = ann_ref[b, m * 5 + 1]
        bx2 = ann_ref[b, m * 5 + 2]
        by2 = ann_ref[b, m * 5 + 3]
        lab = ann_ref[b, m * 5 + 4]
        validf = (lab != -1.0).astype(jnp.float32)                    # scalar 0/1
        iw = jnp.maximum(jnp.minimum(ax2, bx2) - jnp.maximum(ax1, bx1), 0.0)
        ih = jnp.maximum(jnp.minimum(ay2, by2) - jnp.maximum(ay1, by1), 0.0)
        inter = iw * ih
        ua = jnp.maximum(a_area + (bx2 - bx1) * (by2 - by1) - inter, 1e-8)
        iou_m = (inter / ua) * validf + (validf - 1.0)                # invalid -> -1
        upd = iou_m > iou_best                                        # first max wins
        iou_best = jnp.where(upd, iou_m, iou_best)
        gx1 = jnp.where(upd, bx1, gx1)
        gy1 = jnp.where(upd, by1, gy1)
        gx2 = jnp.where(upd, bx2, gx2)
        gy2 = jnp.where(upd, by2, gy2)
        glab = jnp.where(upd, lab, glab)

    positive = iou_best >= 0.5
    pos_f = positive.astype(jnp.float32)
    not_ign_f = jnp.logical_or(positive, iou_best < 0.4).astype(jnp.float32)

    row = lax.broadcasted_iota(jnp.int32, shape, 0)
    sub = jnp.bitwise_and(row, ROWPAD - 1)        # row % 8 -> class idx / box component

    # ---- focal classification loss (single-log form) ----
    is_pos = jnp.logical_and(positive, sub == glab.astype(jnp.int32))
    p_t = jnp.where(is_pos, cls, 1.0 - cls)
    w_focal = jnp.where(is_pos, 1.0 - cls, cls)
    alpha_f = jnp.where(is_pos, ALPHA, 1.0 - ALPHA)
    cls_el = -(alpha_f * w_focal * w_focal) * jnp.log(p_t)
    if num_classes < ROWPAD:                      # mask padded class rows (static)
        cls_el = cls_el * (sub < num_classes).astype(jnp.float32)
    cls_el = cls_el * not_ign_f
    cls_sum = jnp.sum(cls_el)

    # ---- smooth-L1 regression loss on positive anchors ----
    a_cx = ax1 + 0.5 * a_w
    a_cy = ay1 + 0.5 * a_h
    gw0 = gx2 - gx1
    gh0 = gy2 - gy1
    gcx = gx1 + 0.5 * gw0
    gcy = gy1 + 0.5 * gh0
    gw = jnp.maximum(gw0, 1.0)
    gh = jnp.maximum(gh0, 1.0)
    tdy = (gcy - a_cy) / a_h
    tdx = (gcx - a_cx) / a_w
    tdh = jnp.log(gh / a_h)
    tdw = jnp.log(gw / a_w)
    target = (jnp.where(sub == 0, tdy, 0.0)
              + jnp.where(sub == 1, tdx, 0.0)
              + jnp.where(sub == 2, tdh, 0.0)
              + jnp.where(sub == 3, tdw, 0.0))    # padded rows d>=4: pred=0, target=0
    diff = jnp.abs(target - reg_pred)
    rl = jnp.where(diff <= (1.0 / 9.0), 4.5 * diff * diff, diff - 0.5 / 9.0)
    reg_sum = jnp.sum(rl * pos_f)

    # ---- accumulate tile partials (each anchor is duplicated ROWPAD times) ----
    acc_ref[0] = acc_ref[0] + cls_sum
    acc_ref[1] = acc_ref[1] + reg_sum
    acc_ref[2] = acc_ref[2] + jnp.sum(pos_f) * (1.0 / ROWPAD)

    @pl.when(t == n_t - 1)
    def _finalize():
        npos = acc_ref[2]
        cls_out_ref[b] = acc_ref[0] / jnp.maximum(npos, 1.0)
        reg_out_ref[b] = jnp.where(
            npos > 0.0, acc_ref[1] / jnp.maximum(4.0 * npos, 1.0), 0.0)


def fused_train_loss(imgs, annotations, params, tile_hw=128):
    B, Cin, H, W = imgs.shape
    HW = H * W
    num_classes = params["num_classes"]
    x = imgs.reshape(B, Cin, HW)                       # NCHW -> [B, Cin, HW]: no transpose
    nrow = params["wc_pack"].shape[0]
    thw = tile_hw if HW % tile_hw == 0 else HW
    n_tiles = HW // thw
    ann_flat = annotations.reshape(B, -1)              # [B, M*5] scalar table in SMEM

    cls_l, reg_l = pl.pallas_call(
        partial(_fused_loss_kernel, num_classes),
        grid=(B, n_tiles),
        in_specs=[
            pl.BlockSpec((1, Cin, thw), lambda b, t: (b, 0, t)),       # image tile
            pl.BlockSpec((nrow, Cin), lambda b, t: (0, 0)),            # cls weights
            pl.BlockSpec((nrow, 1), lambda b, t: (0, 0)),              # cls bias
            pl.BlockSpec((nrow, Cin), lambda b, t: (0, 0)),            # reg weights
            pl.BlockSpec((nrow, 1), lambda b, t: (0, 0)),              # reg bias
            pl.BlockSpec((4, nrow, thw), lambda b, t: (0, 0, t)),      # anchors (expanded)
            pl.BlockSpec(memory_space=pltpu.MemorySpace.SMEM),         # annotations
        ],
        out_specs=[
            pl.BlockSpec(memory_space=pltpu.MemorySpace.SMEM),
            pl.BlockSpec(memory_space=pltpu.MemorySpace.SMEM),
        ],
        out_shape=[
            jax.ShapeDtypeStruct((B,), jnp.float32),
            jax.ShapeDtypeStruct((B,), jnp.float32),
        ],
        scratch_shapes=[pltpu.SMEM((3,), jnp.float32)],
        # TODO(synk): block the loss outputs per-step and mark batch "parallel"
        # to shard across v7x's two TensorCores.
        compiler_params=pltpu.CompilerParams(
            dimension_semantics=("arbitrary", "arbitrary"),
            vmem_limit_bytes=32 * 1024 * 1024,
        ),
    )(x, params["wc_pack"], params["bc_pack"], params["wr_pack"],
      params["br_pack"], params["anchors_exp"], ann_flat)

    # torch: torch.stack(losses).mean(dim=0, keepdim=True) -> shape [1]
    return jnp.mean(cls_l, keepdims=True), jnp.mean(reg_l, keepdims=True)


# --------------------------------------------------------------------------- #
# Standalone detection heads (test=True path): tiled rows, single fused matmul,
# lane-dense 128-wide padded output (sliced in the wrapper).
# --------------------------------------------------------------------------- #
def run_heads(x_flat, w_head, b_head, n_cls_cols):
    n, cin = x_flat.shape
    npad = w_head.shape[1]
    tile_m = 256 if n % 256 == 0 else n

    def kernel(x_ref, w_ref, b_ref, o_ref):
        z = jnp.dot(x_ref[...], w_ref[...], preferred_element_type=jnp.float32)
        z = z + b_ref[...]
        ci = lax.broadcasted_iota(jnp.int32, z.shape, 1)
        sig = 1.0 / (1.0 + jnp.exp(-z))
        o_ref[...] = jnp.where(ci < n_cls_cols, sig, z)     # sigmoid only on cls lanes

    return pl.pallas_call(
        kernel,
        grid=(n // tile_m,),
        in_specs=[
            pl.BlockSpec((tile_m, cin), lambda i: (i, 0)),
            pl.BlockSpec((cin, npad), lambda i: (0, 0)),
            pl.BlockSpec((1, npad), lambda i: (0, 0)),
        ],
        out_specs=pl.BlockSpec((tile_m, npad), lambda i: (i, 0)),
        out_shape=jax.ShapeDtypeStruct((n, npad), jnp.float32),
        compiler_params=pltpu.CompilerParams(
            dimension_semantics=("parallel",),
            vmem_limit_bytes=32 * 1024 * 1024,
        ),
    )(x_flat, w_head, b_head)


# --------------------------------------------------------------------------- #
# ModelWithLoss.forward equivalent
# --------------------------------------------------------------------------- #
def model_with_loss_forward(imgs, annotations, params, test=False):
    B, Cin, H, W = imgs.shape
    HW = H * W
    na, C = params["anchors_per_loc"], params["num_classes"]
    if test:
        # TODO(synk): real EfficientDet backbone/BiFPN not modeled; heads are 1x1 convs.
        x_flat = jnp.transpose(imgs, (0, 2, 3, 1)).reshape(B * HW, Cin)
        out = run_heads(x_flat, params["w_head"], params["b_head"], na * C)
        out = out.reshape(B, HW, -1)
        classification = out[:, :, :na * C].reshape(B, HW * na, C)
        regression = out[:, :, na * C:na * C + na * 4].reshape(B, HW * na, 4)
        return (None, regression, classification, params["anchors"])
    return fused_train_loss(imgs, annotations, params)


# --------------------------------------------------------------------------- #
# Parameters / anchors
# --------------------------------------------------------------------------- #
def make_anchor_boxes(H, W, stride=8.0, anchor_scale=4.0):
    ratios = [(1.0, 1.0), (1.4, 0.7), (0.7, 1.4)]
    scales = [2.0 ** 0, 2.0 ** (1.0 / 3.0), 2.0 ** (2.0 / 3.0)]
    ys = (jnp.arange(H, dtype=jnp.float32) + 0.5) * stride
    xs = (jnp.arange(W, dtype=jnp.float32) + 0.5) * stride
    cy, cx = jnp.meshgrid(ys, xs, indexing="ij")
    cy = cy.reshape(-1, 1)
    cx = cx.reshape(-1, 1)
    boxes = []
    for s in scales:
        for rx, ry in ratios:
            base = anchor_scale * stride * s
            hx, hy = base * rx / 2.0, base * ry / 2.0
            boxes.append(jnp.concatenate([cy - hy, cx - hx, cy + hy, cx + hx], axis=-1))
    return jnp.stack(boxes, axis=0)                    # [9, HW, 4] (y1, x1, y2, x2)


def make_params(key, cin, H, W, num_classes, anchors_per_loc, prior_bias=-2.0):
    assert 1 <= num_classes <= ROWPAD
    na = anchors_per_loc
    HW = H * W
    k1, k2 = jax.random.split(key)
    w_cls = 0.1 * jax.random.normal(k1, (cin, na * num_classes), jnp.float32)
    b_cls = jnp.full((na * num_classes,), prior_bias, jnp.float32)
    w_reg = 0.1 * jax.random.normal(k2, (cin, na * 4), jnp.float32)
    b_reg = jnp.zeros((na * 4,), jnp.float32)

    base = make_anchor_boxes(H, W)                     # [na, HW, 4]
    assert base.shape[0] == na
    anchors_flat = jnp.transpose(base, (1, 0, 2)).reshape(HW * na, 4)        # a = p*na+k
    anchors_exp = jnp.transpose(jnp.repeat(base, ROWPAD, axis=0), (2, 0, 1))  # [4, na*8, HW]

    # packed weights for the fused train kernel: row = k*ROWPAD + c  /  k*ROWPAD + d
    wc3 = jnp.swapaxes(w_cls, 0, 1).reshape(na, num_classes, cin)
    wc3 = jnp.pad(wc3, ((0, 0), (0, ROWPAD - num_classes), (0, 0)))
    wc_pack = wc3.reshape(na * ROWPAD, cin)
    bc_pack = jnp.pad(b_cls.reshape(na, num_classes),
                      ((0, 0), (0, ROWPAD - num_classes))).reshape(na * ROWPAD, 1)
    wr3 = jnp.swapaxes(w_reg, 0, 1).reshape(na, 4, cin)
    wr3 = jnp.pad(wr3, ((0, 0), (0, ROWPAD - 4), (0, 0)))
    wr_pack = wr3.reshape(na * ROWPAD, cin)
    br_pack = jnp.pad(b_reg.reshape(na, 4),
                      ((0, 0), (0, ROWPAD - 4))).reshape(na * ROWPAD, 1)

    # lane-dense fused head weight for the test path: [cin, 128]
    n_cls_cols, n_reg_cols, npad = na * num_classes, na * 4, 128
    assert n_cls_cols + n_reg_cols <= npad
    w_head = jnp.zeros((cin, npad), jnp.float32)
    w_head = w_head.at[:, :n_cls_cols].set(w_cls)
    w_head = w_head.at[:, n_cls_cols:n_cls_cols + n_reg_cols].set(w_reg)
    b_head = jnp.zeros((1, npad), jnp.float32)
    b_head = b_head.at[0, :n_cls_cols].set(b_cls)
    b_head = b_head.at[0, n_cls_cols:n_cls_cols + n_reg_cols].set(b_reg)

    return {
        "w_cls": w_cls, "b_cls": b_cls, "w_reg": w_reg, "b_reg": b_reg,
        "wc_pack": wc_pack, "bc_pack": bc_pack,
        "wr_pack": wr_pack, "br_pack": br_pack,
        "w_head": w_head, "b_head": b_head,
        "anchors": anchors_flat, "anchors_exp": anchors_exp,
        "anchors_per_loc": na, "num_classes": num_classes,
    }


# --------------------------------------------------------------------------- #
# Pure-JAX reference of the same loss (plumbing check for the Pallas kernels)
# --------------------------------------------------------------------------- #
def focal_loss_ref(classification, regression, anchors, annotations):
    B, A, C = classification.shape
    ay1, ax1, ay2, ax2 = [anchors[:, k:k + 1] for k in range(4)]
    a_w, a_h = ax2 - ax1, ay2 - ay1
    a_cx, a_cy = ax1 + 0.5 * a_w, ay1 + 0.5 * a_h
    cls_ls, reg_ls = [], []
    for j in range(B):
        cls = jnp.clip(classification[j], 1e-4, 1 - 1e-4)
        reg = regression[j]
        ann = annotations[j]
        bx1, by1, bx2, by2, lab = [ann[:, k][None, :] for k in range(5)]
        valid = lab != -1.0
        iw = jnp.maximum(jnp.minimum(ax2, bx2) - jnp.maximum(ax1, bx1), 0.0)
        ih = jnp.maximum(jnp.minimum(ay2, by2) - jnp.maximum(ay1, by1), 0.0)
        inter = iw * ih
        ua = jnp.maximum(a_w * a_h + (bx2 - bx1) * (by2 - by1) - inter, 1e-8)
        iou = jnp.where(valid, inter / ua, -1.0)
        iou_max = jnp.max(iou, axis=-1, keepdims=True)
        g = ann[jnp.argmax(iou, axis=-1)]
        positive = iou_max >= 0.5
        not_ign = positive | (iou_max < 0.4)
        num_pos = jnp.sum(positive.astype(jnp.float32))
        is_pos = positive & (jnp.arange(C)[None, :] == g[:, 4:5].astype(jnp.int32))
        t = is_pos.astype(jnp.float32)
        fw = jnp.where(is_pos, ALPHA, 1 - ALPHA) * jnp.where(is_pos, 1 - cls, cls) ** 2
        bce = -(t * jnp.log(cls) + (1 - t) * jnp.log(1 - cls))
        cls_ls.append(jnp.sum(jnp.where(not_ign, fw * bce, 0.0)) / jnp.maximum(num_pos, 1.0))
        gw0, gh0 = g[:, 2:3] - g[:, 0:1], g[:, 3:4] - g[:, 1:2]
        gcx, gcy = g[:, 0:1] + 0.5 * gw0, g[:, 1:2] + 0.5 * gh0
        gw, gh = jnp.maximum(gw0, 1.0), jnp.maximum(gh0, 1.0)
        tgt = jnp.concatenate([(gcy - a_cy) / a_h, (gcx - a_cx) / a_w,
                               jnp.log(gh / a_h), jnp.log(gw / a_w)], axis=-1)
        d = jnp.abs(tgt - reg)
        rl = jnp.where(positive, jnp.where(d <= 1 / 9, 4.5 * d * d, d - 0.5 / 9), 0.0)
        reg_ls.append(jnp.where(num_pos > 0, jnp.sum(rl) / jnp.maximum(4 * num_pos, 1.0), 0.0))
    return (jnp.mean(jnp.stack(cls_ls), keepdims=True),
            jnp.mean(jnp.stack(reg_ls), keepdims=True))


if __name__ == "__main__":
    B, Cin, H, W = 2, 4, 16, 16
    NUM_CLASSES, ANCHORS_PER_LOC, MAX_ANN = 8, 9, 8

    key = jax.random.PRNGKey(0)
    params = make_params(key, Cin, H, W, NUM_CLASSES, ANCHORS_PER_LOC)
    imgs = jax.random.normal(jax.random.fold_in(key, 1), (B, Cin, H, W), jnp.float32)

    ann_np = -np.ones((B, MAX_ANN, 5), dtype=np.float32)    # -1 padded, (x1,y1,x2,y2,label)
    ann_np[0, :3] = [[10., 12., 60., 70., 1.],
                     [40., 8., 100., 90., 3.],
                     [5., 5., 30., 30., 0.]]
    ann_np[1, :2] = [[20., 25., 110., 115., 2.],
                     [64., 10., 90., 50., 5.]]
    annotations = jnp.asarray(ann_np)

    # fused train path (heads + focal loss in one Pallas kernel)
    cls_loss, reg_loss = model_with_loss_forward(imgs, annotations, params)
    cls_loss, reg_loss = jax.block_until_ready((cls_loss, reg_loss))

    # test path (standalone tiled head kernel) + pure-JAX reference loss
    _, regression, classification, anchors = model_with_loss_forward(
        imgs, annotations, params, test=True)
    cls_ref, reg_ref = focal_loss_ref(classification, regression, anchors, annotations)
    np.testing.assert_allclose(np.asarray(cls_loss), np.asarray(cls_ref), rtol=1e-3, atol=1e-5)
    np.testing.assert_allclose(np.asarray(reg_loss), np.asarray(reg_ref), rtol=1e-3, atol=1e-5)
    assert cls_loss.shape == (1,) and reg_loss.shape == (1,)
    assert np.isfinite(np.asarray(cls_loss)).all() and np.isfinite(np.asarray(reg_loss)).all()

    print("KERNEL_OK")
</pallas_src>

<mosaic_0001>
module attributes {stable_mosaic.version = 11 : i64} {
  func.func @_fused_loss_kernel(%arg0: i32, %arg1: i32, %arg2: memref<1x4x128xf32, #tpu.memory_space<vmem>>, %arg3: memref<72x4xf32, #tpu.memory_space<vmem>>, %arg4: memref<72x1xf32, #tpu.memory_space<vmem>>, %arg5: memref<72x4xf32, #tpu.memory_space<vmem>>, %arg6: memref<72x1xf32, #tpu.memory_space<vmem>>, %arg7: memref<4x72x128xf32, #tpu.memory_space<vmem>>, %arg8: memref<2x40xf32, #tpu.memory_space<smem>>, %arg9: memref<2xf32, #tpu.memory_space<smem>>, %arg10: memref<2xf32, #tpu.memory_space<smem>>, %arg11: memref<3xf32, #tpu.memory_space<smem>>) attributes {dimension_semantics = [#tpu.dimension_semantics<arbitrary>, #tpu.dimension_semantics<arbitrary>], iteration_bounds = array<i64: 2, 2>, scalar_prefetch = 0 : i64, scratch_operands = 1 : i64, tpu.core_type = #tpu.core_type<tc>, window_params = [{transform_indices = @transform_0, window_bounds = array<i64: 1, 4, 128>}, {pipeline_mode = #tpu.pipeline_mode<synchronous>, transform_indices = @transform_1, window_bounds = array<i64: 72, 4>}, {pipeline_mode = #tpu.pipeline_mode<synchronous>, transform_indices = @transform_2, window_bounds = array<i64: 72, 1>}, {pipeline_mode = #tpu.pipeline_mode<synchronous>, transform_indices = @transform_3, window_bounds = array<i64: 72, 4>}, {pipeline_mode = #tpu.pipeline_mode<synchronous>, transform_indices = @transform_4, window_bounds = array<i64: 72, 1>}, {transform_indices = @transform_5, window_bounds = array<i64: 4, 72, 128>}, {transform_indices = @transform_6, window_bounds = array<i64: 2, 40>}, {transform_indices = @transform_7, window_bounds = array<i64: 2>}, {transform_indices = @transform_8, window_bounds = array<i64: 2>}]} {
    %c0_i32 = arith.constant 0 : i32
    %0 = arith.cmpi eq, %arg1, %c0_i32 : i32
    %1 = arith.extui %0 : i1 to i32
    %c0_i32_0 = arith.constant 0 : i32
    %2 = arith.cmpi ne, %1, %c0_i32_0 : i32
    scf.if %2 {
      %cst_109 = arith.constant 0.000000e+00 : f32
      %c0_110 = arith.constant 0 : index
      %587 = memref.load %arg11[%c0_110] : memref<3xf32, #tpu.memory_space<smem>>
      memref.store %cst_109, %arg11[%c0_110] : memref<3xf32, #tpu.memory_space<smem>>
      %cst_111 = arith.constant 0.000000e+00 : f32
      %c1_112 = arith.constant 1 : index
      %588 = memref.load %arg11[%c1_112] : memref<3xf32, #tpu.memory_space<smem>>
      memref.store %cst_111, %arg11[%c1_112] : memref<3xf32, #tpu.memory_space<smem>>
      %cst_113 = arith.constant 0.000000e+00 : f32
      %c2_114 = arith.constant 2 : index
      %589 = memref.load %arg11[%c2_114] : memref<3xf32, #tpu.memory_space<smem>>
      memref.store %cst_113, %arg11[%c2_114] : memref<3xf32, #tpu.memory_space<smem>>
    } else {
    }
    %c0 = arith.constant 0 : index
    %c0_1 = arith.constant 0 : index
    %c0_2 = arith.constant 0 : index
    %3 = vector.load %arg2[%c0, %c0_1, %c0_2] : memref<1x4x128xf32, #tpu.memory_space<vmem>>, vector<1x4x128xf32>
    %4 = vector.shape_cast %3 : vector<1x4x128xf32> to vector<4x128xf32>
    %c0_3 = arith.constant 0 : index
    %c0_4 = arith.constant 0 : index
    %5 = vector.load %arg3[%c0_3, %c0_4] : memref<72x4xf32, #tpu.memory_space<vmem>>, vector<72x4xf32>
    %cst = arith.constant dense<0.000000e+00> : vector<72x128xf32>
    %6 = tpu.matmul %5, %4, %cst {dimension_numbers = #tpu.dot_dimension_numbers<[1], [0], [0], [1], [0, 0, 1, 1], [], []>} : vector<72x4xf32>, vector<4x128xf32>, vector<72x128xf32> -> vector<72x128xf32>
    %c0_5 = arith.constant 0 : index
    %c0_6 = arith.constant 0 : index
    %7 = vector.load %arg4[%c0_5, %c0_6] : memref<72x1xf32, #tpu.memory_space<vmem>>, vector<72x1xf32>
    %8 = vector.broadcast %7 : vector<72x1xf32> to vector<72x128xf32>
    %9 = arith.addf %6, %8 : vector<72x128xf32>
    %c0_7 = arith.constant 0 : index
    %c0_8 = arith.constant 0 : index
    %10 = vector.load %arg5[%c0_7, %c0_8] : memref<72x4xf32, #tpu.memory_space<vmem>>, vector<72x4xf32>
    %cst_9 = arith.constant dense<0.000000e+00> : vector<72x128xf32>
    %11 = tpu.matmul %10, %4, %cst_9 {dimension_numbers = #tpu.dot_dimension_numbers<[1], [0], [0], [1], [0, 0, 1, 1], [], []>} : vector<72x4xf32>, vector<4x128xf32>, vector<72x128xf32> -> vector<72x128xf32>
    %c0_10 = arith.constant 0 : index
    %c0_11 = arith.constant 0 : index
    %12 = vector.load %arg6[%c0_10, %c0_11] : memref<72x1xf32, #tpu.memory_space<vmem>>, vector<72x1xf32>
    %13 = vector.broadcast %12 : vector<72x1xf32> to vector<72x128xf32>
    %14 = arith.addf %11, %13 : vector<72x128xf32>
    %cst_12 = arith.constant 0.000000e+00 : f32
    %15 = vector.broadcast %cst_12 : f32 to vector<72x128xf32>
    %16 = arith.subf %15, %9 : vector<72x128xf32>
    %17 = math.exp %16 : vector<72x128xf32>
    %cst_13 = arith.constant 1.000000e+00 : f32
    %18 = vector.broadcast %cst_13 : f32 to vector<72x128xf32>
    %19 = arith.addf %18, %17 : vector<72x128xf32>
    %cst_14 = arith.constant 1.000000e+00 : f32
    %20 = vector.broadcast %cst_14 : f32 to vector<72x128xf32>
    %21 = arith.divf %20, %19 : vector<72x128xf32>
    %cst_15 = arith.constant 9.99999974E-5 : f32
    %cst_16 = arith.constant 0.999899983 : f32
    %22 = vector.broadcast %cst_15 : f32 to vector<72x128xf32>
    %23 = arith.maximumf %22, %21 : vector<72x128xf32>
    %24 = vector.broadcast %cst_16 : f32 to vector<72x128xf32>
    %25 = arith.minimumf %24, %23 : vector<72x128xf32>
    %c0_17 = arith.constant 0 : index
    %c0_18 = arith.constant 0 : index
    %c0_19 = arith.constant 0 : index
    %26 = vector.load %arg7[%c0_17, %c0_18, %c0_19] : memref<4x72x128xf32, #tpu.memory_space<vmem>>, vector<1x72x128xf32>
    %27 = vector.shape_cast %26 : vector<1x72x128xf32> to vector<72x128xf32>
    %c1 = arith.constant 1 : index
    %c0_20 = arith.constant 0 : index
    %c0_21 = arith.constant 0 : index
    %28 = vector.load %arg7[%c1, %c0_20, %c0_21] : memref<4x72x128xf32, #tpu.memory_space<vmem>>, vector<1x72x128xf32>
    %29 = vector.shape_cast %28 : vector<1x72x128xf32> to vector<72x128xf32>
    %c2 = arith.constant 2 : index
    %c0_22 = arith.constant 0 : index
    %c0_23 = arith.constant 0 : index
    %30 = vector.load %arg7[%c2, %c0_22, %c0_23] : memref<4x72x128xf32, #tpu.memory_space<vmem>>, vector<1x72x128xf32>
    %31 = vector.shape_cast %30 : vector<1x72x128xf32> to vector<72x128xf32>
    %c3 = arith.constant 3 : index
    %c0_24 = arith.constant 0 : index
    %c0_25 = arith.constant 0 : index
    %32 = vector.load %arg7[%c3, %c0_24, %c0_25] : memref<4x72x128xf32, #tpu.memory_space<vmem>>, vector<1x72x128xf32>
    %33 = vector.shape_cast %32 : vector<1x72x128xf32> to vector<72x128xf32>
    %34 = arith.subf %33, %29 : vector<72x128xf32>
    %35 = arith.subf %31, %27 : vector<72x128xf32>
    %36 = arith.mulf %34, %35 : vector<72x128xf32>
    %cst_26 = arith.constant -2.000000e+00 : f32
    %37 = vector.broadcast %cst_26 : f32 to vector<72x128xf32>
    %cst_27 = arith.constant 0.000000e+00 : f32
    %38 = vector.broadcast %cst_27 : f32 to vector<72x128xf32>
    %cst_28 = arith.constant 0.000000e+00 : f32
    %39 = vector.broadcast %cst_28 : f32 to vector<72x128xf32>
    %cst_29 = arith.constant 0.000000e+00 : f32
    %40 = vector.broadcast %cst_29 : f32 to vector<72x128xf32>
    %cst_30 = arith.constant 0.000000e+00 : f32
    %41 = vector.broadcast %cst_30 : f32 to vector<72x128xf32>
    %cst_31 = arith.constant -1.000000e+00 : f32
    %42 = vector.broadcast %cst_31 : f32 to vector<72x128xf32>
    %43 = arith.index_cast %arg0 : i32 to index
    %c0_32 = arith.constant 0 : index
    %44 = memref.load %arg8[%43, %c0_32] : memref<2x40xf32, #tpu.memory_space<smem>>
    %45 = arith.index_cast %arg0 : i32 to index
    %c1_33 = arith.constant 1 : index
    %46 = memref.load %arg8[%45, %c1_33] : memref<2x40xf32, #tpu.memory_space<smem>>
    %47 = arith.index_cast %arg0 : i32 to index
    %c2_34 = arith.constant 2 : index
    %48 = memref.load %arg8[%47, %c2_34] : memref<2x40xf32, #tpu.memory_space<smem>>
    %49 = arith.index_cast %arg0 : i32 to index
    %c3_35 = arith.constant 3 : index
    %50 = memref.load %arg8[%49, %c3_35] : memref<2x40xf32, #tpu.memory_space<smem>>
    %51 = arith.index_cast %arg0 : i32 to index
    %c4 = arith.constant 4 : index
    %52 = memref.load %arg8[%51, %c4] : memref<2x40xf32, #tpu.memory_space<smem>>
    %cst_36 = arith.constant -1.000000e+00 : f32
    %53 = arith.cmpf one, %52, %cst_36 : f32
    %54 = arith.extui %53 : i1 to i32
    %55 = arith.sitofp %54 : i32 to f32
    %56 = vector.broadcast %48 : f32 to vector<72x128xf32>
    %57 = arith.minimumf %33, %56 : vector<72x128xf32>
    %58 = vector.broadcast %44 : f32 to vector<72x128xf32>
    %59 = arith.maximumf %29, %58 : vector<72x128xf32>
    %60 = arith.subf %57, %59 : vector<72x128xf32>
    %cst_37 = arith.constant 0.000000e+00 : f32
    %61 = vector.broadcast %cst_37 : f32 to vector<72x128xf32>
    %62 = arith.maximumf %60, %61 : vector<72x128xf32>
    %63 = vector.broadcast %50 : f32 to vector<72x128xf32>
    %64 = arith.minimumf %31, %63 : vector<72x128xf32>
    %65 = vector.broadcast %46 : f32 to vector<72x128xf32>
    %66 = arith.maximumf %27, %65 : vector<72x128xf32>
    %67 = arith.subf %64, %66 : vector<72x128xf32>
    %cst_38 = arith.constant 0.000000e+00 : f32
    %68 = vector.broadcast %cst_38 : f32 to vector<72x128xf32>
    %69 = arith.maximumf %67, %68 : vector<72x128xf32>
    %70 = arith.mulf %62, %69 : vector<72x128xf32>
    %71 = arith.subf %48, %44 : f32
    %72 = arith.subf %50, %46 : f32
    %73 = arith.mulf %71, %72 : f32
    %74 = vector.broadcast %73 : f32 to vector<72x128xf32>
    %75 = arith.addf %36, %74 : vector<72x128xf32>
    %76 = arith.subf %75, %70 : vector<72x128xf32>
    %cst_39 = arith.constant 9.99999993E-9 : f32
    %77 = vector.broadcast %cst_39 : f32 to vector<72x128xf32>
    %78 = arith.maximumf %76, %77 : vector<72x128xf32>
    %79 = arith.divf %70, %78 : vector<72x128xf32>
    %80 = vector.broadcast %55 : f32 to vector<72x128xf32>
    %81 = arith.mulf %79, %80 : vector<72x128xf32>
    %cst_40 = arith.constant 1.000000e+00 : f32
    %82 = arith.subf %55, %cst_40 : f32
    %83 = vector.broadcast %82 : f32 to vector<72x128xf32>
    %84 = arith.addf %81, %83 : vector<72x128xf32>
    %85 = arith.cmpf ogt, %84, %37 : vector<72x128xf32>
    %86 = arith.select %85, %84, %37 : vector<72x128xi1>, vector<72x128xf32>
    %87 = vector.broadcast %44 : f32 to vector<72x128xf32>
    %88 = arith.select %85, %87, %38 : vector<72x128xi1>, vector<72x128xf32>
    %89 = vector.broadcast %46 : f32 to vector<72x128xf32>
    %90 = arith.select %85, %89, %39 : vector<72x128xi1>, vector<72x128xf32>
    %91 = vector.broadcast %48 : f32 to vector<72x128xf32>
    %92 = arith.select %85, %91, %40 : vector<72x128xi1>, vector<72x128xf32>
    %93 = vector.broadcast %50 : f32 to vector<72x128xf32>
    %94 = arith.select %85, %93, %41 : vector<72x128xi1>, vector<72x128xf32>
    %95 = vector.broadcast %52 : f32 to vector<72x128xf32>
    %96 = arith.select %85, %95, %42 : vector<72x128xi1>, vector<72x128xf32>
    %97 = arith.index_cast %arg0 : i32 to index
    %c5 = arith.constant 5 : index
    %98 = memref.load %arg8[%97, %c5] : memref<2x40xf32, #tpu.memory_space<smem>>
    %99 = arith.index_cast %arg0 : i32 to index
    %c6 = arith.constant 6 : index
    %100 = memref.load %arg8[%99, %c6] : memref<2x40xf32, #tpu.memory_space<smem>>
    %101 = arith.index_cast %arg0 : i32 to index
    %c7 = arith.constant 7 : index
    %102 = memref.load %arg8[%101, %c7] : memref<2x40xf32, #tpu.memory_space<smem>>
    %103 = arith.index_cast %arg0 : i32 to index
    %c8 = arith.constant 8 : index
    %104 = memref.load %arg8[%103, %c8] : memref<2x40xf32, #tpu.memory_space<smem>>
    %105 = arith.index_cast %arg0 : i32 to index
    %c9 = arith.constant 9 : index
    %106 = memref.load %arg8[%105, %c9] : memref<2x40xf32, #tpu.memory_space<smem>>
    %cst_41 = arith.constant -1.000000e+00 : f32
    %107 = arith.cmpf one, %106, %cst_41 : f32
    %108 = arith.extui %107 : i1 to i32
    %109 = arith.sitofp %108 : i32 to f32
    %110 = vector.broadcast %102 : f32 to vector<72x128xf32>
    %111 = arith.minimumf %33, %110 : vector<72x128xf32>
    %112 = vector.broadcast %98 : f32 to vector<72x128xf32>
    %113 = arith.maximumf %29, %112 : vector<72x128xf32>
    %114 = arith.subf %111, %113 : vector<72x128xf32>
    %cst_42 = arith.constant 0.000000e+00 : f32
    %115 = vector.broadcast %cst_42 : f32 to vector<72x128xf32>
    %116 = arith.maximumf %114, %115 : vector<72x128xf32>
    %117 = vector.broadcast %104 : f32 to vector<72x128xf32>
    %118 = arith.minimumf %31, %117 : vector<72x128xf32>
    %119 = vector.broadcast %100 : f32 to vector<72x128xf32>
    %120 = arith.maximumf %27, %119 : vector<72x128xf32>
    %121 = arith.subf %118, %120 : vector<72x128xf32>
    %cst_43 = arith.constant 0.000000e+00 : f32
    %122 = vector.broadcast %cst_43 : f32 to vector<72x128xf32>
    %123 = arith.maximumf %121, %122 : vector<72x128xf32>
    %124 = arith.mulf %116, %123 : vector<72x128xf32>
    %125 = arith.subf %102, %98 : f32
    %126 = arith.subf %104, %100 : f32
    %127 = arith.mulf %125, %126 : f32
    %128 = vector.broadcast %127 : f32 to vector<72x128xf32>
    %129 = arith.addf %36, %128 : vector<72x128xf32>
    %130 = arith.subf %129, %124 : vector<72x128xf32>
    %cst_44 = arith.constant 9.99999993E-9 : f32
    %131 = vector.broadcast %cst_44 : f32 to vector<72x128xf32>
    %132 = arith.maximumf %130, %131 : vector<72x128xf32>
    %133 = arith.divf %124, %132 : vector<72x128xf32>
    %134 = vector.broadcast %109 : f32 to vector<72x128xf32>
    %135 = arith.mulf %133, %134 : vector<72x128xf32>
    %cst_45 = arith.constant 1.000000e+00 : f32
    %136 = arith.subf %109, %cst_45 : f32
    %137 = vector.broadcast %136 : f32 to vector<72x128xf32>
    %138 = arith.addf %135, %137 : vector<72x128xf32>
    %139 = arith.cmpf ogt, %138, %86 : vector<72x128xf32>
    %140 = arith.select %139, %138, %86 : vector<72x128xi1>, vector<72x128xf32>
    %141 = vector.broadcast %98 : f32 to vector<72x128xf32>
    %142 = arith.select %139, %141, %88 : vector<72x128xi1>, vector<72x128xf32>
    %143 = vector.broadcast %100 : f32 to vector<72x128xf32>
    %144 = arith.select %139, %143, %90 : vector<72x128xi1>, vector<72x128xf32>
    %145 = vector.broadcast %102 : f32 to vector<72x128xf32>
    %146 = arith.select %139, %145, %92 : vector<72x128xi1>, vector<72x128xf32>
    %147 = vector.broadcast %104 : f32 to vector<72x128xf32>
    %148 = arith.select %139, %147, %94 : vector<72x128xi1>, vector<72x128xf32>
    %149 = vector.broadcast %106 : f32 to vector<72x128xf32>
    %150 = arith.select %139, %149, %96 : vector<72x128xi1>, vector<72x128xf32>
    %151 = arith.index_cast %arg0 : i32 to index
    %c10 = arith.constant 10 : index
    %152 = memref.load %arg8[%151, %c10] : memref<2x40xf32, #tpu.memory_space<smem>>
    %153 = arith.index_cast %arg0 : i32 to index
    %c11 = arith.constant 11 : index
    %154 = memref.load %arg8[%153, %c11] : memref<2x40xf32, #tpu.memory_space<smem>>
    %155 = arith.index_cast %arg0 : i32 to index
    %c12 = arith.constant 12 : index
    %156 = memref.load %arg8[%155, %c12] : memref<2x40xf32, #tpu.memory_space<smem>>
    %157 = arith.index_cast %arg0 : i32 to index
    %c13 = arith.constant 13 : index
    %158 = memref.load %arg8[%157, %c13] : memref<2x40xf32, #tpu.memory_space<smem>>
    %159 = arith.index_cast %arg0 : i32 to index
    %c14 = arith.constant 14 : index
    %160 = memref.load %arg8[%159, %c14] : memref<2x40xf32, #tpu.memory_space<smem>>
    %cst_46 = arith.constant -1.000000e+00 : f32
    %161 = arith.cmpf one, %160, %cst_46 : f32
    %162 = arith.extui %161 : i1 to i32
    %163 = arith.sitofp %162 : i32 to f32
    %164 = vector.broadcast %156 : f32 to vector<72x128xf32>
    %165 = arith.minimumf %33, %164 : vector<72x128xf32>
    %166 = vector.broadcast %152 : f32 to vector<72x128xf32>
    %167 = arith.maximumf %29, %166 : vector<72x128xf32>
    %168 = arith.subf %165, %167 : vector<72x128xf32>
    %cst_47 = arith.constant 0.000000e+00 : f32
    %169 = vector.broadcast %cst_47 : f32 to vector<72x128xf32>
    %170 = arith.maximumf %168, %169 : vector<72x128xf32>
    %171 = vector.broadcast %158 : f32 to vector<72x128xf32>
    %172 = arith.minimumf %31, %171 : vector<72x128xf32>
    %173 = vector.broadcast %154 : f32 to vector<72x128xf32>
    %174 = arith.maximumf %27, %173 : vector<72x128xf32>
    %175 = arith.subf %172, %174 : vector<72x128xf32>
    %cst_48 = arith.constant 0.000000e+00 : f32
    %176 = vector.broadcast %cst_48 : f32 to vector<72x128xf32>
    %177 = arith.maximumf %175, %176 : vector<72x128xf32>
    %178 = arith.mulf %170, %177 : vector<72x128xf32>
    %179 = arith.subf %156, %152 : f32
    %180 = arith.subf %158, %154 : f32
    %181 = arith.mulf %179, %180 : f32
    %182 = vector.broadcast %181 : f32 to vector<72x128xf32>
    %183 = arith.addf %36, %182 : vector<72x128xf32>
    %184 = arith.subf %183, %178 : vector<72x128xf32>
    %cst_49 = arith.constant 9.99999993E-9 : f32
    %185 = vector.broadcast %cst_49 : f32 to vector<72x128xf32>
    %186 = arith.maximumf %184, %185 : vector<72x128xf32>
    %187 = arith.divf %178, %186 : vector<72x128xf32>
    %188 = vector.broadcast %163 : f32 to vector<72x128xf32>
    %189 = arith.mulf %187, %188 : vector<72x128xf32>
    %cst_50 = arith.constant 1.000000e+00 : f32
    %190 = arith.subf %163, %cst_50 : f32
    %191 = vector.broadcast %190 : f32 to vector<72x128xf32>
    %192 = arith.addf %189, %191 : vector<72x128xf32>
    %193 = arith.cmpf ogt, %192, %140 : vector<72x128xf32>
    %194 = arith.select %193, %192, %140 : vector<72x128xi1>, vector<72x128xf32>
    %195 = vector.broadcast %152 : f32 to vector<72x128xf32>
    %196 = arith.select %193, %195, %142 : vector<72x128xi1>, vector<72x128xf32>
    %197 = vector.broadcast %154 : f32 to vector<72x128xf32>
    %198 = arith.select %193, %197, %144 : vector<72x128xi1>, vector<72x128xf32>
    %199 = vector.broadcast %156 : f32 to vector<72x128xf32>
    %200 = arith.select %193, %199, %146 : vector<72x128xi1>, vector<72x128xf32>
    %201 = vector.broadcast %158 : f32 to vector<72x128xf32>
    %202 = arith.select %193, %201, %148 : vector<72x128xi1>, vector<72x128xf32>
    %203 = vector.broadcast %160 : f32 to vector<72x128xf32>
    %204 = arith.select %193, %203, %150 : vector<72x128xi1>, vector<72x128xf32>
    %205 = arith.index_cast %arg0 : i32 to index
    %c15 = arith.constant 15 : index
    %206 = memref.load %arg8[%205, %c15] : memref<2x40xf32, #tpu.memory_space<smem>>
    %207 = arith.index_cast %arg0 : i32 to index
    %c16 = arith.constant 16 : index
    %208 = memref.load %arg8[%207, %c16] : memref<2x40xf32, #tpu.memory_space<smem>>
    %209 = arith.index_cast %arg0 : i32 to index
    %c17 = arith.constant 17 : index
    %210 = memref.load %arg8[%209, %c17] : memref<2x40xf32, #tpu.memory_space<smem>>
    %211 = arith.index_cast %arg0 : i32 to index
    %c18 = arith.constant 18 : index
    %212 = memref.load %arg8[%211, %c18] : memref<2x40xf32, #tpu.memory_space<smem>>
    %213 = arith.index_cast %arg0 : i32 to index
    %c19 = arith.constant 19 : index
    %214 = memref.load %arg8[%213, %c19] : memref<2x40xf32, #tpu.memory_space<smem>>
    %cst_51 = arith.constant -1.000000e+00 : f32
    %215 = arith.cmpf one, %214, %cst_51 : f32
    %216 = arith.extui %215 : i1 to i32
    %217 = arith.sitofp %216 : i32 to f32
    %218 = vector.broadcast %210 : f32 to vector<72x128xf32>
    %219 = arith.minimumf %33, %218 : vector<72x128xf32>
    %220 = vector.broadcast %206 : f32 to vector<72x128xf32>
    %221 = arith.maximumf %29, %220 : vector<72x128xf32>
    %222 = arith.subf %219, %221 : vector<72x128xf32>
    %cst_52 = arith.constant 0.000000e+00 : f32
    %223 = vector.broadcast %cst_52 : f32 to vector<72x128xf32>
    %224 = arith.maximumf %222, %223 : vector<72x128xf32>
    %225 = vector.broadcast %212 : f32 to vector<72x128xf32>
    %226 = arith.minimumf %31, %225 : vector<72x128xf32>
    %227 = vector.broadcast %208 : f32 to vector<72x128xf32>
    %228 = arith.maximumf %27, %227 : vector<72x128xf32>
    %229 = arith.subf %226, %228 : vector<72x128xf32>
    %cst_53 = arith.constant 0.000000e+00 : f32
    %230 = vector.broadcast %cst_53 : f32 to vector<72x128xf32>
    %231 = arith.maximumf %229, %230 : vector<72x128xf32>
    %232 = arith.mulf %224, %231 : vector<72x128xf32>
    %233 = arith.subf %210, %206 : f32
    %234 = arith.subf %212, %208 : f32
    %235 = arith.mulf %233, %234 : f32
    %236 = vector.broadcast %235 : f32 to vector<72x128xf32>
    %237 = arith.addf %36, %236 : vector<72x128xf32>
    %238 = arith.subf %237, %232 : vector<72x128xf32>
    %cst_54 = arith.constant 9.99999993E-9 : f32
    %239 = vector.broadcast %cst_54 : f32 to vector<72x128xf32>
    %240 = arith.maximumf %238, %239 : vector<72x128xf32>
    %241 = arith.divf %232, %240 : vector<72x128xf32>
    %242 = vector.broadcast %217 : f32 to vector<72x128xf32>
    %243 = arith.mulf %241, %242 : vector<72x128xf32>
    %cst_55 = arith.constant 1.000000e+00 : f32
    %244 = arith.subf %217, %cst_55 : f32
    %245 = vector.broadcast %244 : f32 to vector<72x128xf32>
    %246 = arith.addf %243, %245 : vector<72x128xf32>
    %247 = arith.cmpf ogt, %246, %194 : vector<72x128xf32>
    %248 = arith.select %247, %246, %194 : vector<72x128xi1>, vector<72x128xf32>
    %249 = vector.broadcast %206 : f32 to vector<72x128xf32>
    %250 = arith.select %247, %249, %196 : vector<72x128xi1>, vector<72x128xf32>
    %251 = vector.broadcast %208 : f32 to vector<72x128xf32>
    %252 = arith.select %247, %251, %198 : vector<72x128xi1>, vector<72x128xf32>
    %253 = vector.broadcast %210 : f32 to vector<72x128xf32>
    %254 = arith.select %247, %253, %200 : vector<72x128xi1>, vector<72x128xf32>
    %255 = vector.broadcast %212 : f32 to vector<72x128xf32>
    %256 = arith.select %247, %255, %202 : vector<72x128xi1>, vector<72x128xf32>
    %257 = vector.broadcast %214 : f32 to vector<72x128xf32>
    %258 = arith.select %247, %257, %204 : vector<72x128xi1>, vector<72x128xf32>
    %259 = arith.index_cast %arg0 : i32 to index
    %c20 = arith.constant 20 : index
    %260 = memref.load %arg8[%259, %c20] : memref<2x40xf32, #tpu.memory_space<smem>>
    %261 = arith.index_cast %arg0 : i32 to index
    %c21 = arith.constant 21 : index
    %262 = memref.load %arg8[%261, %c21] : memref<2x40xf32, #tpu.memory_space<smem>>
    %263 = arith.index_cast %arg0 : i32 to index
    %c22 = arith.constant 22 : index
    %264 = memref.load %arg8[%263, %c22] : memref<2x40xf32, #tpu.memory_space<smem>>
    %265 = arith.index_cast %arg0 : i32 to index
    %c23 = arith.constant 23 : index
    %266 = memref.load %arg8[%265, %c23] : memref<2x40xf32, #tpu.memory_space<smem>>
    %267 = arith.index_cast %arg0 : i32 to index
    %c24 = arith.constant 24 : index
    %268 = memref.load %arg8[%267, %c24] : memref<2x40xf32, #tpu.memory_space<smem>>
    %cst_56 = arith.constant -1.000000e+00 : f32
    %269 = arith.cmpf one, %268, %cst_56 : f32
    %270 = arith.extui %269 : i1 to i32
    %271 = arith.sitofp %270 : i32 to f32
    %272 = vector.broadcast %264 : f32 to vector<72x128xf32>
    %273 = arith.minimumf %33, %272 : vector<72x128xf32>
    %274 = vector.broadcast %260 : f32 to vector<72x128xf32>
    %275 = arith.maximumf %29, %274 : vector<72x128xf32>
    %276 = arith.subf %273, %275 : vector<72x128xf32>
    %cst_57 = arith.constant 0.000000e+00 : f32
    %277 = vector.broadcast %cst_57 : f32 to vector<72x128xf32>
    %278 = arith.maximumf %276, %277 : vector<72x128xf32>
    %279 = vector.broadcast %266 : f32 to vector<72x128xf32>
    %280 = arith.minimumf %31, %279 : vector<72x128xf32>
    %281 = vector.broadcast %262 : f32 to vector<72x128xf32>
    %282 = arith.maximumf %27, %281 : vector<72x128xf32>
    %283 = arith.subf %280, %282 : vector<72x128xf32>
    %cst_58 = arith.constant 0.000000e+00 : f32
    %284 = vector.broadcast %cst_58 : f32 to vector<72x128xf32>
    %285 = arith.maximumf %283, %284 : vector<72x128xf32>
    %286 = arith.mulf %278, %285 : vector<72x128xf32>
    %287 = arith.subf %264, %260 : f32
    %288 = arith.subf %266, %262 : f32
    %289 = arith.mulf %287, %288 : f32
    %290 = vector.broadcast %289 : f32 to vector<72x128xf32>
    %291 = arith.addf %36, %290 : vector<72x128xf32>
    %292 = arith.subf %291, %286 : vector<72x128xf32>
    %cst_59 = arith.constant 9.99999993E-9 : f32
    %293 = vector.broadcast %cst_59 : f32 to vector<72x128xf32>
    %294 = arith.maximumf %292, %293 : vector<72x128xf32>
    %295 = arith.divf %286, %294 : vector<72x128xf32>
    %296 = vector.broadcast %271 : f32 to vector<72x128xf32>
    %297 = arith.mulf %295, %296 : vector<72x128xf32>
    %cst_60 = arith.constant 1.000000e+00 : f32
    %298 = arith.subf %271, %cst_60 : f32
    %299 = vector.broadcast %298 : f32 to vector<72x128xf32>
    %300 = arith.addf %297, %299 : vector<72x128xf32>
    %301 = arith.cmpf ogt, %300, %248 : vector<72x128xf32>
    %302 = arith.select %301, %300, %248 : vector<72x128xi1>, vector<72x128xf32>
    %303 = vector.broadcast %260 : f32 to vector<72x128xf32>
    %304 = arith.select %301, %303, %250 : vector<72x128xi1>, vector<72x128xf32>
    %305 = vector.broadcast %262 : f32 to vector<72x128xf32>
    %306 = arith.select %301, %305, %252 : vector<72x128xi1>, vector<72x128xf32>
    %307 = vector.broadcast %264 : f32 to vector<72x128xf32>
    %308 = arith.select %301, %307, %254 : vector<72x128xi1>, vector<72x128xf32>
    %309 = vector.broadcast %266 : f32 to vector<72x128xf32>
    %310 = arith.select %301, %309, %256 : vector<72x128xi1>, vector<72x128xf32>
    %311 = vector.broadcast %268 : f32 to vector<72x128xf32>
    %312 = arith.select %301, %311, %258 : vector<72x128xi1>, vector<72x128xf32>
    %313 = arith.index_cast %arg0 : i32 to index
    %c25 = arith.constant 25 : index
    %314 = memref.load %arg8[%313, %c25] : memref<2x40xf32, #tpu.memory_space<smem>>
    %315 = arith.index_cast %arg0 : i32 to index
    %c26 = arith.constant 26 : index
    %316 = memref.load %arg8[%315, %c26] : memref<2x40xf32, #tpu.memory_space<smem>>
    %317 = arith.index_cast %arg0 : i32 to index
    %c27 = arith.constant 27 : index
    %318 = memref.load %arg8[%317, %c27] : memref<2x40xf32, #tpu.memory_space<smem>>
    %319 = arith.index_cast %arg0 : i32 to index
    %c28 = arith.constant 28 : index
    %320 = memref.load %arg8[%319, %c28] : memref<2x40xf32, #tpu.memory_space<smem>>
    %321 = arith.index_cast %arg0 : i32 to index
    %c29 = arith.constant 29 : index
    %322 = memref.load %arg8[%321, %c29] : memref<2x40xf32, #tpu.memory_space<smem>>
    %cst_61 = arith.constant -1.000000e+00 : f32
    %323 = arith.cmpf one, %322, %cst_61 : f32
    %324 = arith.extui %323 : i1 to i32
    %325 = arith.sitofp %324 : i32 to f32
    %326 = vector.broadcast %318 : f32 to vector<72x128xf32>
    %327 = arith.minimumf %33, %326 : vector<72x128xf32>
    %328 = vector.broadcast %314 : f32 to vector<72x128xf32>
    %329 = arith.maximumf %29, %328 : vector<72x128xf32>
    %330 = arith.subf %327, %329 : vector<72x128xf32>
    %cst_62 = arith.constant 0.000000e+00 : f32
    %331 = vector.broadcast %cst_62 : f32 to vector<72x128xf32>
    %332 = arith.maximumf %330, %331 : vector<72x128xf32>
    %333 = vector.broadcast %320 : f32 to vector<72x128xf32>
    %334 = arith.minimumf %31, %333 : vector<72x128xf32>
    %335 = vector.broadcast %316 : f32 to vector<72x128xf32>
    %336 = arith.maximumf %27, %335 : vector<72x128xf32>
    %337 = arith.subf %334, %336 : vector<72x128xf32>
    %cst_63 = arith.constant 0.000000e+00 : f32
    %338 = vector.broadcast %cst_63 : f32 to vector<72x128xf32>
    %339 = arith.maximumf %337, %338 : vector<72x128xf32>
    %340 = arith.mulf %332, %339 : vector<72x128xf32>
    %341 = arith.subf %318, %314 : f32
    %342 = arith.subf %320, %316 : f32
    %343 = arith.mulf %341, %342 : f32
    %344 = vector.broadcast %343 : f32 to vector<72x128xf32>
    %345 = arith.addf %36, %344 : vector<72x128xf32>
    %346 = arith.subf %345, %340 : vector<72x128xf32>
    %cst_64 = arith.constant 9.99999993E-9 : f32
    %347 = vector.broadcast %cst_64 : f32 to vector<72x128xf32>
    %348 = arith.maximumf %346, %347 : vector<72x128xf32>
    %349 = arith.divf %340, %348 : vector<72x128xf32>
    %350 = vector.broadcast %325 : f32 to vector<72x128xf32>
    %351 = arith.mulf %349, %350 : vector<72x128xf32>
    %cst_65 = arith.constant 1.000000e+00 : f32
    %352 = arith.subf %325, %cst_65 : f32
    %353 = vector.broadcast %352 : f32 to vector<72x128xf32>
    %354 = arith.addf %351, %353 : vector<72x128xf32>
    %355 = arith.cmpf ogt, %354, %302 : vector<72x128xf32>
    %356 = arith.select %355, %354, %302 : vector<72x128xi1>, vector<72x128xf32>
    %357 = vector.broadcast %314 : f32 to vector<72x128xf32>
    %358 = arith.select %355, %357, %304 : vector<72x128xi1>, vector<72x128xf32>
    %359 = vector.broadcast %316 : f32 to vector<72x128xf32>
    %360 = arith.select %355, %359, %306 : vector<72x128xi1>, vector<72x128xf32>
    %361 = vector.broadcast %318 : f32 to vector<72x128xf32>
    %362 = arith.select %355, %361, %308 : vector<72x128xi1>, vector<72x128xf32>
    %363 = vector.broadcast %320 : f32 to vector<72x128xf32>
    %364 = arith.select %355, %363, %310 : vector<72x128xi1>, vector<72x128xf32>
    %365 = vector.broadcast %322 : f32 to vector<72x128xf32>
    %366 = arith.select %355, %365, %312 : vector<72x128xi1>, vector<72x128xf32>
    %367 = arith.index_cast %arg0 : i32 to index
    %c30 = arith.constant 30 : index
    %368 = memref.load %arg8[%367, %c30] : memref<2x40xf32, #tpu.memory_space<smem>>
    %369 = arith.index_cast %arg0 : i32 to index
    %c31 = arith.constant 31 : index
    %370 = memref.load %arg8[%369, %c31] : memref<2x40xf32, #tpu.memory_space<smem>>
    %371 = arith.index_cast %arg0 : i32 to index
    %c32 = arith.constant 32 : index
    %372 = memref.load %arg8[%371, %c32] : memref<2x40xf32, #tpu.memory_space<smem>>
    %373 = arith.index_cast %arg0 : i32 to index
    %c33 = arith.constant 33 : index
    %374 = memref.load %arg8[%373, %c33] : memref<2x40xf32, #tpu.memory_space<smem>>
    %375 = arith.index_cast %arg0 : i32 to index
    %c34 = arith.constant 34 : index
    %376 = memref.load %arg8[%375, %c34] : memref<2x40xf32, #tpu.memory_space<smem>>
    %cst_66 = arith.constant -1.000000e+00 : f32
    %377 = arith.cmpf one, %376, %cst_66 : f32
    %378 = arith.extui %377 : i1 to i32
    %379 = arith.sitofp %378 : i32 to f32
    %380 = vector.broadcast %372 : f32 to vector<72x128xf32>
    %381 = arith.minimumf %33, %380 : vector<72x128xf32>
    %382 = vector.broadcast %368 : f32 to vector<72x128xf32>
    %383 = arith.maximumf %29, %382 : vector<72x128xf32>
    %384 = arith.subf %381, %383 : vector<72x128xf32>
    %cst_67 = arith.constant 0.000000e+00 : f32
    %385 = vector.broadcast %cst_67 : f32 to vector<72x128xf32>
    %386 = arith.maximumf %384, %385 : vector<72x128xf32>
    %387 = vector.broadcast %374 : f32 to vector<72x128xf32>
    %388 = arith.minimumf %31, %387 : vector<72x128xf32>
    %389 = vector.broadcast %370 : f32 to vector<72x128xf32>
    %390 = arith.maximumf %27, %389 : vector<72x128xf32>
    %391 = arith.subf %388, %390 : vector<72x128xf32>
    %cst_68 = arith.constant 0.000000e+00 : f32
    %392 = vector.broadcast %cst_68 : f32 to vector<72x128xf32>
    %393 = arith.maximumf %391, %392 : vector<72x128xf32>
    %394 = arith.mulf %386, %393 : vector<72x128xf32>
    %395 = arith.subf %372, %368 : f32
    %396 = arith.subf %374, %370 : f32
    %397 = arith.mulf %395, %396 : f32
    %398 = vector.broadcast %397 : f32 to vector<72x128xf32>
    %399 = arith.addf %36, %398 : vector<72x128xf32>
    %400 = arith.subf %399, %394 : vector<72x128xf32>
    %cst_69 = arith.constant 9.99999993E-9 : f32
    %401 = vector.broadcast %cst_69 : f32 to vector<72x128xf32>
    %402 = arith.maximumf %400, %401 : vector<72x128xf32>
    %403 = arith.divf %394, %402 : vector<72x128xf32>
    %404 = vector.broadcast %379 : f32 to vector<72x128xf32>
    %405 = arith.mulf %403, %404 : vector<72x128xf32>
    %cst_70 = arith.constant 1.000000e+00 : f32
    %406 = arith.subf %379, %cst_70 : f32
    %407 = vector.broadcast %406 : f32 to vector<72x128xf32>
    %408 = arith.addf %405, %407 : vector<72x128xf32>
    %409 = arith.cmpf ogt, %408, %356 : vector<72x128xf32>
    %410 = arith.select %409, %408, %356 : vector<72x128xi1>, vector<72x128xf32>
    %411 = vector.broadcast %368 : f32 to vector<72x128xf32>
    %412 = arith.select %409, %411, %358 : vector<72x128xi1>, vector<72x128xf32>
    %413 = vector.broadcast %370 : f32 to vector<72x128xf32>
    %414 = arith.select %409, %413, %360 : vector<72x128xi1>, vector<72x128xf32>
    %415 = vector.broadcast %372 : f32 to vector<72x128xf32>
    %416 = arith.select %409, %415, %362 : vector<72x128xi1>, vector<72x128xf32>
    %417 = vector.broadcast %374 : f32 to vector<72x128xf32>
    %418 = arith.select %409, %417, %364 : vector<72x128xi1>, vector<72x128xf32>
    %419 = vector.broadcast %376 : f32 to vector<72x128xf32>
    %420 = arith.select %409, %419, %366 : vector<72x128xi1>, vector<72x128xf32>
    %421 = arith.index_cast %arg0 : i32 to index
    %c35 = arith.constant 35 : index
    %422 = memref.load %arg8[%421, %c35] : memref<2x40xf32, #tpu.memory_space<smem>>
    %423 = arith.index_cast %arg0 : i32 to index
    %c36 = arith.constant 36 : index
    %424 = memref.load %arg8[%423, %c36] : memref<2x40xf32, #tpu.memory_space<smem>>
    %425 = arith.index_cast %arg0 : i32 to index
    %c37 = arith.constant 37 : index
    %426 = memref.load %arg8[%425, %c37] : memref<2x40xf32, #tpu.memory_space<smem>>
    %427 = arith.index_cast %arg0 : i32 to index
    %c38 = arith.constant 38 : index
    %428 = memref.load %arg8[%427, %c38] : memref<2x40xf32, #tpu.memory_space<smem>>
    %429 = arith.index_cast %arg0 : i32 to index
    %c39 = arith.constant 39 : index
    %430 = memref.load %arg8[%429, %c39] : memref<2x40xf32, #tpu.memory_space<smem>>
    %cst_71 = arith.constant -1.000000e+00 : f32
    %431 = arith.cmpf one, %430, %cst_71 : f32
    %432 = arith.extui %431 : i1 to i32
    %433 = arith.sitofp %432 : i32 to f32
    %434 = vector.broadcast %426 : f32 to vector<72x128xf32>
    %435 = arith.minimumf %33, %434 : vector<72x128xf32>
    %436 = vector.broadcast %422 : f32 to vector<72x128xf32>
    %437 = arith.maximumf %29, %436 : vector<72x128xf32>
    %438 = arith.subf %435, %437 : vector<72x128xf32>
    %cst_72 = arith.constant 0.000000e+00 : f32
    %439 = vector.broadcast %cst_72 : f32 to vector<72x128xf32>
    %440 = arith.maximumf %438, %439 : vector<72x128xf32>
    %441 = vector.broadcast %428 : f32 to vector<72x128xf32>
    %442 = arith.minimumf %31, %441 : vector<72x128xf32>
    %443 = vector.broadcast %424 : f32 to vector<72x128xf32>
    %444 = arith.maximumf %27, %443 : vector<72x128xf32>
    %445 = arith.subf %442, %444 : vector<72x128xf32>
    %cst_73 = arith.constant 0.000000e+00 : f32
    %446 = vector.broadcast %cst_73 : f32 to vector<72x128xf32>
    %447 = arith.maximumf %445, %446 : vector<72x128xf32>
    %448 = arith.mulf %440, %447 : vector<72x128xf32>
    %449 = arith.subf %426, %422 : f32
    %450 = arith.subf %428, %424 : f32
    %451 = arith.mulf %449, %450 : f32
    %452 = vector.broadcast %451 : f32 to vector<72x128xf32>
    %453 = arith.addf %36, %452 : vector<72x128xf32>
    %454 = arith.subf %453, %448 : vector<72x128xf32>
    %cst_74 = arith.constant 9.99999993E-9 : f32
    %455 = vector.broadcast %cst_74 : f32 to vector<72x128xf32>
    %456 = arith.maximumf %454, %455 : vector<72x128xf32>
    %457 = arith.divf %448, %456 : vector<72x128xf32>
    %458 = vector.broadcast %433 : f32 to vector<72x128xf32>
    %459 = arith.mulf %457, %458 : vector<72x128xf32>
    %cst_75 = arith.constant 1.000000e+00 : f32
    %460 = arith.subf %433, %cst_75 : f32
    %461 = vector.broadcast %460 : f32 to vector<72x128xf32>
    %462 = arith.addf %459, %461 : vector<72x128xf32>
    %463 = arith.cmpf ogt, %462, %410 : vector<72x128xf32>
    %464 = arith.select %463, %462, %410 : vector<72x128xi1>, vector<72x128xf32>
    %465 = vector.broadcast %422 : f32 to vector<72x128xf32>
    %466 = arith.select %463, %465, %412 : vector<72x128xi1>, vector<72x128xf32>
    %467 = vector.broadcast %424 : f32 to vector<72x128xf32>
    %468 = arith.select %463, %467, %414 : vector<72x128xi1>, vector<72x128xf32>
    %469 = vector.broadcast %426 : f32 to vector<72x128xf32>
    %470 = arith.select %463, %469, %416 : vector<72x128xi1>, vector<72x128xf32>
    %471 = vector.broadcast %428 : f32 to vector<72x128xf32>
    %472 = arith.select %463, %471, %418 : vector<72x128xi1>, vector<72x128xf32>
    %473 = vector.broadcast %430 : f32 to vector<72x128xf32>
    %474 = arith.select %463, %473, %420 : vector<72x128xi1>, vector<72x128xf32>
    %cst_76 = arith.constant 5.000000e-01 : f32
    %475 = vector.broadcast %cst_76 : f32 to vector<72x128xf32>
    %476 = arith.cmpf oge, %464, %475 : vector<72x128xf32>
    %477 = arith.extui %476 : vector<72x128xi1> to vector<72x128xi32>
    %478 = arith.sitofp %477 : vector<72x128xi32> to vector<72x128xf32>
    %cst_77 = arith.constant 4.000000e-01 : f32
    %479 = vector.broadcast %cst_77 : f32 to vector<72x128xf32>
    %480 = arith.cmpf olt, %464, %479 : vector<72x128xf32>
    %481 = arith.ori %476, %480 : vector<72x128xi1>
    %482 = arith.extui %481 : vector<72x128xi1> to vector<72x128xi32>
    %483 = arith.sitofp %482 : vector<72x128xi32> to vector<72x128xf32>
    %484 = tpu.iota {dimensions = array<i32: 0>} : vector<72x128xi32>
    %c7_i32 = arith.constant 7 : i32
    %485 = vector.broadcast %c7_i32 : i32 to vector<72x128xi32>
    %486 = arith.andi %484, %485 : vector<72x128xi32>
    %487 = arith.fptosi %474 : vector<72x128xf32> to vector<72x128xi32>
    %488 = arith.cmpi eq, %486, %487 : vector<72x128xi32>
    %489 = arith.andi %476, %488 : vector<72x128xi1>
    %cst_78 = arith.constant 1.000000e+00 : f32
    %490 = vector.broadcast %cst_78 : f32 to vector<72x128xf32>
    %491 = arith.subf %490, %25 : vector<72x128xf32>
    %492 = arith.select %489, %25, %491 : vector<72x128xi1>, vector<72x128xf32>
    %cst_79 = arith.constant 1.000000e+00 : f32
    %493 = vector.broadcast %cst_79 : f32 to vector<72x128xf32>
    %494 = arith.subf %493, %25 : vector<72x128xf32>
    %495 = arith.select %489, %494, %25 : vector<72x128xi1>, vector<72x128xf32>
    %cst_80 = arith.constant 2.500000e-01 : f32
    %cst_81 = arith.constant 7.500000e-01 : f32
    %496 = vector.broadcast %cst_80 : f32 to vector<72x128xf32>
    %497 = vector.broadcast %cst_81 : f32 to vector<72x128xf32>
    %498 = arith.select %489, %496, %497 : vector<72x128xi1>, vector<72x128xf32>
    %499 = arith.mulf %498, %495 : vector<72x128xf32>
    %500 = arith.mulf %499, %495 : vector<72x128xf32>
    %cst_82 = arith.constant 0.000000e+00 : f32
    %501 = vector.broadcast %cst_82 : f32 to vector<72x128xf32>
    %502 = arith.subf %501, %500 : vector<72x128xf32>
    %503 = math.log %492 : vector<72x128xf32>
    %504 = arith.mulf %502, %503 : vector<72x128xf32>
    %505 = arith.mulf %504, %483 : vector<72x128xf32>
    %506 = vector.shape_cast %505 : vector<72x128xf32> to vector<1x72x128xf32>
    %cst_83 = arith.constant dense<0.000000e+00> : vector<1xf32>
    %507 = vector.multi_reduction <add>, %506, %cst_83 [1, 2] : vector<1x72x128xf32> to vector<1xf32>
    %508 = vector.shape_cast %507 : vector<1xf32> to vector<1x1x1xf32>
    %509 = vector.extract %508[0, 0, 0] : f32 from vector<1x1x1xf32>
    %cst_84 = arith.constant 5.000000e-01 : f32
    %510 = vector.broadcast %cst_84 : f32 to vector<72x128xf32>
    %511 = arith.mulf %510, %34 : vector<72x128xf32>
    %512 = arith.addf %29, %511 : vector<72x128xf32>
    %cst_85 = arith.constant 5.000000e-01 : f32
    %513 = vector.broadcast %cst_85 : f32 to vector<72x128xf32>
    %514 = arith.mulf %513, %35 : vector<72x128xf32>
    %515 = arith.addf %27, %514 : vector<72x128xf32>
    %516 = arith.subf %470, %466 : vector<72x128xf32>
    %517 = arith.subf %472, %468 : vector<72x128xf32>
    %cst_86 = arith.constant 5.000000e-01 : f32
    %518 = vector.broadcast %cst_86 : f32 to vector<72x128xf32>
    %519 = arith.mulf %518, %516 : vector<72x128xf32>
    %520 = arith.addf %466, %519 : vector<72x128xf32>
    %cst_87 = arith.constant 5.000000e-01 : f32
    %521 = vector.broadcast %cst_87 : f32 to vector<72x128xf32>
    %522 = arith.mulf %521, %517 : vector<72x128xf32>
    %523 = arith.addf %468, %522 : vector<72x128xf32>
    %cst_88 = arith.constant 1.000000e+00 : f32
    %524 = vector.broadcast %cst_88 : f32 to vector<72x128xf32>
    %525 = arith.maximumf %516, %524 : vector<72x128xf32>
    %cst_89 = arith.constant 1.000000e+00 : f32
    %526 = vector.broadcast %cst_89 : f32 to vector<72x128xf32>
    %527 = arith.maximumf %517, %526 : vector<72x128xf32>
    %528 = arith.subf %523, %515 : vector<72x128xf32>
    %529 = arith.divf %528, %35 : vector<72x128xf32>
    %530 = arith.subf %520, %512 : vector<72x128xf32>
    %531 = arith.divf %530, %34 : vector<72x128xf32>
    %532 = arith.divf %527, %35 : vector<72x128xf32>
    %533 = math.log %532 : vector<72x128xf32>
    %534 = arith.divf %525, %34 : vector<72x128xf32>
    %535 = math.log %534 : vector<72x128xf32>
    %c0_i32_90 = arith.constant 0 : i32
    %536 = vector.broadcast %c0_i32_90 : i32 to vector<72x128xi32>
    %537 = arith.cmpi eq, %486, %536 : vector<72x128xi32>
    %cst_91 = arith.constant 0.000000e+00 : f32
    %538 = vector.broadcast %cst_91 : f32 to vector<72x128xf32>
    %539 = arith.select %537, %529, %538 : vector<72x128xi1>, vector<72x128xf32>
    %c1_i32 = arith.constant 1 : i32
    %540 = vector.broadcast %c1_i32 : i32 to vector<72x128xi32>
    %541 = arith.cmpi eq, %486, %540 : vector<72x128xi32>
    %cst_92 = arith.constant 0.000000e+00 : f32
    %542 = vector.broadcast %cst_92 : f32 to vector<72x128xf32>
    %543 = arith.select %541, %531, %542 : vector<72x128xi1>, vector<72x128xf32>
    %544 = arith.addf %539, %543 : vector<72x128xf32>
    %c2_i32 = arith.constant 2 : i32
    %545 = vector.broadcast %c2_i32 : i32 to vector<72x128xi32>
    %546 = arith.cmpi eq, %486, %545 : vector<72x128xi32>
    %cst_93 = arith.constant 0.000000e+00 : f32
    %547 = vector.broadcast %cst_93 : f32 to vector<72x128xf32>
    %548 = arith.select %546, %533, %547 : vector<72x128xi1>, vector<72x128xf32>
    %549 = arith.addf %544, %548 : vector<72x128xf32>
    %c3_i32 = arith.constant 3 : i32
    %550 = vector.broadcast %c3_i32 : i32 to vector<72x128xi32>
    %551 = arith.cmpi eq, %486, %550 : vector<72x128xi32>
    %cst_94 = arith.constant 0.000000e+00 : f32
    %552 = vector.broadcast %cst_94 : f32 to vector<72x128xf32>
    %553 = arith.select %551, %535, %552 : vector<72x128xi1>, vector<72x128xf32>
    %554 = arith.addf %549, %553 : vector<72x128xf32>
    %555 = arith.subf %554, %14 : vector<72x128xf32>
    %556 = math.absf %555 : vector<72x128xf32>
    %cst_95 = arith.constant 0.111111112 : f32
    %557 = vector.broadcast %cst_95 : f32 to vector<72x128xf32>
    %558 = arith.cmpf ole, %556, %557 : vector<72x128xf32>
    %cst_96 = arith.constant 4.500000e+00 : f32
    %559 = vector.broadcast %cst_96 : f32 to vector<72x128xf32>
    %560 = arith.mulf %559, %556 : vector<72x128xf32>
    %561 = arith.mulf %560, %556 : vector<72x128xf32>
    %cst_97 = arith.constant 0.055555556 : f32
    %562 = vector.broadcast %cst_97 : f32 to vector<72x128xf32>
    %563 = arith.subf %556, %562 : vector<72x128xf32>
    %564 = arith.select %558, %561, %563 : vector<72x128xi1>, vector<72x128xf32>
    %565 = arith.mulf %564, %478 : vector<72x128xf32>
    %566 = vector.shape_cast %565 : vector<72x128xf32> to vector<1x72x128xf32>
    %cst_98 = arith.constant dense<0.000000e+00> : vector<1xf32>
    %567 = vector.multi_reduction <add>, %566, %cst_98 [1, 2] : vector<1x72x128xf32> to vector<1xf32>
    %568 = vector.shape_cast %567 : vector<1xf32> to vector<1x1x1xf32>
    %569 = vector.extract %568[0, 0, 0] : f32 from vector<1x1x1xf32>
    %c0_99 = arith.constant 0 : index
    %570 = memref.load %arg11[%c0_99] : memref<3xf32, #tpu.memory_space<smem>>
    %571 = arith.addf %570, %509 : f32
    %c0_100 = arith.constant 0 : index
    %572 = memref.load %arg11[%c0_100] : memref<3xf32, #tpu.memory_space<smem>>
    memref.store %571, %arg11[%c0_100] : memref<3xf32, #tpu.memory_space<smem>>
    %c1_101 = arith.constant 1 : index
    %573 = memref.load %arg11[%c1_101] : memref<3xf32, #tpu.memory_space<smem>>
    %574 = arith.addf %573, %569 : f32
    %c1_102 = arith.constant 1 : index
    %575 = memref.load %arg11[%c1_102] : memref<3xf32, #tpu.memory_space<smem>>
    memref.store %574, %arg11[%c1_102] : memref<3xf32, #tpu.memory_space<smem>>
    %c2_103 = arith.constant 2 : index
    %576 = memref.load %arg11[%c2_103] : memref<3xf32, #tpu.memory_space<smem>>
    %577 = vector.shape_cast %478 : vector<72x128xf32> to vector<1x72x128xf32>
    %cst_104 = arith.constant dense<0.000000e+00> : vector<1xf32>
    %578 = vector.multi_reduction <add>, %577, %cst_104 [1, 2] : vector<1x72x128xf32> to vector<1xf32>
    %579 = vector.shape_cast %578 : vector<1xf32> to vector<1x1x1xf32>
    %580 = vector.extract %579[0, 0, 0] : f32 from vector<1x1x1xf32>
    %cst_105 = arith.constant 1.250000e-01 : f32
    %581 = arith.mulf %580, %cst_105 : f32
    %582 = arith.addf %576, %581 : f32
    %c2_106 = arith.constant 2 : index
    %583 = memref.load %arg11[%c2_106] : memref<3xf32, #tpu.memory_space<smem>>
    memref.store %582, %arg11[%c2_106] : memref<3xf32, #tpu.memory_space<smem>>
    %c1_i32_107 = arith.constant 1 : i32
    %584 = arith.cmpi eq, %arg1, %c1_i32_107 : i32
    %585 = arith.extui %584 : i1 to i32
    %c0_i32_108 = arith.constant 0 : i32
    %586 = arith.cmpi ne, %585, %c0_i32_108 : i32
    scf.if %586 {
      %c2_109 = arith.constant 2 : index
      %587 = memref.load %arg11[%c2_109] : memref<3xf32, #tpu.memory_space<smem>>
      %c0_110 = arith.constant 0 : index
      %588 = memref.load %arg11[%c0_110] : memref<3xf32, #tpu.memory_space<smem>>
      %cst_111 = arith.constant 1.000000e+00 : f32
      %589 = arith.maximumf %587, %cst_111 : f32
      %590 = arith.divf %588, %589 : f32
      %591 = arith.index_cast %arg0 : i32 to index
      %592 = memref.load %arg9[%591] : memref<2xf32, #tpu.memory_space<smem>>
      memref.store %590, %arg9[%591] : memref<2xf32, #tpu.memory_space<smem>>
      %cst_112 = arith.constant 0.000000e+00 : f32
      %593 = arith.cmpf ogt, %587, %cst_112 : f32
      %c1_113 = arith.constant 1 : index
      %594 = memref.load %arg11[%c1_113] : memref<3xf32, #tpu.memory_space<smem>>
      %cst_114 = arith.constant 4.000000e+00 : f32
      %595 = arith.mulf %cst_114, %587 : f32
      %cst_115 = arith.constant 1.000000e+00 : f32
      %596 = arith.maximumf %595, %cst_115 : f32
      %597 = arith.divf %594, %596 : f32
      %cst_116 = arith.constant 0.000000e+00 : f32
      %598 = arith.select %593, %597, %cst_116 : f32
      %599 = arith.index_cast %arg0 : i32 to index
      %600 = memref.load %arg10[%599] : memref<2xf32, #tpu.memory_space<smem>>
      memref.store %598, %arg10[%599] : memref<2xf32, #tpu.memory_space<smem>>
    } else {
    }
    return
  }
  func.func @transform_0(%arg0: i32, %arg1: i32) -> (i32, i32, i32) {
    %c0_i32 = arith.constant 0 : i32
    %c0_i32_0 = arith.constant 0 : i32
    return %arg0, %c0_i32, %arg1 : i32, i32, i32
  }
  func.func @transform_1(%arg0: i32, %arg1: i32) -> (i32, i32) {
    %c0_i32 = arith.constant 0 : i32
    %c0_i32_0 = arith.constant 0 : i32
    %c0_i32_1 = arith.constant 0 : i32
    return %c0_i32, %c0_i32_0 : i32, i32
  }
  func.func @transform_2(%arg0: i32, %arg1: i32) -> (i32, i32) {
    %c0_i32 = arith.constant 0 : i32
    %c0_i32_0 = arith.constant 0 : i32
    %c0_i32_1 = arith.constant 0 : i32
    return %c0_i32, %c0_i32_0 : i32, i32
  }
  func.func @transform_3(%arg0: i32, %arg1: i32) -> (i32, i32) {
    %c0_i32 = arith.constant 0 : i32
    %c0_i32_0 = arith.constant 0 : i32
    %c0_i32_1 = arith.constant 0 : i32
    return %c0_i32, %c0_i32_0 : i32, i32
  }
  func.func @transform_4(%arg0: i32, %arg1: i32) -> (i32, i32) {
    %c0_i32 = arith.constant 0 : i32
    %c0_i32_0 = arith.constant 0 : i32
    %c0_i32_1 = arith.constant 0 : i32
    return %c0_i32, %c0_i32_0 : i32, i32
  }
  func.func @transform_5(%arg0: i32, %arg1: i32) -> (i32, i32, i32) {
    %c0_i32 = arith.constant 0 : i32
    %c0_i32_0 = arith.constant 0 : i32
    %c0_i32_1 = arith.constant 0 : i32
    return %c0_i32, %c0_i32_0, %arg1 : i32, i32, i32
  }
  func.func @transform_6(%arg0: i32, %arg1: i32) -> (i32, i32) {
    %c0_i32 = arith.constant 0 : i32
    %c0_i32_0 = arith.constant 0 : i32
    %c0_i32_1 = arith.constant 0 : i32
    return %c0_i32, %c0_i32_0 : i32, i32
  }
  func.func @transform_7(%arg0: i32, %arg1: i32) -> i32 {
    %c0_i32 = arith.constant 0 : i32
    %c0_i32_0 = arith.constant 0 : i32
    return %c0_i32 : i32
  }
  func.func @transform_8(%arg0: i32, %arg1: i32) -> i32 {
    %c0_i32 = arith.constant 0 : i32
    %c0_i32_0 = arith.constant 0 : i32
    return %c0_i32 : i32
  }
}

</mosaic_0001>

<bundles_post_ra>
// kernel: tpu_custom_call.1
= control target key start
LH: loop header
LB: loop body
LE: loop exit
PB: predicated region body
PF: predicated region fallthrough
CT: control target
= control target key end

     0   :  { %s9169_s0 = inlined_call_operand.vmem [shape: f32[2,4,256], index: 0, kind: input, shape index: {}]   ;;  %s9170_s1 = inlined_call_operand.vmem [shape: f32[72,4], index: 1, kind: input, shape index: {}]   ;;  %s9171_s2 = inlined_call_operand.vmem [shape: f32[72,1], index: 2, kind: input, shape index: {}]   ;;  %s9172_s3 = inlined_call_operand.vmem [shape: f32[72,4], index: 3, kind: input, shape index: {}]   ;;  %s9173_s4 = inlined_call_operand.vmem [shape: f32[72,1], index: 4, kind: input, shape index: {}]   ;;  %s9174_s5 = inlined_call_operand.hbm [shape: f32[4,72,256], index: 5, kind: input, shape index: {}]   ;;  %s9175_s6 = inlined_call_operand.vmem [shape: f32[2,40], index: 6, kind: input, shape index: {}]   ;;  %s9176_s7 = inlined_call_operand.hbm [shape: f32[2], index: 7, kind: output, shape index: {0}]   ;;  %s9177_s8 = inlined_call_operand.hbm [shape: f32[2], index: 8, kind: output, shape index: {1}]  }
   0x1   :  { %9546 = sst [smem:[#allocation123_spill]] %s9169_s0 }
   0x2   :  { %9547 = sst [smem:[#allocation124_spill]] %s9170_s1 }
   0x3   :  { %9548 = sst [smem:[#allocation125_spill]] %s9171_s2 }
   0x4   :  { %9549 = sst [smem:[#allocation126_spill]] %s9172_s3 }
   0x5   :  { %9550 = sst [smem:[#allocation127_spill]] %s9173_s4 }
   0x6   :  { %9551 = sst [smem:[#allocation128_spill]] %s9174_s5 }
   0x7   :  { %9552 = sst [smem:[#allocation129_spill]] %s9175_s6 }
   0x8   :  { %9553 = sst [smem:[#allocation130_spill]] %s9177_s8 }
   0x9   :  { %14 = vsyncpa [#allocation4], 0 }
   0xa   :  { %16 = vsyncpa [#allocation4 + $0x1], 0 }
   0xb   :  { %17 = vsyncpa [#allocation6], 0 }
   0xc   :  { %18 = vsyncpa [#allocation5], 0 }
   0xd   :  { %19 = vsyncpa [#allocation10], 0  ;;  %s4389_s27 = smov 0   ;;  %s4391_s28 = smov 0  }
   0xe   :  { %s4393_s29 = smov 0   ;;  %s4395_s30 = smov 0  }
   0xf   :  { %s4397_s9 = smov 0   ;;  %s4399_s10 = smov 0  }
  0x10   :  { %s4401_s11 = smov 0   ;;  %s4403_s12 = smov 0  }
  0x11 LB: > { %s9180_s13 = sadd.s32 4294967295, %s4329_s12   ;;  %s156_s14 = sadd.s32 1, %s4309_s29  ;;  %s4329_s12 = sphi %s4403_s12, %s25_s12   ;;  %s4325_s11 = sphi %s4401_s11, %s10456_s11   ;;  %s4321_s10 = sphi %s4399_s10, %s10455_s10   ;;  %s4317_s9 = sphi %s4397_s9, %s10454_s9   ;;  %s4313_s30 = sphi %s4395_s30, %s10453_s30   ;;  %s4309_s29 = sphi %s4393_s29, %s10452_s29   ;;  %s4305_s28 = sphi %s4391_s28, %s10451_s28   ;;  %s4301_s27 = sphi %s4389_s27, %s10450_s27  }
  0x12   : > { %p163_p0 = scmp.ne.s32.totalorder %s4309_s29, %s4305_s28  ;;  %p164_p1 = scmp.eq.s32.totalorder %s4329_s12, 0 }
  0x13   : > { %p169_p2 = scmp.ne.s32.totalorder %s4305_s28, %s4301_s27  ;;  %p4435_p3 = scmp.eq.s32.totalorder %s9180_s13, 0 }
  0x14   : > { %p165_p4 = por %p164_p1, %p163_p0  ;;  %p3581_p5 = scmp.ge.s32.totalorder %s4329_s12, 1 }
  0x15   : > { %p4442_p6 = por %p4435_p3, %p169_p2  ;;  %p243_p7 = scmp.lt.s32.totalorder %s4329_s12, 5 }
  0x16   : > { %s9556_s6 = sld [smem:[#allocation129_spill]]  ;;  %p3819_p10 = scmp.lt.s32.totalorder %s4329_s12, 4 }
  0x17   : > { %s9555_s16 = scalar_select %p4442_p6, 1, 0 }
  0x18   : > { %p4450_p8 = pnand %p3581_p5, %p243_p7  ;;  %p4459_p12 = pnand %p3819_p10, %p165_p4 }
  0x1a   : > { %s9557_s20 = scalar_select %p4450_p8, 1, 0 }
  0x1b   : > { %p3810_p9 = pneg %p4450_p8 }
  0x1c   : > { %s268_s19 = sshll.u32 %s9556_s6, 4  ;;  %s269_s19 = int_to_ptr.vmem [resolvable:$true] %s268_s19 }
  0x1d   : > { %p3811_p11 = pnand %p3810_p9, %p4435_p3  ;;  %s4182_s22 = scalar_lea.vmem %s269_s19, 32 }
  0x1e   : > { %p4183_p13 = scmp.ne.s32.totalorder %s269_s19, %s4182_s22  ;;  %p4190_p5 = scmp.lt.s32.totalorder %s269_s19, %s269_s19 }
  0x1f   : > { %p4184_p0 = pneg %p3811_p11  ;;  %p4191_p7 = scmp.lt.s32.totalorder %s4182_s22, %s4182_s22 }
  0x21   : > { %p4185_p1 = pnand %p4184_p0, %p4183_p13  ;;  %p4192_p6 = por %p4191_p7, %p4190_p5 }
  0x23   : > { %p4186_p2 = pneg %p4185_p1 }
  0x25   : > { %p4193_p8 = pnand %p4192_p6, %p4186_p2 }
  0x27   : > { %4196 = shalt.err (!%p4193_p8)
}
  0x28   : > { %s4331_s23 = smov [#allocation7]   ;;  %s34_s24 = sadd.s32 1, %s4321_s10 }
  0x29   : > { %3813 = dma.vmem_to_smem (!%p3811_p11), %s269_s19, 32, %s4331_s23, [#allocation6]  }
  0x2a   : > { %s37_s25 = sadd.s32 1, %s4325_s11  ;;  %p35_p4 = scmp.ge.s32.totalorder %s34_s24, 2 }
  0x2b   : > { %s290_s26 = sand.u32 1, %s4309_s29   ;;  %s3584_s18 = sshll.u32 %s4321_s10, 7 }
  0x2c   : > { %s3762_s27 = smul.u32 288, %s290_s26  ;;  %s10458_s24 = smov (%p35_p4, %s34_s24), 0 }
  0x2d   : > { %9559 = sst [smem:[#allocation15_spill]] %s10458_s24  ;;  %s10460_s25 = smov (!%p35_p4, %s37_s25), %s4325_s11 }
  0x2e   : > { %s153_s17 = ssub.s32 %s4321_s10, %s10458_s24  ;;  %p39_p6 = scmp.ge.s32.totalorder %s10460_s25, 2 }
  0x2f   : > { %p154_p8 = scmp.eq.s32.totalorder %s153_s17, 0  ;;  %s294_s22 = scalar_lea.vmem [#allocation3], %s3762_s27 }
  0x30   : > { %s300_s13 = sshll.u32 %s294_s22, 4  ;;  %s10462_s25 = smov (%p39_p6, %s10460_s25), 0  ;;  %s4484_s13 = int_to_ptr.vmem [resolvable:$true] %s300_s13 }
  0x31   : > { %9560 = sst [smem:[#allocation16_spill]] %s10462_s25  ;;  %s9561_s5 = sld [smem:[#allocation128_spill]] }
  0x32   : > { %s4477_s19 = scalar_select %p154_p8, %s4309_s29, %s156_s14  }
  0x33   : > { %s4486_s17 = scalar_lea.sflag [#allocation4], %s290_s26  ;;  %p4199_p10 = pneg %p4459_p12 }
  0x37   : > { %s4482_s8 = scalar_lea.hbm %s9561_s5, %s3584_s18  ;;  %s4202_s18 = scalar_lea.hbm %s9561_s5, 9216 }
  0x38   : > { %s4197_s27 = scalar_lea.hbm %s4482_s8, 4608  ;;  %p4203_p0 = scmp.lt.u32.totalorder %s4482_s8, %s9561_s5 }
  0x39   : > { %p4198_p9 = scmp.ne.s32.totalorder %s4482_s8, %s4197_s27  ;;  %p4204_p1 = scmp.lt.u32.totalorder %s4202_s18, %s4197_s27 }
  0x3a   : > { %p4206_p5 = scmp.lt.u32.totalorder %s4197_s27, %s4482_s8 }
  0x3b   : > { %p4200_p11 = pnand %p4199_p10, %p4198_p9  ;;  %p4205_p2 = por %p4204_p1, %p4203_p0 }
  0x3d   : > { %p4201_p13 = pneg %p4200_p11  ;;  %p4207_p7 = por %p4206_p5, %p4205_p2 }
  0x3f   : > { %p4208_p4 = pnand %p4207_p7, %p4201_p13 }
  0x41   : > { %4211 = shalt.err (!%p4208_p4)
}
  0x42   : > { %s4212_s26 = scalar_lea.vmem %s4484_s13, 4608  ;;  %s4332_s14 = smov [#allocation3]  }
  0x43   : > { %p4213_p6 = scmp.ne.s32.totalorder %s4484_s13, %s4212_s26  ;;  %s4217_s6 = sshll.u32 %s4332_s14, 4  ;;  %s4218_s6 = int_to_ptr.vmem [resolvable:$false] %s4217_s6 }
  0x44   : > { %s4219_s22 = scalar_lea.vmem %s4218_s6, 9216  ;;  %p4220_p11 = scmp.lt.s32.totalorder %s4484_s13, %s4218_s6 }
  0x45   : > { %p4215_p8 = pnand %p4213_p6, %p4199_p10  ;;  %p4221_p0 = scmp.lt.s32.totalorder %s4219_s22, %s4212_s26 }
  0x47   : > { %p4216_p9 = pneg %p4215_p8  ;;  %p4222_p1 = por %p4221_p0, %p4220_p11 }
  0x49   : > { %p4223_p2 = pnand %p4222_p1, %p4216_p9 }
  0x4b   : > { %4226 = shalt.err (!%p4223_p2)
}
  0x4c   : > { %s4333_s27 = smov 256   ;;  %s4334_s18 = smov 128  }
  0x4d   : > { %s4335_s23 = smov 8   ;;  %p9562_p10 = scmp.ne.s32.totalorder %s9557_s20, 0 }
  0x4e   : > { %3817 = dma.hbm_to_vmem [thread:$0]  (!%p4459_p12), %s4482_s8, 4608, %s4484_s13, %s4486_s17, %s4333_s27, %s4334_s18, %s4335_s23  }
  0x4f   : > { %312 = sbr.rel (%p9562_p10) target bundleno = 1087 (0x43f), region = 48 }
  0x56   : > { %s314_s14 = sand.u32 1, %s4305_s28   ;;  %p9563_p13 = scmp.ne.s32.totalorder %s9555_s16, 0 }
  0x57   : > { %s3763_s6 = smul.u32 288, %s314_s14  ;;  %s315_s26 = scalar_lea.sflag [#allocation4], %s314_s14 }
  0x59   : > { %s4517_s22 = scalar_lea.vmem [#allocation3], %s3763_s6 }
  0x5a   : > { %4284 = dma.done.wait (%p9563_p13), %s315_s26, 4608  }
  0x5b   : > { %4286 = vsyncadd (%p9563_p13), %s315_s26, 4294962688 }
  0x5c   : > { %4288 = dma.done.wait (%p4435_p3), [#allocation6], 32  }
  0x5d   : > { %4290 = vsyncadd (%p4435_p3), [#allocation6], 4294967264 }
  0x5e   : > { %327 = sfence }
  0x5f   : > { %p359_p12 = scmp.lt.s32.totalorder %s4317_s9, 1  ;;  %v9183_v0 = vmov 0.0   ;;  %p361_p5 = scmp.lt.s32.totalorder %s4313_s30, 1  ;;  %vm4337_vm0 = vmmov 0   ;;  %v4338_v1 = vmov 0   ;;  %vm469_vm1 = vcmask 1043456  }
  0x60   : > { %3704 = vmatprep.subr.mxu0 %v9183_v0  ;;  %3733 = vmatprep.subr.mxu1 %v9183_v0  ;;  %s9564_s2 = sld [smem:[#allocation125_spill]]  ;;  %s9565_s0 = sld [smem:[#allocation123_spill]]  ;;  %vm441_vm2 = vcmask 31744   ;;  %v4700_v35 = vld [vmem:[%s4517_s22] sm:$0xff]  ;;  %v4703_v36 = vld [vmem:[%s4517_s22 + $0x48] sm:$0xff]  ;;  %v4706_v37 = vld [vmem:[%s4517_s22 + $0x90] sm:$0xff] }
  0x61   : > { %s360_s8 = scalar_select %p359_p12, %s4317_s9, 1  ;;  %3706 = vmatprep.mubr.msk.f32.mxu0 %vm4337_vm0, %v9183_v0  ;;  %3735 = vmatprep.mubr.msk.f32.mxu1 %vm4337_vm0, %v9183_v0  ;;  %v4719_v39 = vld [vmem:[%s4517_s22 + $0xd8] sm:$0xff]  ;;  %v4733_v43 = vld [vmem:[%s4517_s22 + $0x8] sm:$0xff]  ;;  %v4758_v50 = vsub.f32 %v4706_v37, %v4700_v35  ;;  %v4802_v63 = vld [vmem:[%s4517_s22 + $0x50] sm:$0xff] }
  0x62   : > { %s362_s13 = scalar_select %p361_p5, %s4313_s30, 1  ;;  %3902 = vset.pattern.permute.xlu0 %v4338_v1  ;;  %3903 = vset.pattern.permute.xlu1 %v4338_v1  ;;  %v4754_v49 = vsub.f32 %v4719_v39, %v4703_v36  ;;  %v4805_v1 = vld [vmem:[%s4517_s22 + $0xe0] sm:$0xff] }
  0x63   : > { %s3587_s15 = sshll.u32 %s360_s8, 1  ;;  %s9566_s1 = sld [smem:[#allocation124_spill]]  ;;  %9574 = vst [vmem:[#allocation22_spill] sm:$0xff] %v4758_v50 }
  0x64   : > { %s364_s16 = sadd.s32 %s3587_s15, %s362_s13  ;;  %s9567_s3 = sld [smem:[#allocation126_spill]]  ;;  %9573 = vst [vmem:[#allocation21_spill] sm:$0xff] %v4754_v49  ;;  %v4792_v59 = vmul.f32 %v4758_v50, %v4754_v49 }
  0x65   : > { %s3588_s20 = sshll.u32 %s364_s16, 2  ;;  %s9568_s4 = sld [smem:[#allocation127_spill]] }
  0x66   : > { %v387_v2 = vld [vmem:[%s9564_s2] sm:$0xff]  ;;  %s366_s23 = scalar_lea.vmem %s9565_s0, %s3588_s20  ;;  %v389_v5 = vld [vmem:[%s9564_s2 + $0x10] sm:$0xff]  ;;  %v388_v7 = vld [vmem:[%s9564_s2 + $0x8] sm:$0xff]  ;;  %p3821_p1 = scmp.eq.s32.totalorder %s4313_s30, 0 }
  0x67   : > { %398 = vperm.xlu0 %3902, %v387_v2   ;;  %v377_v6 = vld [vmem:[%s366_s23] sm:$0xf]  ;;  %408 = vperm.xlu1 %3903, %v389_v5   ;;  %v390_v8 = vld [vmem:[%s9564_s2 + $0x18] sm:$0xff]  ;;  %v392_v12 = vld [vmem:[%s9564_s2 + $0x28] sm:$0xff]  ;;  %s4633_s23 = sshll.u32 %s4317_s9, 7  ;;  %v4818_v5 = vsub.f32 %v4805_v1, %v4802_v63  ;;  %p3675_p2 = scmp.ne.s32.totalorder %s4313_s30, 1 }
  0x68   : > { %3705 = vmatpush3.msk.msra.mxu0 %vm469_vm1, %v377_v6  ;;  %3734 = vmatpush3.msk.msra.mxu1 %vm469_vm1, %v377_v6  ;;  %v391_v11 = vld [vmem:[%s9564_s2 + $0x20] sm:$0xff]  ;;  %v393_v15 = vld [vmem:[%s9564_s2 + $0x30] sm:$0xff]  ;;  %v394_v16 = vld [vmem:[%s9564_s2 + $0x38] sm:$0xff]  ;;  %s923_s13 = sadd.s32 1, %s4633_s23  ;;  %s925_s15 = sadd.s32 2, %s4633_s23 }
  0x69   : > { %v378_v3 = vld [vmem:[%s9566_s1] sm:$0xff]  ;;  %v379_v9 = vld [vmem:[%s9566_s1 + $0x8] sm:$0xff]  ;;  %v380_v13 = vld [vmem:[%s9566_s1 + $0x10] sm:$0xff]  ;;  %s4648_s16 = sld [smem:[#allocation7 + %s4633_s23]]  ;;  %s927_s14 = sadd.s32 3, %s4633_s23  ;;  %9579 = vst [vmem:[#allocation27_spill] sm:$0xff] %v4818_v5 }
  0x6a   : > { %v583_v4 = vld [vmem:[%s9567_s3] sm:$0xff]  ;;  %3707 = vmatmul.mubr.msk.f32.vlgmr.msra.gmra.mrb[0].mxu0 %vm441_vm2, %v378_v3  ;;  %v584_v10 = vld [vmem:[%s9567_s3 + $0x8] sm:$0xff]  ;;  %v585_v14 = vld [vmem:[%s9567_s3 + $0x10] sm:$0xff]  ;;  %s4650_s20 = sld [smem:[#allocation7 + %s923_s13]]  ;;  %s1153_s26 = sadd.s32 5, %s4633_s23 }
  0x6b   : > { %3736 = vmatmul.mubr.msk.f32.vlgmr.msra.gmra.mrb[0].mxu1 %vm441_vm2, %v583_v4  ;;  %3709 = vmatprep.mubr.msk.f32.mxu0 %vm4337_vm0, %v9183_v0  ;;  %v381_v17 = vld [vmem:[%s9566_s1 + $0x18] sm:$0xff]  ;;  %v395_v19 = vld [vmem:[%s9564_s2 + $0x40] sm:$0xff]  ;;  %v593_v23 = vld [vmem:[%s9568_s4 + $0x8] sm:$0xff]  ;;  %s4658_s18 = sld [smem:[#allocation7 + %s925_s15]]  ;;  %s1155_s17 = sadd.s32 6, %s4633_s23 }
  0x6c   : > { %3738 = vmatprep.mubr.msk.f32.mxu1 %vm4337_vm0, %v9183_v0  ;;  %403 = vperm.xlu0 %3902, %v388_v7   ;;  %v586_v18 = vld [vmem:[%s9567_s3 + $0x18] sm:$0xff]  ;;  %v592_v20 = vld [vmem:[%s9568_s4] sm:$0xff]  ;;  %v594_v24 = vld [vmem:[%s9568_s4 + $0x10] sm:$0xff]  ;;  %s4663_s6 = sld [smem:[#allocation7 + %s927_s14]]  ;;  %s1157_s14 = sadd.s32 7, %s4633_s23 }
  0x6d   : > { %413 = vperm.xlu1 %3903, %v390_v8   ;;  %v382_v21 = vld [vmem:[%s9566_s1 + $0x20] sm:$0xff]  ;;  %v383_v25 = vld [vmem:[%s9566_s1 + $0x28] sm:$0xff]  ;;  %v595_v27 = vld [vmem:[%s9568_s4 + $0x18] sm:$0xff]  ;;  %s4676_s5 = sld [smem:[#allocation7 + %s1153_s26]]  ;;  %s1159_s24 = sadd.s32 8, %s4633_s23 }
  0x6e   : > { %3710 = vmatmul.mubr.msk.f32.gmra.mrb[2].mxu0 %vm441_vm2, %v379_v9  ;;  %v587_v22 = vld [vmem:[%s9567_s3 + $0x20] sm:$0xff]  ;;  %v588_v26 = vld [vmem:[%s9567_s3 + $0x28] sm:$0xff]  ;;  %v384_v29 = vld [vmem:[%s9566_s1 + $0x30] sm:$0xff]  ;;  %s4679_s27 = sld [smem:[#allocation7 + %s1155_s17]]  ;;  %s1385_s2 = sadd.s32 10, %s4633_s23 }
  0x6f   : > { %3739 = vmatmul.mubr.msk.f32.gmra.mrb[2].mxu1 %vm441_vm2, %v584_v10  ;;  %3712 = vmatprep.mubr.msk.f32.mxu0 %vm4337_vm0, %v9183_v0  ;;  %v596_v28 = vld [vmem:[%s9568_s4 + $0x20] sm:$0xff]  ;;  %v589_v30 = vld [vmem:[%s9567_s3 + $0x30] sm:$0xff]  ;;  %v385_v31 = vld [vmem:[%s9566_s1 + $0x38] sm:$0xff]  ;;  %s4694_s17 = sld [smem:[#allocation7 + %s1157_s14]]  ;;  %v4709_v38 = vstv %s4648_s16  ;;  %s1387_s25 = sadd.s32 11, %s4633_s23 }
  0x70   : > { %3741 = vmatprep.mubr.msk.f32.mxu1 %vm4337_vm0, %v9183_v0  ;;  %418 = vperm.xlu0 %3902, %v391_v11   ;;  %v590_v32 = vld [vmem:[%s9567_s3 + $0x38] sm:$0xff]  ;;  %v597_v33 = vld [vmem:[%s9568_s4 + $0x28] sm:$0xff]  ;;  %v598_v34 = vld [vmem:[%s9568_s4 + $0x30] sm:$0xff]  ;;  %9569 = vst [vmem:[#allocation17_spill] sm:$0xff] %v4709_v38  ;;  %s4711_s0 = sld [smem:[#allocation7 + %s1159_s24]]  ;;  %v945_v41 = vmax.f32 %v4703_v36, %v4709_v38  ;;  %v4727_v42 = vstv %s4650_s20  ;;  %s1623_s13 = sadd.s32 18, %s4633_s23 }
  0x71   : > { %423 = vperm.xlu1 %3903, %v392_v12   ;;  %v4722_v40 = vstv %s4658_s18  ;;  %9571 = vst [vmem:[#allocation19_spill] sm:$0xff] %v4727_v42  ;;  %s4729_s24 = sld [smem:[#allocation7 + %s1385_s2]]  ;;  %v983_v46 = vmax.f32 %v4700_v35, %v4727_v42  ;;  %s1019_s14 = ssub.f32 %s4658_s18, %s4648_s16  ;;  %v599_v47 = vld [vmem:[%s9568_s4 + $0x38] sm:$0xff]  ;;  %v600_v48 = vld [vmem:[%s9568_s4 + $0x40] sm:$0xff]  ;;  %v984_v57 = vmax.f32 %v4733_v43, %v4727_v42 }
  0x72   : > { %3713 = vmatmul.mubr.msk.f32.gmra.mrb[4].mxu0 %vm441_vm2, %v380_v13  ;;  %9570 = vst [vmem:[#allocation18_spill] sm:$0xff] %v4722_v40  ;;  %v935_v44 = vmin.f32 %v4719_v39, %v4722_v40  ;;  %v4738_v45 = vstv %s4663_s6  ;;  %s4744_s8 = sld [smem:[#allocation7 + %s1387_s25]]  ;;  %s1020_s16 = ssub.f32 %s4663_s6, %s4650_s20  ;;  %v386_v53 = vld [vmem:[%s9566_s1 + $0x40] sm:$0xff]  ;;  %v4830_v10 = vld [vmem:[%s4517_s22 + $0x98] sm:$0xff] }
  0x73   : > { %3742 = vmatmul.mubr.msk.f32.gmra.mrb[4].mxu1 %vm441_vm2, %v585_v14  ;;  %3715 = vmatprep.mubr.msk.f32.mxu0 %vm4337_vm0, %v9183_v0  ;;  %9572 = vst [vmem:[#allocation20_spill] sm:$0xff] %v4738_v45  ;;  %v973_v51 = vmin.f32 %v4706_v37, %v4738_v45  ;;  %v4765_v52 = vstv %s4676_s5  ;;  %s1389_s18 = sadd.s32 12, %s4633_s23  ;;  %s1391_s6 = sadd.s32 13, %s4633_s23  ;;  %v591_v58 = vld [vmem:[%s9567_s3 + $0x40] sm:$0xff]  ;;  %v4843_v14 = vsub.f32 %v4830_v10, %v4733_v43 }
  0x74   : > { %3744 = vmatprep.mubr.msk.f32.mxu1 %vm4337_vm0, %v9183_v0  ;;  %428 = vperm.xlu0 %3902, %v393_v15   ;;  %9575 = vst [vmem:[#allocation23_spill] sm:$0xff] %v4765_v52  ;;  %v954_v54 = vsub.f32 %v935_v44, %v945_v41  ;;  %v1177_v55 = vmax.f32 %v4703_v36, %v4765_v52  ;;  %v4776_v56 = vstv %s4679_s27  ;;  %s4778_s20 = sld [smem:[#allocation7 + %s1389_s18]]  ;;  %s1021_s26 = smul.f32 %s1020_s16, %s1019_s14 }
  0x75   : > { %433 = vperm.xlu1 %3903, %v394_v16   ;;  %9576 = vst [vmem:[#allocation24_spill] sm:$0xff] %v4776_v56  ;;  %v992_v60 = vsub.f32 %v973_v51, %v983_v46  ;;  %v4795_v61 = vstv %s4694_s17  ;;  %v1215_v62 = vmax.f32 %v4700_v35, %v4776_v56  ;;  %s1251_s21 = ssub.f32 %s4694_s17, %s4676_s5  ;;  %s4814_s16 = sld [smem:[#allocation7 + %s1391_s6]]  ;;  %9583 = vst [vmem:[#allocation31_spill] sm:$0xff] %v4843_v14 }
  0x76   : > { %3716 = vmatmul.mubr.msk.f32.gmra.mrb[6].mxu0 %vm441_vm2, %v381_v17  ;;  %9577 = vst [vmem:[#allocation25_spill] sm:$0xff] %v4795_v61  ;;  %v963_v2 = vmax.f32 %v954_v54, 0.0  ;;  %v1167_v3 = vmin.f32 %v4719_v39, %v4795_v61  ;;  %v4810_v4 = vstv %s4711_s0  ;;  %s1252_s14 = ssub.f32 %s4711_s0, %s4679_s27  ;;  %v4820_v7 = vstv %s1021_s26  ;;  %s1617_s5 = sadd.s32 15, %s4633_s23 }
  0x77   : > { %3745 = vmatmul.mubr.msk.f32.gmra.mrb[6].mxu1 %vm441_vm2, %v586_v18  ;;  %3718 = vmatprep.mubr.msk.f32.mxu0 %vm4337_vm0, %v9183_v0  ;;  %9578 = vst [vmem:[#allocation26_spill] sm:$0xff] %v4810_v4  ;;  %v1001_v6 = vmax.f32 %v992_v60, 0.0  ;;  %9580 = vst [vmem:[#allocation28_spill] sm:$0xff] %v4820_v7  ;;  %v1205_v8 = vmin.f32 %v4706_v37, %v4810_v4  ;;  %v4825_v9 = vstv %s4729_s24  ;;  %s1619_s17 = sadd.s32 16, %s4633_s23  ;;  %s4839_s0 = sld [smem:[#allocation7 + %s1617_s5]] }
  0x78   : > { %3747 = vmatprep.mubr.msk.f32.mxu1 %vm4337_vm0, %v9183_v0  ;;  %438 = vperm.xlu0 %3902, %v395_v19   ;;  %9581 = vst [vmem:[#allocation29_spill] sm:$0xff] %v4825_v9  ;;  %v1023_v11 = vadd.f32 %v4820_v7, %v4792_v59  ;;  %v1186_v12 = vsub.f32 %v1167_v3, %v1177_v55  ;;  %s1253_s27 = smul.f32 %s1252_s14, %s1251_s21  ;;  %v4837_v13 = vstv %s4744_s8  ;;  %s4851_s18 = sld [smem:[#allocation7 + %s1619_s17]] }
  0x79   : > { %603 = vperm.xlu1 %3903, %v592_v20   ;;  %9582 = vst [vmem:[#allocation30_spill] sm:$0xff] %v4837_v13  ;;  %v4845_v15 = vmul.f32 %v1001_v6, %v963_v2  ;;  %v1224_v16 = vsub.f32 %v1205_v8, %v1215_v62  ;;  %v1409_v17 = vmax.f32 %v4703_v36, %v4825_v9  ;;  %s1621_s2 = sadd.s32 17, %s4633_s23  ;;  %s1849_s15 = sadd.s32 20, %s4633_s23 }
  0x7a   : > { %3719 = vmatmul.mubr.msk.f32.gmra.mrb[8].mxu0 %vm441_vm2, %v382_v21  ;;  %v1447_v18 = vmax.f32 %v4700_v35, %v4837_v13  ;;  %v1195_v19 = vmax.f32 %v1186_v12, 0.0  ;;  %v4854_v20 = vstv %s1253_s27  ;;  %v4857_v21 = vstv %s4778_s20  ;;  %s1483_s25 = ssub.f32 %s4778_s20, %s4729_s24  ;;  %s4861_s6 = sld [smem:[#allocation7 + %s1621_s2]] }
  0x7b   : > { %3748 = vmatmul.mubr.msk.f32.gmra.mrb[8].mxu1 %vm441_vm2, %v587_v22  ;;  %3721 = vmatprep.mubr.msk.f32.mxu0 %vm4337_vm0, %v9183_v0  ;;  %9584 = vst [vmem:[#allocation32_spill] sm:$0xff] %v4854_v20  ;;  %9585 = vst [vmem:[#allocation33_spill] sm:$0xff] %v4857_v21  ;;  %v936_v22 = vmin.f32 %v4805_v1, %v4722_v40  ;;  %s929_s26 = sadd.s32 4, %s4633_s23  ;;  %s1484_s24 = ssub.f32 %s4814_s16, %s4744_s8  ;;  %v4902_v51 = vmul.f32 %v4843_v14, %v4818_v5 }
  0x7c   : > { %3750 = vmatprep.mubr.msk.f32.mxu1 %vm4337_vm0, %v9183_v0  ;;  %608 = vperm.xlu0 %3902, %v593_v23   ;;  %v1032_v23 = vsub.f32 %v1023_v11, %v4845_v15  ;;  %s4882_s20 = sld [smem:[#allocation7 + %s929_s26]]  ;;  %s1161_s8 = sadd.s32 9, %s4633_s23 }
  0x7d   : > { %613 = vperm.xlu1 %3903, %v594_v24   ;;  %v1233_v24 = vmax.f32 %v1224_v16, 0.0  ;;  %s4888_s21 = sld [smem:[#allocation7 + %s1623_s13]]  ;;  %s1485_s14 = smul.f32 %s1484_s24, %s1483_s25 }
  0x7e   : > { %3722 = vmatmul.mubr.msk.f32.gmra.mrb[10].mxu0 %vm441_vm2, %v383_v25  ;;  %v1255_v25 = vadd.f32 %v4854_v20, %v4792_v59  ;;  %s1393_s5 = sadd.s32 14, %s4633_s23  ;;  %v4911_v55 = vstv %s4851_s18  ;;  %s4913_s17 = sld [smem:[#allocation7 + %s1849_s15]] }
  0x7f   : > { %3751 = vmatmul.mubr.msk.f32.gmra.mrb[10].mxu1 %vm441_vm2, %v588_v26  ;;  %3724 = vmatprep.mubr.msk.f32.mxu0 %vm4337_vm0, %v9183_v0  ;;  %v1399_v26 = vmin.f32 %v4719_v39, %v4857_v21  ;;  %9590 = vst [vmem:[#allocation38_spill] sm:$0xff] %v4911_v55  ;;  %s4915_s27 = sld [smem:[#allocation7 + %s1393_s5]]  ;;  %s1851_s2 = sadd.s32 21, %s4633_s23  ;;  %v1679_v2 = vmax.f32 %v4700_v35, %v4911_v55 }
  0x80   : > { %3753 = vmatprep.mubr.msk.f32.mxu1 %vm4337_vm0, %v9183_v0  ;;  %618 = vperm.xlu0 %3902, %v595_v27   ;;  %v4874_v27 = vstv %s4814_s16  ;;  %s4897_s16 = sld [smem:[#allocation7 + %s1161_s8]]  ;;  %v4908_v54 = vstv %s4861_s6  ;;  %s1625_s25 = sadd.s32 19, %s4633_s23 }
  0x81   : > { %623 = vperm.xlu1 %3903, %v596_v28   ;;  %9586 = vst [vmem:[#allocation34_spill] sm:$0xff] %v4874_v27  ;;  %v946_v28 = vmax.f32 %v4802_v63, %v4709_v38  ;;  %9589 = vst [vmem:[#allocation37_spill] sm:$0xff] %v4908_v54  ;;  %v1631_v60 = vmin.f32 %v4719_v39, %v4908_v54  ;;  %s1715_s13 = ssub.f32 %s4861_s6, %s4839_s0  ;;  %s4935_s15 = sld [smem:[#allocation7 + %s1851_s2]] }
  0x82   : > { %3725 = vmatmul.mubr.msk.f32.gmra.mrb[12].mxu0 %vm441_vm2, %v384_v29  ;;  %v974_v29 = vmin.f32 %v4830_v10, %v4738_v45  ;;  %p931_p3 = scmp.ne.f32.partialorder %s4882_s20, -1.0  ;;  %s4937_s26 = sld [smem:[#allocation7 + %s1625_s25]] }
  0x83   : > { %3754 = vmatmul.mubr.msk.f32.gmra.mrb[12].mxu1 %vm441_vm2, %v589_v30  ;;  %3727 = vmatprep.mubr.msk.f32.mxu0 %vm4337_vm0, %v9183_v0  ;;  %v1041_v30 = vmax.f32 %v1032_v23, 1e-08  ;;  %v955_v41 = vsub.f32 %v936_v22, %v946_v28  ;;  %v4933_v12 = vstv %s4888_s21  ;;  %v1168_v23 = vmin.f32 %v4805_v1, %v4795_v61  ;;  %s1855_s25 = sadd.s32 23, %s4633_s23 }
  0x84   : > { %3756 = vmatprep.mubr.msk.f32.mxu1 %vm4337_vm0, %v9183_v0  ;;  %628 = vperm.xlu0 %3902, %v597_v33   ;;  %v1437_v33 = vmin.f32 %v4706_v37, %v4874_v27  ;;  %v993_v44 = vsub.f32 %v974_v29, %v984_v57  ;;  %9591 = vst [vmem:[#allocation39_spill] sm:$0xff] %v4933_v12  ;;  %s4943_s6 = scalar_select %p931_p3, 1, 0 }
  0x85   : > { %633 = vperm.xlu1 %3903, %v598_v34   ;;  %v4892_v34 = vstv %s4839_s0  ;;  %3904 = vrcp.f32 %v1041_v30  ;;  %v964_v3 = vmax.f32 %v955_v41, 0.0  ;;  %v1669_v16 = vmin.f32 %v4706_v37, %v4933_v12  ;;  %s1716_s0 = ssub.f32 %s4888_s21, %s4851_s18  ;;  %p1395_p4 = scmp.ne.f32.partialorder %s4915_s27, -1.0 }
  0x86   : > { %3728 = vmatmul.mubr.msk.f32.gmra.mrb[14].mxu0 %vm441_vm2, %v385_v31  ;;  %v4884_v31 = vmul.f32 %v1233_v24, %v1195_v19  ;;  %9587 = vst [vmem:[#allocation35_spill] sm:$0xff] %v4892_v34  ;;  %v1641_v62 = vmax.f32 %v4703_v36, %v4892_v34  ;;  %v1002_v6 = vmax.f32 %v993_v44, 0.0  ;;  %p1163_p7 = scmp.ne.f32.partialorder %s4897_s16, -1.0  ;;  %v1178_v24 = vmax.f32 %v4802_v63, %v4765_v52  ;;  %s1853_s18 = sadd.s32 22, %s4633_s23 }
  0x87   : > { %3757 = vmatmul.mubr.msk.f32.gmra.mrb[14].mxu1 %vm441_vm2, %v590_v32  ;;  %3730 = vmatprep.mubr.msk.f32.mxu0 %vm4337_vm0, %v9183_v0  ;;  %v1418_v32 = vsub.f32 %v1399_v26, %v1409_v17  ;;  %v1688_v19 = vsub.f32 %v1669_v16, %v1679_v2  ;;  %s1717_s24 = smul.f32 %s1716_s0, %s1715_s13  ;;  %v1206_v26 = vmin.f32 %v4830_v10, %v4810_v4  ;;  %s933_s8 = scvt.s32.f32 %s4943_s6 }
  0x88   : > { %3759 = vmatprep.mubr.msk.f32.mxu1 %vm4337_vm0, %v9183_v0  ;;  %638 = vperm.xlu0 %3902, %v599_v47   ;;  %v1264_v46 = vsub.f32 %v1255_v25, %v4884_v31  ;;  %v1650_v17 = vsub.f32 %v1631_v60, %v1641_v62  ;;  %v4948_v22 = vmul.f32 %v1002_v6, %v964_v3  ;;  %s4961_s21 = scalar_select %p1163_p7, 1, 0 }
  0x89   : > { %643 = vperm.xlu1 %3903, %v600_v48   ;;  %v1427_v47 = vmax.f32 %v1418_v32, 0.0  ;;  %v1456_v48 = vsub.f32 %v1437_v33, %v1447_v18  ;;  %v1024_v18 = vadd.f32 %v4820_v7, %v4902_v51  ;;  %v1216_v28 = vmax.f32 %v4733_v43, %v4776_v56  ;;  %s4967_s5 = sld [smem:[#allocation7 + %s1853_s18]]  ;;  %p1627_p6 = scmp.ne.f32.partialorder %s4937_s26, -1.0 }
  0x8a   : > { %3731 = vmatmul.mubr.msk.f32.gmra.mrb[16].mxu0 %vm441_vm2, %v386_v53  ;;  %v4905_v53 = vstv %s1485_s14  ;;  %v1273_v57 = vmax.f32 %v1264_v46, 1e-08  ;;  %v1659_v29 = vmax.f32 %v1650_v17, 0.0  ;;  %v1697_v30 = vmax.f32 %v1688_v19, 0.0  ;;  %s1165_s14 = scvt.s32.f32 %s4961_s21  ;;  %s3638_s13 = sadd.f32 -1.0, %s933_s8 }
  0x8b   : > { %3760 = vmatmul.mubr.msk.f32.gmra.mrb[16].mxu1 %vm441_vm2, %v591_v58  ;;  %9588 = vst [vmem:[#allocation36_spill] sm:$0xff] %v4905_v53  ;;  %v1465_v58 = vmax.f32 %v1456_v48, 0.0  ;;  %v1487_v11 = vadd.f32 %v4905_v53, %v4792_v59  ;;  %v4965_v33 = vstv %s1717_s24  ;;  %v1033_v41 = vsub.f32 %v1024_v18, %v4948_v22  ;;  %s4972_s2 = scalar_select %p1395_p4, 1, 0 }
  0x8c   : > { %3906 = vrcp.f32 %v1273_v57  ;;  %9592 = vst [vmem:[#allocation40_spill] sm:$0xff] %v4965_v33  ;;  %v1187_v44 = vsub.f32 %v1168_v23, %v1178_v24  ;;  %v1225_v48 = vsub.f32 %v1206_v26, %v1216_v28  ;;  %v1719_v60 = vadd.f32 %v4965_v33, %v4792_v59  ;;  %s4984_s0 = sld [smem:[#allocation7 + %s1855_s25]]  ;;  %s4990_s6 = sadd.f32 -1.0, %s1165_s14 }
  0x8d   : > { %v4928_v8 = vmul.f32 %v1465_v58, %v1427_v47  ;;  %v4975_v47 = vstv %s4913_s17  ;;  %v4980_v58 = vmul.f32 %v1697_v30, %v1659_v29  ;;  %v4986_v2 = vstv %s933_s8  ;;  %s1857_s18 = sadd.s32 24, %s4633_s23  ;;  %s2081_s24 = sadd.s32 25, %s4633_s23 }
  0x8e   : > { %9593 = vst [vmem:[#allocation41_spill] sm:$0xff] %v4975_v47  ;;  %9594 = vst [vmem:[#allocation42_spill] sm:$0xff] %v4986_v2  ;;  %v1873_v3 = vmax.f32 %v4703_v36, %v4975_v47  ;;  %v1196_v6 = vmax.f32 %v1187_v44, 0.0  ;;  %v1234_v16 = vmax.f32 %v1225_v48, 0.0  ;;  %v1400_v17 = vmin.f32 %v4805_v1, %v4857_v21  ;;  %s5003_s8 = scalar_select %p1627_p6, 1, 0 }
  0x8f   : > { %v1496_v25 = vsub.f32 %v1487_v11, %v4928_v8  ;;  %v3905_v32 = vpop.eup %3904  ;;  %v4997_v11 = vstv %s4935_s15  ;;  %v5006_v18 = vstv %s4967_s5  ;;  %v1410_v19 = vmax.f32 %v4802_v63, %v4825_v9  ;;  %s1947_s25 = ssub.f32 %s4967_s5, %s4913_s17  ;;  %s5028_s1 = sld [smem:[#allocation7 + %s1857_s18]] }
  0x90   : > { %v1051_v57 = vmul.f32 %v3905_v32, %v4845_v15  ;;  %v1042_v15 = vmax.f32 %v1033_v41, 1e-08  ;;  %9595 = vst [vmem:[#allocation43_spill] sm:$0xff] %v4997_v11  ;;  %9596 = vst [vmem:[#allocation44_spill] sm:$0xff] %v5006_v18  ;;  %v1438_v23 = vmin.f32 %v4830_v10, %v4874_v27  ;;  %v1448_v24 = vmax.f32 %v4733_v43, %v4837_v13  ;;  %s5032_s3 = sld [smem:[#allocation7 + %s2081_s24]]  ;;  %s2083_s17 = sadd.s32 26, %s4633_s23 }
  0x91   : > { %v1505_v46 = vmax.f32 %v1496_v25, 1e-08  ;;  %v1728_v28 = vsub.f32 %v1719_v60, %v4980_v58  ;;  %v1863_v29 = vmin.f32 %v4719_v39, %v5006_v18  ;;  %v5022_v30 = vstv %s3638_s13  ;;  %s5042_s21 = sld [smem:[#allocation7 + %s2083_s17]]  ;;  %s2087_s13 = sadd.s32 28, %s4633_s23  ;;  %v9664_v27 = vld [vmem:[#allocation30_spill] sm:$0xff] }
  0x92   : > { %v1069_v25 = vmul.f32 %v4986_v2, %v1051_v57  ;;  %9597 = vst [vmem:[#allocation45_spill] sm:$0xff] %v5022_v30  ;;  %v5026_v32 = vstv %s1165_s14  ;;  %v1911_v41 = vmax.f32 %v4700_v35, %v4997_v11  ;;  %v5035_v44 = vstv %s4984_s0  ;;  %s1948_s4 = ssub.f32 %s4984_s0, %s4935_s15  ;;  %s2085_s14 = sadd.s32 27, %s4633_s23 }
  0x93   : > { %3908 = vrcp.f32 %v1505_v46  ;;  %9598 = vst [vmem:[#allocation46_spill] sm:$0xff] %v5026_v32  ;;  %9599 = vst [vmem:[#allocation47_spill] sm:$0xff] %v5035_v44  ;;  %v1901_v46 = vmin.f32 %v4706_v37, %v5035_v44  ;;  %v5045_v48 = vmul.f32 %v1234_v16, %v1196_v6  ;;  %v1256_v57 = vadd.f32 %v4854_v20, %v4902_v51  ;;  %s5053_s5 = sld [smem:[#allocation7 + %s2085_s14]]  ;;  %s2313_s24 = sadd.s32 30, %s4633_s23 }
  0x94   : > { %3910 = vrcp.f32 %v1042_v15  ;;  %v1419_v60 = vsub.f32 %v1400_v17, %v1410_v19  ;;  %v1737_v15 = vmax.f32 %v1728_v28, 1e-08  ;;  %s1949_s15 = smul.f32 %s1948_s4, %s1947_s25  ;;  %v5056_v0 = vstv %s4990_s6  ;;  %s5061_s0 = sld [smem:[#allocation7 + %s2087_s13]] }
  0x95   : > { %9600 = vst [vmem:[#allocation48_spill] sm:$0xff] %v5056_v0  ;;  %v1920_v16 = vsub.f32 %v1901_v46, %v1911_v41  ;;  %v5065_v19 = vadd.f32 %v4905_v53, %v4902_v51  ;;  %s9603_s4 = scvt.s32.f32 %s4972_s2  ;;  %s1629_s18 = scvt.s32.f32 %s5003_s8 }
  0x96   : > { %v3907_v62 = vpop.eup %3906  ;;  %v5059_v17 = vstv %s1949_s15  ;;  %v1428_v28 = vmax.f32 %v1419_v60, 0.0  ;;  %3912 = vrcp.f32 %v1737_v15  ;;  %s5088_s25 = sld [smem:[#allocation7 + %s2313_s24]]  ;;  %s2315_s14 = sadd.s32 31, %s4633_s23  ;;  %v1642_v15 = vmax.f32 %v4802_v63, %v4892_v34 }
  0x97   : > { %v1283_v26 = vmul.f32 %v3907_v62, %v4884_v31  ;;  %v1882_v31 = vsub.f32 %v1863_v29, %v1873_v3  ;;  %v5050_v62 = vadd.f32 %v5022_v30, %v1069_v25  ;;  %v1457_v29 = vsub.f32 %v1438_v23, %v1448_v24  ;;  %9601 = vst [vmem:[#allocation49_spill] sm:$0xff] %v5059_v17  ;;  %s3640_s6 = sadd.f32 -1.0, %s9603_s4  ;;  %p1859_p8 = scmp.ne.f32.partialorder %s5028_s1, -1.0 }
  0x98   : > { %v1632_v25 = vmin.f32 %v4805_v1, %v4908_v54  ;;  %v1929_v23 = vmax.f32 %v1920_v16, 0.0  ;;  %v5070_v24 = vstv %s5032_s3  ;;  %v5086_v5 = vstv %s5042_s21  ;;  %s9606_s15 = smov %s9603_s4  ;;  %s2317_s13 = sadd.s32 32, %s4633_s23 }
  0x99   : > { %v1301_v3 = vmul.f32 %v5026_v32, %v1283_v26  ;;  %v1891_v6 = vmax.f32 %v1882_v31, 0.0  ;;  %9602 = vst [vmem:[#allocation50_spill] sm:$0xff] %v5070_v24  ;;  %v1265_v26 = vsub.f32 %v1256_v57, %v5045_v48  ;;  %vm1089_vm3 = vcmp.gt.f32.partialorder %v5050_v62, -2.0  ;;  %9604 = vst [vmem:[#allocation51_spill] sm:$0xff] %v5086_v5  ;;  %s2179_s17 = ssub.f32 %s5053_s5, %s5032_s3  ;;  %s5111_s3 = sld [smem:[#allocation7 + %s2315_s14]] }
  0x9a   : > { %v1466_v46 = vmax.f32 %v1457_v29, 0.0  ;;  %v1951_v57 = vadd.f32 %v5059_v17, %v4792_v59  ;;  %v2105_v60 = vmax.f32 %v4703_v36, %v5070_v24  ;;  %v1670_v29 = vmin.f32 %v4830_v10, %v4933_v12  ;;  %s5130_s2 = sld [smem:[#allocation7 + %s2317_s13]]  ;;  %s2319_s4 = sadd.s32 33, %s4633_s23 }
  0x9b   : > { %v1312_v31 = vadd.f32 %v5056_v0, %v1301_v3  ;;  %v5079_v16 = vmul.f32 %v1929_v23, %v1891_v6  ;;  %v5091_v3 = vstv %s5053_s5  ;;  %v1680_v6 = vmax.f32 %v4733_v43, %v4911_v55  ;;  %s2180_s5 = ssub.f32 %s5061_s0, %s5042_s21  ;;  %s2545_s14 = sadd.s32 35, %s4633_s23 }
  0x9c   : > { %9605 = vst [vmem:[#allocation52_spill] sm:$0xff] %v5091_v3  ;;  %v1098_v14 = vsel %vm1089_vm3, %v5050_v62, -2.0  ;;  %v2095_v20 = vmin.f32 %v4719_v39, %v5091_v3  ;;  %v2143_v7 = vmax.f32 %v4700_v35, %v5086_v5  ;;  %v5115_v50 = vstv %s9606_s15  ;;  %s5151_s24 = scalar_select %p1859_p8, 1, 0 }
  0x9d   : > { %v3909_v41 = vpop.eup %3908  ;;  %9607 = vst [vmem:[#allocation53_spill] sm:$0xff] %v5115_v50  ;;  %v5118_v49 = vstv %s5061_s0  ;;  %v1274_v12 = vmax.f32 %v1265_v26, 1e-08  ;;  %v1960_v54 = vsub.f32 %v1951_v57, %v5079_v16  ;;  %vm5133_vm4 = vcmp.gt.f32.partialorder %v1312_v31, %v1098_v14  ;;  %s2181_s21 = smul.f32 %s2180_s5, %s2179_s17  ;;  %s2089_s0 = sadd.s32 29, %s4633_s23 }
  0x9e   : > { %v3911_v23 = vpop.eup %3910  ;;  %v1515_v53 = vmul.f32 %v3909_v41, %v4928_v8  ;;  %9608 = vst [vmem:[#allocation54_spill] sm:$0xff] %v5118_v49  ;;  %v5123_v8 = vmul.f32 %v1466_v46, %v1428_v28  ;;  %v5125_v41 = vstv %s3640_s6  ;;  %v2114_v55 = vsub.f32 %v2095_v20, %v2105_v60  ;;  %s5140_s6 = sld [smem:[#allocation7 + %s2319_s4]]  ;;  %s5159_s17 = sadd.f32 -1.0, %s1629_s18 }
  0x9f   : > { %9609 = vst [vmem:[#allocation55_spill] sm:$0xff] %v5125_v41  ;;  %v2133_v34 = vmin.f32 %v4706_v37, %v5118_v49  ;;  %v1053_v26 = vmul.f32 %v3911_v23, %v4948_v22  ;;  %v1651_v28 = vsub.f32 %v1632_v25, %v1642_v15  ;;  %v1689_v46 = vsub.f32 %v1670_v29, %v1680_v6  ;;  %s5169_s15 = sld [smem:[#allocation7 + %s2089_s0]]  ;;  %s2547_s5 = sadd.s32 36, %s4633_s23 }
  0xa0   : > { %v1533_v20 = vmul.f32 %v5115_v50, %v1515_v53  ;;  %v2123_v57 = vmax.f32 %v2114_v55, 0.0  ;;  %v5143_v21 = vstv %s5088_s25  ;;  %v5147_v13 = vstv %s1629_s18  ;;  %v3913_v15 = vpop.eup %3912  ;;  %s5173_s8 = sld [smem:[#allocation7 + %s2545_s14]]  ;;  %s2411_s18 = ssub.f32 %s5130_s2, %s5088_s25 }
  0xa1   : > { %v2152_v60 = vsub.f32 %v2133_v34, %v2143_v7  ;;  %9612 = vst [vmem:[#allocation56_spill] sm:$0xff] %v5143_v21  ;;  %9613 = vst [vmem:[#allocation57_spill] sm:$0xff] %v5147_v13  ;;  %v5153_v22 = vstv %s2181_s21  ;;  %3914 = vrcp.f32 %v1274_v12  ;;  %v1497_v53 = vsub.f32 %v5065_v19, %v5123_v8  ;;  %s5189_s13 = sld [smem:[#allocation7 + %s2547_s5]]  ;;  %s2551_s21 = sadd.s32 38, %s4633_s23 }
  0xa2   : > { %9614 = vst [vmem:[#allocation58_spill] sm:$0xff] %v5153_v22  ;;  %v1969_v7 = vmax.f32 %v1960_v54, 1e-08  ;;  %v2183_v55 = vadd.f32 %v5153_v22, %v4792_v59  ;;  %v5164_v25 = vstv %s5111_s3  ;;  %v1330_v12 = vsel %vm5133_vm4, %v1312_v31, %v1098_v14  ;;  %s1861_s0 = scvt.s32.f32 %s5151_s24  ;;  %s2321_s24 = sadd.s32 34, %s4633_s23 }
  0xa3   : > { %v2161_v34 = vmax.f32 %v2152_v60, 0.0  ;;  %9615 = vst [vmem:[#allocation59_spill] sm:$0xff] %v5164_v25  ;;  %v2337_v19 = vmax.f32 %v4703_v36, %v5143_v21  ;;  %v1660_v54 = vmax.f32 %v1651_v28, 0.0  ;;  %v1698_v29 = vmax.f32 %v1689_v46, 0.0 }
  0xa4   : > { %v1544_v6 = vadd.f32 %v5125_v41, %v1533_v20  ;;  %v5179_v60 = vstv %s5130_s2  ;;  %v1070_v14 = vmul.f32 %v4986_v2, %v1053_v26  ;;  %v2375_v28 = vmax.f32 %v4700_v35, %v5164_v25  ;;  %s2412_s25 = ssub.f32 %s5140_s6, %s5111_s3  ;;  %s2549_s2 = sadd.s32 37, %s4633_s23 }
  0xa5   : > { %v5176_v23 = vmul.f32 %v2161_v34, %v2123_v57  ;;  %9616 = vst [vmem:[#allocation60_spill] sm:$0xff] %v5179_v60  ;;  %v2327_v31 = vmin.f32 %v4719_v39, %v5179_v60  ;;  %v1506_v46 = vmax.f32 %v1497_v53, 1e-08  ;;  %v1864_v20 = vmin.f32 %v4805_v1, %v5006_v18  ;;  %s5204_s4 = sld [smem:[#allocation7 + %s2549_s2]]  ;;  %p2091_p9 = scmp.ne.f32.partialorder %s5169_s15, -1.0 }
  0xa6   : > { %3916 = vrcp.f32 %v1969_v7  ;;  %v5195_v34 = vstv %s5140_s6  ;;  %v1874_v26 = vmax.f32 %v4802_v63, %v4975_v47  ;;  %v5207_v53 = vmul.f32 %v1698_v29, %v1660_v54  ;;  %s2413_s3 = smul.f32 %s2412_s25, %s2411_s18  ;;  %s5223_s6 = sld [smem:[#allocation7 + %s2551_s21]] }
  0xa7   : > { %v2192_v57 = vsub.f32 %v2183_v55, %v5176_v23  ;;  %9617 = vst [vmem:[#allocation61_spill] sm:$0xff] %v5195_v34  ;;  %v2346_v2 = vsub.f32 %v2327_v31, %v2337_v19  ;;  %v2365_v9 = vmin.f32 %v4706_v37, %v5195_v34  ;;  %v1720_v7 = vadd.f32 %v4965_v33, %v4902_v51  ;;  %s5258_s14 = sadd.f32 -1.0, %s1861_s0  ;;  %s5264_s18 = sld [smem:[#allocation7 + %s2321_s24]] }
  0xa8   : > { %vm5211_vm5 = vcmp.gt.f32.partialorder %v1544_v6, %v1330_v12  ;;  %v5216_v18 = vstv %s5159_s17  ;;  %v5219_v19 = vadd.f32 %v5022_v30, %v1070_v14  ;;  %v1747_v31 = vmul.f32 %v3913_v15, %v4980_v58 }
  0xa9   : > { %9620 = vst [vmem:[#allocation62_spill] sm:$0xff] %v5216_v18  ;;  %v2201_v47 = vmax.f32 %v2192_v57, 1e-08  ;;  %v2355_v54 = vmax.f32 %v2346_v2, 0.0  ;;  %v2384_v29 = vsub.f32 %v2365_v9, %v2375_v28  ;;  %v5226_v33 = vstv %s5173_s8 }
  0xaa   : > { %9621 = vst [vmem:[#allocation63_spill] sm:$0xff] %v5219_v19  ;;  %9622 = vst [vmem:[#allocation64_spill] sm:$0xff] %v5226_v33  ;;  %v5228_v4 = vstv %s2413_s3  ;;  %3918 = vrcp.f32 %v1506_v46  ;;  %v1883_v57 = vsub.f32 %v1864_v20, %v1874_v26  ;;  %v1902_v14 = vmin.f32 %v4830_v10, %v5035_v44 }
  0xab   : > { %9623 = vst [vmem:[#allocation65_spill] sm:$0xff] %v5228_v4  ;;  %v3915_v58 = vpop.eup %3914  ;;  %v2393_v15 = vmax.f32 %v2384_v29, 0.0  ;;  %v2415_v2 = vadd.f32 %v5228_v4, %v4792_v59  ;;  %v5235_v9 = vstv %s5189_s13  ;;  %v1729_v28 = vsub.f32 %v1720_v7, %v5207_v53  ;;  %s2643_s17 = ssub.f32 %s5204_s4, %s5173_s8 }
  0xac   : > { %9624 = vst [vmem:[#allocation66_spill] sm:$0xff] %v5235_v9  ;;  %v5240_v30 = vsel %vm5211_vm5, %v1544_v6, %v1330_v12  ;;  %3920 = vrcp.f32 %v2201_v47  ;;  %v2569_v46 = vmax.f32 %v4703_v36, %v5226_v33  ;;  %v1912_v20 = vmax.f32 %v4733_v43, %v4997_v11  ;;  %s2644_s5 = ssub.f32 %s5223_s6, %s5189_s13  ;;  %s2553_s13 = sadd.s32 39, %s4633_s23 }
  0xad   : > { %v1765_v26 = vmul.f32 %v5147_v13, %v1747_v31  ;;  %v5249_v29 = vstv %s1861_s0  ;;  %v5251_v7 = vmul.f32 %v2393_v15, %v2355_v54  ;;  %v5254_v12 = vstv %s5204_s4  ;;  %s5276_s8 = scalar_select %p2091_p9, 1, 0 }
  0xae   : > { %9625 = vst [vmem:[#allocation67_spill] sm:$0xff] %v5249_v29  ;;  %9626 = vst [vmem:[#allocation68_spill] sm:$0xff] %v5254_v12  ;;  %v2559_v47 = vmin.f32 %v4719_v39, %v5254_v12  ;;  %v2607_v36 = vmax.f32 %v4700_v35, %v5235_v9  ;;  %v1892_v6 = vmax.f32 %v1883_v57, 0.0  ;;  %v1921_v44 = vsub.f32 %v1902_v14, %v1912_v20  ;;  %s2645_s25 = smul.f32 %s2644_s5, %s2643_s17  ;;  %s5294_s23 = sld [smem:[#allocation7 + %s2553_s13]] }
  0xaf   : > { %v2424_v31 = vsub.f32 %v2415_v2, %v5251_v7  ;;  %v5268_v54 = vstv %s5223_s6  ;;  %v1738_v15 = vmax.f32 %v1729_v28, 1e-08  ;;  %v2096_v11 = vmin.f32 %v4805_v1, %v5091_v3  ;;  %s2093_s2 = scvt.s32.f32 %s5276_s8  ;;  %p2323_p11 = scmp.ne.f32.partialorder %s5264_s18, -1.0 }
  0xb0   : > { %9627 = vst [vmem:[#allocation69_spill] sm:$0xff] %v5268_v54  ;;  %v3917_v61 = vpop.eup %3916  ;;  %v2578_v39 = vsub.f32 %v2559_v47, %v2569_v46  ;;  %v2597_v35 = vmin.f32 %v4706_v37, %v5268_v54  ;;  %v1930_v57 = vmax.f32 %v1921_v44, 0.0  ;;  %v1952_v14 = vadd.f32 %v5059_v17, %v4902_v51 }
  0xb1   : > { %v1776_v2 = vadd.f32 %v5216_v18, %v1765_v26  ;;  %v2433_v20 = vmax.f32 %v2424_v31, 1e-08  ;;  %v1285_v28 = vmul.f32 %v3915_v58, %v5045_v48  ;;  %v2106_v3 = vmax.f32 %v4802_v63, %v5070_v24  ;;  %s3643_s4 = sadd.f32 -1.0, %s2093_s2 }
  0xb2   : > { %v2587_v46 = vmax.f32 %v2578_v39, 0.0  ;;  %v2616_v47 = vsub.f32 %v2597_v35, %v2607_v36  ;;  %v5287_v56 = vmul.f32 %v1930_v57, %v1892_v6  ;;  %v2134_v37 = vmin.f32 %v4830_v10, %v5118_v49  ;;  %s5336_s21 = scalar_select %p2323_p11, 1, 0 }
  0xb3   : > { %v1979_v44 = vmul.f32 %v3917_v61, %v5079_v16  ;;  %v5292_v26 = vstv %s2645_s25  ;;  %3922 = vrcp.f32 %v1738_v15  ;;  %v2115_v31 = vsub.f32 %v2096_v11, %v2106_v3  ;;  %s4341_s25 = smov (!%p3675_p2), 1.0  }
  0xb4   : > { %9628 = vst [vmem:[#allocation70_spill] sm:$0xff] %v5292_v26  ;;  %v3919_v17 = vpop.eup %3918  ;;  %v2625_v48 = vmax.f32 %v2616_v47, 0.0  ;;  %v2647_v58 = vadd.f32 %v5292_v26, %v4792_v59  ;;  %v1961_v36 = vsub.f32 %v1952_v14, %v5287_v56  ;;  %v2144_v6 = vmax.f32 %v4733_v43, %v5086_v5  ;;  %p2555_p0 = scmp.ne.f32.partialorder %s5294_s23, -1.0  ;;  %s2325_s3 = scvt.s32.f32 %s5336_s21 }
  0xb5   : > { %v5302_v39 = vstv %s5258_s14  ;;  %3924 = vrcp.f32 %v2433_v20  ;;  %vm1090_vm6 = vcmp.gt.f32.partialorder %v5219_v19, -2.0  ;;  %v2124_v61 = vmax.f32 %v2115_v31, 0.0 }
  0xb6   : > { %9629 = vst [vmem:[#allocation71_spill] sm:$0xff] %v5302_v39  ;;  %v3921_v11 = vpop.eup %3920  ;;  %v5306_v16 = vmul.f32 %v2625_v48, %v2587_v46  ;;  %v1970_v3 = vmax.f32 %v1961_v36, 1e-08  ;;  %v2153_v15 = vsub.f32 %v2134_v37, %v2144_v6  ;;  %v2328_v59 = vmin.f32 %v4805_v1, %v5179_v60  ;;  %s5368_s0 = scalar_select %p2555_p0, 1, 0 }
  0xb7   : > { %vm5311_vm7 = vcmp.gt.f32.partialorder %v1776_v2, %v5240_v30  ;;  %v1997_v57 = vmul.f32 %v5249_v29, %v1979_v44  ;;  %v1302_v14 = vmul.f32 %v5026_v32, %v1285_v28  ;;  %v2338_v20 = vmax.f32 %v4802_v63, %v5143_v21 }
  0xb8   : > { %v2656_v46 = vsub.f32 %v2647_v58, %v5306_v16  ;;  %v2162_v47 = vmax.f32 %v2153_v15, 0.0  ;;  %v2184_v37 = vadd.f32 %v5153_v22, %v4902_v51  ;;  %v2366_v31 = vmin.f32 %v4830_v10, %v5195_v34  ;;  %s2557_s6 = scvt.s32.f32 %s5368_s0 }
  0xb9   : > { %v2211_v48 = vmul.f32 %v3921_v11, %v5176_v23  ;;  %v5326_v44 = vstv %s2093_s2  ;;  %v1517_v28 = vmul.f32 %v3919_v17, %v5123_v8  ;;  %v2347_v36 = vsub.f32 %v2328_v59, %v2338_v20 }
  0xba   : > { %9632 = vst [vmem:[#allocation72_spill] sm:$0xff] %v5326_v44  ;;  %v2665_v6 = vmax.f32 %v2656_v46, 1e-08  ;;  %3926 = vrcp.f32 %v1970_v3  ;;  %v5329_v32 = vmul.f32 %v2162_v47, %v2124_v61  ;;  %v2376_v58 = vmax.f32 %v4733_v43, %v5164_v25 }
  0xbb   : > { %v2008_v15 = vadd.f32 %v5302_v39, %v1997_v57  ;;  %v1099_v23 = vsel %vm1090_vm6, %v5219_v19, -2.0  ;;  %v1313_v11 = vadd.f32 %v5056_v0, %v1302_v14  ;;  %v1794_v17 = vsel %vm5311_vm7, %v1776_v2, %v5240_v30 }
  0xbc   : > { %v2193_v8 = vsub.f32 %v2184_v37, %v5329_v32  ;;  %v2356_v61 = vmax.f32 %v2347_v36, 0.0  ;;  %v2385_v3 = vsub.f32 %v2366_v31, %v2376_v58  ;;  %v2229_v57 = vmul.f32 %v5326_v44, %v2211_v48  ;;  %v9687_v37 = vld [vmem:[#allocation52_spill] sm:$0xff] }
  0xbd   : > { %v3923_v59 = vpop.eup %3922  ;;  %v5348_v20 = vstv %s3643_s4  ;;  %v1534_v46 = vmul.f32 %v5115_v50, %v1517_v28  ;;  %3928 = vrcp.f32 %v2665_v6  ;;  %v2416_v30 = vadd.f32 %v5228_v4, %v4902_v51 }
  0xbe   : > { %9633 = vst [vmem:[#allocation73_spill] sm:$0xff] %v5348_v20  ;;  %v2202_v14 = vmax.f32 %v2193_v8, 1e-08  ;;  %v2394_v47 = vmax.f32 %v2385_v3, 0.0  ;;  %vm5353_vm8 = vcmp.gt.f32.partialorder %v2008_v15, %v1794_v17  ;;  %vm5358_vm9 = vcmp.gt.f32.partialorder %v1313_v11, %v1099_v23 }
  0xbf   : > { %v3925_v2 = vpop.eup %3924  ;;  %v9636_v31 = vmov 0  ;;  %v2560_v48 = vmin.f32 %v4805_v1, %v5254_v12  ;;  %v2570_v28 = vmax.f32 %v4802_v63, %v5226_v33  ;;  %v2598_v6 = vmin.f32 %v4830_v10, %v5268_v54 }
  0xc0   : > { %v9637_v31 = vsel %vm5358_vm9, 4294967295, %v9636_v31  ;;  %3930 = vrcp.f32 %v2202_v14  ;;  %v5370_v36 = vmul.f32 %v2394_v47, %v2356_v61  ;;  %v2608_v58 = vmax.f32 %v4733_v43, %v5235_v9 }
  0xc1   : > { %9638 = vst [vmem:[#allocation74_spill] sm:$0xff] %v9637_v31  ;;  %v5377_v8 = vstv %s4882_s20  ;;  %v2240_v1 = vadd.f32 %v5348_v20, %v2229_v57  ;;  %v1545_v3 = vadd.f32 %v5125_v41, %v1534_v46  ;;  %v1749_v63 = vmul.f32 %v3923_v59, %v5207_v53  ;;  %s3644_s20 = sadd.f32 -1.0, %s2325_s3  ;;  %v9699_v31 = vld [vmem:[#allocation28_spill] sm:$0xff] }
  0xc2   : > { %9639 = vst [vmem:[#allocation75_spill] sm:$0xff] %v5377_v8  ;;  %v1144_v61 = vsel %vm1089_vm3, %v5377_v8, -1.0  ;;  %v5386_v14 = vstv %s4897_s16  ;;  %v2443_v10 = vmul.f32 %v3925_v2, %v5251_v7  ;;  %v2425_v47 = vsub.f32 %v2416_v30, %v5370_v36  ;;  %s3645_s16 = sadd.f32 -1.0, %s2557_s6 }
  0xc3   : > { %9640 = vst [vmem:[#allocation76_spill] sm:$0xff] %v5386_v14  ;;  %v2026_v43 = vsel %vm5353_vm8, %v2008_v15, %v1794_v17  ;;  %v5392_v50 = vstv %s2325_s3  ;;  %v1331_v57 = vsel %vm5358_vm9, %v1313_v11, %v1099_v23  ;;  %v2579_v46 = vsub.f32 %v2560_v48, %v2570_v28 }
  0xc4   : > { %9641 = vst [vmem:[#allocation77_spill] sm:$0xff] %v5392_v50  ;;  %v3927_v53 = vpop.eup %3926  ;;  %v2434_v59 = vmax.f32 %v2425_v47, 1e-08  ;;  %v2617_v41 = vsub.f32 %v2598_v6, %v2608_v58  ;;  %v1376_v7 = vsel %vm5133_vm4, %v5386_v14, %v1144_v61  ;;  %v5401_v30 = vstv %s4915_s27 }
  0xc5   : > { %9642 = vst [vmem:[#allocation78_spill] sm:$0xff] %v5401_v30  ;;  %v1766_v15 = vmul.f32 %v5147_v13, %v1749_v63  ;;  %vm5404_vm10 = vcmp.gt.f32.partialorder %v2240_v1, %v2026_v43  ;;  %v2461_v23 = vmul.f32 %v5392_v50, %v2443_v10  ;;  %vm5409_vm11 = vcmp.gt.f32.partialorder %v1545_v3, %v1331_v57 }
  0xc6   : > { %v9645_v11 = vmov 0  ;;  %v5413_v2 = vstv %s3644_s20  ;;  %v2840_v48 = vlaneseq  ;;  %v1981_v28 = vmul.f32 %v3927_v53, %v5287_v56 }
  0xc7   : > { %v9646_v11 = vsel %vm5409_vm11, 4294967295, %v9645_v11  ;;  %9648 = vst [vmem:[#allocation80_spill] sm:$0xff] %v5413_v2  ;;  %3932 = vrcp.f32 %v2434_v59  ;;  %v3929_v6 = vpop.eup %3928  ;;  %v1608_v58 = vsel %vm5211_vm5, %v5401_v30, %v1376_v7  ;;  %v5420_v63 = vstv %s4937_s26 }
  0xc8   : > { %9647 = vst [vmem:[#allocation79_spill] sm:$0xff] %v9646_v11  ;;  %9649 = vst [vmem:[#allocation81_spill] sm:$0xff] %v5420_v63  ;;  %v2588_v61 = vmax.f32 %v2579_v46, 0.0  ;;  %v2626_v10 = vmax.f32 %v2617_v41, 0.0  ;;  %v2258_v47 = vsel %vm5404_vm10, %v2240_v1, %v2026_v43  ;;  %v5424_v13 = vstv %s2557_s6  ;;  %s3447_s6 = scalar_lea.smem (!%p3675_p2), [#allocation8], %s4317_s9 }
  0xc9   : > { %9650 = vst [vmem:[#allocation82_spill] sm:$0xff] %v5424_v13  ;;  %v1563_v56 = vsel %vm5409_vm11, %v1545_v3, %v1331_v57  ;;  %v1777_v53 = vadd.f32 %v5216_v18, %v1766_v15  ;;  %v2472_v0 = vadd.f32 %v5413_v2, %v2461_v23  ;;  %v1107_v7 = vsel %vm1089_vm3, %v4709_v38, 0.0 }
  0xca   : > { %v3931_v59 = vpop.eup %3930  ;;  %v1116_v41 = vsel %vm1089_vm3, %v4727_v42, 0.0  ;;  %v1125_v1 = vsel %vm1089_vm3, %v4722_v40, 0.0  ;;  %v1840_v3 = vsel %vm5311_vm7, %v5420_v63, %v1608_v58  ;;  %v5443_v43 = vstv %s5028_s1  ;;  %s4340_s1 = smov 0.0  }
  0xcb   : > { %9651 = vst [vmem:[#allocation83_spill] sm:$0xff] %v5443_v43  ;;  %v2675_v57 = vmul.f32 %v3929_v6, %v5306_v16  ;;  %v1998_v46 = vmul.f32 %v5249_v29, %v1981_v28  ;;  %v5447_v15 = vstv %s3645_s16  ;;  %v5449_v23 = vmul.f32 %v2626_v10, %v2588_v61  ;;  %v9658_v6 = vld [vmem:[#allocation24_spill] sm:$0xff]  ;;  %v9659_v10 = vld [vmem:[#allocation25_spill] sm:$0xff]  ;;  %3799 = sst [smem:[#allocation2]] (%p3821_p1), %s4340_s1 }
  0xcc   : > { %9652 = vst [vmem:[#allocation84_spill] sm:$0xff] %v5447_v15  ;;  %v2648_v18 = vadd.f32 %v5292_v26, %v4902_v51  ;;  %v1134_v4 = vsel %vm1089_vm3, %v4738_v45, 0.0  ;;  %v1145_v58 = vsel %vm1090_vm6, %v5377_v8, -1.0  ;;  %vm5459_vm12 = vcmp.gt.f32.partialorder %v1777_v53, %v1563_v56  ;;  %v9662_v26 = vld [vmem:[#allocation29_spill] sm:$0xff]  ;;  %3800 = sst [smem:[#allocation2 + $0x1]] (%p3821_p1), %s4340_s1 }
  0xcd   : > { %v9653_v22 = vmov 0  ;;  %v2213_v16 = vmul.f32 %v3931_v59, %v5329_v32  ;;  %v1339_v28 = vsel %vm5133_vm4, %v4765_v52, %v1107_v7  ;;  %v2072_v51 = vsel %vm5353_vm8, %v5443_v43, %v1840_v3  ;;  %v9661_v3 = vld [vmem:[#allocation26_spill] sm:$0xff]  ;;  %3801 = sst [smem:[#allocation2 + $0x2]] (%p3821_p1), %s4340_s1  ;;  %s3673_s27 = sld [smem:[#allocation2 + $0x1]] }
  0xce   : > { %v9654_v22 = vsel %vm5459_vm12, 4294967295, %v9653_v22  ;;  %vm5470_vm13 = vcmp.gt.f32.partialorder %v2472_v0, %v2258_v47  ;;  %v1348_v61 = vsel %vm5133_vm4, %v9658_v6, %v1116_v41  ;;  %v1357_v32 = vsel %vm5133_vm4, %v9659_v10, %v1125_v1  ;;  %s3674_s26 = sld [smem:[#allocation2 + $0x2]]  ;;  %s3458_s1 = scalar_lea.smem (!%p3675_p2), [#allocation9], %s4317_s9 }
  0xcf   : > { %9655 = vst [vmem:[#allocation85_spill] sm:$0xff] %v9654_v22  ;;  %v5481_v59 = vstv %s5169_s15  ;;  %v2693_v7 = vmul.f32 %v5424_v13, %v2675_v57  ;;  %v2009_v8 = vadd.f32 %v5302_v39, %v1998_v46  ;;  %v1366_v29 = vsel %vm5133_vm4, %v9661_v3, %v1134_v4  ;;  %v9672_v39 = vld [vmem:[#allocation38_spill] sm:$0xff] }
  0xd0   : > { %9660 = vst [vmem:[#allocation86_spill] sm:$0xff] %v5481_v59  ;;  %v1377_v19 = vsel %vm5358_vm9, %v5386_v14, %v1145_v58  ;;  %v1795_v41 = vsel %vm5459_vm12, %v1777_v53, %v1563_v56  ;;  %v2657_v1 = vsub.f32 %v2648_v18, %v5449_v23  ;;  %v1571_v6 = vsel %vm5211_vm5, %v9662_v26, %v1339_v28  ;;  %v9665_v58 = vld [vmem:[#allocation33_spill] sm:$0xff]  ;;  %v9667_v28 = vld [vmem:[#allocation34_spill] sm:$0xff] }
  0xd1   : > { %v3933_v57 = vpop.eup %3932  ;;  %v5497_v13 = vshrl.u32 %v2840_v48, 7  ;;  %v2230_v46 = vmul.f32 %v5326_v44, %v2213_v16  ;;  %v1580_v4 = vsel %vm5211_vm5, %v9664_v27, %v1348_v61  ;;  %v1589_v56 = vsel %vm5211_vm5, %v9665_v58, %v1357_v32  ;;  %v9698_v22 = vld [vmem:[#allocation22_spill] sm:$0xff] }
  0xd2   : > { %v2304_v18 = vsel %vm5404_vm10, %v5481_v59, %v2072_v51  ;;  %v2490_v53 = vsel %vm5470_vm13, %v2472_v0, %v2258_v47  ;;  %v5512_v48 = vstv %s5264_s18  ;;  %v1598_v16 = vsel %vm5211_vm5, %v9667_v28, %v1366_v29  ;;  %v9671_v51 = vld [vmem:[#allocation35_spill] sm:$0xff]  ;;  %v9673_v29 = vld [vmem:[#allocation37_spill] sm:$0xff] }
  0xd3   : > { %9663 = vst [vmem:[#allocation87_spill] sm:$0xff] %v5497_v13  ;;  %9666 = vst [vmem:[#allocation88_spill] sm:$0xff] %v5512_v48  ;;  %v2704_v14 = vadd.f32 %v5447_v15, %v2693_v7  ;;  %v1609_v61 = vsel %vm5409_vm11, %v5401_v30, %v1377_v19  ;;  %vm5521_vm14 = vcmp.gt.f32.partialorder %v2009_v8, %v1795_v41  ;;  %v9668_v32 = vmov 0 }
  0xd4   : > { %v9669_v32 = vsel %vm5521_vm14, 4294967295, %v9668_v32  ;;  %v1803_v0 = vsel %vm5311_vm7, %v9671_v51, %v1571_v6  ;;  %v2445_v47 = vmul.f32 %v3933_v57, %v5370_v36  ;;  %v2666_v44 = vmax.f32 %v2657_v1, 1e-08  ;;  %v9675_v6 = vld [vmem:[#allocation39_spill] sm:$0xff] }
  0xd5   : > { %9670 = vst [vmem:[#allocation89_spill] sm:$0xff] %v9669_v32  ;;  %v1812_v55 = vsel %vm5311_vm7, %v9672_v39, %v1580_v4  ;;  %v1821_v7 = vsel %vm5311_vm7, %v9673_v29, %v1589_v56  ;;  %v2536_v19 = vsel %vm5470_vm13, %v5512_v48, %v2304_v18  ;;  %v5539_v30 = vstv %s5294_s23  ;;  %v9676_v4 = vld [vmem:[#allocation41_spill] sm:$0xff]  ;;  %v9679_v18 = vld [vmem:[#allocation43_spill] sm:$0xff] }
  0xd6   : > { %9674 = vst [vmem:[#allocation35_spill] sm:$0xff] %v5539_v30  ;;  %v2241_v11 = vadd.f32 %v5348_v20, %v2230_v46  ;;  %v1830_v36 = vsel %vm5311_vm7, %v9675_v6, %v1598_v16  ;;  %v2027_v1 = vsel %vm5521_vm14, %v2009_v8, %v1795_v41  ;;  %v2842_v57 = vadd.s32 8, %v5497_v13  ;;  %v9680_v16 = vld [vmem:[#allocation44_spill] sm:$0xff]  ;;  %v9681_v20 = vld [vmem:[#allocation47_spill] sm:$0xff] }
  0xd7   : > { %v2035_v56 = vsel %vm5353_vm8, %v9676_v4, %v1803_v0  ;;  %vm5551_vm15 = vcmp.gt.f32.partialorder %v2704_v14, %v2490_v53  ;;  %v1841_v46 = vsel %vm5459_vm12, %v5420_v63, %v1609_v61  ;;  %v2044_v35 = vsel %vm5353_vm8, %v9679_v18, %v1812_v55 }
  0xd8   : > { %v2053_v8 = vsel %vm5353_vm8, %v9680_v16, %v1821_v7  ;;  %v2768_v41 = vsel %vm5551_vm15, %v5539_v30, %v2536_v19  ;;  %v2462_v0 = vmul.f32 %v5392_v50, %v2445_v47  ;;  %3934 = vrcp.f32 %v2666_v44 }
  0xd9   : > { %v2062_v61 = vsel %vm5353_vm8, %v9681_v20, %v1830_v36  ;;  %vm5571_vm0 = vcmp.gt.f32.partialorder %v2241_v11, %v2027_v1  ;;  %v9682_v55 = vmov 0  ;;  %v2267_v7 = vsel %vm5404_vm10, %v5070_v24, %v2035_v56 }
  0xda   : > { %v9683_v55 = vsel %vm5571_vm0, 4294967295, %v9682_v55  ;;  %v5579_v63 = vand.u32 7, %v5497_v13  ;;  %v5581_v19 = vand.u32 7, %v2842_v57  ;;  %v2276_v44 = vsel %vm5404_vm10, %v5086_v5, %v2044_v35  ;;  %v5605_v35 = vld [vmem:[%s4517_s22 + $0xa0] sm:$0xff]  ;;  %v5608_v13 = vld [vmem:[%s4517_s22 + $0xe8] sm:$0xff] }
  0xdb   : > { %9684 = vst [vmem:[#allocation90_spill] sm:$0xff] %v9683_v55  ;;  %v2285_v47 = vsel %vm5404_vm10, %v9687_v37, %v2053_v8  ;;  %v5591_v36 = vsel %vm5551_vm15, %v2704_v14, %v2490_v53  ;;  %v5593_v50 = vtrunc.f32 %v2768_v41  ;;  %v2073_v56 = vsel %vm5521_vm14, %v5443_v43, %v1841_v46  ;;  %v5617_v46 = vld [vmem:[%s4517_s22 + $0x10] sm:$0xff] }
  0xdc   : > { %9685 = vst [vmem:[#allocation91_spill] sm:$0xff] %v5579_v63  ;;  %9686 = vst [vmem:[#allocation92_spill] sm:$0xff] %v5581_v19  ;;  %v2294_v57 = vsel %vm5404_vm10, %v5118_v49, %v2062_v61  ;;  %v5602_v19 = vld [vmem:[%s4517_s22 + $0x58] sm:$0xff]  ;;  %v2259_v14 = vsel %vm5571_vm0, %v2241_v11, %v2027_v1  ;;  %v2473_v53 = vadd.f32 %v5413_v2, %v2462_v0  ;;  %v9694_v30 = vmov 0 }
  0xdd   : > { %9688 = vst [vmem:[#allocation93_spill] sm:$0xff] %v5591_v36  ;;  %9689 = vst [vmem:[#allocation94_spill] sm:$0xff] %v5593_v50  ;;  %v2499_v8 = vsel %vm5470_vm13, %v5143_v21, %v2267_v7  ;;  %v2508_v17 = vsel %vm5470_vm13, %v5164_v25, %v2276_v44  ;;  %v2517_v41 = vsel %vm5470_vm13, %v5179_v60, %v2285_v47  ;;  %v3020_v63 = vmul.f32 0.5, %v9698_v22 }
  0xde   : > { %9690 = vst [vmem:[#allocation95_spill] sm:$0xff] %v5602_v19  ;;  %9691 = vst [vmem:[#allocation96_spill] sm:$0xff] %v5617_v46  ;;  %v5627_v61 = vsub.f32 %v5608_v13, %v5602_v19  ;;  %v5631_v11 = vsub.f32 %v5605_v35, %v5617_v46  ;;  %v2526_v1 = vsel %vm5470_vm13, %v5195_v34, %v2294_v57  ;;  %3936 = vrcp.f32 %v9698_v22 }
  0xdf   : > { %v937_v0 = vmin.f32 %v5608_v13, %v4722_v40  ;;  %v947_v7 = vmax.f32 %v5602_v19, %v4709_v38  ;;  %v975_v44 = vmin.f32 %v5605_v35, %v4738_v45  ;;  %v2305_v47 = vsel %vm5571_vm0, %v5481_v59, %v2073_v56  ;;  %v9700_v45 = vld [vmem:[#allocation24_spill] sm:$0xff] }
  0xe0   : > { %9692 = vst [vmem:[#allocation97_spill] sm:$0xff] %v5627_v61  ;;  %9693 = vst [vmem:[#allocation98_spill] sm:$0xff] %v5631_v11  ;;  %v5648_v43 = vsel %vm5551_vm15, %v5226_v33, %v2499_v8  ;;  %v5652_v62 = vmul.f32 %v5631_v11, %v5627_v61  ;;  %v985_v57 = vmax.f32 %v5617_v46, %v4727_v42  ;;  %v9697_v11 = vld [vmem:[#allocation21_spill] sm:$0xff] }
  0xe1   : > { %v5659_v2 = vsel %vm5551_vm15, %v5235_v9, %v2508_v17  ;;  %v2749_v56 = vsel %vm5551_vm15, %v5254_v12, %v2517_v41  ;;  %v956_v59 = vsub.f32 %v937_v0, %v947_v7  ;;  %v1169_v8 = vmin.f32 %v5608_v13, %v9659_v10 }
  0xe2   : > { %vm5666_vm1 = vcmp.gt.f32.partialorder %v2473_v53, %v2259_v14  ;;  %v2758_v61 = vsel %vm5551_vm15, %v5268_v54, %v2526_v1  ;;  %v3002_v55 = vmul.f32 0.5, %v9697_v11  ;;  %v994_v17 = vsub.f32 %v975_v44, %v985_v57  ;;  %v3935_v32 = vpop.eup %3934 }
  0xe3   : > { %v9695_v30 = vsel %vm5666_vm1, 4294967295, %v9694_v30  ;;  %v965_v41 = vmax.f32 %v956_v59, 0.0  ;;  %v1179_v0 = vmax.f32 %v5602_v19, %v4765_v52  ;;  %v1207_v7 = vmin.f32 %v5605_v35, %v9661_v3  ;;  %v4174_v52 = vld [vmem:[%s4517_s22 + $0x48] sm:$0xff] }
  0xe4   : > { %9696 = vst [vmem:[#allocation99_spill] sm:$0xff] %v9695_v30  ;;  %v5680_v36 = vsub.f32 %v2749_v56, %v5648_v43  ;;  %v1003_v10 = vmax.f32 %v994_v17, 0.0  ;;  %v1025_v1 = vadd.f32 %v9699_v31, %v5652_v62  ;;  %v1217_v44 = vmax.f32 %v5617_v46, %v9700_v45 }
  0xe5   : > { %v5689_v59 = vsel %vm5666_vm1, %v2473_v53, %v2259_v14  ;;  %v5694_v3 = vsel %vm5666_vm1, %v5512_v48, %v2305_v47  ;;  %v1188_v56 = vsub.f32 %v1169_v8, %v1179_v0  ;;  %v2677_v17 = vmul.f32 %v3935_v32, %v5449_v23  ;;  %v4175_v47 = vld [vmem:[%s4517_s22] sm:$0xff] }
  0xe6   : > { %9701 = vst [vmem:[#allocation21_spill] sm:$0xff] %v5689_v59  ;;  %9702 = vst [vmem:[#allocation22_spill] sm:$0xff] %v5694_v3  ;;  %v5698_v40 = vadd.f32 %v4174_v52, %v3002_v55  ;;  %v5701_v31 = vsub.f32 %v2758_v61, %v5659_v2  ;;  %v5703_v45 = vmul.f32 %v1003_v10, %v965_v41  ;;  %v3056_v23 = vmul.f32 0.5, %v5680_v36  ;;  %v9703_v10 = vld [vmem:[#allocation32_spill] sm:$0xff] }
  0xe7   : > { %v1197_v14 = vmax.f32 %v1188_v56, 0.0  ;;  %v1226_v53 = vsub.f32 %v1207_v7, %v1217_v44  ;;  %v1401_v57 = vmin.f32 %v5608_v13, %v9665_v58  ;;  %v5709_v50 = vadd.f32 %v4175_v47, %v3020_v63 }
  0xe8   : > { %v1034_v32 = vsub.f32 %v1025_v1, %v5703_v45  ;;  %v1257_v61 = vadd.f32 %v9703_v10, %v5652_v62  ;;  %v1411_v22 = vmax.f32 %v5602_v19, %v9662_v26  ;;  %v1439_v8 = vmin.f32 %v5605_v35, %v9667_v28 }
  0xe9   : > { %v1235_v55 = vmax.f32 %v1226_v53, 0.0  ;;  %3938 = vrcp.f32 %v9697_v11  ;;  %v1449_v41 = vmax.f32 %v5617_v46, %v9664_v27  ;;  %v1633_v0 = vmin.f32 %v5608_v13, %v9673_v29  ;;  %v9704_v11 = vld [vmem:[#allocation36_spill] sm:$0xff] }
  0xea   : > { %v1043_v63 = vmax.f32 %v1034_v32, 1e-08  ;;  %v1420_v1 = vsub.f32 %v1401_v57, %v1411_v22  ;;  %v1643_v44 = vmax.f32 %v5602_v19, %v9671_v51  ;;  %v1671_v56 = vmin.f32 %v5605_v35, %v9675_v6 }
  0xeb   : > { %v5725_v7 = vmul.f32 %v1235_v55, %v1197_v14  ;;  %v1458_v53 = vsub.f32 %v1439_v8, %v1449_v41  ;;  %v1489_v47 = vadd.f32 %v9704_v11, %v5652_v62  ;;  %v1681_v32 = vmax.f32 %v5617_v46, %v9672_v39  ;;  %v9705_v11 = vld [vmem:[#allocation40_spill] sm:$0xff] }
  0xec   : > { %3940 = vrcp.f32 %v1043_v63  ;;  %v1429_v10 = vmax.f32 %v1420_v1, 0.0  ;;  %v1652_v14 = vsub.f32 %v1633_v0, %v1643_v44  ;;  %v1865_v57 = vmin.f32 %v5608_v13, %v9680_v16 }
  0xed   : > { %v1266_v52 = vsub.f32 %v1257_v61, %v5725_v7  ;;  %v1467_v55 = vmax.f32 %v1458_v53, 0.0  ;;  %v1690_v22 = vsub.f32 %v1671_v56, %v1681_v32  ;;  %v1875_v48 = vmax.f32 %v5602_v19, %v9676_v4  ;;  %v5750_v53 = vpop.eup %3936  ;;  %v9706_v32 = vld [vmem:[#allocation82_spill] sm:$0xff] }
  0xee   : > { %v1903_v8 = vmin.f32 %v5605_v35, %v9681_v20  ;;  %v1661_v41 = vmax.f32 %v1652_v14, 0.0  ;;  %v1721_v3 = vadd.f32 %v9705_v11, %v5652_v62  ;;  %v1913_v61 = vmax.f32 %v5617_v46, %v9679_v18 }
  0xef   : > { %v1275_v63 = vmax.f32 %v1266_v52, 1e-08  ;;  %v5746_v0 = vmul.f32 %v1467_v55, %v1429_v10  ;;  %v1699_v1 = vmax.f32 %v1690_v22, 0.0  ;;  %v1884_v44 = vsub.f32 %v1865_v57, %v1875_v48  ;;  %v9707_v55 = vld [vmem:[#allocation49_spill] sm:$0xff] }
  0xf0   : > { %v2097_v56 = vmin.f32 %v5608_v13, %v9687_v37  ;;  %v2694_v30 = vmul.f32 %v9706_v32, %v2677_v17  ;;  %v1922_v52 = vsub.f32 %v1903_v8, %v1913_v61  ;;  %v2107_v14 = vmax.f32 %v5602_v19, %v5070_v24 }
  0xf1   : > { %3942 = vrcp.f32 %v1275_v63  ;;  %v1498_v11 = vsub.f32 %v1489_v47, %v5746_v0  ;;  %v5756_v59 = vmul.f32 %v1699_v1, %v1661_v41  ;;  %v1893_v10 = vmax.f32 %v1884_v44, 0.0 }
  0xf2   : > { %v2135_v48 = vmin.f32 %v5605_v35, %v5118_v49  ;;  %v1931_v57 = vmax.f32 %v1922_v52, 0.0  ;;  %v1953_v22 = vadd.f32 %v9707_v55, %v5652_v62  ;;  %v2116_v37 = vsub.f32 %v2097_v56, %v2107_v14 }
  0xf3   : > { %v2145_v17 = vmax.f32 %v5617_v46, %v5086_v5  ;;  %v5764_v8 = vpop.eup %3938  ;;  %v3074_v63 = vmul.f32 0.5, %v5701_v31  ;;  %v1507_v41 = vmax.f32 %v1498_v11, 1e-08  ;;  %v1730_v61 = vsub.f32 %v1721_v3, %v5756_v59 }
  0xf4   : > { %v5770_v1 = vadd.f32 %v5447_v15, %v2694_v30  ;;  %v5773_v44 = vadd.f32 %v3056_v23, %v5648_v43  ;;  %v5775_v52 = vmul.f32 %v1931_v57, %v1893_v10  ;;  %v2125_v56 = vmax.f32 %v2116_v37, 0.0  ;;  %v9708_v30 = vld [vmem:[#allocation58_spill] sm:$0xff] }
  0xf5   : > { %3944 = vrcp.f32 %v1507_v41  ;;  %v1739_v55 = vmax.f32 %v1730_v61, 1e-08  ;;  %v2154_v32 = vsub.f32 %v2135_v48, %v2145_v17  ;;  %v2329_v49 = vmin.f32 %v5608_v13, %v5179_v60 }
  0xf6   : > { %v3941_v14 = vpop.eup %3940  ;;  %v1962_v3 = vsub.f32 %v1953_v22, %v5775_v52  ;;  %v2185_v47 = vadd.f32 %v9708_v30, %v5652_v62  ;;  %v2339_v43 = vmax.f32 %v5602_v19, %v5143_v21  ;;  %v2367_v37 = vmin.f32 %v5605_v35, %v5195_v34  ;;  %v9710_v30 = vld [vmem:[#allocation45_spill] sm:$0xff] }
  0xf7   : > { %v1055_v11 = vmul.f32 %v3941_v14, %v5703_v45  ;;  %3946 = vrcp.f32 %v1739_v55  ;;  %v2163_v23 = vmax.f32 %v2154_v32, 0.0  ;;  %v2377_v10 = vmax.f32 %v5617_v46, %v5164_v25  ;;  %v9709_v45 = vld [vmem:[#allocation42_spill] sm:$0xff] }
  0xf8   : > { %v5790_v48 = vadd.f32 %v3074_v63, %v5659_v2  ;;  %v1971_v22 = vmax.f32 %v1962_v3, 1e-08  ;;  %v2348_v17 = vsub.f32 %v2329_v49, %v2339_v43  ;;  %v2561_v55 = vmin.f32 %v5608_v13, %v5254_v12  ;;  %v9711_v43 = vld [vmem:[#allocation65_spill] sm:$0xff]  ;;  %v9714_v13 = vld [vmem:[#allocation48_spill] sm:$0xff] }
  0xf9   : > { %v1071_v57 = vmul.f32 %v9709_v45, %v1055_v11  ;;  %v5793_v41 = vmul.f32 %v2163_v23, %v2125_v56  ;;  %v2386_v61 = vsub.f32 %v2367_v37, %v2377_v10  ;;  %v2571_v32 = vmax.f32 %v5602_v19, %v5226_v33  ;;  %v9712_v10 = vld [vmem:[#allocation46_spill] sm:$0xff]  ;;  %v9724_v19 = vld [vmem:[#allocation53_spill] sm:$0xff] }
  0xfa   : > { %3948 = vrcp.f32 %v1971_v22  ;;  %v2357_v2 = vmax.f32 %v2348_v17, 0.0  ;;  %v2599_v63 = vmin.f32 %v5605_v35, %v5268_v54  ;;  %v2417_v23 = vadd.f32 %v9711_v43, %v5652_v62 }
  0xfb   : > { %v3943_v14 = vpop.eup %3942  ;;  %v5800_v15 = vadd.f32 %v9710_v30, %v1071_v57  ;;  %v2194_v56 = vsub.f32 %v2185_v47, %v5793_v41  ;;  %v2395_v11 = vmax.f32 %v2386_v61, 0.0  ;;  %v2580_v3 = vsub.f32 %v2561_v55, %v2571_v32  ;;  %v9713_v47 = vld [vmem:[#allocation70_spill] sm:$0xff] }
  0xfc   : > { %v1287_v49 = vmul.f32 %v3943_v14, %v5725_v7  ;;  %v2609_v37 = vmax.f32 %v5617_v46, %v5235_v9  ;;  %v2649_v22 = vadd.f32 %v9713_v47, %v5652_v62  ;;  %v1117_v62 = vsel %vm1090_vm6, %v4727_v42, 0.0  ;;  %v9725_v42 = vld [vmem:[#allocation25_spill] sm:$0xff] }
  0xfd   : > { %vm1091_vm2 = vcmp.gt.f32.partialorder %v5800_v15, -2.0  ;;  %v2203_v57 = vmax.f32 %v2194_v56, 1e-08  ;;  %v5821_v61 = vmul.f32 %v2395_v11, %v2357_v2  ;;  %v2589_v55 = vmax.f32 %v2580_v3, 0.0  ;;  %v9716_v11 = vld [vmem:[#allocation18_spill] sm:$0xff] }
  0xfe   : > { %v1303_v7 = vmul.f32 %v9712_v10, %v1287_v49  ;;  %v1100_v17 = vsel %vm1091_vm2, %v5800_v15, -2.0  ;;  %v2618_v32 = vsub.f32 %v2599_v63, %v2609_v37  ;;  %v1108_v49 = vsel %vm1090_vm6, %v4709_v38, 0.0 }
  0xff   : > { %v3945_v14 = vpop.eup %3944  ;;  %3950 = vrcp.f32 %v2203_v57  ;;  %v2426_v47 = vsub.f32 %v2417_v23, %v5821_v61  ;;  %v1126_v63 = vsel %vm1090_vm6, %v9716_v11, 0.0 }
 0x100   : > { %v1314_v43 = vadd.f32 %v9714_v13, %v1303_v7  ;;  %v1519_v56 = vmul.f32 %v3945_v14, %v5746_v0  ;;  %v2627_v2 = vmax.f32 %v2618_v32, 0.0  ;;  %v9719_v7 = vld [vmem:[#allocation20_spill] sm:$0xff]  ;;  %v9720_v13 = vld [vmem:[#allocation23_spill] sm:$0xff]  ;;  %v9723_v32 = vmax.f32 %v5701_v31, 1.0 }
 0x101   : > { %v3947_v3 = vpop.eup %3946  ;;  %v1135_v57 = vsel %vm1090_vm6, %v9719_v7, 0.0  ;;  %v1340_v0 = vsel %vm5358_vm9, %v9720_v13, %v1108_v49  ;;  %v9722_v14 = vld [vmem:[#allocation24_spill] sm:$0xff]  ;;  %v2435_v7 = vmax.f32 %v2426_v47, 1e-08  ;;  %v1358_v49 = vsel %vm5358_vm9, %v9725_v42, %v1126_v63  ;;  %v9726_v13 = vld [vmem:[#allocation26_spill] sm:$0xff] }
 0x102   : > { %vm5835_vm3 = vcmp.gt.f32.partialorder %v1314_v43, %v1100_v17  ;;  %v1349_v23 = vsel %vm5358_vm9, %v9722_v14, %v1117_v62  ;;  %v3164_v30 = vmul.f32 %v5750_v53, %v9723_v32  ;;  %v1535_v46 = vmul.f32 %v9724_v19, %v1519_v56  ;;  %v9727_v32 = vld [vmem:[#allocation93_spill] sm:$0xff]  ;;  %v9728_v14 = vld [vmem:[#allocation55_spill] sm:$0xff] }
 0x103   : > { %v1332_v45 = vsel %vm5835_vm3, %v1314_v43, %v1100_v17  ;;  %v1751_v35 = vmul.f32 %v3947_v3, %v5756_v59  ;;  %v5855_v11 = vmul.f32 %v2627_v2, %v2589_v55  ;;  %v1367_v31 = vsel %vm5358_vm9, %v9726_v13, %v1135_v57  ;;  %v9729_v17 = vld [vmem:[#allocation57_spill] sm:$0xff]  ;;  %v9731_v2 = vld [vmem:[#allocation91_spill] sm:$0xff]  ;;  %v9734_v57 = vld [vmem:[#allocation62_spill] sm:$0xff] }
 0x104   : > { %v3949_v62 = vpop.eup %3948  ;;  %vm9464_vm4 = vcmp.ge.f32.partialorder %v9727_v32, 0.5  ;;  %v1546_v43 = vadd.f32 %v9728_v14, %v1535_v46  ;;  %v1572_v47 = vsel %vm5409_vm11, %v9662_v26, %v1340_v0  ;;  %v1581_v55 = vsel %vm5409_vm11, %v9664_v27, %v1349_v23  ;;  %v9739_v59 = vld [vmem:[#allocation75_spill] sm:$0xff]  ;;  %v6036_v32 = vpop.permute.xlu0 %398 }
 0x105   : > { %v1767_v56 = vmul.f32 %v9729_v17, %v1751_v35  ;;  %vm3218_vm5 = vcmp.eq.s32.totalorder %v9731_v2, 0  ;;  %v1983_v10 = vmul.f32 %v3949_v62, %v5775_v52  ;;  %3952 = vrcp.f32 %v2435_v7  ;;  %v9735_v7 = vld [vmem:[#allocation67_spill] sm:$0xff]  ;;  %9771 = vst [vmem:[#allocation91_spill] sm:$0xff] %v6036_v32 }
 0x106   : > { %v2658_v63 = vsub.f32 %v2649_v22, %v5855_v11  ;;  %v1590_v46 = vsel %vm5409_vm11, %v9665_v58, %v1358_v49  ;;  %3954 = vlog2.f32 %v3164_v30  ;;  %vm3236_vm6 = vcmp.eq.s32.totalorder %v9731_v2, 1  ;;  %v4177_v62 = vld [vmem:[%s4517_s22 + $0x50] sm:$0xff] }
 0x107   : > { %vm5879_vm7 = vcmp.gt.f32.partialorder %v1546_v43, %v1332_v45  ;;  %v1778_v0 = vadd.f32 %v9734_v57, %v1767_v56  ;;  %v1599_v52 = vsel %vm5409_vm11, %v9667_v28, %v1367_v31  ;;  %v1999_v23 = vmul.f32 %v9735_v7, %v1983_v10 }
 0x108   : > { %v1564_v22 = vsel %vm5879_vm7, %v1546_v43, %v1332_v45  ;;  %v2667_v35 = vmax.f32 %v2658_v63, 1e-08  ;;  %v1804_v49 = vsel %vm5459_vm12, %v9671_v51, %v1572_v47  ;;  %v1813_v56 = vsel %vm5459_vm12, %v9672_v39, %v1581_v55  ;;  %v9740_v63 = vld [vmem:[#allocation71_spill] sm:$0xff] }
 0x109   : > { %vm5893_vm8 = vcmp.gt.f32.partialorder %v1778_v0, %v1564_v22  ;;  %v1822_v31 = vsel %vm5459_vm12, %v9673_v29, %v1590_v46  ;;  %v1831_v45 = vsel %vm5459_vm12, %v9675_v6, %v1599_v52  ;;  %v3951_v43 = vpop.eup %3950  ;;  %v1146_v47 = vsel %vm1091_vm2, %v9739_v59, -1.0 }
 0x10a   : > { %v1796_v10 = vsel %vm5893_vm8, %v1778_v0, %v1564_v22  ;;  %v2010_v7 = vadd.f32 %v9740_v63, %v1999_v23  ;;  %3956 = vrcp.f32 %v2667_v35  ;;  %v2215_v55 = vmul.f32 %v3951_v43, %v5793_v41  ;;  %v9747_v43 = vld [vmem:[#allocation72_spill] sm:$0xff] }
 0x10b   : > { %v2036_v46 = vsel %vm5521_vm14, %v9676_v4, %v1804_v49  ;;  %v2045_v52 = vsel %vm5521_vm14, %v9679_v18, %v1813_v56  ;;  %v2054_v30 = vsel %vm5521_vm14, %v9680_v16, %v1822_v31  ;;  %v2063_v41 = vsel %vm5521_vm14, %v9681_v20, %v1831_v45  ;;  %v9748_v45 = vld [vmem:[#allocation52_spill] sm:$0xff] }
 0x10c   : > { %vm5922_vm9 = vcmp.gt.f32.partialorder %v2010_v7, %v1796_v10  ;;  %v2268_v22 = vsel %vm5571_vm0, %v5070_v24, %v2036_v46  ;;  %v2277_v23 = vsel %vm5571_vm0, %v5086_v5, %v2045_v52  ;;  %v9745_v35 = vsub.f32 %v5790_v48, %v5709_v50  ;;  %v9749_v46 = vld [vmem:[#allocation21_spill] sm:$0xff] }
 0x10d   : > { %v9746_v56 = vmax.f32 %v5680_v36, 1.0  ;;  %v2231_v57 = vmul.f32 %v9747_v43, %v2215_v55  ;;  %v2286_v63 = vsel %vm5571_vm0, %v9748_v45, %v2054_v30  ;;  %vm5948_vm10 = vcmp.gt.f32.partialorder %v5770_v1, %v9749_v46  ;;  %v9753_v36 = vld [vmem:[#allocation76_spill] sm:$0xff]  ;;  %v9754_v55 = vld [vmem:[#allocation54_spill] sm:$0xff]  ;;  %v9764_v43 = vld [vmem:[#allocation77_spill] sm:$0xff] }
 0x10e   : > { %v3120_v49 = vmul.f32 %v5750_v53, %v9745_v35  ;;  %v9752_v50 = vsub.f32 %v5773_v44, %v5698_v40  ;;  %v1378_v48 = vsel %vm5835_vm3, %v9753_v36, %v1146_v47  ;;  %v2295_v52 = vsel %vm5571_vm0, %v9754_v55, %v2063_v41  ;;  %v9755_v35 = vld [vmem:[#allocation73_spill] sm:$0xff]  ;;  %v9757_v44 = vld [vmem:[#allocation22_spill] sm:$0xff]  ;;  %v9758_v47 = vld [vmem:[#allocation35_spill] sm:$0xff] }
 0x10f   : > { %v3191_v31 = vmul.f32 %v5764_v8, %v9746_v56  ;;  %v2028_v30 = vsel %vm5922_vm9, %v2010_v7, %v1796_v10  ;;  %v2242_v56 = vadd.f32 %v9755_v35, %v2231_v57  ;;  %v2500_v14 = vsel %vm5666_vm1, %v5143_v21, %v2268_v22 }
 0x110   : > { %v3147_v53 = vmul.f32 %v5764_v8, %v9752_v50  ;;  %v2509_v40 = vsel %vm5666_vm1, %v5164_v25, %v2277_v23  ;;  %v3953_v8 = vpop.eup %3952  ;;  %v2769_v0 = vsel %vm5948_vm10, %v9758_v47, %v9757_v44  ;;  %v9759_v41 = vmov 0.0   ;;  %v9761_v50 = vld [vmem:[#allocation78_spill] sm:$0xff] }
 0x111   : > { %v5978_v7 = vsel %vm9464_vm4, 1.0, %v9759_v41  ;;  %v2518_v10 = vsel %vm5666_vm1, %v5179_v60, %v2286_v63  ;;  %v2527_v22 = vsel %vm5666_vm1, %v5195_v34, %v2295_v52  ;;  %v3955_v23 = vpop.eup %3954  ;;  %3958 = vlog2.f32 %v3191_v31  ;;  %v9765_v52 = vld [vmem:[#allocation31_spill] sm:$0xff] }
 0x112   : > { %9760 = vst [vmem:[#allocation63_spill] sm:$0xff] %v5978_v7  ;;  %v3227_v57 = vsel %vm3218_vm5, %v3120_v49, 0.0  ;;  %v1610_v44 = vsel %vm5879_vm7, %v9761_v50, %v1378_v48  ;;  %v2447_v35 = vmul.f32 %v3953_v8, %v5821_v61  ;;  %v3245_v36 = vsel %vm3236_vm6, %v3147_v53, 0.0  ;;  %v9770_v41 = vld [vmem:[#allocation27_spill] sm:$0xff] }
 0x113   : > { %vm5994_vm11 = vcmp.gt.f32.partialorder %v2242_v56, %v2028_v30  ;;  %v6001_v31 = vsel %vm5948_vm10, %v5226_v33, %v2500_v14  ;;  %v2741_v49 = vsel %vm5948_vm10, %v5235_v9, %v2509_v40  ;;  %v2750_v61 = vsel %vm5948_vm10, %v5254_v12, %v2518_v10 }
 0x114   : > { %v2463_v48 = vmul.f32 %v9764_v43, %v2447_v35  ;;  %v2759_v53 = vsel %vm5948_vm10, %v5268_v54, %v2527_v22  ;;  %v3021_v8 = vmul.f32 0.5, %v9765_v52  ;;  %v3957_v50 = vpop.eup %3956  ;;  %v6018_v14 = vsel %vm5948_vm10, %v5770_v1, %v9749_v46  ;;  %v9768_v35 = vld [vmem:[#allocation81_spill] sm:$0xff]  ;;  %v9769_v43 = vld [vmem:[#allocation80_spill] sm:$0xff] }
 0x115   : > { %9766 = vst [vmem:[#allocation74_spill] sm:$0xff] %v6018_v14  ;;  %v6020_v40 = vtrunc.f32 %v2769_v0  ;;  %v1842_v10 = vsel %vm5893_vm8, %v9768_v35, %v1610_v44  ;;  %3960 = vrcp.f32 %v9765_v52  ;;  %v2260_v22 = vsel %vm5994_vm11, %v2242_v56, %v2028_v30  ;;  %v6038_v44 = vpop.permute.xlu1 %408  ;;  %v9773_v52 = vld [vmem:[#allocation83_spill] sm:$0xff] }
 0x116   : > { %v2474_v19 = vadd.f32 %v9769_v43, %v2463_v48  ;;  %v2679_v7 = vmul.f32 %v3957_v50, %v5855_v11  ;;  %3962 = vrcp.f32 %v9770_v41  ;;  %v6031_v1 = vmul.f32 0.6931472, %v3955_v23  ;;  %9772 = vst [vmem:[#allocation85_spill] sm:$0xff] %v6038_v44  ;;  %v4176_v11 = vld [vmem:[%s4517_s22 + $0x8] sm:$0xff]  ;;  %v9779_v43 = vld [vmem:[#allocation20_spill] sm:$0xff]  ;;  %v9780_v35 = vld [vmem:[#allocation23_spill] sm:$0xff] }
 0x117   : > { %9767 = vst [vmem:[#allocation79_spill] sm:$0xff] %v6020_v40  ;;  %v6033_v17 = vadd.f32 %v3245_v36, %v3227_v57  ;;  %v3039_v46 = vsub.f32 %v2750_v61, %v6001_v31  ;;  %v3048_v0 = vsub.f32 %v2759_v53, %v2741_v49  ;;  %v2074_v30 = vsel %vm5922_vm9, %v9773_v52, %v1842_v10  ;;  %v9776_v61 = vld [vmem:[#allocation19_spill] sm:$0xff]  ;;  %v9781_v44 = vld [vmem:[#allocation24_spill] sm:$0xff] }
 0x118   : > { %v3003_v56 = vmul.f32 0.5, %v9770_v41  ;;  %v6045_v50 = vadd.f32 %v4176_v11, %v3021_v8  ;;  %v1109_v36 = vsel %vm1091_vm2, %v4709_v38, 0.0  ;;  %vm6050_vm12 = vcmp.gt.f32.partialorder %v2474_v19, %v2260_v22  ;;  %v9777_v41 = vld [vmem:[#allocation82_spill] sm:$0xff]  ;;  %v9804_v40 = vld [vmem:[#allocation95_spill] sm:$0xff] }
 0x119   : > { %v3057_v57 = vmul.f32 0.5, %v3039_v46  ;;  %v3075_v48 = vmul.f32 0.5, %v3048_v0  ;;  %v1118_v53 = vsel %vm1091_vm2, %v9776_v61, 0.0  ;;  %vm3263_vm13 = vcmp.eq.s32.totalorder %v9731_v2, 2  ;;  %v9778_v8 = vld [vmem:[#allocation18_spill] sm:$0xff] }
 0x11a   : > { %v2695_v10 = vmul.f32 %v9777_v41, %v2679_v7  ;;  %v1127_v11 = vsel %vm1091_vm2, %v9778_v8, 0.0  ;;  %v1136_v52 = vsel %vm1091_vm2, %v9779_v43, 0.0  ;;  %v1341_v14 = vsel %vm5835_vm3, %v9780_v35, %v1109_v36 }
 0x11b   : > { %v1350_v32 = vsel %vm5835_vm3, %v9781_v44, %v1118_v53  ;;  %v1359_v7 = vsel %vm5835_vm3, %v9725_v42, %v1127_v11  ;;  %v1368_v41 = vsel %vm5835_vm3, %v9726_v13, %v1136_v52  ;;  %v1573_v15 = vsel %vm5879_vm7, %v9662_v26, %v1341_v14  ;;  %v3959_v61 = vpop.eup %3958 }
 0x11c   : > { %v3102_v43 = vmax.f32 %v3048_v0, 1.0  ;;  %v1582_v36 = vsel %vm5879_vm7, %v9664_v27, %v1350_v32  ;;  %v1591_v53 = vsel %vm5879_vm7, %v9665_v58, %v1359_v7  ;;  %v1600_v11 = vsel %vm5879_vm7, %v9667_v28, %v1368_v41  ;;  %v6096_v0 = vpop.permute.xlu0 %403  ;;  %v6098_v7 = vpop.permute.xlu1 %413  ;;  %v9783_v41 = vld [vmem:[#allocation84_spill] sm:$0xff] }
 0x11d   : > { %vm3290_vm14 = vcmp.eq.s32.totalorder %v9731_v2, 3  ;;  %v3084_v37 = vadd.f32 %v3075_v48, %v2741_v49  ;;  %v3093_v52 = vmax.f32 %v3039_v46, 1.0  ;;  %v1805_v14 = vsel %vm5893_vm8, %v9671_v51, %v1573_v15 }
 0x11e   : > { %v1814_v32 = vsel %vm5893_vm8, %v9672_v39, %v1582_v36  ;;  %v6102_v3 = vsel %vm6050_vm12, %v2474_v19, %v2260_v22  ;;  %v6105_v49 = vadd.f32 %v9783_v41, %v2695_v10  ;;  %v1823_v46 = vsel %vm5893_vm8, %v9673_v29, %v1591_v53 }
 0x11f   : > { %9782 = vst [vmem:[#allocation89_spill] sm:$0xff] %v6102_v3  ;;  %v1832_v48 = vsel %vm5893_vm8, %v9675_v6, %v1600_v11  ;;  %v3961_v15 = vpop.eup %3960  ;;  %v2037_v36 = vsel %vm5922_vm9, %v9676_v4, %v1805_v14  ;;  %v2046_v19 = vsel %vm5922_vm9, %v9679_v18, %v1814_v32  ;;  %v2055_v22 = vsel %vm5922_vm9, %v9680_v16, %v1823_v46  ;;  %v9785_v32 = vld [vmem:[#allocation86_spill] sm:$0xff] }
 0x120   : > { %9784 = vst [vmem:[#allocation90_spill] sm:$0xff] %v6105_v49  ;;  %v2064_v10 = vsel %vm5922_vm9, %v9681_v20, %v1832_v48  ;;  %v3963_v53 = vpop.eup %3962  ;;  %v3012_v11 = vadd.f32 %v4177_v62, %v3003_v56  ;;  %v3066_v41 = vadd.f32 %v3057_v57, %v6001_v31  ;;  %v3165_v39 = vmul.f32 %v3961_v15, %v3102_v43 }
 0x121   : > { %v2269_v14 = vsel %vm5994_vm11, %v5070_v24, %v2037_v36  ;;  %v3201_v4 = vmul.f32 0.6931472, %v3959_v61  ;;  %v2306_v18 = vsel %vm5994_vm11, %v9785_v32, %v2074_v30  ;;  %v2278_v59 = vsel %vm5994_vm11, %v5086_v5, %v2046_v19  ;;  %v9789_v61 = vld [vmem:[#allocation87_spill] sm:$0xff]  ;;  %v6156_v19 = vpop.permute.xlu0 %418 }
 0x122   : > { %v2287_v56 = vsel %vm5994_vm11, %v9748_v45, %v2055_v22  ;;  %vm6141_vm15 = vcmp.gt.f32.partialorder %v6105_v49, %v6102_v3  ;;  %v9786_v31 = vmov 0  ;;  %v3111_v43 = vsub.f32 %v3084_v37, %v6045_v50  ;;  %9790 = vst [vmem:[#allocation99_spill] sm:$0xff] %v6156_v19  ;;  %v6158_v22 = vpop.permute.xlu1 %423  ;;  %v9792_v50 = vld [vmem:[#allocation88_spill] sm:$0xff] }
 0x123   : > { %v9787_v31 = vsel %vm6141_vm15, 4294967295, %v9786_v31  ;;  %v3192_v57 = vmul.f32 %v3963_v53, %v3093_v52  ;;  %v2296_v30 = vsel %vm5994_vm11, %v9754_v55, %v2064_v10  ;;  %v2843_v46 = vadd.s32 16, %v9789_v61  ;;  %9791 = vst [vmem:[#allocation22_spill] sm:$0xff] %v6158_v22  ;;  %v9797_v10 = vld [vmem:[#allocation97_spill] sm:$0xff] }
 0x124   : > { %9788 = vst [vmem:[#allocation21_spill] sm:$0xff] %v9787_v31  ;;  %3964 = vlog2.f32 %v3165_v39  ;;  %v2501_v48 = vsel %vm6050_vm12, %v5143_v21, %v2269_v14  ;;  %v2510_v36 = vsel %vm6050_vm12, %v5164_v25, %v2278_v59  ;;  %v2538_v63 = vsel %vm6050_vm12, %v9792_v50, %v2306_v18  ;;  %v9793_v59 = vld [vmem:[#allocation92_spill] sm:$0xff] }
 0x125   : > { %v3138_v37 = vsub.f32 %v3066_v41, %v3012_v11  ;;  %v2519_v39 = vsel %vm6050_vm12, %v5179_v60, %v2287_v56  ;;  %v2528_v52 = vsel %vm6050_vm12, %v5195_v34, %v2296_v30  ;;  %v3272_v62 = vsel %vm3263_vm13, %v6031_v1, 0.0  ;;  %v9794_v30 = vld [vmem:[#allocation98_spill] sm:$0xff] }
 0x126   : > { %v2742_v18 = vsel %vm6141_vm15, %v5235_v9, %v2510_v36  ;;  %v2760_v41 = vsel %vm6141_vm15, %v5268_v54, %v2528_v52  ;;  %v3122_v11 = vmul.f32 %v3961_v15, %v3111_v43  ;;  %3966 = vlog2.f32 %v3192_v57  ;;  %v6198_v36 = vld [vmem:[%s4517_s22 + $0x60] sm:$0xff]  ;;  %v6204_v52 = vld [vmem:[%s4517_s22 + $0xf0] sm:$0xff] }
 0x127   : > { %v2733_v23 = vsel %vm6141_vm15, %v5226_v33, %v2501_v48  ;;  %v2751_v1 = vsel %vm6141_vm15, %v5254_v12, %v2519_v39  ;;  %v2770_v14 = vsel %vm6141_vm15, %v9758_v47, %v2538_v63  ;;  %vm3219_vm0 = vcmp.eq.s32.totalorder %v9793_v59, 0  ;;  %v6201_v39 = vld [vmem:[%s4517_s22 + $0xa8] sm:$0xff]  ;;  %v9803_v54 = vld [vmem:[#allocation91_spill] sm:$0xff] }
 0x128   : > { %v6189_v56 = vsub.f32 %v2760_v41, %v2742_v18  ;;  %3968 = vrcp.f32 %v9794_v30  ;;  %v3281_v15 = vadd.f32 %v3272_v62, %v6033_v17  ;;  %v3299_v43 = vsel %vm3290_vm14, %v3201_v4, 0.0  ;;  %v6212_v62 = vld [vmem:[%s4517_s22 + $0x18] sm:$0xff]  ;;  %v6214_v4 = vpop.permute.xlu0 %428 }
 0x129   : > { %v6195_v57 = vand.u32 7, %v2843_v46  ;;  %v3149_v48 = vmul.f32 %v3963_v53, %v3138_v37  ;;  %vm3237_vm1 = vcmp.eq.s32.totalorder %v9793_v59, 1  ;;  %v3022_v63 = vmul.f32 0.5, %v9794_v30  ;;  %9795 = vst [vmem:[#allocation31_spill] sm:$0xff] %v6214_v4  ;;  %v6216_v46 = vpop.permute.xlu1 %433  ;;  %v9798_v4 = vld [vmem:[#allocation20_spill] sm:$0xff] }
 0x12a   : > { %v6208_v41 = vsub.f32 %v2751_v1, %v2733_v23  ;;  %v3076_v17 = vmul.f32 0.5, %v6189_v56  ;;  %9796 = vst [vmem:[#allocation27_spill] sm:$0xff] %v6216_v46  ;;  %v6218_v53 = vtrunc.f32 %v2770_v14  ;;  %v3228_v37 = vsel %vm3219_vm0, %v3122_v11, 0.0 }
 0x12b   : > { %v3004_v22 = vmul.f32 0.5, %v9797_v10  ;;  %3970 = vrcp.f32 %v9797_v10  ;;  %v938_v30 = vmin.f32 %v6204_v52, %v9778_v8  ;;  %v948_v47 = vmax.f32 %v6198_v36, %v4709_v38  ;;  %v9801_v10 = vld [vmem:[#allocation19_spill] sm:$0xff] }
 0x12c   : > { %v3058_v1 = vmul.f32 0.5, %v6208_v41  ;;  %v976_v46 = vmin.f32 %v6201_v39, %v9798_v4  ;;  %v3246_v14 = vsel %vm3237_vm1, %v3149_v48, 0.0  ;;  %v6233_v50 = vsub.f32 %v6204_v52, %v6198_v36  ;;  %v9802_v4 = vld [vmem:[#allocation96_spill] sm:$0xff]  ;;  %v6250_v3 = vpop.permute.xlu0 %438 }
 0x12d   : > { %v6237_v11 = vsub.f32 %v6201_v39, %v6212_v62  ;;  %v986_v32 = vmax.f32 %v6212_v62, %v9801_v10  ;;  %v6241_v9 = vadd.f32 %v3299_v43, %v3281_v15  ;;  %vm3264_vm2 = vcmp.eq.s32.totalorder %v9793_v59, 2  ;;  %9805 = vst [vmem:[#allocation97_spill] sm:$0xff] %v6250_v3  ;;  %v9814_v3 = vld [vmem:[#allocation41_spill] sm:$0xff] }
 0x12e   : > { %9799 = vst [vmem:[#allocation92_spill] sm:$0xff] %v6233_v50  ;;  %v3965_v19 = vpop.eup %3964  ;;  %v3031_v48 = vadd.f32 %v3022_v63, %v9802_v4  ;;  %v3085_v38 = vadd.f32 %v3076_v17, %v2742_v18  ;;  %vm3291_vm3 = vcmp.eq.s32.totalorder %v9793_v59, 3  ;;  %v957_v21 = vsub.f32 %v938_v30, %v948_v47  ;;  %v604_v63 = vpop.permute.xlu1 %603 }
 0x12f   : > { %9800 = vst [vmem:[#allocation98_spill] sm:$0xff] %v6237_v11  ;;  %v995_v10 = vsub.f32 %v976_v46, %v986_v32  ;;  %v3255_v60 = vadd.f32 %v3246_v14, %v3228_v37  ;;  %v3013_v31 = vadd.f32 %v9804_v40, %v3004_v22  ;;  %v3067_v15 = vadd.f32 %v3058_v1, %v2733_v23 }
 0x130   : > { %v3103_v43 = vmax.f32 %v6189_v56, 1.0  ;;  %v3967_v49 = vpop.eup %3966  ;;  %vm3220_vm5 = vcmp.eq.s32.totalorder %v6195_v57, 0  ;;  %v3112_v40 = vsub.f32 %v3085_v38, %v3031_v48  ;;  %v1170_v22 = vmin.f32 %v6204_v52, %v9725_v42 }
 0x131   : > { %v1180_v23 = vmax.f32 %v6198_v36, %v9780_v35  ;;  %v966_v4 = vmax.f32 %v957_v21, 0.0  ;;  %v1004_v46 = vmax.f32 %v995_v10, 0.0  ;;  %v3094_v37 = vmax.f32 %v6208_v41, 1.0  ;;  %v9806_v21 = vld [vmem:[#allocation28_spill] sm:$0xff] }
 0x132   : > { %v3139_v1 = vsub.f32 %v3067_v15, %v3013_v31  ;;  %vm3238_vm6 = vcmp.eq.s32.totalorder %v6195_v57, 1  ;;  %v3203_v14 = vmul.f32 0.6931472, %v3967_v49  ;;  %v9807_v15 = vld [vmem:[#allocation85_spill] sm:$0xff]  ;;  %vm3265_vm7 = vcmp.eq.s32.totalorder %v6195_v57, 2 }
 0x133   : > { %v1189_v31 = vsub.f32 %v1170_v22, %v1180_v23  ;;  %v6272_v49 = vmul.f32 %v1004_v46, %v966_v4  ;;  %vm3292_vm8 = vcmp.eq.s32.totalorder %v6195_v57, 3  ;;  %v1634_v34 = vmin.f32 %v6204_v52, %v9673_v29 }
 0x135   : > { %v1198_v46 = vmax.f32 %v1189_v31, 0.0 }
 0x13d   : > { %v539_v61 = vpop.f32.mrb[0].mxu0 }
 0x13e   : > { %v739_v8 = vpop.f32.mrb[0].mxu1  ;;  %v540_v33 = vadd.f32 %v539_v61, %v9803_v54  ;;  %v3708_v12 = vpop.f32.mrb[1].mxu0  ;;  %v3176_v54 = vmul.f32 0.6931472, %v3965_v19 }
 0x13f   : > { %v3737_v25 = vpop.f32.mrb[1].mxu1  ;;  %v3969_v12 = vpop.eup %3968  ;;  %v740_v32 = vadd.f32 %v739_v8, %v604_v63 }
 0x140   : > { %v783_v18 = vsub.f32 0.0, %v540_v33  ;;  %v6255_v25 = vmul.f32 %v6237_v11, %v6233_v50  ;;  %v3166_v30 = vmul.f32 %v3969_v12, %v3103_v43  ;;  %v3971_v38 = vpop.eup %3970  ;;  %v3273_v48 = vsel %vm3264_vm2, %v3176_v54, 0.0 }
 0x141   : > { %v544_v47 = vpop.f32.mrb[2].mxu0  ;;  %v3193_v54 = vmul.f32 %v3971_v38, %v3094_v37  ;;  %v3282_v22 = vadd.f32 %v3273_v48, %v3255_v60 }
 0x142   : > { %v744_v61 = vpop.f32.mrb[2].mxu1  ;;  %v792_v33 = vmul.f32 1.442695, %v783_v18  ;;  %v545_v19 = vadd.f32 %v544_v47, %v6096_v0  ;;  %v3711_v56 = vpop.f32.mrb[3].mxu0  ;;  %v3317_v18 = vsub.f32 %v6241_v9, %v740_v32  ;;  %v1026_v41 = vadd.f32 %v9806_v21, %v6255_v25 }
 0x143   : > { %v3740_v17 = vpop.f32.mrb[3].mxu1  ;;  %v3151_v56 = vmul.f32 %v3971_v38, %v3139_v1  ;;  %v1208_v9 = vmin.f32 %v6201_v39, %v9726_v13  ;;  %v1218_v32 = vmax.f32 %v6212_v62, %v9781_v44  ;;  %v2098_v21 = vmin.f32 %v6204_v52, %v9748_v45 }
 0x144   : > { %3972 = vpow2.f32 %v792_v33  ;;  %v784_v8 = vsub.f32 0.0, %v545_v19  ;;  %v3124_v33 = vmul.f32 %v3969_v12, %v3112_v40  ;;  %v609_v17 = vpop.permute.xlu0 %608  ;;  %v6279_v23 = vand.u32 2147483647, %v3317_v18 }
 0x145   : > { %v549_v0 = vpop.f32.mrb[4].mxu0  ;;  %3974 = vlog2.f32 %v3166_v30  ;;  %v6281_v12 = vadd.f32 %v744_v61, %v609_v17  ;;  %v3300_v40 = vsel %vm3291_vm3, %v3203_v14, 0.0  ;;  %v1035_v38 = vsub.f32 %v1026_v41, %v6272_v49  ;;  %v9809_v41 = vld [vmem:[#allocation32_spill] sm:$0xff] }
 0x146   : > { %v6267_v63 = vpop.f32.mrb[4].mxu1  ;;  %v794_v10 = vmul.f32 1.442695, %v784_v8  ;;  %v550_v43 = vadd.f32 %v549_v0, %v9807_v15  ;;  %v3714_v47 = vpop.f32.mrb[5].mxu0  ;;  %v3229_v1 = vsel %vm3220_vm5, %v3124_v33, 0.0  ;;  %v3247_v48 = vsel %vm3238_vm6, %v3151_v56, 0.0 }
 0x147   : > { %v3743_v19 = vpop.f32.mrb[5].mxu1  ;;  %v1227_v18 = vsub.f32 %v1208_v9, %v1218_v32  ;;  %v1402_v14 = vmin.f32 %v6204_v52, %v9665_v58  ;;  %v6297_v31 = vadd.f32 %v3300_v40, %v3282_v22  ;;  %v1258_v15 = vadd.f32 %v9809_v41, %v6255_v25 }
 0x148   : > { %3976 = vpow2.f32 %v794_v10  ;;  %v785_v30 = vsub.f32 0.0, %v550_v43  ;;  %v1044_v10 = vmax.f32 %v1035_v38, 1e-08  ;;  %v1412_v43 = vmax.f32 %v6198_v36, %v9662_v26 }
 0x149   : > { %v554_v4 = vpop.f32.mrb[6].mxu0  ;;  %3978 = vlog2.f32 %v3193_v54  ;;  %v1236_v47 = vmax.f32 %v1227_v18, 0.0  ;;  %v1450_v33 = vmax.f32 %v6212_v62, %v9664_v27  ;;  %v6311_v54 = vmul.f32 4.5, %v6279_v23  ;;  %v9811_v18 = vld [vmem:[#allocation36_spill] sm:$0xff] }
 0x14a   : > { %v796_v37 = vmul.f32 1.442695, %v785_v30  ;;  %v6288_v8 = vpop.f32.mrb[6].mxu1  ;;  %v3717_v60 = vpop.f32.mrb[7].mxu0  ;;  %v6293_v61 = vadd.f32 %v554_v4, %v6098_v7  ;;  %v1440_v7 = vmin.f32 %v6201_v39, %v9667_v28  ;;  %v3256_v9 = vadd.f32 %v3247_v48, %v3229_v1 }
 0x14b   : > { %9808 = vst [vmem:[#allocation96_spill] sm:$0xff] %v6288_v8  ;;  %v3746_v0 = vpop.f32.mrb[7].mxu1  ;;  %v1421_v32 = vsub.f32 %v1402_v14, %v1412_v43  ;;  %v6314_v4 = vmul.f32 %v1236_v47, %v1198_v46  ;;  %v1644_v14 = vmax.f32 %v6198_v36, %v9671_v51  ;;  %v9812_v43 = vld [vmem:[#allocation38_spill] sm:$0xff]  ;;  %v1876_v8 = vmax.f32 %v6198_v36, %v9814_v3 }
 0x14c   : > { %3980 = vpow2.f32 %v796_v37  ;;  %v786_v40 = vsub.f32 0.0, %v6293_v61  ;;  %v1459_v37 = vsub.f32 %v1440_v7, %v1450_v33  ;;  %v1490_v0 = vadd.f32 %v9811_v18, %v6255_v25  ;;  %v9813_v7 = vld [vmem:[#allocation40_spill] sm:$0xff] }
 0x14d   : > { %v6308_v19 = vpop.f32.mrb[8].mxu0  ;;  %3982 = vrcp.f32 %v1044_v10  ;;  %v1430_v60 = vmax.f32 %v1421_v32, 0.0  ;;  %v1267_v1 = vsub.f32 %v1258_v15, %v6314_v4  ;;  %v1672_v61 = vmin.f32 %v6201_v39, %v9675_v6 }
 0x14e   : > { %9810 = vst [vmem:[#allocation91_spill] sm:$0xff] %v6308_v19  ;;  %v3973_v56 = vpop.eup %3972  ;;  %v3720_v17 = vpop.f32.mrb[9].mxu0  ;;  %v1468_v48 = vmax.f32 %v1459_v37, 0.0  ;;  %v1682_v47 = vmax.f32 %v6212_v62, %v9812_v43  ;;  %v1722_v33 = vadd.f32 %v9813_v7, %v6255_v25  ;;  %vm3335_vm11 = vcmp.le.f32.partialorder %v6279_v23, 0.11111111 }
 0x14f   : > { %v3975_v30 = vpop.eup %3974  ;;  %v810_v22 = vadd.f32 1.0, %v3973_v56  ;;  %v1276_v15 = vmax.f32 %v1267_v1, 1e-08 }
 0x150   : > { %v3178_v38 = vmul.f32 0.6931472, %v3975_v30  ;;  %v6331_v17 = vmul.f32 %v1468_v48, %v1430_v60  ;;  %v1691_v37 = vsub.f32 %v1672_v61, %v1682_v47  ;;  %v614_v61 = vpop.permute.xlu1 %613  ;;  %v3318_v47 = vsub.f32 %v6297_v31, %v6281_v12  ;;  %v6358_v31 = vpop.f32.mrb[8].mxu1 }
 0x151   : > { %3984 = vrcp.f32 %v810_v22  ;;  %v1653_v22 = vsub.f32 %v1634_v34, %v1644_v14  ;;  %v9815_v34 = vld [vmem:[#allocation94_spill] sm:$0xff]  ;;  %9820 = vst [vmem:[#allocation95_spill] sm:$0xff] %v6358_v31  ;;  %v6480_v45 = vpop.f32.mrb[10].mxu0 }
 0x152   : > { %v3977_v10 = vpop.eup %3976  ;;  %v3274_v46 = vsel %vm3265_vm7, %v3178_v38, 0.0  ;;  %v1866_v38 = vmin.f32 %v6204_v52, %v9680_v16  ;;  %v1499_v41 = vsub.f32 %v1490_v0, %v6331_v17  ;;  %v1700_v60 = vmax.f32 %v1691_v37, 0.0 }
 0x153   : > { %v811_v56 = vadd.f32 1.0, %v3977_v10  ;;  %v3283_v32 = vadd.f32 %v3274_v46, %v3256_v9  ;;  %v3979_v30 = vpop.eup %3978  ;;  %v1904_v10 = vmin.f32 %v6201_v39, %v9681_v20  ;;  %v1662_v9 = vmax.f32 %v1653_v22, 0.0 }
 0x154   : > { %v3205_v18 = vmul.f32 0.6931472, %v3979_v30  ;;  %v1885_v1 = vsub.f32 %v1866_v38, %v1876_v8  ;;  %v9816_v14 = vcvt.f32.s32 %v9815_v34  ;;  %v3664_v22 = vadd.f32 -0.055555556, %v6279_v23 }
 0x155   : > { %3986 = vrcp.f32 %v811_v56  ;;  %v1508_v56 = vmax.f32 %v1499_v41, 1e-08  ;;  %v750_v37 = vadd.f32 %v6267_v63, %v614_v61  ;;  %v6355_v38 = vmul.f32 %v1700_v60, %v1662_v9 }
 0x156   : > { %3988 = vrcp.f32 %v1276_v15  ;;  %v3981_v48 = vpop.eup %3980  ;;  %vm6343_vm9 = vcmp.eq.s32.totalorder %v9731_v2, %v9816_v14  ;;  %v3301_v0 = vsel %vm3292_vm8, %v3205_v18, 0.0  ;;  %v9819_v15 = vld [vmem:[#allocation43_spill] sm:$0xff]  ;;  %v798_v2 = vmul.f32 1.442695, %v786_v40  ;;  %v9821_v18 = vld [vmem:[#allocation74_spill] sm:$0xff]  ;;  %v3749_v40 = vpop.f32.mrb[9].mxu1 }
 0x157   : > { %v1914_v30 = vmax.f32 %v6212_v62, %v9819_v15  ;;  %v3983_v8 = vpop.eup %3982  ;;  %v3310_v34 = vadd.f32 %v3301_v0, %v3283_v32  ;;  %v1894_v7 = vmax.f32 %v1885_v1, 0.0  ;;  %vm9457_vm10 = vcmp.ge.f32.partialorder %v9821_v18, 0.5  ;;  %v9823_v1 = vld [vmem:[#allocation49_spill] sm:$0xff] }
 0x158   : > { %v1057_v14 = vmul.f32 %v3983_v8, %v6272_v49  ;;  %3990 = vrcp.f32 %v1508_v56  ;;  %v1731_v41 = vsub.f32 %v1722_v33, %v6355_v38  ;;  %v2108_v63 = vmax.f32 %v6198_v36, %v5070_v24  ;;  %v9822_v49 = vld [vmem:[#allocation42_spill] sm:$0xff] }
 0x159   : > { %v1923_v12 = vsub.f32 %v1904_v10, %v1914_v30  ;;  %v6366_v32 = vand.u32 2147483647, %v3318_v47  ;;  %v1954_v61 = vadd.f32 %v9823_v1, %v6255_v25  ;;  %v812_v56 = vadd.f32 1.0, %v3981_v48  ;;  %v9824_v30 = vld [vmem:[#allocation45_spill] sm:$0xff] }
 0x15a   : > { %v1072_v60 = vmul.f32 %v9822_v49, %v1057_v14  ;;  %3992 = vpow2.f32 %v798_v2  ;;  %v1740_v33 = vmax.f32 %v1731_v41, 1e-08  ;;  %v2136_v40 = vmin.f32 %v6201_v39, %v9754_v55  ;;  %v9825_v2 = vld [vmem:[#allocation89_spill] sm:$0xff]  ;;  %v9826_v41 = vld [vmem:[#allocation90_spill] sm:$0xff] }
 0x15b   : > { %v3985_v9 = vpop.eup %3984  ;;  %v1932_v10 = vmax.f32 %v1923_v12, 0.0  ;;  %v2146_v47 = vmax.f32 %v6212_v62, %v5086_v5  ;;  %v3353_v14 = vmul.f32 %v6311_v54, %v6279_v23  ;;  %v3319_v12 = vsub.f32 %v3310_v34, %v750_v37  ;;  %v9829_v54 = vld [vmem:[#allocation79_spill] sm:$0xff]  ;;  %9852 = vst [vmem:[#allocation90_spill] sm:$0xff] %v6480_v45  ;;  %v6482_v5 = vpop.f32.mrb[10].mxu1 }
 0x15c   : > { %v837_v0 = vmax.f32 %v3985_v9, 0.0001  ;;  %v6372_v8 = vadd.f32 %v9824_v30, %v1072_v60  ;;  %3994 = vrcp.f32 %v1740_v33  ;;  %v2117_v9 = vsub.f32 %v2098_v21, %v2108_v63  ;;  %v9843_v60 = vld [vmem:[#allocation58_spill] sm:$0xff]  ;;  %9853 = vst [vmem:[#allocation21_spill] sm:$0xff] %v6482_v5  ;;  %v9857_v5 = vld [vmem:[#allocation56_spill] sm:$0xff] }
 0x15d   : > { %v6374_v31 = vmul.f32 %v1932_v10, %v1894_v7  ;;  %v6387_v7 = vsel %vm6141_vm15, %v9826_v41, %v9825_v2  ;;  %v3345_v10 = vmul.f32 4.5, %v6366_v32  ;;  %v9830_v37 = vcvt.f32.s32 %v9829_v54  ;;  %vm6409_vm15 = vmand %vm9464_vm4, %vm6343_vm9 }
 0x15e   : > { %9828 = vst [vmem:[#allocation85_spill] sm:$0xff] %v6387_v7  ;;  %v6391_v49 = vmin.f32 %v837_v0, 0.9999  ;;  %3996 = vrcp.f32 %v812_v56  ;;  %v9831_v21 = vcvt.f32.s32 %v6218_v53  ;;  %vm1092_vm14 = vcmp.gt.f32.partialorder %v6372_v8, -2.0 }
 0x15f   : > { %v3987_v48 = vpop.eup %3986  ;;  %v1963_v1 = vsub.f32 %v1954_v61, %v6374_v31  ;;  %vm2869_vm12 = vcmp.eq.s32.totalorder %v9793_v59, %v9830_v37  ;;  %v2155_v61 = vsub.f32 %v2136_v40, %v2146_v47  ;;  %v3371_v53 = vsel %vm3335_vm11, %v3353_v14, %v3664_v22 }
 0x160   : > { %v3989_v30 = vpop.eup %3988  ;;  %vm6399_vm13 = vcmp.eq.s32.totalorder %v6195_v57, %v9831_v21  ;;  %vm9451_vm0 = vcmp.ge.f32.partialorder %v6387_v7, 0.5  ;;  %v3328_v57 = vand.u32 2147483647, %v3319_v12  ;;  %v2126_v56 = vmax.f32 %v2117_v9, 0.0  ;;  %vm6416_vm1 = vmand %vm9457_vm10, %vm2869_vm12  ;;  %v3752_v7 = vpop.f32.mrb[11].mxu1 }
 0x161   : > { %v1289_v34 = vmul.f32 %v3989_v30, %v6314_v4  ;;  %v1972_v63 = vmax.f32 %v1963_v1, 1e-08  ;;  %v838_v33 = vmax.f32 %v3987_v48, 0.0001  ;;  %v3354_v46 = vmul.f32 %v3345_v10, %v6366_v32  ;;  %v9839_v30 = vld [vmem:[#allocation46_spill] sm:$0xff]  ;;  %vm6428_vm2 = vmand %vm9451_vm0, %vm6399_vm13  ;;  %v9842_v48 = vld [vmem:[#allocation48_spill] sm:$0xff] }
 0x162   : > { %v3665_v1 = vadd.f32 -0.055555556, %v6366_v32  ;;  %v3991_v47 = vpop.eup %3990  ;;  %v2886_v22 = vsub.f32 1.0, %v6391_v49  ;;  %v1101_v12 = vsel %vm1092_vm14, %v6372_v8, -2.0  ;;  %v2164_v9 = vmax.f32 %v2155_v61, 0.0 }
 0x163   : > { %v1304_v40 = vmul.f32 %v9839_v30, %v1289_v34  ;;  %3998 = vrcp.f32 %v1972_v63  ;;  %vm3336_vm3 = vcmp.le.f32.partialorder %v6366_v32, 0.11111111  ;;  %v1521_v41 = vmul.f32 %v3991_v47, %v6331_v17  ;;  %v9851_v30 = vld [vmem:[#allocation53_spill] sm:$0xff] }
 0x164   : > { %v2186_v10 = vadd.f32 %v9843_v60, %v6255_v25  ;;  %v3993_v54 = vpop.eup %3992  ;;  %v9359_v37 = vmov 0.75   ;;  %v3346_v34 = vmul.f32 4.5, %v3328_v57  ;;  %v6448_v63 = vmul.f32 %v2164_v9, %v2126_v56 }
 0x165   : > { %v1315_v2 = vadd.f32 %v9842_v48, %v1304_v40  ;;  %v2913_v21 = vsel %vm6409_vm15, 0.25, %v9359_v37  ;;  %v6446_v23 = vsel %vm6416_vm1, 0.25, %v9359_v37  ;;  %v847_v61 = vmin.f32 %v838_v33, 0.9999  ;;  %v9848_v33 = vld [vmem:[#allocation63_spill] sm:$0xff] }
 0x166   : > { %v6453_v17 = vsel %vm6428_vm2, 0.25, %v9359_v37  ;;  %v9844_v40 = vmov 0.0   ;;  %v3995_v60 = vpop.eup %3994  ;;  %v2904_v56 = vsel %vm6409_vm15, %v2886_v22, %v6391_v49  ;;  %v6468_v9 = vmul.f32 %v9848_v33, %v3371_v53  ;;  %v3723_v33 = vpop.f32.mrb[11].mxu0 }
 0x167   : > { %v6458_v47 = vsel %vm9457_vm10, 1.0, %v9844_v40  ;;  %vm6460_vm5 = vcmp.gt.f32.partialorder %v1315_v2, %v1101_v12  ;;  %v3372_v37 = vsel %vm3336_vm3, %v3354_v46, %v3665_v1  ;;  %v6475_v18 = vsel %vm9451_vm0, 1.0, %v9844_v40  ;;  %v9863_v33 = vld [vmem:[#allocation62_spill] sm:$0xff] }
 0x168   : > { %9845 = vst [vmem:[#allocation38_spill] sm:$0xff] %v6458_v47  ;;  %9849 = vst [vmem:[#allocation94_spill] sm:$0xff] %v6468_v9  ;;  %v813_v48 = vadd.f32 1.0, %v3993_v54  ;;  %v1536_v55 = vmul.f32 %v9851_v30, %v1521_v41  ;;  %v1753_v19 = vmul.f32 %v3995_v60, %v6355_v38  ;;  %v2195_v50 = vsub.f32 %v2186_v10, %v6448_v63  ;;  %v3997_v53 = vpop.eup %3996  ;;  %v9854_v41 = vld [vmem:[#allocation55_spill] sm:$0xff]  ;;  %v9855_v38 = vld [vmem:[#allocation60_spill] sm:$0xff] }
 0x169   : > { %9850 = vst [vmem:[#allocation89_spill] sm:$0xff] %v6475_v18  ;;  %vm3337_vm6 = vcmp.le.f32.partialorder %v3328_v57, 0.11111111  ;;  %v3355_v32 = vmul.f32 %v3346_v34, %v3328_v57  ;;  %v3666_v46 = vadd.f32 -0.055555556, %v3328_v57  ;;  %v1333_v1 = vsel %vm6460_vm5, %v1315_v2, %v1101_v12  ;;  %v9856_v10 = vld [vmem:[#allocation57_spill] sm:$0xff] }
 0x16a   : > { %v2922_v54 = vmul.f32 %v2913_v21, %v2904_v56  ;;  %v2887_v9 = vsub.f32 1.0, %v847_v61  ;;  %v1547_v40 = vadd.f32 %v9854_v41, %v1536_v55  ;;  %v2330_v60 = vmin.f32 %v6204_v52, %v9855_v38  ;;  %v9858_v34 = vld [vmem:[#allocation61_spill] sm:$0xff]  ;;  %v9862_v55 = vld [vmem:[#allocation59_spill] sm:$0xff] }
 0x16b   : > { %v1768_v45 = vmul.f32 %v9856_v10, %v1753_v19  ;;  %v2204_v30 = vmax.f32 %v2195_v50, 1e-08  ;;  %v2340_v24 = vmax.f32 %v6198_v36, %v9857_v5  ;;  %v2368_v11 = vmin.f32 %v6201_v39, %v9858_v34 }
 0x16c   : > { %v839_v20 = vmax.f32 %v3997_v53, 0.0001  ;;  %v6495_v12 = vmul.f32 %v6458_v47, %v3372_v37  ;;  %vm6497_vm7 = vcmp.gt.f32.partialorder %v1547_v40, %v1333_v1  ;;  %v2378_v2 = vmax.f32 %v6212_v62, %v9862_v55 }
 0x16d   : > { %v3999_v21 = vpop.eup %3998  ;;  %v2895_v50 = vsel %vm6409_vm15, %v6391_v49, %v2886_v22  ;;  %v3373_v19 = vsel %vm3337_vm6, %v3355_v32, %v3666_v46  ;;  %4000 = vrcp.f32 %v813_v48  ;;  %v1779_v53 = vadd.f32 %v9863_v33, %v1768_v45  ;;  %v9865_v49 = vld [vmem:[#allocation68_spill] sm:$0xff]  ;;  %v9866_v48 = vld [vmem:[#allocation67_spill] sm:$0xff] }
 0x16e   : > { %9859 = vst [vmem:[#allocation79_spill] sm:$0xff] %v6495_v12  ;;  %v1565_v37 = vsel %vm6497_vm7, %v1547_v40, %v1333_v1  ;;  %v1985_v47 = vmul.f32 %v3999_v21, %v6374_v31  ;;  %4002 = vrcp.f32 %v2204_v30  ;;  %v2349_v12 = vsub.f32 %v2330_v60, %v2340_v24  ;;  %v9867_v40 = vld [vmem:[#allocation65_spill] sm:$0xff]  ;;  %v9870_v30 = vld [vmem:[#allocation64_spill] sm:$0xff]  ;;  %v9891_v31 = vld [vmem:[#allocation83_spill] sm:$0xff] }
 0x16f   : > { %v6511_v10 = vmul.f32 %v2922_v54, %v2904_v56  ;;  %v6515_v41 = vsel %vm6416_vm1, %v2887_v9, %v847_v61  ;;  %v2387_v59 = vsub.f32 %v2368_v11, %v2378_v2  ;;  %v2562_v57 = vmin.f32 %v6204_v52, %v9865_v49  ;;  %v9871_v1 = vld [vmem:[#allocation69_spill] sm:$0xff]  ;;  %v9873_v52 = vld [vmem:[#allocation75_spill] sm:$0xff]  ;;  %v9874_v54 = vld [vmem:[#allocation66_spill] sm:$0xff] }
 0x170   : > { %v848_v22 = vmin.f32 %v839_v20, 0.9999  ;;  %v2000_v45 = vmul.f32 %v9866_v48, %v1985_v47  ;;  %v2358_v32 = vmax.f32 %v2349_v12, 0.0  ;;  %v2418_v46 = vadd.f32 %v9867_v40, %v6255_v25  ;;  %v9875_v2 = vld [vmem:[#allocation71_spill] sm:$0xff]  ;;  %v9876_v33 = vld [vmem:[#allocation76_spill] sm:$0xff] }
 0x171   : > { %9864 = vst [vmem:[#allocation100_spill] sm:$0xff] %v6511_v10  ;;  %vm6522_vm8 = vcmp.gt.f32.partialorder %v1779_v53, %v1565_v37  ;;  %v2396_v24 = vmax.f32 %v2387_v59, 0.0  ;;  %v2572_v56 = vmax.f32 %v6198_v36, %v9870_v30  ;;  %v2600_v11 = vmin.f32 %v6201_v39, %v9871_v1  ;;  %v9900_v40 = vld [vmem:[#allocation52_spill] sm:$0xff] }
 0x172   : > { %4004 = vlog2.f32 %v2895_v50  ;;  %v6531_v20 = vmul.f32 %v6475_v18, %v3373_v19  ;;  %v1147_v47 = vsel %vm1092_vm14, %v9873_v52, -1.0  ;;  %v2610_v60 = vmax.f32 %v6212_v62, %v9874_v54 }
 0x173   : > { %v2896_v12 = vsel %vm6416_vm1, %v847_v61, %v2887_v9  ;;  %v2011_v21 = vadd.f32 %v9875_v2, %v2000_v45  ;;  %v6541_v59 = vmul.f32 %v2396_v24, %v2358_v32  ;;  %v2581_v48 = vsub.f32 %v2562_v57, %v2572_v56  ;;  %v9877_v9 = vld [vmem:[#allocation70_spill] sm:$0xff]  ;;  %v9878_v24 = vld [vmem:[#allocation17_spill] sm:$0xff]  ;;  %v9879_v56 = vld [vmem:[#allocation19_spill] sm:$0xff] }
 0x174   : > { %9872 = vst [vmem:[#allocation101_spill] sm:$0xff] %v6531_v20  ;;  %v2923_v50 = vmul.f32 %v6446_v23, %v6515_v41  ;;  %v1797_v19 = vsel %vm6522_vm8, %v1779_v53, %v1565_v37  ;;  %v2619_v18 = vsub.f32 %v2600_v11, %v2610_v60  ;;  %v2888_v20 = vsub.f32 1.0, %v848_v22 }
 0x175   : > { %v1379_v4 = vsel %vm6460_vm5, %v9876_v33, %v1147_v47  ;;  %v2427_v61 = vsub.f32 %v2418_v46, %v6541_v59  ;;  %v2650_v45 = vadd.f32 %v9877_v9, %v6255_v25  ;;  %v2590_v57 = vmax.f32 %v2581_v48, 0.0  ;;  %v9882_v46 = vld [vmem:[#allocation18_spill] sm:$0xff]  ;;  %v9883_v48 = vld [vmem:[#allocation20_spill] sm:$0xff] }
 0x176   : > { %v2628_v32 = vmax.f32 %v2619_v18, 0.0  ;;  %v1110_v23 = vsel %vm1092_vm14, %v9878_v24, 0.0  ;;  %v1119_v53 = vsel %vm1092_vm14, %v9879_v56, 0.0  ;;  %vm6560_vm9 = vcmp.gt.f32.partialorder %v2011_v21, %v1797_v19 }
 0x177   : > { %v4001_v37 = vpop.eup %4000  ;;  %v2436_v47 = vmax.f32 %v2427_v61, 1e-08  ;;  %v1128_v25 = vsel %vm1092_vm14, %v9882_v46, 0.0  ;;  %v1137_v18 = vsel %vm1092_vm14, %v9883_v48, 0.0  ;;  %v1342_v2 = vsel %vm6460_vm5, %v9780_v35, %v1110_v23  ;;  %v9884_v23 = vld [vmem:[#allocation78_spill] sm:$0xff] }
 0x178   : > { %v4003_v60 = vpop.eup %4002  ;;  %v6570_v39 = vmul.f32 %v2628_v32, %v2590_v57  ;;  %v1351_v33 = vsel %vm6460_vm5, %v9781_v44, %v1119_v53  ;;  %v1360_v61 = vsel %vm6460_vm5, %v9725_v42, %v1128_v25  ;;  %v1369_v8 = vsel %vm6460_vm5, %v9726_v13, %v1137_v18  ;;  %v9885_v25 = vld [vmem:[#allocation72_spill] sm:$0xff]  ;;  %v9887_v18 = vld [vmem:[#allocation81_spill] sm:$0xff] }
 0x179   : > { %v2217_v52 = vmul.f32 %v4003_v60, %v6448_v63  ;;  %4006 = vrcp.f32 %v2436_v47  ;;  %v1574_v57 = vsel %vm6497_vm7, %v9662_v26, %v1342_v2  ;;  %v840_v32 = vmax.f32 %v4001_v37, 0.0001 }
 0x17a   : > { %4008 = vlog2.f32 %v2896_v12  ;;  %v1611_v53 = vsel %vm6497_vm7, %v9884_v23, %v1379_v4  ;;  %v2659_v9 = vsub.f32 %v2650_v45, %v6570_v39  ;;  %v1583_v63 = vsel %vm6497_vm7, %v9664_v27, %v1351_v33 }
 0x17b   : > { %v2232_v10 = vmul.f32 %v9885_v25, %v2217_v52  ;;  %v1592_v0 = vsel %vm6497_vm7, %v9665_v58, %v1360_v61  ;;  %v1601_v12 = vsel %vm6497_vm7, %v9667_v28, %v1369_v8  ;;  %v2029_v4 = vsel %vm6560_vm9, %v2011_v21, %v1797_v19  ;;  %v9886_v52 = vld [vmem:[#allocation87_spill] sm:$0xff]  ;;  %v9888_v19 = vld [vmem:[#allocation73_spill] sm:$0xff] }
 0x17c   : > { %v6602_v2 = vpop.eup %4004  ;;  %v2668_v45 = vmax.f32 %v2659_v9, 1e-08  ;;  %v2844_v37 = vadd.s32 24, %v9886_v52  ;;  %v1806_v33 = vsel %vm6522_vm8, %v9671_v51, %v1574_v57  ;;  %v2897_v47 = vsel %vm6428_vm2, %v848_v22, %v2888_v20  ;;  %v6642_v57 = vld [vmem:[%s4517_s22 + $0x20] sm:$0xff] }
 0x17d   : > { %v6614_v7 = vsel %vm6428_vm2, %v2888_v20, %v848_v22  ;;  %v1843_v21 = vsel %vm6522_vm8, %v9887_v18, %v1611_v53  ;;  %v2243_v9 = vadd.f32 %v9888_v19, %v2232_v10  ;;  %v1815_v60 = vsel %vm6522_vm8, %v9812_v43, %v1583_v63  ;;  %v6659_v63 = vld [vmem:[%s4517_s22 + $0xb0] sm:$0xff] }
 0x17e   : > { %4010 = vrcp.f32 %v2668_v45  ;;  %v1824_v14 = vsel %vm6522_vm8, %v9673_v29, %v1592_v0  ;;  %v1833_v22 = vsel %vm6522_vm8, %v9675_v6, %v1601_v12  ;;  %v6630_v20 = vmul.f32 %v2923_v50, %v6515_v41  ;;  %v6662_v0 = vld [vmem:[%s4517_s22 + $0xf8] sm:$0xff]  ;;  %v9892_v45 = vld [vmem:[#allocation47_spill] sm:$0xff] }
 0x17f   : > { %v6632_v61 = vmin.f32 %v840_v32, 0.9999  ;;  %vm6634_vm11 = vcmp.gt.f32.partialorder %v2243_v9, %v2029_v4  ;;  %v2038_v8 = vsel %vm6560_vm9, %v9814_v3, %v1806_v33  ;;  %v6646_v53 = vmul.f32 %v6453_v17, %v6614_v7  ;;  %v6656_v32 = vld [vmem:[%s4517_s22 + $0x68] sm:$0xff]  ;;  %v9898_v18 = vld [vmem:[#allocation51_spill] sm:$0xff] }
 0x180   : > { %4012 = vlog2.f32 %v2897_v47  ;;  %v6651_v41 = vsel %vm6560_vm9, %v9891_v31, %v1843_v21  ;;  %v6653_v50 = vand.u32 7, %v2844_v37  ;;  %v2047_v12 = vsel %vm6560_vm9, %v9819_v15, %v1815_v60  ;;  %v9893_v37 = vld [vmem:[#allocation98_spill] sm:$0xff] }
 0x181   : > { %v2056_v17 = vsel %vm6560_vm9, %v9680_v16, %v1824_v14  ;;  %v2065_v33 = vsel %vm6560_vm9, %v9892_v45, %v1833_v22  ;;  %4014 = vrcp.f32 %v9893_v37  ;;  %v2261_v47 = vsel %vm6634_vm11, %v2243_v9, %v2029_v4  ;;  %v9894_v21 = vld [vmem:[#allocation50_spill] sm:$0xff] }
 0x182   : > { %v2270_v52 = vsel %vm6634_vm11, %v9894_v21, %v2038_v8  ;;  %v6681_v60 = vsub.f32 %v6662_v0, %v6656_v32  ;;  %v6685_v14 = vsub.f32 %v6659_v63, %v6642_v57  ;;  %v939_v11 = vmin.f32 %v6662_v0, %v9882_v46  ;;  %v9904_v21 = vld [vmem:[#allocation80_spill] sm:$0xff] }
 0x183   : > { %v4007_v31 = vpop.eup %4006  ;;  %v949_v22 = vmax.f32 %v6656_v32, %v9878_v24  ;;  %v977_v4 = vmin.f32 %v6659_v63, %v9883_v48  ;;  %v987_v9 = vmax.f32 %v6642_v57, %v9879_v56  ;;  %v2279_v25 = vsel %vm6634_vm11, %v9898_v18, %v2047_v12  ;;  %v9901_v18 = vld [vmem:[#allocation92_spill] sm:$0xff] }
 0x184   : > { %9895 = vst [vmem:[#allocation98_spill] sm:$0xff] %v6681_v60  ;;  %9896 = vst [vmem:[#allocation102_spill] sm:$0xff] %v6685_v14  ;;  %v6695_v8 = vpop.eup %4008  ;;  %v2449_v19 = vmul.f32 %v4007_v31, %v6541_v59  ;;  %v6703_v23 = vmul.f32 %v6685_v14, %v6681_v60  ;;  %v1171_v46 = vmin.f32 %v6662_v0, %v9725_v42  ;;  %v9899_v59 = vld [vmem:[#allocation77_spill] sm:$0xff]  ;;  %4016 = vrcp.f32 %v9901_v18  ;;  %v9902_v14 = vld [vmem:[#allocation99_spill] sm:$0xff] }
 0x185   : > { %9897 = vst [vmem:[#allocation103_spill] sm:$0xff] %v6695_v8  ;;  %v958_v24 = vsub.f32 %v939_v11, %v949_v22  ;;  %v996_v48 = vsub.f32 %v977_v4, %v987_v9  ;;  %v1181_v56 = vmax.f32 %v6656_v32, %v9780_v35  ;;  %v1209_v8 = vmin.f32 %v6659_v63, %v9726_v13  ;;  %v9903_v11 = vld [vmem:[#allocation91_spill] sm:$0xff] }
 0x186   : > { %v2464_v31 = vmul.f32 %v9899_v59, %v2449_v19  ;;  %v2288_v12 = vsel %vm6634_vm11, %v9900_v40, %v2056_v17  ;;  %v1219_v60 = vmax.f32 %v6642_v57, %v9781_v44  ;;  %v560_v22 = vadd.f32 %v9903_v11, %v9902_v14  ;;  %v9905_v19 = vld [vmem:[#allocation28_spill] sm:$0xff] }
 0x187   : > { %v967_v4 = vmax.f32 %v958_v24, 0.0  ;;  %v1005_v9 = vmax.f32 %v996_v48, 0.0  ;;  %v1190_v42 = vsub.f32 %v1171_v46, %v1181_v56  ;;  %v1027_v59 = vadd.f32 %v9905_v19, %v6703_v23 }
 0x188   : > { %v4011_v35 = vpop.eup %4010  ;;  %v2475_v13 = vadd.f32 %v9904_v21, %v2464_v31  ;;  %v1228_v15 = vsub.f32 %v1209_v8, %v1219_v60  ;;  %v1403_v17 = vmin.f32 %v6662_v0, %v9665_v58  ;;  %v1413_v24 = vmax.f32 %v6656_v32, %v9662_v26  ;;  %v9909_v8 = vld [vmem:[#allocation54_spill] sm:$0xff]  ;;  %v9911_v21 = vld [vmem:[#allocation84_spill] sm:$0xff] }
 0x189   : > { %v2681_v40 = vmul.f32 %v4011_v35, %v6570_v39  ;;  %v6726_v45 = vmul.f32 %v1005_v9, %v967_v4  ;;  %v1199_v44 = vmax.f32 %v1190_v42, 0.0  ;;  %v1441_v60 = vmin.f32 %v6659_v63, %v9667_v28  ;;  %v9908_v39 = vld [vmem:[#allocation82_spill] sm:$0xff]  ;;  %v9910_v4 = vld [vmem:[#allocation32_spill] sm:$0xff] }
 0x18a   : > { %v6730_v48 = vpop.eup %4012  ;;  %vm6732_vm12 = vcmp.gt.f32.partialorder %v2475_v13, %v2261_v47  ;;  %v1237_v46 = vmax.f32 %v1228_v15, 0.0  ;;  %v1451_v14 = vmax.f32 %v6642_v57, %v9664_v27  ;;  %v2297_v31 = vsel %vm6634_vm11, %v9909_v8, %v2065_v33  ;;  %v9916_v27 = vld [vmem:[#allocation88_spill] sm:$0xff] }
 0x18b   : > { %v6740_v35 = vpop.eup %4014  ;;  %v2696_v42 = vmul.f32 %v9908_v39, %v2681_v40  ;;  %v787_v11 = vsub.f32 0.0, %v560_v22  ;;  %v1259_v9 = vadd.f32 %v9910_v4, %v6703_v23  ;;  %v6750_v15 = vsel %vm6732_vm12, %v2475_v13, %v2261_v47 }
 0x18c   : > { %v2502_v19 = vsel %vm6732_vm12, %v9857_v5, %v2270_v52  ;;  %v2511_v40 = vsel %vm6732_vm12, %v9862_v55, %v2279_v25  ;;  %v1036_v39 = vsub.f32 %v1027_v59, %v6726_v45  ;;  %v6762_v22 = vmul.f32 %v1237_v46, %v1199_v44 }
 0x18d   : > { %v6760_v33 = vadd.f32 %v9911_v21, %v2696_v42  ;;  %v1422_v4 = vsub.f32 %v1403_v17, %v1413_v24  ;;  %v1460_v28 = vsub.f32 %v1441_v60, %v1451_v14  ;;  %v2520_v13 = vsel %vm6732_vm12, %v9855_v38, %v2288_v12  ;;  %v9914_v12 = vld [vmem:[#allocation86_spill] sm:$0xff] }
 0x18e   : > { %v2529_v52 = vsel %vm6732_vm12, %v9858_v34, %v2297_v31  ;;  %v3023_v47 = vmul.f32 0.5, %v9893_v37  ;;  %v1045_v25 = vmax.f32 %v1036_v39, 1e-08  ;;  %v1268_v44 = vsub.f32 %v1259_v9, %v6762_v22  ;;  %v4017_v46 = vpop.eup %4016 }
 0x18f   : > { %vm6773_vm13 = vcmp.gt.f32.partialorder %v6760_v33, %v6750_v15  ;;  %v1431_v17 = vmax.f32 %v1422_v4, 0.0  ;;  %v1469_v24 = vmax.f32 %v1460_v28, 0.0  ;;  %v2307_v60 = vsel %vm6634_vm11, %v9914_v12, %v6651_v41  ;;  %v9915_v41 = vld [vmem:[#allocation36_spill] sm:$0xff] }
 0x190   : > { %v2734_v37 = vsel %vm6773_vm13, %v9870_v30, %v2502_v19  ;;  %v2743_v14 = vsel %vm6773_vm13, %v9874_v54, %v2511_v40  ;;  %v3005_v39 = vmul.f32 0.5, %v9901_v18  ;;  %v2752_v28 = vsel %vm6773_vm13, %v9865_v49, %v2520_v13 }
 0x191   : > { %v2761_v42 = vsel %vm6773_vm13, %v9871_v1, %v2529_v52  ;;  %v800_v10 = vmul.f32 1.442695, %v787_v11  ;;  %v1491_v31 = vadd.f32 %v9915_v41, %v6703_v23  ;;  %v3032_v19 = vadd.f32 %v3023_v47, %v6212_v62  ;;  %v9927_v41 = vld [vmem:[#allocation49_spill] sm:$0xff] }
 0x192   : > { %v3041_v4 = vsub.f32 %v2752_v28, %v2734_v37  ;;  %v3050_v9 = vsub.f32 %v2761_v42, %v2743_v14  ;;  %4018 = vrcp.f32 %v1045_v25  ;;  %v1277_v40 = vmax.f32 %v1268_v44, 1e-08 }
 0x193   : > { %v6798_v21 = vmul.f32 %v1469_v24, %v1431_v17  ;;  %v1635_v18 = vmin.f32 %v6662_v0, %v9673_v29  ;;  %v1645_v13 = vmax.f32 %v6656_v32, %v9671_v51  ;;  %v2539_v62 = vsel %vm6732_vm12, %v9916_v27, %v2307_v60 }
 0x194   : > { %v3059_v12 = vmul.f32 0.5, %v3041_v4  ;;  %v3077_v52 = vmul.f32 0.5, %v3050_v9  ;;  %v3095_v11 = vmax.f32 %v3041_v4, 1.0  ;;  %v3104_v58 = vmax.f32 %v3050_v9, 1.0 }
 0x195   : > { %v3014_v47 = vadd.f32 %v6198_v36, %v3005_v39  ;;  %4020 = vpow2.f32 %v800_v10  ;;  %v1500_v25 = vsub.f32 %v1491_v31, %v6798_v21  ;;  %v6813_v4 = vmul.f32 %v6646_v53, %v6614_v7  ;;  %v9917_v36 = vld [vmem:[#allocation35_spill] sm:$0xff] }
 0x196   : > { %v3068_v44 = vadd.f32 %v3059_v12, %v2734_v37  ;;  %v3086_v17 = vadd.f32 %v3077_v52, %v2743_v14  ;;  %v3167_v24 = vmul.f32 %v6740_v35, %v3104_v58  ;;  %v3194_v28 = vmul.f32 %v4017_v46, %v3095_v11 }
 0x197   : > { %4022 = vrcp.f32 %v1277_v40  ;;  %v1654_v9 = vsub.f32 %v1635_v18, %v1645_v13  ;;  %v6816_v56 = vmul.f32 0.6931472, %v6602_v2  ;;  %v2771_v60 = vsel %vm6773_vm13, %v9917_v36, %v2539_v62  ;;  %v9919_v62 = vld [vmem:[#allocation40_spill] sm:$0xff] }
 0x198   : > { %v3113_v37 = vsub.f32 %v3086_v17, %v3032_v19  ;;  %4024 = vlog2.f32 %v3167_v24  ;;  %v1509_v58 = vmax.f32 %v1500_v25, 1e-08  ;;  %v1673_v14 = vmin.f32 %v6659_v63, %v9675_v6  ;;  %v9920_v25 = vld [vmem:[#allocation47_spill] sm:$0xff] }
 0x199   : > { %v1683_v7 = vmax.f32 %v6642_v57, %v9812_v43  ;;  %v3140_v53 = vsub.f32 %v3068_v44, %v3014_v47  ;;  %4026 = vlog2.f32 %v3194_v28  ;;  %vm3221_vm14 = vcmp.eq.s32.totalorder %v6653_v50, 0 }
 0x19a   : > { %vm3239_vm15 = vcmp.eq.s32.totalorder %v6653_v50, 1  ;;  %4028 = vrcp.f32 %v1509_v58  ;;  %v1663_v2 = vmax.f32 %v1654_v9, 0.0  ;;  %v1867_v10 = vmin.f32 %v6662_v0, %v9680_v16  ;;  %v9923_v9 = vld [vmem:[#allocation42_spill] sm:$0xff] }
 0x19b   : > { %v1692_v39 = vsub.f32 %v1673_v14, %v1683_v7  ;;  %v6834_v19 = vsel %vm6773_vm13, %v6760_v33, %v6750_v15  ;;  %v3770_v40 = vtrunc.f32 %v2771_v60  ;;  %v3126_v18 = vmul.f32 %v6740_v35, %v3113_v37  ;;  %v9921_v33 = vld [vmem:[#allocation43_spill] sm:$0xff]  ;;  %v9922_v35 = vld [vmem:[#allocation52_spill] sm:$0xff] }
 0x19c   : > { %v4019_v31 = vpop.eup %4018  ;;  %9918 = vst [vmem:[#allocation92_spill] sm:$0xff] %v6834_v19  ;;  %v1877_v13 = vmax.f32 %v6656_v32, %v9814_v3  ;;  %vm3266_vm1 = vcmp.eq.s32.totalorder %v6653_v50, 2  ;;  %v1723_v47 = vadd.f32 %v9919_v62, %v6703_v23  ;;  %v1905_v44 = vmin.f32 %v6659_v63, %v9920_v25 }
 0x19d   : > { %v1059_v52 = vmul.f32 %v4019_v31, %v6726_v45  ;;  %v1701_v11 = vmax.f32 %v1692_v39, 0.0  ;;  %v3153_v59 = vmul.f32 %v4017_v46, %v3140_v53  ;;  %v1915_v17 = vmax.f32 %v6642_v57, %v9921_v33  ;;  %v9924_v45 = vld [vmem:[#allocation50_spill] sm:$0xff]  ;;  %v9925_v39 = vld [vmem:[#allocation51_spill] sm:$0xff] }
 0x19e   : > { %v1886_v15 = vsub.f32 %v1867_v10, %v1877_v13  ;;  %v2099_v24 = vmin.f32 %v6662_v0, %v9922_v35  ;;  %v2109_v58 = vmax.f32 %v6656_v32, %v9924_v45  ;;  %v2137_v14 = vmin.f32 %v6659_v63, %v9909_v8  ;;  %v9926_v13 = vld [vmem:[#allocation45_spill] sm:$0xff] }
 0x19f   : > { %v4021_v28 = vpop.eup %4020  ;;  %v1073_v60 = vmul.f32 %v9923_v9, %v1059_v52  ;;  %v6850_v37 = vmul.f32 %v1701_v11, %v1663_v2  ;;  %v3771_v7 = vcvt.f32.s32 %v3770_v40  ;;  %v3230_v46 = vsel %vm3221_vm14, %v3126_v18, 0.0 }
 0x1a0   : > { %vm3293_vm2 = vcmp.eq.s32.totalorder %v6653_v50, 3  ;;  %v1924_v53 = vsub.f32 %v1905_v44, %v1915_v17  ;;  %v2147_v10 = vmax.f32 %v6642_v57, %v9925_v39  ;;  %v1895_v11 = vmax.f32 %v1886_v15, 0.0 }
 0x1a1   : > { %v4023_v31 = vpop.eup %4022  ;;  %v6862_v2 = vadd.f32 %v9926_v13, %v1073_v60  ;;  %v1732_v52 = vsub.f32 %v1723_v47, %v6850_v37  ;;  %v2118_v42 = vsub.f32 %v2099_v24, %v2109_v58  ;;  %v3248_v40 = vsel %vm3239_vm15, %v3153_v59, 0.0  ;;  %v9930_v59 = vld [vmem:[#allocation46_spill] sm:$0xff] }
 0x1a2   : > { %v1291_v12 = vmul.f32 %v4023_v31, %v6762_v22  ;;  %v1933_v18 = vmax.f32 %v1924_v53, 0.0  ;;  %v2156_v9 = vsub.f32 %v2137_v14, %v2147_v10  ;;  %v4025_v62 = vpop.eup %4024  ;;  %v814_v44 = vadd.f32 1.0, %v4021_v28  ;;  %v9931_v53 = vld [vmem:[#allocation48_spill] sm:$0xff] }
 0x1a3   : > { %v1741_v17 = vmax.f32 %v1732_v52, 1e-08  ;;  %v1955_v36 = vadd.f32 %v9927_v41, %v6703_v23  ;;  %v2127_v27 = vmax.f32 %v2118_v42, 0.0  ;;  %v4027_v60 = vpop.eup %4026  ;;  %vm6871_vm3 = vcmp.eq.s32.totalorder %v6653_v50, %v3771_v7  ;;  %v9932_v7 = vld [vmem:[#allocation58_spill] sm:$0xff] }
 0x1a4   : > { %v3180_v15 = vmul.f32 0.6931472, %v4025_v62  ;;  %vm1093_vm5 = vcmp.gt.f32.partialorder %v6862_v2, -2.0  ;;  %v1305_v22 = vmul.f32 %v9930_v59, %v1291_v12  ;;  %v4029_v24 = vpop.eup %4028  ;;  %v3257_v58 = vadd.f32 %v3248_v40, %v3230_v46  ;;  %v9941_v59 = vld [vmem:[#allocation55_spill] sm:$0xff]  ;;  %v9973_v41 = vld [vmem:[#allocation30_spill] sm:$0xff] }
 0x1a5   : > { %4030 = vrcp.f32 %v1741_v17  ;;  %v6877_v28 = vmul.f32 %v1933_v18, %v1895_v11  ;;  %v2165_v14 = vmax.f32 %v2156_v9, 0.0  ;;  %v1523_v42 = vmul.f32 %v4029_v24, %v6798_v21  ;;  %v619_v9 = vpop.permute.xlu0 %618  ;;  %v9933_v21 = vld [vmem:[#allocation53_spill] sm:$0xff] }
 0x1a6   : > { %v1316_v10 = vadd.f32 %v9931_v53, %v1305_v22  ;;  %v2187_v31 = vadd.f32 %v9932_v7, %v6703_v23  ;;  %v2331_v62 = vmin.f32 %v6662_v0, %v9855_v38  ;;  %v3207_v52 = vmul.f32 0.6931472, %v4027_v60  ;;  %v9934_v22 = vld [vmem:[#allocation96_spill] sm:$0xff] }
 0x1a7   : > { %v1102_v12 = vsel %vm1093_vm5, %v6862_v2, -2.0  ;;  %v1964_v46 = vsub.f32 %v1955_v36, %v6877_v28  ;;  %v6889_v11 = vmul.f32 %v2165_v14, %v2127_v27  ;;  %v3275_v40 = vsel %vm3266_vm1, %v3180_v15, 0.0  ;;  %v9966_v2 = vld [vmem:[#allocation25_spill] sm:$0xff] }
 0x1a8   : > { %v1537_v18 = vmul.f32 %v9933_v21, %v1523_v42  ;;  %v2341_v17 = vmax.f32 %v6656_v32, %v9857_v5  ;;  %v2369_v60 = vmin.f32 %v6659_v63, %v9858_v34  ;;  %vm9481_vm6 = vcmp.ge.f32.partialorder %v6834_v19, 0.5 }
 0x1a9   : > { %v6900_v24 = vadd.f32 %v9934_v22, %v619_v9  ;;  %4032 = vrcp.f32 %v814_v44  ;;  %v1973_v27 = vmax.f32 %v1964_v46, 1e-08  ;;  %vm6906_vm7 = vmand %vm9481_vm6, %vm6871_vm3  ;;  %vm6910_vm8 = vcmp.gt.f32.partialorder %v1316_v10, %v1102_v12  ;;  %v6917_v44 = vpop.f32.mrb[12].mxu0  ;;  %v6919_v46 = vpop.f32.mrb[12].mxu1 }
 0x1aa   : > { %v2196_v14 = vsub.f32 %v2187_v31, %v6889_v11  ;;  %v2350_v42 = vsub.f32 %v2331_v62, %v2341_v17  ;;  %v2379_v9 = vmax.f32 %v6642_v57, %v9862_v55  ;;  %9939 = vst [vmem:[#allocation99_spill] sm:$0xff] %v6917_v44  ;;  %9940 = vst [vmem:[#allocation91_spill] sm:$0xff] %v6919_v46  ;;  %v3302_v22 = vsel %vm3293_vm2, %v3207_v52, 0.0  ;;  %v3726_v21 = vpop.f32.mrb[13].mxu0  ;;  %v3755_v53 = vpop.f32.mrb[13].mxu1  ;;  %v9943_v52 = vld [vmem:[#allocation65_spill] sm:$0xff] }
 0x1ab   : > { %v3284_v47 = vadd.f32 %v3275_v40, %v3257_v58  ;;  %4034 = vrcp.f32 %v1973_v27  ;;  %v2563_v19 = vmin.f32 %v6662_v0, %v9865_v49  ;;  %v1548_v31 = vadd.f32 %v9941_v59, %v1537_v18  ;;  %v9947_v46 = vld [vmem:[#allocation100_spill] sm:$0xff] }
 0x1ac   : > { %v2205_v62 = vmax.f32 %v2196_v14, 1e-08  ;;  %v2359_v17 = vmax.f32 %v2350_v42, 0.0  ;;  %v2388_v13 = vsub.f32 %v2369_v60, %v2379_v9  ;;  %v9942_v7 = vsub.f32 1.0, %v6632_v61 }
 0x1ad   : > { %v1334_v50 = vsel %vm6910_vm8, %v1316_v10, %v1102_v12  ;;  %v2419_v40 = vadd.f32 %v9943_v52, %v6703_v23  ;;  %v2573_v0 = vmax.f32 %v6656_v32, %v9870_v30  ;;  %v2601_v21 = vmin.f32 %v6659_v63, %v9871_v1 }
 0x1ae   : > { %v2898_v58 = vsel %vm6906_vm7, %v6632_v61, %v9942_v7  ;;  %4036 = vrcp.f32 %v2205_v62  ;;  %v2397_v53 = vmax.f32 %v2388_v13, 0.0  ;;  %v2611_v18 = vmax.f32 %v6642_v57, %v9874_v54 }
 0x1af   : > { %v4031_v60 = vpop.eup %4030  ;;  %v2907_v10 = vsel %vm6906_vm7, %v9942_v7, %v6632_v61  ;;  %v9944_v12 = vmov 0.75   ;;  %v3311_v14 = vadd.f32 %v3302_v22, %v3284_v47  ;;  %v2582_v42 = vsub.f32 %v2563_v19, %v2573_v0  ;;  %v9950_v47 = vld [vmem:[#allocation57_spill] sm:$0xff]  ;;  %v9951_v7 = vld [vmem:[#allocation70_spill] sm:$0xff] }
 0x1b0   : > { %v2916_v27 = vsel %vm6906_vm7, 0.25, %v9944_v12  ;;  %vm6949_vm9 = vcmp.gt.f32.partialorder %v1548_v31, %v1334_v50  ;;  %v1755_v63 = vmul.f32 %v4031_v60, %v6850_v37  ;;  %v6954_v9 = vmul.f32 %v2397_v53, %v2359_v17  ;;  %v9952_v53 = vld [vmem:[#allocation103_spill] sm:$0xff] }
 0x1b1   : > { %v2620_v62 = vsub.f32 %v2601_v21, %v2611_v18  ;;  %v9948_v44 = vsub.f32 0.0, %v9947_v46  ;;  %v2942_v61 = vsub.f32 0.0, %v6813_v4  ;;  %4038 = vlog2.f32 %v2898_v58  ;;  %v9953_v4 = vld [vmem:[#allocation75_spill] sm:$0xff]  ;;  %v9954_v58 = vld [vmem:[#allocation62_spill] sm:$0xff] }
 0x1b2   : > { %v2591_v36 = vmax.f32 %v2582_v42, 0.0  ;;  %v1769_v19 = vmul.f32 %v9950_v47, %v1755_v63  ;;  %v2428_v22 = vsub.f32 %v2419_v40, %v6954_v9  ;;  %v2651_v37 = vadd.f32 %v9951_v7, %v6703_v23  ;;  %v9963_v7 = vld [vmem:[#allocation67_spill] sm:$0xff] }
 0x1b3   : > { %v6959_v59 = vmul.f32 %v6816_v56, %v9948_v44  ;;  %v2629_v0 = vmax.f32 %v2620_v62, 0.0  ;;  %v4033_v17 = vpop.eup %4032  ;;  %v2952_v21 = vmul.f32 0.6931472, %v9952_v53  ;;  %v2925_v18 = vmul.f32 %v2916_v27, %v2907_v10  ;;  %v9955_v62 = vld [vmem:[#allocation17_spill] sm:$0xff]  ;;  %v9961_v53 = vld [vmem:[#allocation76_spill] sm:$0xff] }
 0x1b4   : > { %v3320_v46 = vsub.f32 %v3311_v14, %v6900_v24  ;;  %v1566_v56 = vsel %vm6949_vm9, %v1548_v31, %v1334_v50  ;;  %v1148_v44 = vsel %vm1093_vm5, %v9953_v4, -1.0  ;;  %v1780_v60 = vadd.f32 %v9954_v58, %v1769_v19  ;;  %v9956_v24 = vld [vmem:[#allocation19_spill] sm:$0xff]  ;;  %v9957_v50 = vld [vmem:[#allocation18_spill] sm:$0xff]  ;;  %v9962_v4 = vld [vmem:[#allocation20_spill] sm:$0xff] }
 0x1b5   : > { %9949 = vst [vmem:[#allocation54_spill] sm:$0xff] %v6959_v59  ;;  %v2437_v40 = vmax.f32 %v2428_v22, 1e-08  ;;  %v6974_v42 = vmul.f32 %v2629_v0, %v2591_v36  ;;  %v4035_v63 = vpop.eup %4034  ;;  %v2954_v23 = vmul.f32 0.6931472, %v6730_v48  ;;  %v1111_v27 = vsel %vm1093_vm5, %v9955_v62, 0.0 }
 0x1b6   : > { %v1120_v31 = vsel %vm1093_vm5, %v9956_v24, 0.0  ;;  %v1129_v14 = vsel %vm1093_vm5, %v9957_v50, 0.0  ;;  %vm6986_vm11 = vcmp.gt.f32.partialorder %v1780_v60, %v1566_v56  ;;  %v1987_v36 = vmul.f32 %v4035_v63, %v6877_v28  ;;  %v9964_v28 = vld [vmem:[#allocation23_spill] sm:$0xff] }
 0x1b7   : > { %4040 = vrcp.f32 %v2437_v40  ;;  %v2660_v48 = vsub.f32 %v2651_v37, %v6974_v42  ;;  %v6992_v22 = vmul.f32 %v2925_v18, %v2907_v10  ;;  %v6994_v0 = vand.u32 2147483647, %v3320_v46  ;;  %v9965_v10 = vld [vmem:[#allocation24_spill] sm:$0xff] }
 0x1b8   : > { %v1380_v59 = vsel %vm6910_vm8, %v9961_v53, %v1148_v44  ;;  %v1138_v58 = vsel %vm1093_vm5, %v9962_v4, 0.0  ;;  %v4037_v47 = vpop.eup %4036  ;;  %v2001_v52 = vmul.f32 %v9963_v7, %v1987_v36  ;;  %v1343_v37 = vsel %vm6910_vm8, %v9964_v28, %v1111_v27  ;;  %v9967_v36 = vld [vmem:[#allocation78_spill] sm:$0xff]  ;;  %v9968_v53 = vld [vmem:[#allocation71_spill] sm:$0xff] }
 0x1b9   : > { %9960 = vst [vmem:[#allocation96_spill] sm:$0xff] %v6992_v22  ;;  %v2669_v12 = vmax.f32 %v2660_v48, 1e-08  ;;  %v1352_v18 = vsel %vm6910_vm8, %v9965_v10, %v1120_v31  ;;  %v841_v46 = vmax.f32 %v4033_v17, 0.0001  ;;  %v1798_v44 = vsel %vm6986_vm11, %v1780_v60, %v1566_v56  ;;  %v9969_v7 = vld [vmem:[#allocation26_spill] sm:$0xff] }
 0x1ba   : > { %v2219_v40 = vmul.f32 %v4037_v47, %v6889_v11  ;;  %v1361_v63 = vsel %vm6910_vm8, %v9966_v2, %v1129_v14  ;;  %v1612_v48 = vsel %vm6949_vm9, %v9967_v36, %v1380_v59  ;;  %v2012_v27 = vadd.f32 %v9968_v53, %v2001_v52  ;;  %v9972_v11 = vld [vmem:[#allocation72_spill] sm:$0xff]  ;;  %v7084_v22 = vld [vmem:[%s4517_s22 + $0x70] sm:$0xff] }
 0x1bb   : > { %4042 = vrcp.f32 %v2669_v12  ;;  %v1370_v17 = vsel %vm6910_vm8, %v9969_v7, %v1138_v58  ;;  %v4039_v31 = vpop.eup %4038  ;;  %v9970_v56 = vsub.f32 0.0, %v6630_v20  ;;  %v1575_v14 = vsel %vm6949_vm9, %v9662_v26, %v1343_v37  ;;  %v9977_v20 = vld [vmem:[#allocation33_spill] sm:$0xff]  ;;  %v9983_v58 = vld [vmem:[#allocation83_spill] sm:$0xff] }
 0x1bc   : > { %v2233_v47 = vmul.f32 %v9972_v11, %v2219_v40  ;;  %v1584_v59 = vsel %vm6949_vm9, %v9973_v41, %v1352_v18  ;;  %v7033_v52 = vmul.f32 %v2954_v23, %v2942_v61  ;;  %v3347_v15 = vmul.f32 4.5, %v6994_v0  ;;  %v9978_v37 = vld [vmem:[#allocation81_spill] sm:$0xff]  ;;  %v9980_v23 = vld [vmem:[#allocation34_spill] sm:$0xff] }
 0x1bd   : > { %v7024_v60 = vmul.f32 %v2952_v21, %v9970_v56  ;;  %vm7036_vm12 = vcmp.gt.f32.partialorder %v2012_v27, %v1798_v44  ;;  %v1593_v21 = vsel %vm6949_vm9, %v9977_v20, %v1361_v63  ;;  %v1844_v40 = vsel %vm6986_vm11, %v9978_v37, %v1612_v48  ;;  %v9979_v18 = vld [vmem:[#allocation73_spill] sm:$0xff]  ;;  %v9995_v37 = vld [vmem:[#allocation22_spill] sm:$0xff] }
 0x1be   : > { %9974 = vst [vmem:[#allocation103_spill] sm:$0xff] %v7033_v52  ;;  %v2244_v61 = vadd.f32 %v9979_v18, %v2233_v47  ;;  %v1602_v56 = vsel %vm6949_vm9, %v9980_v23, %v1370_v17  ;;  %v7051_v52 = vmin.f32 %v841_v46, 0.9999  ;;  %v1807_v63 = vsel %vm6986_vm11, %v9671_v51, %v1575_v14  ;;  %v9982_v17 = vld [vmem:[#allocation102_spill] sm:$0xff] }
 0x1bf   : > { %9971 = vst [vmem:[#allocation100_spill] sm:$0xff] %v7024_v60  ;;  %v2030_v60 = vsel %vm7036_vm12, %v2012_v27, %v1798_v44  ;;  %v1816_v48 = vsel %vm6986_vm11, %v9812_v43, %v1584_v59  ;;  %v7061_v47 = vmul.f32 0.6931472, %v4039_v31  ;;  %v7064_v13 = vadd.f32 -0.055555556, %v6994_v0  ;;  %v7071_v44 = vld [vmem:[%s4517_s22 + $0x100] sm:$0xff] }
 0x1c0   : > { %v1825_v46 = vsel %vm6986_vm11, %v9673_v29, %v1593_v21  ;;  %4044 = vrcp.f32 %v9982_v17  ;;  %v7074_v14 = vmul.f32 %v3347_v15, %v6994_v0  ;;  %v2076_v31 = vsel %vm7036_vm12, %v9983_v58, %v1844_v40  ;;  %v7087_v21 = vld [vmem:[%s4517_s22 + $0xb8] sm:$0xff] }
 0x1c1   : > { %9981 = vst [vmem:[#allocation104_spill] sm:$0xff] %v7061_v47  ;;  %v4041_v27 = vpop.eup %4040  ;;  %v1834_v59 = vsel %vm6986_vm11, %v9675_v6, %v1602_v56  ;;  %v9984_v47 = vld [vmem:[#allocation98_spill] sm:$0xff]  ;;  %vm7089_vm13 = vcmp.gt.f32.partialorder %v2244_v61, %v2030_v60  ;;  %v2039_v40 = vsel %vm7036_vm12, %v9814_v3, %v1807_v63  ;;  %v2048_v19 = vsel %vm7036_vm12, %v9921_v33, %v1816_v48 }
 0x1c2   : > { %4046 = vrcp.f32 %v9984_v47  ;;  %v2451_v15 = vmul.f32 %v4041_v27, %v6954_v9  ;;  %v7101_v56 = vld [vmem:[%s4517_s22 + $0x28] sm:$0xff]  ;;  %v2057_v58 = vsel %vm7036_vm12, %v9680_v16, %v1825_v46  ;;  %v7108_v36 = vsub.f32 %v7071_v44, %v7084_v22  ;;  %v9989_v27 = vld [vmem:[#allocation77_spill] sm:$0xff] }
 0x1c3   : > { %v7112_v9 = vsub.f32 %v7087_v21, %v7101_v56  ;;  %v940_v63 = vmin.f32 %v7071_v44, %v9957_v50  ;;  %v2066_v48 = vsel %vm7036_vm12, %v9920_v25, %v1834_v59  ;;  %v950_v46 = vmax.f32 %v7084_v22, %v9955_v62  ;;  %v9990_v3 = vld [vmem:[#allocation86_spill] sm:$0xff]  ;;  %v9991_v59 = vld [vmem:[#allocation80_spill] sm:$0xff] }
 0x1c4   : > { %9987 = vst [vmem:[#allocation102_spill] sm:$0xff] %v7108_v36  ;;  %v2465_v18 = vmul.f32 %v9989_v27, %v2451_v15  ;;  %v978_v11 = vmin.f32 %v7087_v21, %v9962_v4  ;;  %v2262_v33 = vsel %vm7089_vm13, %v2244_v61, %v2030_v60  ;;  %v2308_v50 = vsel %vm7089_vm13, %v9990_v3, %v2076_v31 }
 0x1c5   : > { %9988 = vst [vmem:[#allocation98_spill] sm:$0xff] %v7112_v9  ;;  %v4043_v53 = vpop.eup %4042  ;;  %v7131_v15 = vmul.f32 %v7112_v9, %v7108_v36  ;;  %v988_v12 = vmax.f32 %v7101_v56, %v9956_v24  ;;  %v2271_v4 = vsel %vm7089_vm13, %v9924_v45, %v2039_v40  ;;  %v959_v60 = vsub.f32 %v940_v63, %v950_v46  ;;  %v9998_v36 = vld [vmem:[#allocation84_spill] sm:$0xff] }
 0x1c6   : > { %v2476_v27 = vadd.f32 %v9991_v59, %v2465_v18  ;;  %v2683_v62 = vmul.f32 %v4043_v53, %v6974_v42  ;;  %v2280_v61 = vsel %vm7089_vm13, %v9925_v39, %v2048_v19  ;;  %v2289_v31 = vsel %vm7089_vm13, %v9922_v35, %v2057_v58  ;;  %v9994_v53 = vld [vmem:[#allocation82_spill] sm:$0xff]  ;;  %v10002_v42 = vld [vmem:[#allocation87_spill] sm:$0xff] }
 0x1c7   : > { %v2298_v3 = vsel %vm7089_vm13, %v9909_v8, %v2066_v48  ;;  %v997_v18 = vsub.f32 %v978_v11, %v988_v12  ;;  %vm3338_vm14 = vcmp.le.f32.partialorder %v6994_v0, 0.11111111  ;;  %v1172_v19 = vmin.f32 %v7071_v44, %v9966_v2  ;;  %v9996_v48 = vld [vmem:[#allocation90_spill] sm:$0xff]  ;;  %v9997_v12 = vld [vmem:[#allocation28_spill] sm:$0xff] }
 0x1c8   : > { %vm7150_vm15 = vcmp.gt.f32.partialorder %v2476_v27, %v2262_v33  ;;  %v2697_v40 = vmul.f32 %v9994_v53, %v2683_v62  ;;  %v1182_v63 = vmax.f32 %v7084_v22, %v9964_v28  ;;  %v565_v11 = vadd.f32 %v9996_v48, %v9995_v37  ;;  %v9999_v48 = vld [vmem:[#allocation88_spill] sm:$0xff] }
 0x1c9   : > { %v2494_v58 = vsel %vm7150_vm15, %v2476_v27, %v2262_v33  ;;  %v968_v46 = vmax.f32 %v959_v60, 0.0  ;;  %v1028_v59 = vadd.f32 %v9997_v12, %v7131_v15  ;;  %v2503_v53 = vsel %vm7150_vm15, %v9857_v5, %v2271_v4 }
 0x1ca   : > { %v7165_v9 = vpop.eup %4044  ;;  %v2708_v62 = vadd.f32 %v9998_v36, %v2697_v40  ;;  %v2512_v2 = vsel %vm7150_vm15, %v9862_v55, %v2280_v61  ;;  %v1006_v33 = vmax.f32 %v997_v18, 0.0  ;;  %v2521_v60 = vsel %vm7150_vm15, %v9855_v38, %v2289_v31 }
 0x1cb   : > { %v2530_v37 = vsel %vm7150_vm15, %v9858_v34, %v2298_v3  ;;  %v1210_v40 = vmin.f32 %v7087_v21, %v9969_v7  ;;  %v1220_v4 = vmax.f32 %v7101_v56, %v9965_v10  ;;  %v2540_v61 = vsel %vm7150_vm15, %v9999_v48, %v2308_v50 }
 0x1cc   : > { %v7174_v27 = vpop.eup %4046  ;;  %vm7189_vm1 = vcmp.gt.f32.partialorder %v2708_v62, %v2494_v58  ;;  %v1191_v36 = vsub.f32 %v1172_v19, %v1182_v63  ;;  %v1404_v31 = vmin.f32 %v7071_v44, %v9977_v20  ;;  %v7201_v7 = vmul.f32 %v1006_v33, %v968_v46  ;;  %v10003_v33 = vld [vmem:[#allocation35_spill] sm:$0xff] }
 0x1cd   : > { %v2735_v3 = vsel %vm7189_vm1, %v9870_v30, %v2503_v53  ;;  %v2744_v12 = vsel %vm7189_vm1, %v9874_v54, %v2512_v2  ;;  %v1414_v50 = vmax.f32 %v7084_v22, %v9662_v26  ;;  %v2845_v48 = vadd.s32 32, %v10002_v42 }
 0x1ce   : > { %v2753_v63 = vsel %vm7189_vm1, %v9865_v49, %v2521_v60  ;;  %v2762_v53 = vsel %vm7189_vm1, %v9871_v1, %v2530_v37  ;;  %v788_v2 = vsub.f32 0.0, %v565_v11  ;;  %v1229_v46 = vsub.f32 %v1210_v40, %v1220_v4  ;;  %v624_v49 = vpop.permute.xlu1 %623 }
 0x1cf   : > { %v3042_v20 = vsub.f32 %v2753_v63, %v2735_v3  ;;  %v3051_v10 = vsub.f32 %v2762_v53, %v2744_v12  ;;  %v2772_v26 = vsel %vm7189_vm1, %v10003_v33, %v2540_v61  ;;  %v3006_v42 = vmul.f32 0.5, %v9984_v47 }
 0x1d0   : > { %v3024_v19 = vmul.f32 0.5, %v9982_v17  ;;  %v1200_v28 = vmax.f32 %v1191_v36, 0.0  ;;  %v1037_v60 = vsub.f32 %v1028_v59, %v7201_v7  ;;  %v1423_v30 = vsub.f32 %v1404_v31, %v1414_v50  ;;  %v10005_v36 = vld [vmem:[#allocation95_spill] sm:$0xff]  ;;  %v10007_v50 = vld [vmem:[#allocation32_spill] sm:$0xff] }
 0x1d1   : > { %v3060_v24 = vmul.f32 0.5, %v3042_v20  ;;  %v3078_v54 = vmul.f32 0.5, %v3051_v10  ;;  %v3105_v37 = vmax.f32 %v3051_v10, 1.0  ;;  %v1238_v63 = vmax.f32 %v1229_v46, 0.0 }
 0x1d2   : > { %v1442_v11 = vmin.f32 %v7087_v21, %v9980_v23  ;;  %v1452_v40 = vmax.f32 %v7101_v56, %v9973_v41  ;;  %v7227_v47 = vsel %vm3338_vm14, %v7074_v14, %v7064_v13  ;;  %v7230_v17 = vadd.f32 %v10005_v36, %v624_v49 }
 0x1d3   : > { %10004 = vst [vmem:[#allocation22_spill] sm:$0xff] %v7227_v47  ;;  %v3096_v59 = vmax.f32 %v3042_v20, 1.0  ;;  %v802_v4 = vmul.f32 1.442695, %v788_v2  ;;  %v3772_v61 = vtrunc.f32 %v2772_v26  ;;  %v7233_v10 = vadd.f32 %v6656_v32, %v3006_v42 }
 0x1d4   : > { %10006 = vst [vmem:[#allocation90_spill] sm:$0xff] %v7230_v17  ;;  %v3033_v31 = vadd.f32 %v3024_v19, %v6642_v57  ;;  %v1260_v53 = vadd.f32 %v10007_v50, %v7131_v15  ;;  %v3069_v46 = vadd.f32 %v3060_v24, %v2735_v3  ;;  %v3087_v33 = vadd.f32 %v3078_v54, %v2744_v12  ;;  %v10009_v24 = vld [vmem:[#allocation36_spill] sm:$0xff]  ;;  %v10040_v17 = vld [vmem:[#allocation19_spill] sm:$0xff] }
 0x1d5   : > { %v1046_v23 = vmax.f32 %v1037_v60, 1e-08  ;;  %v1432_v0 = vmax.f32 %v1423_v30, 0.0  ;;  %v3168_v13 = vmul.f32 %v7165_v9, %v3105_v37  ;;  %v7239_v14 = vmul.f32 %v1238_v63, %v1200_v28  ;;  %v10011_v63 = vld [vmem:[#allocation41_spill] sm:$0xff] }
 0x1d6   : > { %v1461_v49 = vsub.f32 %v1442_v11, %v1452_v40  ;;  %v1636_v26 = vmin.f32 %v7071_v44, %v9673_v29  ;;  %v7245_v32 = vsel %vm7189_vm1, %v2708_v62, %v2494_v58  ;;  %v7247_v57 = vand.u32 7, %v2845_v48 }
 0x1d7   : > { %10008 = vst [vmem:[#allocation95_spill] sm:$0xff] %v7245_v32  ;;  %v3195_v20 = vmul.f32 %v7174_v27, %v3096_v59  ;;  %4048 = vpow2.f32 %v802_v4  ;;  %v1269_v54 = vsub.f32 %v1260_v53, %v7239_v14  ;;  %v1492_v28 = vadd.f32 %v10009_v24, %v7131_v15  ;;  %v10012_v4 = vld [vmem:[#allocation43_spill] sm:$0xff] }
 0x1d8   : > { %v1470_v30 = vmax.f32 %v1461_v49, 0.0  ;;  %v1646_v12 = vmax.f32 %v7084_v22, %v9671_v51  ;;  %v3773_v3 = vcvt.f32.s32 %v3772_v61  ;;  %v3114_v42 = vsub.f32 %v3087_v33, %v3033_v31 }
 0x1d9   : > { %v3141_v18 = vsub.f32 %v3069_v46, %v7233_v10  ;;  %4050 = vrcp.f32 %v1046_v23  ;;  %v1278_v58 = vmax.f32 %v1269_v54, 1e-08  ;;  %v1674_v19 = vmin.f32 %v7087_v21, %v9675_v6  ;;  %v10010_v23 = vld [vmem:[#allocation40_spill] sm:$0xff] }
 0x1da   : > { %4052 = vlog2.f32 %v3168_v13  ;;  %v7256_v62 = vmul.f32 %v1470_v30, %v1432_v0  ;;  %v1655_v48 = vsub.f32 %v1636_v26, %v1646_v12  ;;  %v1684_v2 = vmax.f32 %v7101_v56, %v9812_v43 }
 0x1db   : > { %4054 = vlog2.f32 %v3195_v20  ;;  %v1868_v60 = vmin.f32 %v7071_v44, %v9680_v16  ;;  %v1724_v37 = vadd.f32 %v10010_v23, %v7131_v15  ;;  %v1878_v11 = vmax.f32 %v7084_v22, %v10011_v63 }
 0x1dc   : > { %4056 = vrcp.f32 %v1278_v58  ;;  %v1501_v33 = vsub.f32 %v1492_v28, %v7256_v62  ;;  %v1664_v40 = vmax.f32 %v1655_v48, 0.0  ;;  %v1693_v36 = vsub.f32 %v1674_v19, %v1684_v2  ;;  %v10013_v58 = vld [vmem:[#allocation49_spill] sm:$0xff] }
 0x1dd   : > { %v1906_v59 = vmin.f32 %v7087_v21, %v9920_v25  ;;  %v1916_v61 = vmax.f32 %v7101_v56, %v10012_v4  ;;  %v1887_v31 = vsub.f32 %v1868_v60, %v1878_v11  ;;  %v2100_v53 = vmin.f32 %v7071_v44, %v9922_v35 }
 0x1de   : > { %v1510_v10 = vmax.f32 %v1501_v33, 1e-08  ;;  %v2110_v46 = vmax.f32 %v7084_v22, %v9924_v45  ;;  %v1702_v0 = vmax.f32 %v1693_v36, 0.0  ;;  %v2138_v49 = vmin.f32 %v7087_v21, %v9909_v8 }
 0x1df   : > { %v1925_v13 = vsub.f32 %v1906_v59, %v1916_v61  ;;  %v2148_v26 = vmax.f32 %v7101_v56, %v9925_v39  ;;  %vm2872_vm2 = vcmp.eq.s32.totalorder %v7247_v57, %v3773_v3  ;;  %v1896_v20 = vmax.f32 %v1887_v31, 0.0  ;;  %v10016_v59 = vld [vmem:[#allocation58_spill] sm:$0xff] }
 0x1e0   : > { %4058 = vrcp.f32 %v1510_v10  ;;  %v2119_v54 = vsub.f32 %v2100_v53, %v2110_v46  ;;  %v7282_v28 = vmul.f32 %v1702_v0, %v1664_v40  ;;  %v1956_v48 = vadd.f32 %v10013_v58, %v7131_v15  ;;  %v629_v0 = vpop.permute.xlu0 %628  ;;  %v10058_v58 = vld [vmem:[#allocation62_spill] sm:$0xff] }
 0x1e1   : > { %v4049_v30 = vpop.eup %4048  ;;  %v1934_v12 = vmax.f32 %v1925_v13, 0.0  ;;  %v2157_v19 = vsub.f32 %v2138_v49, %v2148_v26  ;;  %vm9478_vm3 = vcmp.ge.f32.partialorder %v7245_v32, 0.5  ;;  %v3128_v2 = vmul.f32 %v7165_v9, %v3114_v42  ;;  %v10018_v49 = vld [vmem:[#allocation21_spill] sm:$0xff] }
 0x1e2   : > { %vm3222_vm5 = vcmp.eq.s32.totalorder %v7247_v57, 0  ;;  %v2128_v60 = vmax.f32 %v2119_v54, 0.0  ;;  %vm7291_vm7 = vmand %vm9478_vm3, %vm2872_vm2  ;;  %v3155_v11 = vmul.f32 %v7174_v27, %v3141_v18  ;;  %v1733_v40 = vsub.f32 %v1724_v37, %v7282_v28 }
 0x1e3   : > { %v4051_v33 = vpop.eup %4050  ;;  %v7297_v36 = vmul.f32 %v1934_v12, %v1896_v20  ;;  %v2188_v61 = vadd.f32 %v10016_v59, %v7131_v15  ;;  %v2166_v10 = vmax.f32 %v2157_v19, 0.0  ;;  %v2332_v31 = vmin.f32 %v7071_v44, %v9855_v38  ;;  %v10020_v20 = vld [vmem:[#allocation42_spill] sm:$0xff]  ;;  %v7320_v19 = vpop.f32.mrb[14].mxu0 }
 0x1e4   : > { %v4053_v9 = vpop.eup %4052  ;;  %v1061_v42 = vmul.f32 %v4051_v33, %v7201_v7  ;;  %v2342_v53 = vmax.f32 %v7084_v22, %v9857_v5  ;;  %vm3240_vm8 = vcmp.eq.s32.totalorder %v7247_v57, 1  ;;  %vm3267_vm9 = vcmp.eq.s32.totalorder %v7247_v57, 2  ;;  %10021 = vst [vmem:[#allocation43_spill] sm:$0xff] %v7320_v19  ;;  %v7322_v33 = vpop.f32.mrb[14].mxu1  ;;  %v10029_v19 = vld [vmem:[#allocation68_spill] sm:$0xff] }
 0x1e5   : > { %v4055_v46 = vpop.eup %4054  ;;  %v1742_v27 = vmax.f32 %v1733_v40, 1e-08  ;;  %v1965_v18 = vsub.f32 %v1956_v48, %v7297_v36  ;;  %v10017_v13 = vsub.f32 1.0, %v7051_v52  ;;  %v7315_v26 = vadd.f32 %v10018_v49, %v629_v0  ;;  %10022 = vst [vmem:[#allocation21_spill] sm:$0xff] %v7322_v33  ;;  %v3729_v32 = vpop.f32.mrb[15].mxu0  ;;  %v10025_v33 = vld [vmem:[#allocation46_spill] sm:$0xff] }
 0x1e6   : > { %v4057_v37 = vpop.eup %4056  ;;  %v1074_v54 = vmul.f32 %v10020_v20, %v1061_v42  ;;  %v7318_v12 = vmul.f32 %v2166_v10, %v2128_v60  ;;  %v3231_v48 = vsel %vm3222_vm5, %v3128_v2, 0.0  ;;  %v3249_v0 = vsel %vm3240_vm8, %v3155_v11, 0.0  ;;  %v10023_v60 = vld [vmem:[#allocation45_spill] sm:$0xff] }
 0x1e7   : > { %v2899_v7 = vsel %vm7291_vm7, %v7051_v52, %v10017_v13  ;;  %10019 = vst [vmem:[#allocation41_spill] sm:$0xff] %v7315_v26  ;;  %v1293_v40 = vmul.f32 %v4057_v37, %v7239_v14  ;;  %4060 = vrcp.f32 %v1742_v27  ;;  %v1974_v47 = vmax.f32 %v1965_v18, 1e-08  ;;  %v3758_v13 = vpop.f32.mrb[15].mxu1 }
 0x1e8   : > { %vm3294_vm11 = vcmp.eq.s32.totalorder %v7247_v57, 3  ;;  %v7331_v42 = vadd.f32 %v10023_v60, %v1074_v54  ;;  %v2197_v10 = vsub.f32 %v2188_v61, %v7318_v12  ;;  %v2351_v49 = vsub.f32 %v2332_v31, %v2342_v53 }
 0x1e9   : > { %v1306_v26 = vmul.f32 %v10025_v33, %v1293_v40  ;;  %4062 = vrcp.f32 %v1974_v47  ;;  %v2370_v14 = vmin.f32 %v7087_v21, %v9858_v34  ;;  %v2380_v32 = vmax.f32 %v7101_v56, %v9862_v55 }
 0x1ea   : > { %10024 = vst [vmem:[#allocation105_spill] sm:$0xff] %v7331_v42  ;;  %v4059_v2 = vpop.eup %4058  ;;  %v10026_v11 = vsub.f32 1.0, %v7051_v52  ;;  %v3182_v18 = vmul.f32 0.6931472, %v4053_v9  ;;  %vm9490_vm12 = vcmp.gt.f32.partialorder %v7331_v42, -2.0  ;;  %v10028_v31 = vmov 0.75  }
 0x1eb   : > { %v2206_v61 = vmax.f32 %v2197_v10, 1e-08  ;;  %v2917_v47 = vsel %vm7291_vm7, 0.25, %v10028_v31  ;;  %4064 = vlog2.f32 %v2899_v7  ;;  %v3258_v53 = vadd.f32 %v3249_v0, %v3231_v48  ;;  %v10030_v9 = vld [vmem:[#allocation48_spill] sm:$0xff]  ;;  %v10032_v48 = vld [vmem:[#allocation66_spill] sm:$0xff] }
 0x1ec   : > { %v7344_v27 = vsel %vm7291_vm7, %v10026_v11, %v7051_v52  ;;  %v815_v37 = vadd.f32 1.0, %v4049_v30  ;;  %v3209_v54 = vmul.f32 0.6931472, %v4055_v46  ;;  %v1103_v40 = vsel %vm9490_vm12, %v7331_v42, -2.0  ;;  %v10031_v7 = vld [vmem:[#allocation64_spill] sm:$0xff]  ;;  %v10054_v42 = vld [vmem:[#allocation57_spill] sm:$0xff] }
 0x1ed   : > { %10027 = vst [vmem:[#allocation106_spill] sm:$0xff] %v7344_v27  ;;  %v2360_v13 = vmax.f32 %v2351_v49, 0.0  ;;  %v2564_v52 = vmin.f32 %v7071_v44, %v10029_v19  ;;  %v1317_v11 = vadd.f32 %v10030_v9, %v1306_v26  ;;  %v1525_v10 = vmul.f32 %v4059_v2, %v7256_v62  ;;  %v10036_v26 = vld [vmem:[#allocation53_spill] sm:$0xff] }
 0x1ee   : > { %4066 = vrcp.f32 %v2206_v61  ;;  %v2389_v59 = vsub.f32 %v2370_v14, %v2380_v32  ;;  %v3276_v3 = vsel %vm3267_vm9, %v3182_v18, 0.0  ;;  %v2574_v30 = vmax.f32 %v7084_v22, %v10031_v7  ;;  %v10037_v14 = vld [vmem:[#allocation65_spill] sm:$0xff] }
 0x1ef   : > { %v2602_v46 = vmin.f32 %v7087_v21, %v9871_v1  ;;  %v2612_v0 = vmax.f32 %v7101_v56, %v10032_v48  ;;  %vm7365_vm13 = vcmp.gt.f32.partialorder %v1317_v11, %v1103_v40  ;;  %v10033_v44 = vmov 0  ;;  %v10039_v18 = vld [vmem:[#allocation17_spill] sm:$0xff] }
 0x1f0   : > { %v10034_v44 = vsel %vm7365_vm13, 4294967295, %v10033_v44  ;;  %v1538_v62 = vmul.f32 %v10036_v26, %v1525_v10  ;;  %v2398_v49 = vmax.f32 %v2389_v59, 0.0  ;;  %v2420_v32 = vadd.f32 %v10037_v14, %v7131_v15  ;;  %v10041_v59 = vld [vmem:[#allocation55_spill] sm:$0xff] }
 0x1f1   : > { %10035 = vst [vmem:[#allocation64_spill] sm:$0xff] %v10034_v44  ;;  %v7373_v2 = vmul.f32 %v2917_v47, %v7344_v27  ;;  %4068 = vrcp.f32 %v815_v37  ;;  %v1112_v21 = vsel %vm9490_vm12, %v10039_v18, 0.0  ;;  %v1335_v61 = vsel %vm7365_vm13, %v1317_v11, %v1103_v40  ;;  %v4061_v31 = vpop.eup %4060  ;;  %v10043_v37 = vld [vmem:[#allocation18_spill] sm:$0xff]  ;;  %v10057_v27 = vld [vmem:[#allocation29_spill] sm:$0xff] }
 0x1f2   : > { %v1121_v10 = vsel %vm9490_vm12, %v10040_v17, 0.0  ;;  %v1549_v26 = vadd.f32 %v10041_v59, %v1538_v62  ;;  %v7384_v9 = vmul.f32 %v2398_v49, %v2360_v13  ;;  %v2583_v14 = vsub.f32 %v2564_v52, %v2574_v30  ;;  %v10051_v30 = vld [vmem:[#allocation70_spill] sm:$0xff]  ;;  %v10053_v62 = vld [vmem:[#allocation25_spill] sm:$0xff] }
 0x1f3   : > { %10038 = vst [vmem:[#allocation66_spill] sm:$0xff] %v7373_v2  ;;  %v7386_v47 = vadd.f32 %v3276_v3, %v3258_v53  ;;  %v1130_v33 = vsel %vm9490_vm12, %v10043_v37, 0.0  ;;  %v1757_v60 = vmul.f32 %v4061_v31, %v7282_v28  ;;  %v2621_v20 = vsub.f32 %v2602_v46, %v2612_v0  ;;  %v4063_v40 = vpop.eup %4062  ;;  %v10045_v2 = vld [vmem:[#allocation20_spill] sm:$0xff]  ;;  %v10049_v3 = vld [vmem:[#allocation23_spill] sm:$0xff] }
 0x1f4   : > { %v7394_v11 = vsel %vm3294_vm11, %v3209_v54, 0.0  ;;  %v1139_v13 = vsel %vm9490_vm12, %v10045_v2, 0.0  ;;  %vm7399_vm14 = vcmp.gt.f32.partialorder %v1549_v26, %v1335_v61  ;;  %v10046_v52 = vmov 0  ;;  %v10050_v31 = vld [vmem:[#allocation24_spill] sm:$0xff] }
 0x1f5   : > { %10042 = vst [vmem:[#allocation107_spill] sm:$0xff] %v7386_v47  ;;  %10044 = vst [vmem:[#allocation108_spill] sm:$0xff] %v7394_v11  ;;  %v10047_v52 = vsel %vm7399_vm14, 4294967295, %v10046_v52  ;;  %v2429_v53 = vsub.f32 %v2420_v32, %v7384_v9  ;;  %v1344_v28 = vsel %vm7365_vm13, %v10049_v3, %v1112_v21  ;;  %v1353_v57 = vsel %vm7365_vm13, %v10050_v31, %v1121_v10  ;;  %v7412_v0 = vpop.eup %4064  ;;  %v10055_v21 = vld [vmem:[#allocation26_spill] sm:$0xff] }
 0x1f6   : > { %10048 = vst [vmem:[#allocation109_spill] sm:$0xff] %v10047_v52  ;;  %v2592_v54 = vmax.f32 %v2583_v14, 0.0  ;;  %v2652_v46 = vadd.f32 %v10051_v30, %v7131_v15  ;;  %10052 = vst [vmem:[#allocation23_spill] sm:$0xff] %v7412_v0  ;;  %v1362_v49 = vsel %vm7365_vm13, %v10053_v62, %v1130_v33  ;;  %v1770_v32 = vmul.f32 %v10054_v42, %v1757_v60  ;;  %v10056_v15 = vld [vmem:[#allocation102_spill] sm:$0xff]  ;;  %v10059_v42 = vld [vmem:[#allocation67_spill] sm:$0xff] }
 0x1f7   : > { %v1989_v59 = vmul.f32 %v4063_v40, %v7297_v36  ;;  %v2438_v11 = vmax.f32 %v2429_v53, 1e-08  ;;  %v1371_v47 = vsel %vm7365_vm13, %v10055_v21, %v1139_v13  ;;  %v1567_v14 = vsel %vm7399_vm14, %v1549_v26, %v1335_v61  ;;  %v10061_v53 = vld [vmem:[#allocation33_spill] sm:$0xff] }
 0x1f8   : > { %v2630_v10 = vmax.f32 %v2621_v20, 0.0  ;;  %v3007_v30 = vmul.f32 0.5, %v10056_v15  ;;  %v4067_v0 = vpop.eup %4066  ;;  %v1576_v33 = vsel %vm7399_vm14, %v10057_v27, %v1344_v28  ;;  %v1781_v60 = vadd.f32 %v10058_v58, %v1770_v32  ;;  %v10060_v20 = vld [vmem:[#allocation98_spill] sm:$0xff]  ;;  %v10066_v32 = vld [vmem:[#allocation87_spill] sm:$0xff] }
 0x1f9   : > { %v2002_v36 = vmul.f32 %v10059_v42, %v1989_v59  ;;  %4070 = vrcp.f32 %v2438_v11  ;;  %v1585_v40 = vsel %vm7399_vm14, %v9973_v41, %v1353_v57  ;;  %v2221_v13 = vmul.f32 %v4067_v0, %v7318_v12  ;;  %v10065_v59 = vld [vmem:[#allocation71_spill] sm:$0xff]  ;;  %v10067_v12 = vld [vmem:[#allocation34_spill] sm:$0xff] }
 0x1fa   : > { %v7434_v26 = vmul.f32 %v2630_v10, %v2592_v54  ;;  %v3025_v61 = vmul.f32 0.5, %v10060_v20  ;;  %v1594_v44 = vsel %vm7399_vm14, %v10061_v53, %v1362_v49  ;;  %vm7440_vm15 = vcmp.gt.f32.partialorder %v1781_v60, %v1567_v14 }
 0x1fb   : > { %v10062_v28 = vmov 0  ;;  %v2013_v11 = vadd.f32 %v10065_v59, %v2002_v36  ;;  %v7446_v42 = vadd.s32 40, %v10066_v32  ;;  %v7448_v57 = vpop.eup %4068  ;;  %v1603_v54 = vsel %vm7399_vm14, %v10067_v12, %v1371_v47  ;;  %v10071_v47 = vld [vmem:[#allocation72_spill] sm:$0xff]  ;;  %v7479_v32 = vld [vmem:[%s4517_s22 + $0x108] sm:$0xff] }
 0x1fc   : > { %v10063_v28 = vsel %vm7440_vm15, 4294967295, %v10062_v28  ;;  %v1799_v0 = vsel %vm7440_vm15, %v1781_v60, %v1567_v14  ;;  %v1808_v49 = vsel %vm7440_vm15, %v9671_v51, %v1576_v33  ;;  %v7459_v10 = vadd.f32 %v7084_v22, %v3007_v30  ;;  %v10072_v30 = vld [vmem:[#allocation31_spill] sm:$0xff] }
 0x1fd   : > { %10064 = vst [vmem:[#allocation102_spill] sm:$0xff] %v10063_v28  ;;  %v1817_v36 = vsel %vm7440_vm15, %v9812_v43, %v1585_v40  ;;  %vm7464_vm1 = vcmp.gt.f32.partialorder %v2013_v11, %v1799_v0  ;;  %v10068_v59 = vmov 0  ;;  %v2234_v52 = vmul.f32 %v10071_v47, %v2221_v13  ;;  %v10073_v60 = vld [vmem:[#allocation99_spill] sm:$0xff]  ;;  %v10074_v47 = vld [vmem:[#allocation73_spill] sm:$0xff] }
 0x1fe   : > { %v10069_v59 = vsel %vm7464_vm1, 4294967295, %v10068_v59  ;;  %v2661_v14 = vsub.f32 %v2652_v46, %v7434_v26  ;;  %v2031_v33 = vsel %vm7464_vm1, %v2013_v11, %v1799_v0  ;;  %v7473_v22 = vadd.f32 %v3025_v61, %v7101_v56  ;;  %v7489_v56 = vld [vmem:[%s4517_s22 + $0x78] sm:$0xff] }
 0x1ff   : > { %10070 = vst [vmem:[#allocation98_spill] sm:$0xff] %v10069_v59  ;;  %4072 = vrcp.f32 %v10060_v20  ;;  %v570_v40 = vadd.f32 %v10073_v60, %v10072_v30  ;;  %v1826_v13 = vsel %vm7440_vm15, %v9673_v29, %v1594_v44  ;;  %v1835_v46 = vsel %vm7440_vm15, %v9675_v6, %v1603_v54  ;;  %v7499_v44 = vld [vmem:[%s4517_s22 + $0x30] sm:$0xff]  ;;  %v7502_v30 = vld [vmem:[%s4517_s22 + $0xc0] sm:$0xff] }
 0x200   : > { %v2245_v11 = vadd.f32 %v10074_v47, %v2234_v52  ;;  %v2670_v0 = vmax.f32 %v2661_v14, 1e-08  ;;  %v2040_v20 = vsel %vm7464_vm1, %v10011_v63, %v1808_v49  ;;  %v2049_v61 = vsel %vm7464_vm1, %v10012_v4, %v1817_v36 }
 0x201   : > { %4074 = vrcp.f32 %v10056_v15  ;;  %v7506_v52 = vsub.f32 %v7479_v32, %v7489_v56  ;;  %v10076_v54 = vmov 0  ;;  %v7514_v49 = vsub.f32 %v7502_v30, %v7499_v44 }
 0x202   : > { %vm7508_vm2 = vcmp.gt.f32.partialorder %v2245_v11, %v2031_v33  ;;  %4076 = vrcp.f32 %v2670_v0  ;;  %v941_v15 = vmin.f32 %v7479_v32, %v10043_v37  ;;  %v2058_v36 = vsel %vm7464_vm1, %v9680_v16, %v1826_v13 }
 0x203   : > { %10075 = vst [vmem:[#allocation31_spill] sm:$0xff] %v7506_v52  ;;  %v10077_v54 = vsel %vm7508_vm2, 4294967295, %v10076_v54  ;;  %10079 = vst [vmem:[#allocation110_spill] sm:$0xff] %v7514_v49  ;;  %v2067_v14 = vsel %vm7464_vm1, %v9920_v25, %v1835_v46  ;;  %v2263_v60 = vsel %vm7508_vm2, %v2245_v11, %v2031_v33  ;;  %v789_v28 = vsub.f32 0.0, %v570_v40  ;;  %v4071_v0 = vpop.eup %4070 }
 0x204   : > { %10078 = vst [vmem:[#allocation99_spill] sm:$0xff] %v10077_v54  ;;  %v2272_v47 = vsel %vm7508_vm2, %v9924_v45, %v2040_v20  ;;  %v2281_v58 = vsel %vm7508_vm2, %v9925_v39, %v2049_v61  ;;  %v7534_v13 = vmul.f32 %v7514_v49, %v7506_v52  ;;  %v951_v46 = vmax.f32 %v7489_v56, %v10039_v18 }
 0x205   : > { %v2453_v59 = vmul.f32 %v4071_v0, %v7384_v9  ;;  %v979_v33 = vmin.f32 %v7502_v30, %v10045_v2  ;;  %v989_v40 = vmax.f32 %v7499_v44, %v10040_v17  ;;  %v1173_v11 = vmin.f32 %v7479_v32, %v10053_v62  ;;  %v10080_v0 = vld [vmem:[#allocation77_spill] sm:$0xff] }
 0x206   : > { %v2290_v20 = vsel %vm7508_vm2, %v9922_v35, %v2058_v36  ;;  %v2299_v61 = vsel %vm7508_vm2, %v9909_v8, %v2067_v14  ;;  %v960_v49 = vsub.f32 %v941_v15, %v951_v46  ;;  %v1183_v9 = vmax.f32 %v7489_v56, %v10049_v3  ;;  %v10081_v36 = vld [vmem:[#allocation28_spill] sm:$0xff] }
 0x207   : > { %v2466_v52 = vmul.f32 %v10080_v0, %v2453_v59  ;;  %v998_v2 = vsub.f32 %v979_v33, %v989_v40  ;;  %v1211_v37 = vmin.f32 %v7502_v30, %v10055_v21  ;;  %v1221_v62 = vmax.f32 %v7499_v44, %v10050_v31  ;;  %v10082_v46 = vld [vmem:[#allocation80_spill] sm:$0xff] }
 0x208   : > { %v969_v17 = vmax.f32 %v960_v49, 0.0  ;;  %v1029_v18 = vadd.f32 %v10081_v36, %v7534_v13  ;;  %v1192_v39 = vsub.f32 %v1173_v11, %v1183_v9  ;;  %v1405_v15 = vmin.f32 %v7479_v32, %v10061_v53 }
 0x209   : > { %v7562_v14 = vpop.eup %4072  ;;  %v2477_v54 = vadd.f32 %v10082_v46, %v2466_v52  ;;  %v1007_v59 = vmax.f32 %v998_v2, 0.0  ;;  %v1230_v33 = vsub.f32 %v1211_v37, %v1221_v62  ;;  %v1415_v40 = vmax.f32 %v7489_v56, %v10057_v27 }
 0x20a   : > { %v1201_v0 = vmax.f32 %v1192_v39, 0.0  ;;  %v1261_v49 = vadd.f32 %v10007_v50, %v7534_v13  ;;  %v1443_v36 = vmin.f32 %v7502_v30, %v10067_v12  ;;  %v1453_v11 = vmax.f32 %v7499_v44, %v9973_v41 }
 0x20b   : > { %v7573_v9 = vpop.eup %4074  ;;  %vm7575_vm5 = vcmp.gt.f32.partialorder %v2477_v54, %v2263_v60  ;;  %v10083_v53 = vmov 0  ;;  %v7579_v2 = vmul.f32 %v1007_v59, %v969_v17  ;;  %v1239_v37 = vmax.f32 %v1230_v33, 0.0 }
 0x20c   : > { %v10084_v53 = vsel %vm7575_vm5, 4294967295, %v10083_v53  ;;  %v1424_v62 = vsub.f32 %v1405_v15, %v1415_v40  ;;  %v4077_v39 = vpop.eup %4076  ;;  %v7583_v52 = vsel %vm7575_vm5, %v2477_v54, %v2263_v60  ;;  %v2504_v46 = vsel %vm7575_vm5, %v9857_v5, %v2272_v47  ;;  %v10087_v47 = vld [vmem:[#allocation82_spill] sm:$0xff] }
 0x20d   : > { %10085 = vst [vmem:[#allocation111_spill] sm:$0xff] %v10084_v53  ;;  %10086 = vst [vmem:[#allocation112_spill] sm:$0xff] %v7583_v52  ;;  %v804_v50 = vmul.f32 1.442695, %v789_v28  ;;  %v1493_v12 = vadd.f32 %v10009_v24, %v7534_v13  ;;  %v2513_v17 = vsel %vm7575_vm5, %v9862_v55, %v2281_v58  ;;  %v2685_v59 = vmul.f32 %v4077_v39, %v7434_v26 }
 0x20e   : > { %v1038_v15 = vsub.f32 %v1029_v18, %v7579_v2  ;;  %v7595_v33 = vmul.f32 %v1239_v37, %v1201_v0  ;;  %v1433_v54 = vmax.f32 %v1424_v62, 0.0  ;;  %v1462_v60 = vsub.f32 %v1443_v36, %v1453_v11  ;;  %v10088_v37 = vld [vmem:[#allocation84_spill] sm:$0xff] }
 0x20f   : > { %v1637_v40 = vmin.f32 %v7479_v32, %v9673_v29  ;;  %v1647_v28 = vmax.f32 %v7489_v56, %v9671_v51  ;;  %v2698_v24 = vmul.f32 %v10087_v47, %v2685_v59  ;;  %v1675_v58 = vmin.f32 %v7502_v30, %v9675_v6 }
 0x210   : > { %v1047_v41 = vmax.f32 %v1038_v15, 1e-08  ;;  %v1270_v27 = vsub.f32 %v1261_v49, %v7595_v33  ;;  %v2522_v18 = vsel %vm7575_vm5, %v9855_v38, %v2290_v20  ;;  %v1471_v26 = vmax.f32 %v1462_v60, 0.0 }
 0x211   : > { %v1656_v0 = vsub.f32 %v1637_v40, %v1647_v28  ;;  %v1685_v36 = vmax.f32 %v7499_v44, %v9812_v43  ;;  %v2531_v11 = vsel %vm7575_vm5, %v9858_v34, %v2299_v61  ;;  %v7614_v62 = vadd.f32 %v10088_v37, %v2698_v24  ;;  %v10119_v37 = vld [vmem:[#allocation55_spill] sm:$0xff] }
 0x212   : > { %4078 = vrcp.f32 %v1047_v41  ;;  %v1279_v49 = vmax.f32 %v1270_v27, 1e-08  ;;  %v7616_v39 = vmul.f32 %v1471_v26, %v1433_v54  ;;  %v1869_v20 = vmin.f32 %v7479_v32, %v9680_v16 }
 0x213   : > { %10089 = vst [vmem:[#allocation113_spill] sm:$0xff] %v7614_v62  ;;  %4080 = vpow2.f32 %v804_v50  ;;  %v1694_v59 = vsub.f32 %v1675_v58, %v1685_v36  ;;  %vm7622_vm7 = vcmp.gt.f32.partialorder %v7614_v62, %v7583_v52  ;;  %v10090_v15 = vmov 0 }
 0x214   : > { %v10091_v15 = vsel %vm7622_vm7, 4294967295, %v10090_v15  ;;  %v1665_v60 = vmax.f32 %v1656_v0, 0.0  ;;  %v1879_v24 = vmax.f32 %v7489_v56, %v10011_v63  ;;  %v1907_v41 = vmin.f32 %v7502_v30, %v9920_v25 }
 0x215   : > { %10092 = vst [vmem:[#allocation114_spill] sm:$0xff] %v10091_v15  ;;  %v2736_v50 = vsel %vm7622_vm7, %v10031_v7, %v2504_v46  ;;  %v2745_v27 = vsel %vm7622_vm7, %v10032_v48, %v2513_v17  ;;  %v2754_v61 = vsel %vm7622_vm7, %v10029_v19, %v2522_v18  ;;  %v2763_v54 = vsel %vm7622_vm7, %v9871_v1, %v2531_v11 }
 0x216   : > { %v3043_v40 = vsub.f32 %v2754_v61, %v2736_v50  ;;  %v3052_v28 = vsub.f32 %v2763_v54, %v2745_v27  ;;  %4082 = vrcp.f32 %v1279_v49  ;;  %v1502_v58 = vsub.f32 %v1493_v12, %v7616_v39 }
 0x217   : > { %v1703_v26 = vmax.f32 %v1694_v59, 0.0  ;;  %v1725_v46 = vadd.f32 %v10010_v23, %v7534_v13  ;;  %v1888_v0 = vsub.f32 %v1869_v20, %v1879_v24  ;;  %v1917_v17 = vmax.f32 %v7499_v44, %v10012_v4  ;;  %v10093_v59 = vld [vmem:[#allocation49_spill] sm:$0xff] }
 0x218   : > { %v3061_v36 = vmul.f32 0.5, %v3043_v40  ;;  %v3079_v62 = vmul.f32 0.5, %v3052_v28  ;;  %v3097_v18 = vmax.f32 %v3043_v40, 1.0  ;;  %v3106_v52 = vmax.f32 %v3052_v28, 1.0 }
 0x219   : > { %v1511_v53 = vmax.f32 %v1502_v58, 1e-08  ;;  %v7647_v15 = vmul.f32 %v1703_v26, %v1665_v60  ;;  %v1897_v11 = vmax.f32 %v1888_v0, 0.0  ;;  %v1926_v61 = vsub.f32 %v1907_v41, %v1917_v17  ;;  %v10096_v0 = vld [vmem:[#allocation66_spill] sm:$0xff] }
 0x21a   : > { %v3070_v49 = vadd.f32 %v3061_v36, %v2736_v50  ;;  %v3088_v54 = vadd.f32 %v3079_v62, %v2745_v27  ;;  %v3169_v12 = vmul.f32 %v7562_v14, %v3106_v52  ;;  %v1957_v23 = vadd.f32 %v10093_v59, %v7534_v13  ;;  %v10098_v36 = vld [vmem:[#allocation42_spill] sm:$0xff] }
 0x21b   : > { %4084 = vrcp.f32 %v1511_v53  ;;  %v1734_v20 = vsub.f32 %v1725_v46, %v7647_v15  ;;  %v1935_v24 = vmax.f32 %v1926_v61, 0.0  ;;  %v2101_v40 = vmin.f32 %v7479_v32, %v9922_v35  ;;  %v10095_v46 = vld [vmem:[#allocation106_spill] sm:$0xff] }
 0x21c   : > { %v4079_v28 = vpop.eup %4078  ;;  %v7656_v60 = vand.u32 7, %v7446_v42  ;;  %v3115_v41 = vsub.f32 %v3088_v54, %v7473_v22  ;;  %v3196_v62 = vmul.f32 %v7573_v9, %v3097_v18  ;;  %v2111_v52 = vmax.f32 %v7489_v56, %v9924_v45 }
 0x21d   : > { %v4081_v50 = vpop.eup %4080  ;;  %v3142_v53 = vsub.f32 %v3070_v49, %v7459_v10  ;;  %v1063_v27 = vmul.f32 %v4079_v28, %v7579_v2  ;;  %v1743_v58 = vmax.f32 %v1734_v20, 1e-08  ;;  %v7664_v26 = vmul.f32 %v1935_v24, %v1897_v11  ;;  %v10099_v49 = vld [vmem:[#allocation107_spill] sm:$0xff]  ;;  %v10100_v11 = vld [vmem:[#allocation108_spill] sm:$0xff]  ;;  %v10102_v28 = vld [vmem:[#allocation45_spill] sm:$0xff] }
 0x21e   : > { %10094 = vst [vmem:[#allocation115_spill] sm:$0xff] %v7656_v60  ;;  %v7668_v17 = vmul.f32 %v10096_v0, %v10095_v46  ;;  %v842_v42 = vmax.f32 %v7448_v57, 0.0001  ;;  %4086 = vlog2.f32 %v3169_v12  ;;  %v2139_v22 = vmin.f32 %v7502_v30, %v9909_v8  ;;  %v10101_v57 = vld [vmem:[#allocation51_spill] sm:$0xff] }
 0x21f   : > { %v1075_v18 = vmul.f32 %v10098_v36, %v1063_v27  ;;  %4088 = vrcp.f32 %v1743_v58  ;;  %v1966_v10 = vsub.f32 %v1957_v23, %v7664_v26  ;;  %v2120_v61 = vsub.f32 %v2101_v40, %v2111_v52 }
 0x220   : > { %10097 = vst [vmem:[#allocation106_spill] sm:$0xff] %v7668_v17  ;;  %v4083_v2 = vpop.eup %4082  ;;  %v7677_v54 = vadd.f32 %v10100_v11, %v10099_v49  ;;  %v3130_v20 = vmul.f32 %v7562_v14, %v3115_v41  ;;  %vm3223_vm8 = vcmp.eq.s32.totalorder %v7656_v60, 0  ;;  %v2149_v12 = vmax.f32 %v7499_v44, %v10101_v57  ;;  %v10104_v41 = vld [vmem:[#allocation46_spill] sm:$0xff]  ;;  %v7704_v49 = vpop.f32.mrb[16].mxu0 }
 0x221   : > { %v3157_v24 = vmul.f32 %v7573_v9, %v3142_v53  ;;  %4090 = vlog2.f32 %v3196_v62  ;;  %v7685_v27 = vadd.f32 %v10102_v28, %v1075_v18  ;;  %v1295_v23 = vmul.f32 %v4083_v2, %v7595_v33  ;;  %10107 = vst [vmem:[#allocation108_spill] sm:$0xff] %v7704_v49  ;;  %v7706_v11 = vpop.f32.mrb[16].mxu1 }
 0x222   : > { %vm3241_vm9 = vcmp.eq.s32.totalorder %v7656_v60, 1  ;;  %v1975_v40 = vmax.f32 %v1966_v10, 1e-08  ;;  %v2158_v52 = vsub.f32 %v2139_v22, %v2149_v12  ;;  %v2333_v14 = vmin.f32 %v7479_v32, %v9855_v38  ;;  %v10106_v10 = vld [vmem:[#allocation48_spill] sm:$0xff]  ;;  %10108 = vst [vmem:[#allocation51_spill] sm:$0xff] %v7706_v11  ;;  %v10109_v12 = vld [vmem:[#allocation90_spill] sm:$0xff] }
 0x223   : > { %10103 = vst [vmem:[#allocation66_spill] sm:$0xff] %v7685_v27  ;;  %vm9482_vm11 = vcmp.gt.f32.partialorder %v7685_v27, -2.0  ;;  %v1307_v58 = vmul.f32 %v10104_v41, %v1295_v23  ;;  %v2129_v46 = vmax.f32 %v2120_v61, 0.0  ;;  %v2343_v9 = vmax.f32 %v7489_v56, %v9857_v5  ;;  %v3732_v41 = vpop.f32.mrb[17].mxu0  ;;  %v3761_v28 = vpop.f32.mrb[17].mxu1  ;;  %v10117_v11 = vld [vmem:[#allocation53_spill] sm:$0xff] }
 0x224   : > { %v7696_v53 = vmin.f32 %v842_v42, 0.9999  ;;  %v3232_v33 = vsel %vm3223_vm8, %v3130_v20, 0.0  ;;  %v1104_v0 = vsel %vm9482_vm11, %v7685_v27, -2.0  ;;  %v3250_v18 = vsel %vm3241_vm9, %v3157_v24, 0.0  ;;  %v10110_v20 = vld [vmem:[#allocation58_spill] sm:$0xff] }
 0x225   : > { %v4085_v22 = vpop.eup %4084  ;;  %v1318_v2 = vadd.f32 %v10106_v10, %v1307_v58  ;;  %4092 = vrcp.f32 %v1975_v40  ;;  %v2167_v61 = vmax.f32 %v2158_v52, 0.0  ;;  %v3321_v42 = vsub.f32 %v7677_v54, %v10109_v12  ;;  %v10114_v41 = vld [vmem:[#allocation17_spill] sm:$0xff] }
 0x226   : > { %10105 = vst [vmem:[#allocation107_spill] sm:$0xff] %v7696_v53  ;;  %v1527_v23 = vmul.f32 %v4085_v22, %v7616_v39  ;;  %v2189_v62 = vadd.f32 %v10110_v20, %v7534_v13  ;;  %v2352_v17 = vsub.f32 %v2333_v14, %v2343_v9  ;;  %v10111_v24 = vmov 0  ;;  %v10140_v53 = vld [vmem:[#allocation71_spill] sm:$0xff] }
 0x227   : > { %vm7713_vm8 = vcmp.gt.f32.partialorder %v1318_v2, %v1104_v0  ;;  %v7717_v40 = vmul.f32 %v2167_v61, %v2129_v46  ;;  %v2371_v52 = vmin.f32 %v7502_v30, %v9858_v34  ;;  %v2381_v54 = vmax.f32 %v7499_v44, %v9862_v55  ;;  %v10115_v46 = vld [vmem:[#allocation19_spill] sm:$0xff]  ;;  %v10116_v61 = vld [vmem:[#allocation18_spill] sm:$0xff]  ;;  %v10120_v55 = vld [vmem:[#allocation57_spill] sm:$0xff] }
 0x228   : > { %v10112_v24 = vsel %vm7713_vm8, 4294967295, %v10111_v24  ;;  %v4087_v58 = vpop.eup %4086  ;;  %v3259_v39 = vadd.f32 %v3250_v18, %v3232_v33  ;;  %vm3268_vm9 = vcmp.eq.s32.totalorder %v7656_v60, 2  ;;  %vm3295_vm0 = vcmp.eq.s32.totalorder %v7656_v60, 3  ;;  %v10118_v18 = vld [vmem:[#allocation20_spill] sm:$0xff] }
 0x229   : > { %10113 = vst [vmem:[#allocation90_spill] sm:$0xff] %v10112_v24  ;;  %v816_v14 = vadd.f32 1.0, %v4081_v50  ;;  %v4089_v28 = vpop.eup %4088  ;;  %v1113_v9 = vsel %vm9482_vm11, %v10114_v41, 0.0  ;;  %v1122_v22 = vsel %vm9482_vm11, %v10115_v46, 0.0  ;;  %v1131_v12 = vsel %vm9482_vm11, %v10116_v61, 0.0  ;;  %v10141_v24 = vld [vmem:[#allocation70_spill] sm:$0xff] }
 0x22a   : > { %v1539_v33 = vmul.f32 %v10117_v11, %v1527_v23  ;;  %v1140_v49 = vsel %vm9482_vm11, %v10118_v18, 0.0  ;;  %v1336_v50 = vsel %vm7713_vm8, %v1318_v2, %v1104_v0  ;;  %v1759_v20 = vmul.f32 %v4089_v28, %v7647_v15  ;;  %v10126_v28 = vld [vmem:[#allocation25_spill] sm:$0xff] }
 0x22b   : > { %v2198_v10 = vsub.f32 %v2189_v62, %v7717_v40  ;;  %v4091_v36 = vpop.eup %4090  ;;  %v3184_v59 = vmul.f32 0.6931472, %v4087_v58  ;;  %v2361_v38 = vmax.f32 %v2352_v17, 0.0  ;;  %v2390_v47 = vsub.f32 %v2371_v52, %v2381_v54  ;;  %v10125_v58 = vld [vmem:[#allocation62_spill] sm:$0xff] }
 0x22c   : > { %v1550_v34 = vadd.f32 %v10119_v37, %v1539_v33  ;;  %v1771_v5 = vmul.f32 %v10120_v55, %v1759_v20  ;;  %v2565_v27 = vmin.f32 %v7479_v32, %v10029_v19  ;;  %v2575_v11 = vmax.f32 %v7489_v56, %v10031_v7  ;;  %v10124_v20 = vld [vmem:[#allocation65_spill] sm:$0xff] }
 0x22d   : > { %v2207_v23 = vmax.f32 %v2198_v10, 1e-08  ;;  %v10121_v0 = vmov 0  ;;  %v2399_v15 = vmax.f32 %v2390_v47, 0.0  ;;  %v2603_v62 = vmin.f32 %v7502_v30, %v9871_v1 }
 0x22e   : > { %vm7748_vm10 = vcmp.gt.f32.partialorder %v1550_v34, %v1336_v50  ;;  %v2613_v17 = vmax.f32 %v7499_v44, %v10032_v48  ;;  %v3211_v2 = vmul.f32 0.6931472, %v4091_v36  ;;  %v1345_v10 = vsel %vm7713_vm8, %v10049_v3, %v1113_v9 }
 0x22f   : > { %v10122_v0 = vsel %vm7748_vm10, 4294967295, %v10121_v0  ;;  %v1354_v32 = vsel %vm7713_vm8, %v10050_v31, %v1122_v22  ;;  %v2421_v52 = vadd.f32 %v10124_v20, %v7534_v13  ;;  %v4093_v54 = vpop.eup %4092  ;;  %v3277_v47 = vsel %vm3268_vm9, %v3184_v59, 0.0  ;;  %v634_v20 = vpop.permute.xlu1 %633 }
 0x230   : > { %10123 = vst [vmem:[#allocation17_spill] sm:$0xff] %v10122_v0  ;;  %v1568_v30 = vsel %vm7748_vm10, %v1550_v34, %v1336_v50  ;;  %v1782_v36 = vadd.f32 %v10125_v58, %v1771_v5  ;;  %4094 = vrcp.f32 %v2207_v23  ;;  %v1363_v9 = vsel %vm7713_vm8, %v10126_v28, %v1131_v12  ;;  %v10128_v23 = vld [vmem:[#allocation91_spill] sm:$0xff]  ;;  %v10136_v12 = vld [vmem:[#allocation34_spill] sm:$0xff] }
 0x231   : > { %v1991_v33 = vmul.f32 %v4093_v54, %v7664_v26  ;;  %v7773_v22 = vmul.f32 %v2399_v15, %v2361_v38  ;;  %v2584_v55 = vsub.f32 %v2565_v27, %v2575_v11  ;;  %v7775_v37 = vand.u32 2147483647, %v3321_v42  ;;  %v10133_v27 = vld [vmem:[#allocation29_spill] sm:$0xff]  ;;  %v10134_v42 = vld [vmem:[#allocation30_spill] sm:$0xff] }
 0x232   : > { %v1372_v34 = vsel %vm7713_vm8, %v10055_v21, %v1140_v49  ;;  %v2622_v5 = vsub.f32 %v2603_v62, %v2613_v17  ;;  %v3286_v50 = vadd.f32 %v3277_v47, %v3259_v39  ;;  %4096 = vrcp.f32 %v816_v14  ;;  %v10135_v39 = vld [vmem:[#allocation33_spill] sm:$0xff]  ;;  %v10137_v62 = vld [vmem:[#allocation67_spill] sm:$0xff]  ;;  %v10142_v0 = vld [vmem:[#allocation110_spill] sm:$0xff] }
 0x233   : > { %10127 = vst [vmem:[#allocation116_spill] sm:$0xff] %v7775_v37  ;;  %v7782_v58 = vadd.f32 %v10128_v23, %v634_v20  ;;  %vm7784_vm9 = vcmp.gt.f32.partialorder %v1782_v36, %v1568_v30  ;;  %v10130_v26 = vmov 0  ;;  %v3304_v38 = vsel %vm3295_vm0, %v3211_v2, 0.0  ;;  %v10138_v47 = vld [vmem:[#allocation87_spill] sm:$0xff] }
 0x234   : > { %v10131_v26 = vsel %vm7784_vm9, 4294967295, %v10130_v26  ;;  %v1577_v11 = vsel %vm7748_vm10, %v10133_v27, %v1345_v10  ;;  %v1586_v49 = vsel %vm7748_vm10, %v10134_v42, %v1354_v32  ;;  %v1595_v14 = vsel %vm7748_vm10, %v10135_v39, %v1363_v9  ;;  %v10139_v32 = vld [vmem:[#allocation31_spill] sm:$0xff] }
 0x235   : > { %10129 = vst [vmem:[#allocation91_spill] sm:$0xff] %v7782_v58  ;;  %10132 = vst [vmem:[#allocation117_spill] sm:$0xff] %v10131_v26  ;;  %v1604_v15 = vsel %vm7748_vm10, %v10136_v12, %v1372_v34  ;;  %v2003_v17 = vmul.f32 %v10137_v62, %v1991_v33  ;;  %v2430_v2 = vsub.f32 %v2421_v52, %v7773_v22  ;;  %v2593_v20 = vmax.f32 %v2584_v55, 0.0  ;;  %v10152_v26 = vld [vmem:[#allocation73_spill] sm:$0xff] }
 0x236   : > { %v1800_v10 = vsel %vm7784_vm9, %v1782_v36, %v1568_v30  ;;  %v2631_v54 = vmax.f32 %v2622_v5, 0.0  ;;  %v2847_v23 = vadd.s32 48, %v10138_v47  ;;  %v3008_v59 = vmul.f32 0.5, %v10139_v32 }
 0x237   : > { %v2014_v60 = vadd.f32 %v10140_v53, %v2003_v17  ;;  %v2439_v9 = vmax.f32 %v2430_v2, 1e-08  ;;  %v2653_v34 = vadd.f32 %v10141_v24, %v7534_v13  ;;  %v3026_v33 = vmul.f32 0.5, %v10142_v0  ;;  %v7841_v2 = vld [vmem:[%s4517_s22 + $0x110] sm:$0xff] }
 0x238   : > { %v7812_v58 = vadd.f32 %v3304_v38, %v3286_v50  ;;  %v1809_v55 = vsel %vm7784_vm9, %v9671_v51, %v1577_v11  ;;  %v1818_v52 = vsel %vm7784_vm9, %v9812_v43, %v1586_v49  ;;  %v7820_v30 = vmul.f32 %v2631_v54, %v2593_v20  ;;  %v10147_v49 = vld [vmem:[#allocation27_spill] sm:$0xff] }
 0x239   : > { %v1827_v13 = vsel %vm7784_vm9, %v9673_v29, %v1595_v14  ;;  %v1836_v36 = vsel %vm7784_vm9, %v9675_v6, %v1604_v15  ;;  %vm7828_vm0 = vcmp.gt.f32.partialorder %v2014_v60, %v1800_v10  ;;  %v10143_v5 = vmov 0  ;;  %v10148_v14 = vld [vmem:[#allocation43_spill] sm:$0xff] }
 0x23a   : > { %v10144_v5 = vsel %vm7828_vm0, 4294967295, %v10143_v5  ;;  %4098 = vrcp.f32 %v2439_v9  ;;  %v4095_v50 = vpop.eup %4094  ;;  %v7832_v38 = vand.u32 7, %v2847_v23  ;;  %v7835_v11 = vadd.f32 %v7489_v56, %v3008_v59  ;;  %v7850_v23 = vld [vmem:[%s4517_s22 + $0x38] sm:$0xff]  ;;  %v7853_v56 = vld [vmem:[%s4517_s22 + $0x80] sm:$0xff]  ;;  %v7856_v59 = vld [vmem:[%s4517_s22 + $0xc8] sm:$0xff] }
 0x23b   : > { %10145 = vst [vmem:[#allocation31_spill] sm:$0xff] %v10144_v5  ;;  %4100 = vrcp.f32 %v10142_v0  ;;  %v575_v17 = vadd.f32 %v10148_v14, %v10147_v49  ;;  %v2223_v15 = vmul.f32 %v4095_v50, %v7717_v40  ;;  %v2662_v20 = vsub.f32 %v2653_v34, %v7820_v30  ;;  %v10150_v34 = vld [vmem:[#allocation72_spill] sm:$0xff] }
 0x23c   : > { %10146 = vst [vmem:[#allocation110_spill] sm:$0xff] %v7832_v38  ;;  %v7846_v54 = vadd.f32 %v3026_v33, %v7499_v44  ;;  %4102 = vrcp.f32 %v10139_v32  ;;  %v2032_v0 = vsel %vm7828_vm0, %v2014_v60, %v1800_v10  ;;  %v7863_v40 = vsel %vm7828_vm0, %v10011_v63, %v1809_v55  ;;  %v7874_v9 = vpop.eup %4096 }
 0x23d   : > { %v7868_v44 = vsel %vm7828_vm0, %v10012_v4, %v1818_v52  ;;  %v7872_v32 = vsub.f32 %v7841_v2, %v7853_v56  ;;  %v2235_v33 = vmul.f32 %v10150_v34, %v2223_v15  ;;  %v2671_v50 = vmax.f32 %v2662_v20, 1e-08 }
 0x23e   : > { %v7879_v60 = vsub.f32 %v7856_v59, %v7850_v23  ;;  %v942_v10 = vmin.f32 %v7841_v2, %v10116_v61  ;;  %v790_v55 = vsub.f32 0.0, %v575_v17  ;;  %v952_v52 = vmax.f32 %v7853_v56, %v10114_v41 }
 0x23f   : > { %10149 = vst [vmem:[#allocation27_spill] sm:$0xff] %v7872_v32  ;;  %v980_v49 = vmin.f32 %v7856_v59, %v10118_v18  ;;  %v990_v14 = vmax.f32 %v7850_v23, %v10115_v46  ;;  %v2246_v15 = vadd.f32 %v10152_v26, %v2235_v33  ;;  %4104 = vrcp.f32 %v2671_v50 }
 0x240   : > { %10151 = vst [vmem:[#allocation43_spill] sm:$0xff] %v7879_v60  ;;  %v7892_v20 = vmul.f32 %v7879_v60, %v7872_v32  ;;  %v1174_v34 = vmin.f32 %v7841_v2, %v10126_v28  ;;  %v2059_v17 = vsel %vm7828_vm0, %v9680_v16, %v1827_v13  ;;  %v961_v24 = vsub.f32 %v942_v10, %v952_v52 }
 0x241   : > { %v999_v47 = vsub.f32 %v980_v49, %v990_v14  ;;  %v1184_v53 = vmax.f32 %v7853_v56, %v10049_v3  ;;  %v2068_v33 = vsel %vm7828_vm0, %v9920_v25, %v1836_v36  ;;  %vm7904_vm4 = vcmp.gt.f32.partialorder %v2246_v15, %v2032_v0  ;;  %v10156_v36 = vld [vmem:[#allocation28_spill] sm:$0xff] }
 0x242   : > { %v10153_v50 = vmov 0  ;;  %v1212_v26 = vmin.f32 %v7856_v59, %v10055_v21  ;;  %v1222_v60 = vmax.f32 %v7850_v23, %v10050_v31  ;;  %v2264_v13 = vsel %vm7904_vm4, %v2246_v15, %v2032_v0 }
 0x243   : > { %v10154_v50 = vsel %vm7904_vm4, 4294967295, %v10153_v50  ;;  %v2273_v10 = vsel %vm7904_vm4, %v9924_v45, %v7863_v40  ;;  %v806_v52 = vmul.f32 1.442695, %v790_v55  ;;  %v1030_v49 = vadd.f32 %v10156_v36, %v7892_v20 }
 0x244   : > { %10155 = vst [vmem:[#allocation118_spill] sm:$0xff] %v10154_v50  ;;  %v4099_v14 = vpop.eup %4098  ;;  %v2282_v5 = vsel %vm7904_vm4, %v10101_v57, %v7868_v44  ;;  %v970_v32 = vmax.f32 %v961_v24, 0.0  ;;  %v1008_v37 = vmax.f32 %v999_v47, 0.0  ;;  %v1193_v62 = vsub.f32 %v1174_v34, %v1184_v53  ;;  %v10157_v47 = vld [vmem:[#allocation77_spill] sm:$0xff] }
 0x245   : > { %v7924_v21 = vpop.eup %4100  ;;  %v2291_v0 = vsel %vm7904_vm4, %v9922_v35, %v2059_v17  ;;  %v2455_v40 = vmul.f32 %v4099_v14, %v7773_v22  ;;  %v1231_v55 = vsub.f32 %v1212_v26, %v1222_v60  ;;  %v1406_v15 = vmin.f32 %v7841_v2, %v10135_v39  ;;  %v10158_v22 = vld [vmem:[#allocation32_spill] sm:$0xff]  ;;  %v10169_v50 = vld [vmem:[#allocation61_spill] sm:$0xff] }
 0x246   : > { %v7932_v36 = vpop.eup %4102  ;;  %v7934_v28 = vmul.f32 %v1008_v37, %v970_v32  ;;  %v1202_v44 = vmax.f32 %v1193_v62, 0.0  ;;  %v1416_v53 = vmax.f32 %v7853_v56, %v10133_v27  ;;  %v1444_v24 = vmin.f32 %v7856_v59, %v10136_v12  ;;  %v10159_v39 = vld [vmem:[#allocation80_spill] sm:$0xff] }
 0x247   : > { %v2467_v34 = vmul.f32 %v10157_v47, %v2455_v40  ;;  %v1240_v17 = vmax.f32 %v1231_v55, 0.0  ;;  %v1262_v26 = vadd.f32 %v10158_v22, %v7892_v20  ;;  %v1454_v60 = vmax.f32 %v7850_v23, %v10134_v42 }
 0x248   : > { %v1039_v14 = vsub.f32 %v1030_v49, %v7934_v28  ;;  %v1425_v37 = vsub.f32 %v1406_v15, %v1416_v53  ;;  %v1638_v62 = vmin.f32 %v7841_v2, %v9673_v29  ;;  %v1648_v32 = vmax.f32 %v7853_v56, %v9671_v51 }
 0x249   : > { %v2478_v12 = vadd.f32 %v10159_v39, %v2467_v34  ;;  %v7951_v27 = vmul.f32 %v1240_v17, %v1202_v44  ;;  %v1463_v40 = vsub.f32 %v1444_v24, %v1454_v60  ;;  %v1676_v55 = vmin.f32 %v7856_v59, %v9675_v6  ;;  %v4105_v22 = vpop.eup %4104  ;;  %v10164_v60 = vld [vmem:[#allocation36_spill] sm:$0xff] }
 0x24a   : > { %v1048_v47 = vmax.f32 %v1039_v14, 1e-08  ;;  %v1434_v42 = vmax.f32 %v1425_v37, 0.0  ;;  %v1657_v31 = vsub.f32 %v1638_v62, %v1648_v32  ;;  %v1686_v49 = vmax.f32 %v7850_v23, %v9812_v43  ;;  %v10165_v37 = vld [vmem:[#allocation56_spill] sm:$0xff] }
 0x24b   : > { %vm7957_vm3 = vcmp.gt.f32.partialorder %v2478_v12, %v2264_v13  ;;  %v10160_v15 = vmov 0  ;;  %v2687_v53 = vmul.f32 %v4105_v22, %v7820_v30  ;;  %v1271_v44 = vsub.f32 %v1262_v26, %v7951_v27  ;;  %v10166_v30 = vld [vmem:[#allocation59_spill] sm:$0xff]  ;;  %v10167_v26 = vld [vmem:[#allocation82_spill] sm:$0xff] }
 0x24c   : > { %v10161_v15 = vsel %vm7957_vm3, 4294967295, %v10160_v15  ;;  %v1472_v34 = vmax.f32 %v1463_v40, 0.0  ;;  %v2300_v24 = vsel %vm7904_vm4, %v9909_v8, %v2068_v33  ;;  %v7968_v17 = vsel %vm7957_vm3, %v2478_v12, %v2264_v13  ;;  %v10168_v33 = vld [vmem:[#allocation60_spill] sm:$0xff] }
 0x24d   : > { %10162 = vst [vmem:[#allocation119_spill] sm:$0xff] %v10161_v15  ;;  %10163 = vst [vmem:[#allocation120_spill] sm:$0xff] %v7968_v17  ;;  %4106 = vpow2.f32 %v806_v52  ;;  %v1494_v14 = vadd.f32 %v10164_v60, %v7892_v20  ;;  %v2505_v62 = vsel %vm7957_vm3, %v10165_v37, %v2273_v10  ;;  %v2514_v22 = vsel %vm7957_vm3, %v10166_v30, %v2282_v5  ;;  %v10170_v10 = vld [vmem:[#allocation84_spill] sm:$0xff] }
 0x24e   : > { %v2699_v32 = vmul.f32 %v10167_v26, %v2687_v53  ;;  %4108 = vrcp.f32 %v1048_v47  ;;  %v2523_v12 = vsel %vm7957_vm3, %v10168_v33, %v2291_v0  ;;  %v1280_v13 = vmax.f32 %v1271_v44, 1e-08 }
 0x24f   : > { %v7982_v52 = vmul.f32 %v1472_v34, %v1434_v42  ;;  %v1695_v40 = vsub.f32 %v1676_v55, %v1686_v49  ;;  %v2532_v60 = vsel %vm7957_vm3, %v10169_v50, %v2300_v24  ;;  %v1666_v6 = vmax.f32 %v1657_v31, 0.0  ;;  %v10175_v55 = vld [vmem:[#allocation40_spill] sm:$0xff] }
 0x250   : > { %v7988_v39 = vadd.f32 %v10170_v10, %v2699_v32  ;;  %v1870_v5 = vmin.f32 %v7841_v2, %v9680_v16  ;;  %4110 = vrcp.f32 %v1280_v13  ;;  %v1880_v42 = vmax.f32 %v7853_v56, %v10011_v63 }
 0x251   : > { %v1503_v47 = vsub.f32 %v1494_v14, %v7982_v52  ;;  %v1704_v53 = vmax.f32 %v1695_v40, 0.0  ;;  %v10172_v0 = vmov 0  ;;  %v1726_v49 = vadd.f32 %v10175_v55, %v7892_v20  ;;  %v10176_v55 = vld [vmem:[#allocation49_spill] sm:$0xff] }
 0x252   : > { %10171 = vst [vmem:[#allocation56_spill] sm:$0xff] %v7988_v39  ;;  %vm7997_vm6 = vcmp.gt.f32.partialorder %v7988_v39, %v7968_v17  ;;  %v1908_v31 = vmin.f32 %v7856_v59, %v9920_v25  ;;  %v1918_v44 = vmax.f32 %v7850_v23, %v10012_v4  ;;  %vm3224_vm11 = vcmp.eq.s32.totalorder %v7832_v38, 0 }
 0x253   : > { %v10173_v0 = vsel %vm7997_vm6, 4294967295, %v10172_v0  ;;  %v2737_v34 = vsel %vm7997_vm6, %v10031_v7, %v2505_v62  ;;  %v2746_v24 = vsel %vm7997_vm6, %v10032_v48, %v2514_v22  ;;  %v2755_v14 = vsel %vm7997_vm6, %v10029_v19, %v2523_v12 }
 0x254   : > { %10174 = vst [vmem:[#allocation59_spill] sm:$0xff] %v10173_v0  ;;  %v2764_v32 = vsel %vm7997_vm6, %v9871_v1, %v2532_v60  ;;  %v3044_v13 = vsub.f32 %v2755_v14, %v2737_v34  ;;  %v1512_v39 = vmax.f32 %v1503_v47, 1e-08  ;;  %v8020_v17 = vmul.f32 %v1704_v53, %v1666_v6 }
 0x255   : > { %v3053_v40 = vsub.f32 %v2764_v32, %v2746_v24  ;;  %v1889_v62 = vsub.f32 %v1870_v5, %v1880_v42  ;;  %v1927_v15 = vsub.f32 %v1908_v31, %v1918_v44  ;;  %v1958_v22 = vadd.f32 %v10176_v55, %v7892_v20 }
 0x256   : > { %v2102_v10 = vmin.f32 %v7841_v2, %v9922_v35  ;;  %v3062_v12 = vmul.f32 0.5, %v3044_v13  ;;  %v3098_v25 = vmax.f32 %v3044_v13, 1.0  ;;  %4112 = vrcp.f32 %v1512_v39 }
 0x257   : > { %v3080_v26 = vmul.f32 0.5, %v3053_v40  ;;  %v3107_v0 = vmax.f32 %v3053_v40, 1.0  ;;  %v4107_v60 = vpop.eup %4106  ;;  %v1735_v14 = vsub.f32 %v1726_v49, %v8020_v17  ;;  %v1898_v32 = vmax.f32 %v1889_v62, 0.0 }
 0x258   : > { %v1936_v47 = vmax.f32 %v1927_v15, 0.0  ;;  %v4109_v6 = vpop.eup %4108  ;;  %v3071_v53 = vadd.f32 %v3062_v12, %v2737_v34  ;;  %v3197_v31 = vmul.f32 %v7932_v36, %v3098_v25  ;;  %v2112_v13 = vmax.f32 %v7853_v56, %v9924_v45 }
 0x259   : > { %v3089_v5 = vadd.f32 %v3080_v26, %v2746_v24  ;;  %v3170_v42 = vmul.f32 %v7924_v21, %v3107_v0  ;;  %v1065_v44 = vmul.f32 %v4109_v6, %v7934_v28  ;;  %v1744_v55 = vmax.f32 %v1735_v14, 1e-08  ;;  %v10177_v0 = vld [vmem:[#allocation42_spill] sm:$0xff] }
 0x25a   : > { %v8030_v35 = vmul.f32 %v1936_v47, %v1898_v32  ;;  %v3143_v49 = vsub.f32 %v3071_v53, %v7835_v11  ;;  %vm3242_vm12 = vcmp.eq.s32.totalorder %v7832_v38, 1  ;;  %v4111_v15 = vpop.eup %4110  ;;  %v817_v26 = vadd.f32 1.0, %v4107_v60 }
 0x25b   : > { %v3116_v39 = vsub.f32 %v3089_v5, %v7846_v54  ;;  %4114 = vlog2.f32 %v3170_v42  ;;  %v1076_v25 = vmul.f32 %v10177_v0, %v1065_v44  ;;  %v1297_v40 = vmul.f32 %v4111_v15, %v7951_v27  ;;  %v10178_v54 = vld [vmem:[#allocation45_spill] sm:$0xff]  ;;  %v10182_v5 = vld [vmem:[#allocation48_spill] sm:$0xff] }
 0x25c   : > { %4116 = vlog2.f32 %v3197_v31  ;;  %v1967_v28 = vsub.f32 %v1958_v22, %v8030_v35  ;;  %v3159_v24 = vmul.f32 %v7932_v36, %v3143_v49  ;;  %v2121_v12 = vsub.f32 %v2102_v10, %v2112_v13  ;;  %v10180_v22 = vld [vmem:[#allocation46_spill] sm:$0xff]  ;;  %v10181_v36 = vld [vmem:[#allocation41_spill] sm:$0xff] }
 0x25d   : > { %v3132_v34 = vmul.f32 %v7924_v21, %v3116_v39  ;;  %4118 = vrcp.f32 %v1744_v55  ;;  %v8043_v62 = vadd.f32 %v10178_v54, %v1076_v25  ;;  %v2140_v14 = vmin.f32 %v7856_v59, %v9909_v8  ;;  %v10188_v54 = vld [vmem:[#allocation55_spill] sm:$0xff] }
 0x25e   : > { %v1976_v11 = vmax.f32 %v1967_v28, 1e-08  ;;  %v3251_v32 = vsel %vm3242_vm12, %v3159_v24, 0.0  ;;  %v1308_v47 = vmul.f32 %v10180_v22, %v1297_v40  ;;  %v2150_v21 = vmax.f32 %v7850_v23, %v10101_v57  ;;  %v10186_v28 = vld [vmem:[#allocation58_spill] sm:$0xff] }
 0x25f   : > { %10179 = vst [vmem:[#allocation60_spill] sm:$0xff] %v8043_v62  ;;  %v3233_v60 = vsel %vm3224_vm11, %v3132_v34, 0.0  ;;  %vm9513_vm6 = vcmp.gt.f32.partialorder %v8043_v62, -2.0  ;;  %vm3269_vm7 = vcmp.eq.s32.totalorder %v7832_v38, 2  ;;  %vm3296_vm3 = vcmp.eq.s32.totalorder %v7832_v38, 3 }
 0x260   : > { %4120 = vrcp.f32 %v1976_v11  ;;  %v1105_v10 = vsel %vm9513_vm6, %v8043_v62, -2.0  ;;  %v4113_v6 = vpop.eup %4112  ;;  %v3260_v53 = vadd.f32 %v3251_v32, %v3233_v60  ;;  %v1319_v42 = vadd.f32 %v10182_v5, %v1308_v47 }
 0x261   : > { %4122 = vrcp.f32 %v817_v26  ;;  %v2130_v31 = vmax.f32 %v2121_v12, 0.0  ;;  %v2159_v44 = vsub.f32 %v2140_v14, %v2150_v21  ;;  %v1529_v13 = vmul.f32 %v4113_v6, %v7982_v52  ;;  %v10187_v21 = vld [vmem:[#allocation53_spill] sm:$0xff] }
 0x262   : > { %v2334_v39 = vmin.f32 %v7841_v2, %v10168_v33  ;;  %v2344_v49 = vmax.f32 %v7853_v56, %v10165_v37  ;;  %v2372_v15 = vmin.f32 %v7856_v59, %v10169_v50  ;;  %vm8069_vm12 = vcmp.gt.f32.partialorder %v1319_v42, %v1105_v10 }
 0x263   : > { %v10183_v26 = vmov 0  ;;  %v2168_v25 = vmax.f32 %v2159_v44, 0.0  ;;  %v2190_v34 = vadd.f32 %v10186_v28, %v7892_v20  ;;  %v2382_v52 = vmax.f32 %v7850_v23, %v10166_v30 }
 0x264   : > { %v10184_v26 = vsel %vm8069_vm12, 4294967295, %v10183_v26  ;;  %v1114_v40 = vsel %vm9513_vm6, %v10114_v41, 0.0  ;;  %v1123_v11 = vsel %vm9513_vm6, %v10115_v46, 0.0  ;;  %v1132_v12 = vsel %vm9513_vm6, %v10116_v61, 0.0 }
 0x265   : > { %10185 = vst [vmem:[#allocation61_spill] sm:$0xff] %v10184_v26  ;;  %v4115_v24 = vpop.eup %4114  ;;  %v1141_v14 = vsel %vm9513_vm6, %v10118_v18, 0.0  ;;  %v1337_v47 = vsel %vm8069_vm12, %v1319_v42, %v1105_v10  ;;  %v1540_v6 = vmul.f32 %v10187_v21, %v1529_v13  ;;  %v8092_v44 = vmul.f32 %v2168_v25, %v2130_v31  ;;  %v10211_v21 = vld [vmem:[#allocation34_spill] sm:$0xff] }
 0x266   : > { %v4117_v60 = vpop.eup %4116  ;;  %v3186_v32 = vmul.f32 0.6931472, %v4115_v24  ;;  %v2353_v5 = vsub.f32 %v2334_v39, %v2344_v49  ;;  %v2391_v28 = vsub.f32 %v2372_v15, %v2382_v52  ;;  %v2566_v22 = vmin.f32 %v7841_v2, %v10029_v19  ;;  %v10192_v2 = vld [vmem:[#allocation57_spill] sm:$0xff] }
 0x267   : > { %v4119_v55 = vpop.eup %4118  ;;  %v3213_v27 = vmul.f32 0.6931472, %v4117_v60  ;;  %v1551_v0 = vadd.f32 %v10188_v54, %v1540_v6  ;;  %v2199_v10 = vsub.f32 %v2190_v34, %v8092_v44  ;;  %v10189_v49 = vmov 0  ;;  %v10196_v34 = vld [vmem:[#allocation25_spill] sm:$0xff]  ;;  %v10197_v6 = vld [vmem:[#allocation26_spill] sm:$0xff] }
 0x268   : > { %v3278_v62 = vsel %vm3269_vm7, %v3186_v32, 0.0  ;;  %v1761_v24 = vmul.f32 %v4119_v55, %v8020_v17  ;;  %v2362_v13 = vmax.f32 %v2353_v5, 0.0  ;;  %v2400_v25 = vmax.f32 %v2391_v28, 0.0  ;;  %v10195_v5 = vld [vmem:[#allocation65_spill] sm:$0xff] }
 0x269   : > { %v3287_v42 = vadd.f32 %v3278_v62, %v3260_v53  ;;  %v3305_v31 = vsel %vm3296_vm3, %v3213_v27, 0.0  ;;  %vm8103_vm11 = vcmp.gt.f32.partialorder %v1551_v0, %v1337_v47  ;;  %v2208_v52 = vmax.f32 %v2199_v10, 1e-08  ;;  %v10194_v27 = vld [vmem:[#allocation24_spill] sm:$0xff]  ;;  %v10198_v10 = vld [vmem:[#allocation62_spill] sm:$0xff] }
 0x26a   : > { %v4121_v39 = vpop.eup %4120  ;;  %v10190_v49 = vsel %vm8103_vm11, 4294967295, %v10189_v49  ;;  %v1772_v15 = vmul.f32 %v10192_v2, %v1761_v24  ;;  %v2576_v60 = vmax.f32 %v7853_v56, %v10031_v7  ;;  %v1346_v62 = vsel %vm8069_vm12, %v10049_v3, %v1114_v40 }
 0x26b   : > { %10191 = vst [vmem:[#allocation41_spill] sm:$0xff] %v10190_v49  ;;  %v8110_v17 = vpop.eup %4122  ;;  %v1355_v55 = vsel %vm8069_vm12, %v10194_v27, %v1123_v11  ;;  %v1569_v53 = vsel %vm8103_vm11, %v1551_v0, %v1337_v47  ;;  %v2422_v28 = vadd.f32 %v10195_v5, %v7892_v20  ;;  %v1364_v32 = vsel %vm8069_vm12, %v10196_v34, %v1132_v12  ;;  %v10202_v5 = vld [vmem:[#allocation67_spill] sm:$0xff] }
 0x26c   : > { %10193 = vst [vmem:[#allocation121_spill] sm:$0xff] %v8110_v17  ;;  %v1373_v24 = vsel %vm8069_vm12, %v10197_v6, %v1141_v14  ;;  %v1783_v40 = vadd.f32 %v10198_v10, %v1772_v15  ;;  %v1993_v38 = vmul.f32 %v4121_v39, %v8030_v35  ;;  %v3314_v2 = vadd.f32 %v3305_v31, %v3287_v42  ;;  %v10203_v15 = vld [vmem:[#allocation116_spill] sm:$0xff]  ;;  %v10205_v42 = vld [vmem:[#allocation29_spill] sm:$0xff]  ;;  %v10206_v31 = vld [vmem:[#allocation30_spill] sm:$0xff] }
 0x26d   : > { %4124 = vrcp.f32 %v2208_v52  ;;  %v8130_v11 = vmul.f32 %v2400_v25, %v2362_v13  ;;  %v2585_v0 = vsub.f32 %v2566_v22, %v2576_v60  ;;  %v10199_v47 = vmov 0  ;;  %v10208_v39 = vld [vmem:[#allocation71_spill] sm:$0xff]  ;;  %v10231_v17 = vld [vmem:[#allocation73_spill] sm:$0xff] }
 0x26e   : > { %vm8132_vm3 = vcmp.gt.f32.partialorder %v1783_v40, %v1569_v53  ;;  %v2004_v54 = vmul.f32 %v10202_v5, %v1993_v38  ;;  %v2604_v12 = vmin.f32 %v7856_v59, %v9871_v1  ;;  %v2614_v14 = vmax.f32 %v7850_v23, %v10032_v48  ;;  %v10207_v38 = vld [vmem:[#allocation33_spill] sm:$0xff] }
 0x26f   : > { %v10200_v47 = vsel %vm8132_vm3, 4294967295, %v10199_v47  ;;  %v3348_v26 = vmul.f32 4.5, %v10203_v15  ;;  %v8143_v35 = vadd.f32 -0.055555556, %v10203_v15  ;;  %v1578_v22 = vsel %vm8103_vm11, %v10205_v42, %v1346_v62  ;;  %v10210_v62 = vld [vmem:[#allocation91_spill] sm:$0xff] }
 0x270   : > { %10201 = vst [vmem:[#allocation24_spill] sm:$0xff] %v10200_v47  ;;  %v1587_v13 = vsel %vm8103_vm11, %v10206_v31, %v1355_v55  ;;  %v1596_v59 = vsel %vm8103_vm11, %v10207_v38, %v1364_v32  ;;  %v1801_v25 = vsel %vm8132_vm3, %v1783_v40, %v1569_v53  ;;  %v2015_v52 = vadd.f32 %v10208_v39, %v2004_v54  ;;  %v10218_v40 = vld [vmem:[#allocation39_spill] sm:$0xff] }
 0x271   : > { %10204 = vst [vmem:[#allocation25_spill] sm:$0xff] %v8143_v35  ;;  %v2431_v60 = vsub.f32 %v2422_v28, %v8130_v11  ;;  %v10209_v35 = vsub.f32 %v7812_v58, %v10181_v36  ;;  %v3323_v10 = vsub.f32 %v3314_v2, %v10210_v62  ;;  %v1605_v55 = vsel %vm8103_vm11, %v10211_v21, %v1373_v24  ;;  %v10227_v47 = vld [vmem:[#allocation43_spill] sm:$0xff] }
 0x272   : > { %v2623_v1 = vsub.f32 %v2604_v12, %v2614_v14  ;;  %v10212_v32 = vmax.f32 %v7874_v9, 0.0001  ;;  %v1810_v54 = vsel %vm8132_vm3, %v9671_v51, %v1578_v22  ;;  %v2594_v28 = vmax.f32 %v2585_v0, 0.0  ;;  %v10217_v9 = vld [vmem:[#allocation87_spill] sm:$0xff]  ;;  %v10219_v14 = vld [vmem:[#allocation70_spill] sm:$0xff] }
 0x273   : > { %v8161_v5 = vand.u32 2147483647, %v10209_v35  ;;  %v2440_v53 = vmax.f32 %v2431_v60, 1e-08  ;;  %v1819_v58 = vsel %vm8132_vm3, %v9812_v43, %v1587_v13  ;;  %v1828_v36 = vsel %vm8132_vm3, %v9673_v29, %v1596_v59 }
 0x274   : > { %v8169_v19 = vmin.f32 %v10212_v32, 0.9999  ;;  %vm8180_vm7 = vcmp.gt.f32.partialorder %v2015_v52, %v1801_v25  ;;  %v10214_v2 = vmov 0  ;;  %v2848_v24 = vadd.s32 56, %v10217_v9 }
 0x275   : > { %v10215_v2 = vsel %vm8180_vm7, 4294967295, %v10214_v2  ;;  %v1837_v12 = vsel %vm8132_vm3, %v10218_v40, %v1605_v55  ;;  %4126 = vrcp.f32 %v2440_v53  ;;  %v2632_v0 = vmax.f32 %v2623_v1, 0.0  ;;  %v10223_v55 = vld [vmem:[#allocation108_spill] sm:$0xff] }
 0x276   : > { %10213 = vst [vmem:[#allocation26_spill] sm:$0xff] %v8169_v19  ;;  %10216 = vst [vmem:[#allocation30_spill] sm:$0xff] %v10215_v2  ;;  %v2654_v35 = vadd.f32 %v10219_v14, %v7892_v20  ;;  %v8191_v22 = vmul.f32 %v3348_v26, %v10203_v15  ;;  %v8194_v13 = vmul.f32 4.5, %v8161_v5  ;;  %v8196_v59 = vand.u32 2147483647, %v3323_v10  ;;  %v10222_v26 = vld [vmem:[#allocation97_spill] sm:$0xff] }
 0x277   : > { %v2033_v62 = vsel %vm8180_vm7, %v2015_v52, %v1801_v25  ;;  %v8204_v1 = vsel %vm8180_vm7, %v10011_v63, %v1810_v54  ;;  %v8206_v20 = vmul.f32 %v2632_v0, %v2594_v28  ;;  %v580_v32 = vadd.f32 %v10223_v55, %v10222_v26  ;;  %v8211_v53 = vld [vmem:[%s4517_s22 + $0x118] sm:$0xff]  ;;  %v4125_v10 = vpop.eup %4124  ;;  %v10224_v52 = vld [vmem:[#allocation47_spill] sm:$0xff]  ;;  %v8231_v0 = vld [vmem:[%s4517_s22 + $0x88] sm:$0xff] }
 0x278   : > { %10220 = vst [vmem:[#allocation91_spill] sm:$0xff] %v8191_v22  ;;  %10221 = vst [vmem:[#allocation122_spill] sm:$0xff] %v8196_v59  ;;  %v8216_v60 = vsel %vm8180_vm7, %v10012_v4, %v1819_v58  ;;  %v8221_v25 = vsel %vm8180_vm7, %v9680_v16, %v1828_v36  ;;  %v8226_v54 = vsel %vm8180_vm7, %v10224_v52, %v1837_v12  ;;  %v8228_v28 = vand.u32 7, %v2848_v24  ;;  %v8234_v26 = vld [vmem:[%s4517_s22 + $0xd0] sm:$0xff]  ;;  %v8241_v36 = vld [vmem:[%s4517_s22 + $0x40] sm:$0xff]  ;;  %s3406_s22 = sld [smem:[#allocation2]] }
 0x279   : > { %v2225_v55 = vmul.f32 %v4125_v10, %v8092_v44  ;;  %v2663_v58 = vsub.f32 %v2654_v35, %v8206_v20  ;;  %v10226_v22 = vld [vmem:[#allocation27_spill] sm:$0xff]  ;;  %4128 = vrcp.f32 %v10227_v47  ;;  %v791_v49 = vsub.f32 0.0, %v580_v32  ;;  %v10230_v10 = vld [vmem:[#allocation72_spill] sm:$0xff] }
 0x27a   : > { %10225 = vst [vmem:[#allocation97_spill] sm:$0xff] %v8228_v28  ;;  %v3009_v15 = vmul.f32 0.5, %v10226_v22  ;;  %v8245_v12 = vsub.f32 %v8211_v53, %v8231_v0  ;;  %v8249_v24 = vsub.f32 %v8234_v26, %v8241_v36  ;;  %v943_v44 = vmin.f32 %v8211_v53, %v10116_v61 }
 0x27b   : > { %v2236_v35 = vmul.f32 %v10230_v10, %v2225_v55  ;;  %v2672_v2 = vmax.f32 %v2663_v58, 1e-08  ;;  %v953_v9 = vmax.f32 %v8231_v0, %v10114_v41  ;;  %v981_v32 = vmin.f32 %v8234_v26, %v10118_v18 }
 0x27c   : > { %10228 = vst [vmem:[#allocation108_spill] sm:$0xff] %v8245_v12  ;;  %10229 = vst [vmem:[#allocation27_spill] sm:$0xff] %v8249_v24  ;;  %v808_v14 = vmul.f32 1.442695, %v791_v49  ;;  %v8260_v39 = vmul.f32 %v8249_v24, %v8245_v12  ;;  %v991_v59 = vmax.f32 %v8241_v36, %v10115_v46  ;;  %v1175_v61 = vmin.f32 %v8211_v53, %v10196_v34 }
 0x27d   : > { %v2247_v55 = vadd.f32 %v10231_v17, %v2236_v35  ;;  %4130 = vrcp.f32 %v2672_v2  ;;  %v962_v58 = vsub.f32 %v943_v44, %v953_v9  ;;  %v1185_v10 = vmax.f32 %v8231_v0, %v10049_v3 }
 0x27e   : > { %v8270_v18 = vmul.f32 0.5, %v10227_v47  ;;  %4132 = vrcp.f32 %v10226_v22  ;;  %v1000_v49 = vsub.f32 %v981_v32, %v991_v59  ;;  %v1213_v24 = vmin.f32 %v8234_v26, %v10197_v6  ;;  %v10235_v22 = vld [vmem:[#allocation28_spill] sm:$0xff] }
 0x27f   : > { %v4127_v12 = vpop.eup %4126  ;;  %vm8275_vm6 = vcmp.gt.f32.partialorder %v2247_v55, %v2033_v62  ;;  %v10232_v46 = vmov 0  ;;  %v971_v35 = vmax.f32 %v962_v58, 0.0  ;;  %v1194_v2 = vsub.f32 %v1175_v61, %v1185_v10 }
 0x280   : > { %v10233_v46 = vsel %vm8275_vm6, 4294967295, %v10232_v46  ;;  %v1223_v9 = vmax.f32 %v8241_v36, %v10194_v27  ;;  %v2265_v47 = vsel %vm8275_vm6, %v2247_v55, %v2033_v62  ;;  %v8284_v44 = vadd.f32 %v7853_v56, %v3009_v15 }
 0x281   : > { %10234 = vst [vmem:[#allocation43_spill] sm:$0xff] %v10233_v46  ;;  %4134 = vpow2.f32 %v808_v14  ;;  %v1031_v59 = vadd.f32 %v10235_v22, %v8260_v39  ;;  %v2274_v32 = vsel %vm8275_vm6, %v9924_v45, %v8204_v1  ;;  %v2283_v61 = vsel %vm8275_vm6, %v10101_v57, %v8216_v60  ;;  %v10236_v22 = vld [vmem:[#allocation77_spill] sm:$0xff] }
 0x282   : > { %v2457_v10 = vmul.f32 %v4127_v12, %v8130_v11  ;;  %v1009_v62 = vmax.f32 %v1000_v49, 0.0  ;;  %v1203_v55 = vmax.f32 %v1194_v2, 0.0  ;;  %v1232_v56 = vsub.f32 %v1213_v24, %v1223_v9  ;;  %v10237_v24 = vld [vmem:[#allocation32_spill] sm:$0xff] }
 0x283   : > { %v1407_v15 = vmin.f32 %v8211_v53, %v10207_v38  ;;  %v1417_v14 = vmax.f32 %v8231_v0, %v10205_v42  ;;  %v8301_v58 = vpop.eup %4128  ;;  %v1445_v60 = vmin.f32 %v8234_v26, %v10211_v21  ;;  %v1455_v11 = vmax.f32 %v8241_v36, %v10206_v31  ;;  %v10238_v38 = vld [vmem:[#allocation80_spill] sm:$0xff] }
 0x284   : > { %v2468_v1 = vmul.f32 %v10236_v22, %v2457_v10  ;;  %v8304_v17 = vmul.f32 %v1009_v62, %v971_v35  ;;  %v1241_v12 = vmax.f32 %v1232_v56, 0.0  ;;  %v1263_v49 = vadd.f32 %v10237_v24, %v8260_v39 }
 0x285   : > { %v1426_v2 = vsub.f32 %v1407_v15, %v1417_v14  ;;  %v1639_v9 = vmin.f32 %v8211_v53, %v9673_v29  ;;  %v1464_v35 = vsub.f32 %v1445_v60, %v1455_v11  ;;  %v1649_v62 = vmax.f32 %v8231_v0, %v9671_v51  ;;  %v10245_v29 = vld [vmem:[#allocation82_spill] sm:$0xff] }
 0x286   : > { %v2479_v42 = vadd.f32 %v10238_v38, %v2468_v1  ;;  %v1040_v10 = vsub.f32 %v1031_v59, %v8304_v17  ;;  %v8318_v22 = vmul.f32 %v1241_v12, %v1203_v55  ;;  %v1677_v56 = vmin.f32 %v8234_v26, %v10218_v40  ;;  %v10242_v55 = vld [vmem:[#allocation52_spill] sm:$0xff] }
 0x287   : > { %v1435_v21 = vmax.f32 %v1426_v2, 0.0  ;;  %v1687_v15 = vmax.f32 %v8241_v36, %v9812_v43  ;;  %v4131_v14 = vpop.eup %4130  ;;  %v10239_v24 = vmov 0  ;;  %v1473_v59 = vmax.f32 %v1464_v35, 0.0 }
 0x288   : > { %vm8324_vm5 = vcmp.gt.f32.partialorder %v2479_v42, %v2265_v47  ;;  %v1049_v1 = vmax.f32 %v1040_v10, 1e-08  ;;  %v1658_v60 = vsub.f32 %v1639_v9, %v1649_v62  ;;  %v8328_v11 = vpop.eup %4132  ;;  %v2292_v12 = vsel %vm8275_vm6, %v10242_v55, %v8221_v25  ;;  %v10244_v10 = vld [vmem:[#allocation36_spill] sm:$0xff] }
 0x289   : > { %v10240_v24 = vsel %vm8324_vm5, 4294967295, %v10239_v24  ;;  %v2301_v2 = vsel %vm8275_vm6, %v9909_v8, %v8226_v54  ;;  %v8340_v38 = vsel %vm8324_vm5, %v2479_v42, %v2265_v47  ;;  %v1495_v35 = vadd.f32 %v10244_v10, %v8260_v39 }
 0x28a   : > { %10241 = vst [vmem:[#allocation28_spill] sm:$0xff] %v10240_v24  ;;  %10243 = vst [vmem:[#allocation32_spill] sm:$0xff] %v8340_v38  ;;  %v2506_v9 = vsel %vm8324_vm5, %v10165_v37, %v2274_v32  ;;  %v2515_v25 = vsel %vm8324_vm5, %v10166_v30, %v2283_v61  ;;  %v2689_v62 = vmul.f32 %v4131_v14, %v8206_v20  ;;  %4136 = vrcp.f32 %v1049_v1 }
 0x28b   : > { %v4135_v46 = vpop.eup %4134  ;;  %v1272_v54 = vsub.f32 %v1263_v49, %v8318_v22  ;;  %v8352_v40 = vmul.f32 %v1473_v59, %v1435_v21  ;;  %v1667_v42 = vmax.f32 %v1658_v60, 0.0  ;;  %v1696_v47 = vsub.f32 %v1677_v56, %v1687_v15  ;;  %v10246_v15 = vld [vmem:[#allocation84_spill] sm:$0xff] }
 0x28c   : > { %v2524_v10 = vsel %vm8324_vm5, %v10168_v33, %v2292_v12  ;;  %v2533_v32 = vsel %vm8324_vm5, %v10169_v50, %v2301_v2  ;;  %v2700_v61 = vmul.f32 %v10245_v29, %v2689_v62  ;;  %v1871_v20 = vmin.f32 %v8211_v53, %v9680_v16  ;;  %v10248_v59 = vld [vmem:[#allocation40_spill] sm:$0xff] }
 0x28d   : > { %v1281_v14 = vmax.f32 %v1272_v54, 1e-08  ;;  %v1504_v49 = vsub.f32 %v1495_v35, %v8352_v40  ;;  %v1705_v21 = vmax.f32 %v1696_v47, 0.0  ;;  %v1881_v56 = vmax.f32 %v8231_v0, %v10011_v63 }
 0x28e   : > { %v8367_v1 = vadd.f32 %v10246_v15, %v2700_v61  ;;  %v1727_v60 = vadd.f32 %v10248_v59, %v8260_v39  ;;  %v1909_v12 = vmin.f32 %v8234_v26, %v10224_v52  ;;  %v1919_v2 = vmax.f32 %v8241_v36, %v10012_v4  ;;  %v10252_v15 = vld [vmem:[#allocation49_spill] sm:$0xff] }
 0x28f   : > { %4138 = vrcp.f32 %v1281_v14  ;;  %v1513_v62 = vmax.f32 %v1504_v49, 1e-08  ;;  %v8375_v54 = vmul.f32 %v1705_v21, %v1667_v42  ;;  %v1890_v35 = vsub.f32 %v1871_v20, %v1881_v56  ;;  %v10253_v20 = vld [vmem:[#allocation68_spill] sm:$0xff]  ;;  %v10254_v21 = vld [vmem:[#allocation69_spill] sm:$0xff] }
 0x290   : > { %10247 = vst [vmem:[#allocation36_spill] sm:$0xff] %v8367_v1  ;;  %vm8379_vm5 = vcmp.gt.f32.partialorder %v8367_v1, %v8340_v38  ;;  %v10249_v47 = vmov 0  ;;  %v3036_v61 = vadd.f32 %v8270_v18, %v7850_v23  ;;  %v1928_v59 = vsub.f32 %v1909_v12, %v1919_v2 }
 0x291   : > { %v10250_v47 = vsel %vm8379_vm5, 4294967295, %v10249_v47  ;;  %v1959_v29 = vadd.f32 %v10252_v15, %v8260_v39  ;;  %v2738_v14 = vsel %vm8379_vm5, %v10031_v7, %v2506_v9  ;;  %v2747_v42 = vsel %vm8379_vm5, %v10032_v48, %v2515_v25 }
 0x292   : > { %10251 = vst [vmem:[#allocation40_spill] sm:$0xff] %v10250_v47  ;;  %v2756_v49 = vsel %vm8379_vm5, %v10253_v20, %v2524_v10  ;;  %v2765_v18 = vsel %vm8379_vm5, %v10254_v21, %v2533_v32  ;;  %vm3225_vm6 = vcmp.eq.s32.totalorder %v8228_v28, 0  ;;  %4140 = vrcp.f32 %v1513_v62 }
 0x293   : > { %v3045_v23 = vsub.f32 %v2756_v49, %v2738_v14  ;;  %v3054_v56 = vsub.f32 %v2765_v18, %v2747_v42  ;;  %v1736_v9 = vsub.f32 %v1727_v60, %v8375_v54  ;;  %v1899_v15 = vmax.f32 %v1890_v35, 0.0 }
 0x294   : > { %v1937_v12 = vmax.f32 %v1928_v59, 0.0  ;;  %v2103_v25 = vmin.f32 %v8211_v53, %v10242_v55  ;;  %v2113_v10 = vmax.f32 %v8231_v0, %v9924_v45  ;;  %v4137_v2 = vpop.eup %4136  ;;  %v2141_v60 = vmin.f32 %v8234_v26, %v9909_v8  ;;  %v10255_v45 = vld [vmem:[#allocation42_spill] sm:$0xff] }
 0x295   : > { %v3063_v47 = vmul.f32 0.5, %v3045_v23  ;;  %v3081_v32 = vmul.f32 0.5, %v3054_v56  ;;  %v3099_v49 = vmax.f32 %v3045_v23, 1.0  ;;  %v3108_v18 = vmax.f32 %v3054_v56, 1.0 }
 0x296   : > { %v1067_v1 = vmul.f32 %v4137_v2, %v8304_v17  ;;  %v1745_v38 = vmax.f32 %v1736_v9, 1e-08  ;;  %v8407_v24 = vmul.f32 %v1937_v12, %v1899_v15  ;;  %v2122_v56 = vsub.f32 %v2103_v25, %v2113_v10  ;;  %v10262_v2 = vld [vmem:[#allocation122_spill] sm:$0xff] }
 0x297   : > { %v3072_v62 = vadd.f32 %v3063_v47, %v2738_v14  ;;  %v3090_v35 = vadd.f32 %v3081_v32, %v2747_v42  ;;  %v3171_v59 = vmul.f32 %v8301_v58, %v3108_v18  ;;  %v3198_v55 = vmul.f32 %v8328_v11, %v3099_v49  ;;  %v10256_v14 = vld [vmem:[#allocation45_spill] sm:$0xff]  ;;  %v10264_v18 = vld [vmem:[#allocation46_spill] sm:$0xff] }
 0x298   : > { %v1077_v52 = vmul.f32 %v10255_v45, %v1067_v1  ;;  %4142 = vrcp.f32 %v1745_v38  ;;  %v1968_v23 = vsub.f32 %v1959_v29, %v8407_v24  ;;  %v2151_v9 = vmax.f32 %v8241_v36, %v10101_v57 }
 0x299   : > { %v3117_v16 = vsub.f32 %v3090_v35, %v3036_v61  ;;  %v3144_v17 = vsub.f32 %v3072_v62, %v8284_v44  ;;  %4144 = vlog2.f32 %v3171_v59  ;;  %v4139_v15 = vpop.eup %4138  ;;  %v818_v47 = vadd.f32 1.0, %v4135_v46  ;;  %v639_v61 = vpop.permute.xlu0 %638 }
 0x29a   : > { %4146 = vlog2.f32 %v3198_v55  ;;  %v8419_v42 = vadd.f32 %v10256_v14, %v1077_v52  ;;  %v1977_v12 = vmax.f32 %v1968_v23, 1e-08  ;;  %v1299_v29 = vmul.f32 %v4139_v15, %v8318_v22  ;;  %v10259_v55 = vld [vmem:[#allocation121_spill] sm:$0xff] }
 0x29b   : > { %v3134_v45 = vmul.f32 %v8301_v58, %v3117_v16  ;;  %v3161_v38 = vmul.f32 %v8328_v11, %v3144_v17  ;;  %v2160_v1 = vsub.f32 %v2141_v60, %v2151_v9  ;;  %v8426_v44 = vmul.f32 %v8194_v13, %v8161_v5  ;;  %v10261_v58 = vld [vmem:[#allocation21_spill] sm:$0xff] }
 0x29c   : > { %v8429_v25 = vadd.f32 -0.055555556, %v8161_v5  ;;  %4148 = vrcp.f32 %v1977_v12  ;;  %v4141_v52 = vpop.eup %4140  ;;  %v10260_v10 = vmax.f32 %v10259_v55, 0.0001  ;;  %v8437_v11 = vadd.f32 %v10261_v58, %v639_v61  ;;  %v10268_v55 = vld [vmem:[#allocation19_spill] sm:$0xff]  ;;  %v10311_v58 = vld [vmem:[#allocation81_spill] sm:$0xff] }
 0x29d   : > { %10257 = vst [vmem:[#allocation49_spill] sm:$0xff] %v8426_v44  ;;  %vm9541_vm4 = vcmp.gt.f32.partialorder %v8419_v42, -2.0  ;;  %v2131_v22 = vmax.f32 %v2122_v56, 0.0  ;;  %v8441_v13 = vmul.f32 4.5, %v10262_v2  ;;  %v3234_v32 = vsel %vm3225_vm6, %v3134_v45, 0.0  ;;  %v10265_v56 = vld [vmem:[#allocation58_spill] sm:$0xff] }
 0x29e   : > { %10258 = vst [vmem:[#allocation68_spill] sm:$0xff] %v8429_v25  ;;  %v8434_v16 = vmin.f32 %v10260_v10, 0.9999  ;;  %vm10263_vm5 = vcmp.eq.s32.totalorder %v8228_v28, 1  ;;  %4150 = vrcp.f32 %v818_v47  ;;  %v1309_v60 = vmul.f32 %v10264_v18, %v1299_v29  ;;  %v10266_v47 = vld [vmem:[#allocation48_spill] sm:$0xff]  ;;  %v10280_v44 = vld [vmem:[#allocation67_spill] sm:$0xff] }
 0x29f   : > { %v3252_v49 = vsel %vm10263_vm5, %v3161_v38, 0.0  ;;  %v1531_v62 = vmul.f32 %v4141_v52, %v8352_v40  ;;  %v2169_v35 = vmax.f32 %v2160_v1, 0.0  ;;  %v2335_v59 = vmin.f32 %v8211_v53, %v10168_v33  ;;  %v10267_v40 = vld [vmem:[#allocation53_spill] sm:$0xff] }
 0x2a0   : > { %v1106_v23 = vsel %vm9541_vm4, %v8419_v42, -2.0  ;;  %v2191_v17 = vadd.f32 %v10265_v56, %v8260_v39  ;;  %v2345_v9 = vmax.f32 %v8231_v0, %v10165_v37  ;;  %v2373_v15 = vmin.f32 %v8234_v26, %v10169_v50 }
 0x2a1   : > { %v1320_v14 = vadd.f32 %v10266_v47, %v1309_v60  ;;  %v1541_v12 = vmul.f32 %v10267_v40, %v1531_v62  ;;  %v8462_v45 = vmul.f32 %v2169_v35, %v2131_v22  ;;  %v2383_v38 = vmax.f32 %v8241_v36, %v10166_v30  ;;  %v10271_v22 = vld [vmem:[#allocation55_spill] sm:$0xff]  ;;  %v10272_v47 = vld [vmem:[#allocation18_spill] sm:$0xff] }
 0x2a2   : > { %v4143_v29 = vpop.eup %4142  ;;  %v3261_v1 = vadd.f32 %v3252_v49, %v3234_v32  ;;  %vm3270_vm6 = vcmp.eq.s32.totalorder %v8228_v28, 2  ;;  %v1115_v61 = vsel %vm9541_vm4, %v10114_v41, 0.0  ;;  %v1124_v10 = vsel %vm9541_vm4, %v10268_v55, 0.0  ;;  %v10273_v55 = vld [vmem:[#allocation20_spill] sm:$0xff] }
 0x2a3   : > { %v4145_v52 = vpop.eup %4144  ;;  %vm8474_vm2 = vcmp.gt.f32.partialorder %v1320_v14, %v1106_v23  ;;  %v1552_v18 = vadd.f32 %v10271_v22, %v1541_v12  ;;  %v2354_v32 = vsub.f32 %v2335_v59, %v2345_v9  ;;  %v1763_v35 = vmul.f32 %v4143_v29, %v8375_v54 }
 0x2a4   : > { %v4147_v49 = vpop.eup %4146  ;;  %v3188_v60 = vmul.f32 0.6931472, %v4145_v52  ;;  %v1338_v62 = vsel %vm8474_vm2, %v1320_v14, %v1106_v23  ;;  %v2200_v41 = vsub.f32 %v2191_v17, %v8462_v45  ;;  %v1133_v40 = vsel %vm9541_vm4, %v10272_v47, 0.0  ;;  %v10345_v23 = vld [vmem:[#allocation114_spill] sm:$0xff] }
 0x2a5   : > { %v3215_v56 = vmul.f32 0.6931472, %v4147_v49  ;;  %v1142_v46 = vsel %vm9541_vm4, %v10273_v55, 0.0  ;;  %v2392_v12 = vsub.f32 %v2373_v15, %v2383_v38  ;;  %vm8491_vm5 = vcmp.gt.f32.partialorder %v1552_v18, %v1338_v62  ;;  %v10277_v15 = vld [vmem:[#allocation65_spill] sm:$0xff] }
 0x2a6   : > { %v4149_v59 = vpop.eup %4148  ;;  %v3279_v9 = vsel %vm3270_vm6, %v3188_v60, 0.0  ;;  %v2567_v54 = vmin.f32 %v8211_v53, %v10253_v20  ;;  %v2577_v17 = vmax.f32 %v8231_v0, %v10031_v7  ;;  %vm10276_vm7 = vcmp.eq.s32.totalorder %v8228_v28, 3  ;;  %v10278_v49 = vld [vmem:[#allocation57_spill] sm:$0xff]  ;;  %v10279_v28 = vld [vmem:[#allocation62_spill] sm:$0xff] }
 0x2a7   : > { %v3288_v14 = vadd.f32 %v3279_v9, %v3261_v1  ;;  %v3306_v29 = vsel %vm10276_vm7, %v3215_v56, 0.0  ;;  %v2423_v38 = vadd.f32 %v10277_v15, %v8260_v39  ;;  %v2605_v52 = vmin.f32 %v8234_v26, %v10254_v21 }
 0x2a8   : > { %v4151_v22 = vpop.eup %4150  ;;  %v1773_v60 = vmul.f32 %v10278_v49, %v1763_v35  ;;  %v1995_v47 = vmul.f32 %v4149_v59, %v8407_v24  ;;  %v2209_v55 = vmax.f32 %v2200_v41, 1e-08  ;;  %v2363_v53 = vmax.f32 %v2354_v32, 0.0  ;;  %v10332_v35 = vld [vmem:[#allocation88_spill] sm:$0xff] }
 0x2a9   : > { %v3315_v19 = vadd.f32 %v3306_v29, %v3288_v14  ;;  %v1570_v1 = vsel %vm8491_vm5, %v1552_v18, %v1338_v62  ;;  %v2401_v9 = vmax.f32 %v2392_v12, 0.0  ;;  %v2615_v56 = vmax.f32 %v8241_v36, %v10032_v48 }
 0x2aa   : > { %v1784_v15 = vadd.f32 %v10279_v28, %v1773_v60  ;;  %v2005_v25 = vmul.f32 %v10280_v44, %v1995_v47  ;;  %4152 = vrcp.f32 %v2209_v55  ;;  %v2586_v26 = vsub.f32 %v2567_v54, %v2577_v17  ;;  %v10285_v54 = vld [vmem:[#allocation33_spill] sm:$0xff]  ;;  %v10291_v55 = vld [vmem:[#allocation108_spill] sm:$0xff]  ;;  %v10349_v60 = vld [vmem:[#allocation59_spill] sm:$0xff] }
 0x2ab   : > { %v1347_v24 = vsel %vm8474_vm2, %v10049_v3, %v1115_v61  ;;  %v1356_v32 = vsel %vm8474_vm2, %v10194_v27, %v1124_v10  ;;  %v1365_v18 = vsel %vm8474_vm2, %v10196_v34, %v1133_v40  ;;  %v8522_v62 = vmul.f32 %v2401_v9, %v2363_v53  ;;  %v10283_v34 = vld [vmem:[#allocation71_spill] sm:$0xff]  ;;  %v10284_v40 = vld [vmem:[#allocation29_spill] sm:$0xff] }
 0x2ac   : > { %v3324_v28 = vsub.f32 %v3315_v19, %v8437_v11  ;;  %v1374_v44 = vsel %vm8474_vm2, %v10197_v6, %v1142_v46  ;;  %vm8528_vm7 = vcmp.gt.f32.partialorder %v1784_v15, %v1570_v1  ;;  %v2624_v3 = vsub.f32 %v2605_v52, %v2615_v56  ;;  %v10287_v52 = vld [vmem:[#allocation70_spill] sm:$0xff]  ;;  %v10292_v9 = vld [vmem:[#allocation75_spill] sm:$0xff]  ;;  %v10293_v56 = vld [vmem:[#allocation105_spill] sm:$0xff] }
 0x2ad   : > { %v8533_v61 = vadd.f32 -0.055555556, %v10262_v2  ;;  %v2893_v27 = vsub.f32 1.0, %v8434_v16  ;;  %v845_v10 = vmax.f32 %v4151_v22, 0.0001  ;;  %v2016_v41 = vadd.f32 %v10283_v34, %v2005_v25 }
 0x2ae   : > { %v8539_v19 = vmul.f32 %v8441_v13, %v10262_v2  ;;  %v1802_v6 = vsel %vm8528_vm7, %v1784_v15, %v1570_v1  ;;  %v2432_v46 = vsub.f32 %v2423_v38, %v8522_v62  ;;  %v2595_v11 = vmax.f32 %v2586_v26, 0.0  ;;  %v10286_v13 = vld [vmem:[#allocation34_spill] sm:$0xff] }
 0x2af   : > { %v1579_v12 = vsel %vm8491_vm5, %v10284_v40, %v1347_v24  ;;  %v1588_v59 = vsel %vm8491_vm5, %v10206_v31, %v1356_v32  ;;  %v1597_v25 = vsel %vm8491_vm5, %v10285_v54, %v1365_v18  ;;  %v1606_v17 = vsel %vm8491_vm5, %v10286_v13, %v1374_v44  ;;  %v10290_v31 = vld [vmem:[#allocation87_spill] sm:$0xff]  ;;  %v10295_v26 = vld [vmem:[#allocation66_spill] sm:$0xff]  ;;  %v10297_v18 = vld [vmem:[#allocation37_spill] sm:$0xff] }
 0x2b0   : > { %v8556_v14 = vand.u32 2147483647, %v3324_v28  ;;  %v2441_v29 = vmax.f32 %v2432_v46, 1e-08  ;;  %v2633_v38 = vmax.f32 %v2624_v3, 0.0  ;;  %v2655_v22 = vadd.f32 %v10287_v52, %v8260_v39  ;;  %v10298_v44 = vld [vmem:[#allocation39_spill] sm:$0xff] }
 0x2b1   : > { %v8560_v49 = vmin.f32 %v845_v10, 0.9999  ;;  %vm8562_vm6 = vcmp.gt.f32.partialorder %v2016_v41, %v1802_v6  ;;  %v2849_v47 = vadd.s32 64, %v10290_v31  ;;  %v3010_v53 = vmul.f32 0.5, %v10291_v55 }
 0x2b2   : > { %4154 = vrcp.f32 %v2441_v29  ;;  %v8568_v1 = vmul.f32 %v2633_v38, %v2595_v11  ;;  %vm10294_vm4 = vcmp.gt.f32.partialorder %v10293_v56, -2.0  ;;  %vm10296_vm0 = vcmp.gt.f32.partialorder %v10295_v26, -2.0  ;;  %v10299_v11 = vld [vmem:[#allocation60_spill] sm:$0xff]  ;;  %v10306_v38 = vld [vmem:[#allocation78_spill] sm:$0xff] }
 0x2b3   : > { %v1149_v15 = vsel %vm10294_vm4, %v10292_v9, -1.0  ;;  %v1150_v39 = vsel %vm10296_vm0, %v10292_v9, -1.0  ;;  %v1811_v24 = vsel %vm8528_vm7, %v9671_v51, %v1579_v12  ;;  %v1820_v32 = vsel %vm8528_vm7, %v9812_v43, %v1588_v59  ;;  %v10302_v59 = vld [vmem:[#allocation76_spill] sm:$0xff] }
 0x2b4   : > { %v1829_v28 = vsel %vm8528_vm7, %v10297_v18, %v1597_v25  ;;  %v1838_v3 = vsel %vm8528_vm7, %v10298_v44, %v1606_v17  ;;  %v4153_v10 = vpop.eup %4152  ;;  %v8589_v34 = vmul.f32 4.5, %v8556_v14  ;;  %v2034_v46 = vsel %vm8562_vm6, %v2016_v41, %v1802_v6 }
 0x2b5   : > { %v2664_v51 = vsub.f32 %v2655_v22, %v8568_v1  ;;  %vm10300_vm4 = vcmp.gt.f32.partialorder %v10299_v11, -2.0  ;;  %v2227_v40 = vmul.f32 %v4153_v10, %v8462_v45  ;;  %vm10301_vm0 = vcmp.gt.f32.partialorder %v8419_v42, -2.0  ;;  %v10308_v22 = vld [vmem:[#allocation72_spill] sm:$0xff]  ;;  %v10323_v42 = vld [vmem:[#allocation86_spill] sm:$0xff] }
 0x2b6   : > { %v1151_v43 = vsel %vm10300_vm4, %v10292_v9, -1.0  ;;  %v1152_v12 = vsel %vm10301_vm0, %v10292_v9, -1.0  ;;  %v1381_v25 = vsel %vm7365_vm13, %v10302_v59, %v1149_v15  ;;  %v1382_v41 = vsel %vm7713_vm8, %v10302_v59, %v1150_v39 }
 0x2b7   : > { %v2673_v6 = vmax.f32 %v2664_v51, 1e-08  ;;  %v1383_v29 = vsel %vm8069_vm12, %v10302_v59, %v1151_v43  ;;  %v1384_v45 = vsel %vm8474_vm2, %v10302_v59, %v1152_v12  ;;  %v1613_v52 = vsel %vm7399_vm14, %v10306_v38, %v1381_v25  ;;  %v10316_v59 = vld [vmem:[#allocation27_spill] sm:$0xff] }
 0x2b8   : > { %v2237_v31 = vmul.f32 %v10308_v22, %v2227_v40  ;;  %v1614_v56 = vsel %vm7748_vm10, %v10306_v38, %v1382_v41  ;;  %v1615_v26 = vsel %vm8103_vm11, %v10306_v38, %v1383_v29  ;;  %v1616_v39 = vsel %vm8491_vm5, %v10306_v38, %v1384_v45  ;;  %v10315_v40 = vld [vmem:[#allocation73_spill] sm:$0xff]  ;;  %v10317_v25 = vld [vmem:[#allocation83_spill] sm:$0xff]  ;;  %v10321_v45 = vld [vmem:[#allocation30_spill] sm:$0xff] }
 0x2b9   : > { %4156 = vrcp.f32 %v2673_v6  ;;  %v1845_v44 = vsel %vm7440_vm15, %v10311_v58, %v1613_v52  ;;  %v1846_v51 = vsel %vm7784_vm9, %v10311_v58, %v1614_v56  ;;  %v1847_v43 = vsel %vm8132_vm3, %v10311_v58, %v1615_v26  ;;  %v10319_v41 = vld [vmem:[#allocation31_spill] sm:$0xff] }
 0x2ba   : > { %v2248_v12 = vadd.f32 %v10315_v40, %v2237_v31  ;;  %v3028_v54 = vmul.f32 0.5, %v10316_v59  ;;  %v2077_v13 = vsel %vm7464_vm1, %v10317_v25, %v1845_v44  ;;  %vm10320_vm10 = vnez %v10319_v41  ;;  %v10324_v52 = vld [vmem:[#allocation99_spill] sm:$0xff]  ;;  %v10326_v31 = vld [vmem:[#allocation44_spill] sm:$0xff] }
 0x2bb   : > { %v2078_v6 = vsel %vm10320_vm10, %v10317_v25, %v1846_v51  ;;  %v2043_v17 = vsel %vm8562_vm6, %v10011_v63, %v1811_v24  ;;  %v2052_v29 = vsel %vm8562_vm6, %v10012_v4, %v1820_v32  ;;  %vm10322_vm13 = vnez %v10321_v45  ;;  %v10327_v24 = vld [vmem:[#allocation118_spill] sm:$0xff]  ;;  %v10329_v32 = vld [vmem:[#allocation43_spill] sm:$0xff]  ;;  %v10348_v41 = vld [vmem:[#allocation56_spill] sm:$0xff] }
 0x2bc   : > { %v2079_v38 = vsel %vm10322_vm13, %v10317_v25, %v1847_v43  ;;  %vm10325_vm14 = vnez %v10324_v52  ;;  %v2061_v9 = vsel %vm8562_vm6, %v10326_v31, %v1829_v28  ;;  %v1848_v63 = vsel %vm8528_vm7, %v10311_v58, %v1616_v39  ;;  %v4155_v15 = vpop.eup %4154  ;;  %v10331_v26 = vld [vmem:[#allocation47_spill] sm:$0xff]  ;;  %v10340_v43 = vld [vmem:[#allocation28_spill] sm:$0xff]  ;;  %v10352_v52 = vld [vmem:[#allocation50_spill] sm:$0xff] }
 0x2bd   : > { %v2309_v22 = vsel %vm10325_vm14, %v10323_v42, %v2077_v13  ;;  %vm10328_vm15 = vnez %v10327_v24  ;;  %vm10330_vm1 = vnez %v10329_v32  ;;  %v2070_v18 = vsel %vm8562_vm6, %v10331_v26, %v1838_v3  ;;  %v10333_v39 = vld [vmem:[#allocation111_spill] sm:$0xff]  ;;  %v10354_v24 = vld [vmem:[#allocation36_spill] sm:$0xff] }
 0x2be   : > { %v2310_v4 = vsel %vm10328_vm15, %v10323_v42, %v2078_v6  ;;  %v2311_v56 = vsel %vm10330_vm1, %v10323_v42, %v2079_v38  ;;  %v8670_v44 = vand.u32 7, %v2849_v47  ;;  %v8673_v28 = vadd.f32 %v8231_v0, %v3010_v53  ;;  %v10337_v47 = vld [vmem:[#allocation116_spill] sm:$0xff]  ;;  %v10338_v53 = vld [vmem:[#allocation119_spill] sm:$0xff] }
 0x2bf   : > { %vm10334_vm2 = vnez %v10333_v39  ;;  %vm8678_vm8 = vcmp.gt.f32.partialorder %v2248_v12, %v2034_v46  ;;  %v2459_v51 = vmul.f32 %v4155_v15, %v8522_v62  ;;  %v8684_v11 = vadd.f32 %v3028_v54, %v8241_v36  ;;  %v10342_v36 = vld [vmem:[#allocation77_spill] sm:$0xff]  ;;  %v10343_v54 = vld [vmem:[#allocation112_spill] sm:$0xff]  ;;  %v10351_v6 = vld [vmem:[#allocation35_spill] sm:$0xff] }
 0x2c0   : > { %v2541_v58 = vsel %vm10334_vm2, %v10332_v35, %v2309_v22  ;;  %4158 = vrcp.f32 %v10316_v59  ;;  %vm3339_vm9 = vcmp.le.f32.partialorder %v10337_v47, 0.11111111  ;;  %v2080_v0 = vsel %vm8562_vm6, %v10317_v25, %v1848_v63  ;;  %v10344_v59 = vld [vmem:[#allocation113_spill] sm:$0xff]  ;;  %v10353_v63 = vld [vmem:[#allocation32_spill] sm:$0xff] }
 0x2c1   : > { %4160 = vrcp.f32 %v10291_v55  ;;  %vm10339_vm12 = vnez %v10338_v53  ;;  %vm10341_vm11 = vnez %v10340_v43  ;;  %v2469_v40 = vmul.f32 %v10342_v36, %v2459_v51  ;;  %v10347_v55 = vld [vmem:[#allocation120_spill] sm:$0xff]  ;;  %v10378_v39 = vld [vmem:[#allocation49_spill] sm:$0xff] }
 0x2c2   : > { %v2542_v3 = vsel %vm10339_vm12, %v10332_v35, %v2310_v4  ;;  %v2543_v62 = vsel %vm10341_vm11, %v10332_v35, %v2311_v56  ;;  %vm10346_vm3 = vnez %v10345_v23  ;;  %vm10350_vm5 = vnez %v10349_v60  ;;  %v10355_v4 = vld [vmem:[#allocation40_spill] sm:$0xff]  ;;  %v10368_v60 = vld [vmem:[#allocation74_spill] sm:$0xff] }
 0x2c3   : > { %v8703_v13 = vsel %vm10346_vm3, %v10344_v59, %v10343_v54  ;;  %v8709_v25 = vsel %vm10350_vm5, %v10348_v41, %v10347_v55  ;;  %v2773_v45 = vsel %vm10346_vm3, %v10351_v6, %v2541_v58  ;;  %v2266_v38 = vsel %vm8678_vm8, %v2248_v12, %v2034_v46  ;;  %v10357_v56 = vld [vmem:[#allocation52_spill] sm:$0xff]  ;;  %v10367_v54 = vld [vmem:[#allocation93_spill] sm:$0xff] }
 0x2c4   : > { %v2275_v22 = vsel %vm8678_vm8, %v10352_v52, %v2043_v17  ;;  %v2284_v31 = vsel %vm8678_vm8, %v10101_v57, %v2052_v29  ;;  %vm10356_vm7 = vnez %v10355_v4  ;;  %v2293_v15 = vsel %vm8678_vm8, %v10357_v56, %v2061_v9  ;;  %v10358_v26 = vld [vmem:[#allocation80_spill] sm:$0xff]  ;;  %v4157_v17 = vpop.eup %4156 }
 0x2c5   : > { %v8726_v32 = vsel %vm10356_vm7, %v10354_v24, %v10353_v63  ;;  %v2480_v46 = vadd.f32 %v10358_v26, %v2469_v40  ;;  %v2774_v12 = vsel %vm10350_vm5, %v10351_v6, %v2542_v3  ;;  %v2775_v57 = vsel %vm10356_vm7, %v10351_v6, %v2543_v62  ;;  %v10362_v3 = vld [vmem:[#allocation92_spill] sm:$0xff]  ;;  %v10366_v40 = vld [vmem:[#allocation82_spill] sm:$0xff]  ;;  %v10375_v26 = vld [vmem:[#allocation25_spill] sm:$0xff] }
 0x2c6   : > { %vm3340_vm6 = vcmp.le.f32.partialorder %v8161_v5, 0.11111111  ;;  %v2302_v29 = vsel %vm8678_vm8, %v9909_v8, %v2070_v18  ;;  %vm9544_vm4 = vcmp.ge.f32.partialorder %v8703_v13, 0.5  ;;  %vm9543_vm0 = vcmp.ge.f32.partialorder %v8709_v25, 0.5  ;;  %v10364_v18 = vld [vmem:[#allocation95_spill] sm:$0xff]  ;;  %v10369_v52 = vld [vmem:[#allocation84_spill] sm:$0xff] }
 0x2c7   : > { %v3774_v9 = vtrunc.f32 %v2773_v45  ;;  %vm8744_vm10 = vcmp.gt.f32.partialorder %v2480_v46, %v2266_v38  ;;  %v2691_v58 = vmul.f32 %v4157_v17, %v8568_v1  ;;  %v2312_v51 = vsel %vm8678_vm8, %v10323_v42, %v2080_v0  ;;  %v10377_v47 = vld [vmem:[#allocation68_spill] sm:$0xff] }
 0x2c8   : > { %vm9545_vm13 = vcmp.ge.f32.partialorder %v8726_v32, 0.5  ;;  %v10361_v53 = vmov 0.0   ;;  %vm10363_vm14 = vcmp.ge.f32.partialorder %v10362_v3, 0.5  ;;  %vm10365_vm15 = vcmp.ge.f32.partialorder %v10364_v18, 0.5 }
 0x2c9   : > { %v8756_v8 = vsel %vm10363_vm14, 1.0, %v10361_v53  ;;  %v8761_v43 = vsel %vm10365_vm15, 1.0, %v10361_v53  ;;  %v3776_v62 = vtrunc.f32 %v2774_v12  ;;  %v3778_v36 = vtrunc.f32 %v2775_v57 }
 0x2ca   : > { %v2701_v1 = vmul.f32 %v10366_v40, %v2691_v58  ;;  %v8767_v42 = vsel %vm9544_vm4, 1.0, %v10361_v53  ;;  %v8772_v10 = vsel %vm9543_vm0, 1.0, %v10361_v53  ;;  %v3775_v0 = vcvt.f32.s32 %v3774_v9  ;;  %v4159_v41 = vpop.eup %4158 }
 0x2cb   : > { %vm2804_vm1 = vcmp.lt.f32.partialorder %v10367_v54, 0.4  ;;  %v2498_v59 = vsel %vm8744_vm10, %v2480_v46, %v2266_v38  ;;  %v2507_v23 = vsel %vm8744_vm10, %v10165_v37, %v2275_v22  ;;  %v8783_v55 = vsel %vm9545_vm13, 1.0, %v10361_v53  ;;  %v4161_v63 = vpop.eup %4160 }
 0x2cc   : > { %vm3341_vm2 = vcmp.le.f32.partialorder %v10262_v2, 0.11111111  ;;  %vm2805_vm8 = vcmp.lt.f32.partialorder %v10368_v60, 0.4  ;;  %v2516_v45 = vsel %vm8744_vm10, %v10166_v30, %v2284_v31  ;;  %v2525_v38 = vsel %vm8744_vm10, %v10168_v33, %v2293_v15  ;;  %v10372_v31 = vld [vmem:[#allocation115_spill] sm:$0xff] }
 0x2cd   : > { %v2534_v37 = vsel %vm8744_vm10, %v10169_v50, %v2302_v29  ;;  %v2712_v22 = vadd.f32 %v10369_v52, %v2701_v1  ;;  %v2544_v24 = vsel %vm8744_vm10, %v10332_v35, %v2312_v51  ;;  %v3777_v4 = vcvt.f32.s32 %v3776_v62  ;;  %v10376_v35 = vld [vmem:[#allocation91_spill] sm:$0xff]  ;;  %v10380_v62 = vld [vmem:[#allocation94_spill] sm:$0xff] }
 0x2ce   : > { %v3779_v56 = vcvt.f32.s32 %v3778_v36  ;;  %vm3342_vm12 = vcmp.le.f32.partialorder %v8556_v14, 0.11111111  ;;  %v3360_v30 = vmul.f32 %v8589_v34, %v8556_v14  ;;  %vm8808_vm3 = vcmp.eq.s32.totalorder %v10372_v31, %v3775_v0  ;;  %v10381_v36 = vld [vmem:[#allocation79_spill] sm:$0xff]  ;;  %v10383_v31 = vld [vmem:[#allocation110_spill] sm:$0xff] }
 0x2cf   : > { %vm8803_vm11 = vcmp.gt.f32.partialorder %v2712_v22, %v2498_v59  ;;  %v3671_v15 = vadd.f32 -0.055555556, %v8556_v14  ;;  %v3375_v46 = vsel %vm3339_vm9, %v10376_v35, %v10375_v26  ;;  %vm3226_vm9 = vcmp.eq.s32.totalorder %v8670_v44, 0  ;;  %v10386_v35 = vld [vmem:[#allocation97_spill] sm:$0xff] }
 0x2d0   : > { %v2739_v34 = vsel %vm8803_vm11, %v10031_v7, %v2507_v23  ;;  %v2748_v12 = vsel %vm8803_vm11, %v10032_v48, %v2516_v45  ;;  %v2757_v57 = vsel %vm8803_vm11, %v10253_v20, %v2525_v38  ;;  %v2766_v17 = vsel %vm8803_vm11, %v10254_v21, %v2534_v37  ;;  %v10379_v21 = vld [vmem:[#allocation22_spill] sm:$0xff]  ;;  %v10382_v37 = vld [vmem:[#allocation101_spill] sm:$0xff] }
 0x2d1   : > { %v3046_v29 = vsub.f32 %v2757_v57, %v2739_v34  ;;  %v3055_v9 = vsub.f32 %v2766_v17, %v2748_v12  ;;  %v2776_v7 = vsel %vm8803_vm11, %v10351_v6, %v2544_v24  ;;  %v3376_v48 = vsel %vm3340_vm6, %v10378_v39, %v10377_v47 }
 0x2d2   : > { %v3780_v58 = vtrunc.f32 %v2776_v7  ;;  %v3377_v20 = vsel %vm3341_vm2, %v8539_v19, %v8533_v61  ;;  %v3383_v51 = vmul.f32 %v8756_v8, %v10379_v21  ;;  %v3389_v40 = vadd.f32 %v10381_v36, %v10380_v62  ;;  %v10407_v36 = vld [vmem:[#allocation107_spill] sm:$0xff] }
 0x2d3   : > { %v3064_v1 = vmul.f32 0.5, %v3046_v29  ;;  %v3082_v0 = vmul.f32 0.5, %v3055_v9  ;;  %v3100_v6 = vmax.f32 %v3046_v29, 1.0  ;;  %v3109_v23 = vmax.f32 %v3055_v9, 1.0  ;;  %v10403_v29 = vld [vmem:[#allocation85_spill] sm:$0xff]  ;;  %v644_v9 = vpop.permute.xlu1 %643 }
 0x2d4   : > { %v8847_v5 = vsel %vm8803_vm11, %v2712_v22, %v2498_v59  ;;  %v3781_v45 = vcvt.f32.s32 %v3780_v58  ;;  %v3384_v38 = vmul.f32 %v8761_v43, %v3375_v46  ;;  %v3390_v2 = vadd.f32 %v3389_v40, %v10382_v37  ;;  %vm8894_vm11 = vmand %vm9544_vm4, %vm8808_vm3  ;;  %v10406_v58 = vld [vmem:[#allocation51_spill] sm:$0xff] }
 0x2d5   : > { %v3073_v61 = vadd.f32 %v3064_v1, %v2739_v34  ;;  %v3091_v19 = vadd.f32 %v3082_v0, %v2748_v12  ;;  %v3172_v52 = vmul.f32 %v4159_v41, %v3109_v23  ;;  %v3199_v24 = vmul.f32 %v4161_v63, %v3100_v6  ;;  %v10412_v23 = vld [vmem:[#allocation26_spill] sm:$0xff] }
 0x2d6   : > { %vm8852_vm5 = vcmp.eq.s32.totalorder %v10383_v31, %v3777_v4  ;;  %vm8857_vm7 = vcmp.eq.s32.totalorder %v10386_v35, %v3779_v56  ;;  %v3385_v59 = vmul.f32 %v8767_v42, %v3376_v48  ;;  %v3391_v22 = vadd.f32 %v3390_v2, %v3383_v51 }
 0x2d7   : > { %v3118_v33 = vsub.f32 %v3091_v19, %v8684_v11  ;;  %v3145_v46 = vsub.f32 %v3073_v61, %v8673_v28  ;;  %4162 = vlog2.f32 %v3172_v52  ;;  %v3378_v34 = vsel %vm3342_vm12, %v3360_v30, %v3671_v15 }
 0x2d8   : > { %vm10389_vm6 = vcmp.ge.f32.partialorder %v10367_v54, 0.5  ;;  %4164 = vlog2.f32 %v3199_v24  ;;  %vm2785_vm14 = vcmp.ge.f32.partialorder %v8847_v5, 0.5  ;;  %v3386_v56 = vmul.f32 %v8772_v10, %v3377_v20 }
 0x2d9   : > { %vm8870_vm10 = vmor %vm10389_vm6, %vm2804_vm1  ;;  %v3392_v11 = vadd.f32 %v3391_v22, %v3384_v38  ;;  %vm10392_vm15 = vcmp.ge.f32.partialorder %v10368_v60, 0.5  ;;  %v3136_v28 = vmul.f32 %v4159_v41, %v3118_v33  ;;  %v3163_v54 = vmul.f32 %v4161_v63, %v3145_v46 }
 0x2da   : > { %vm8880_vm2 = vmor %vm10392_vm15, %vm2805_vm8  ;;  %vm3244_vm1 = vcmp.eq.s32.totalorder %v8670_v44, 1  ;;  %vm8886_vm12 = vcmp.eq.s32.totalorder %v8670_v44, %v3781_v45  ;;  %v2894_v60 = vsub.f32 1.0, %v8560_v49  ;;  %vm3271_vm8 = vcmp.eq.s32.totalorder %v8670_v44, 2 }
 0x2db   : > { %vm8904_vm6 = vmand %vm9543_vm0, %vm8852_vm5  ;;  %v3387_v63 = vmul.f32 %v8783_v55, %v3378_v34  ;;  %v3393_v50 = vadd.f32 %v3392_v11, %v3385_v59  ;;  %v8913_v12 = vsel %vm2785_vm14, 1.0, %v10361_v53  ;;  %vm2806_vm5 = vcmp.lt.f32.partialorder %v10403_v29, 0.4 }
 0x2dc   : > { %vm8919_vm15 = vmand %vm9545_vm13, %vm8857_vm7  ;;  %vm2807_vm0 = vcmp.lt.f32.partialorder %v10362_v3, 0.4  ;;  %v3235_v7 = vsel %vm3226_vm9, %v3136_v28, 0.0  ;;  %v3253_v47 = vsel %vm3244_vm1, %v3163_v54, 0.0  ;;  %vm2808_vm7 = vcmp.lt.f32.partialorder %v10364_v18, 0.4 }
 0x2dd   : > { %vm8931_vm4 = vmand %vm2785_vm14, %vm8886_vm12  ;;  %v3394_v48 = vadd.f32 %v3393_v50, %v3386_v56  ;;  %v8937_v20 = vadd.f32 %v10406_v58, %v644_v9  ;;  %vm2809_vm13 = vcmp.lt.f32.partialorder %v8703_v13, 0.4  ;;  %vm2810_vm3 = vcmp.lt.f32.partialorder %v8709_v25, 0.4  ;;  %v10434_v58 = vld [vmem:[#allocation100_spill] sm:$0xff] }
 0x2de   : > { %vm2811_vm9 = vcmp.lt.f32.partialorder %v8726_v32, 0.4  ;;  %v3655_v51 = vsel %vm8870_vm10, 1.0, %v10361_v53  ;;  %v3656_v62 = vsel %vm8880_vm2, 1.0, %v10361_v53  ;;  %v10408_v40 = vsub.f32 1.0, %v10407_v36 }
 0x2df   : > { %v8942_v21 = vadd.f32 %v3394_v48, %v3387_v63  ;;  %v3262_v0 = vadd.f32 %v3253_v47, %v3235_v7  ;;  %vm10409_vm1 = vcmp.ge.f32.partialorder %v10403_v29, 0.5  ;;  %v10413_v45 = vsub.f32 1.0, %v10412_v23  ;;  %v10430_v29 = vld [vmem:[#allocation104_spill] sm:$0xff]  ;;  %v10431_v7 = vld [vmem:[#allocation106_spill] sm:$0xff] }
 0x2e0   : > { %v2900_v1 = vsel %vm8894_vm11, %v10407_v36, %v10408_v40  ;;  %vm8959_vm12 = vmor %vm10409_vm1, %vm2806_vm5  ;;  %v2902_v37 = vsel %vm8919_vm15, %v8434_v16, %v2893_v27  ;;  %v2903_v2 = vsel %vm8931_vm4, %v8560_v49, %v2894_v60  ;;  %vm10414_vm10 = vcmp.ge.f32.partialorder %v10362_v3, 0.5  ;;  %v10433_v48 = vld [vmem:[#allocation54_spill] sm:$0xff] }
 0x2e1   : > { %v2901_v38 = vsel %vm8904_vm6, %v10412_v23, %v10413_v45  ;;  %vm8980_vm2 = vmor %vm10414_vm10, %vm2807_vm0  ;;  %v10417_v19 = vmov %v10408_v40  ;;  %v10418_v24 = vmov %v10413_v45  ;;  %v2911_v3 = vsel %vm8919_vm15, %v2893_v27, %v8434_v16  ;;  %v4163_v35 = vpop.eup %4162  ;;  %v10440_v45 = vld [vmem:[#allocation38_spill] sm:$0xff] }
 0x2e2   : > { %v2909_v52 = vsel %vm8894_vm11, %v10417_v19, %v10407_v36  ;;  %v2910_v31 = vsel %vm8904_vm6, %v10418_v24, %v10412_v23  ;;  %v2912_v26 = vsel %vm8931_vm4, %v2894_v60, %v8560_v49  ;;  %v10419_v57 = vmov 0.75   ;;  %v4165_v46 = vpop.eup %4164  ;;  %v10420_v49 = vld [vmem:[#allocation23_spill] sm:$0xff] }
 0x2e3   : > { %v2918_v59 = vsel %vm8894_vm11, 0.25, %v10419_v57  ;;  %v2919_v22 = vsel %vm8904_vm6, 0.25, %v10419_v57  ;;  %v2920_v33 = vsel %vm8919_vm15, 0.25, %v10419_v57  ;;  %4166 = vlog2.f32 %v2900_v1  ;;  %v10439_v23 = vld [vmem:[#allocation63_spill] sm:$0xff] }
 0x2e4   : > { %v3190_v16 = vmul.f32 0.6931472, %v4163_v35  ;;  %v2921_v27 = vsel %vm8931_vm4, 0.25, %v10419_v57  ;;  %v2958_v34 = vmul.f32 0.6931472, %v10420_v49  ;;  %4168 = vlog2.f32 %v2901_v38  ;;  %v10444_v35 = vld [vmem:[#allocation89_spill] sm:$0xff] }
 0x2e5   : > { %v3217_v4 = vmul.f32 0.6931472, %v4165_v46  ;;  %v3657_v56 = vsel %vm8959_vm12, 1.0, %v10361_v53  ;;  %v3658_v11 = vsel %vm8980_vm2, 1.0, %v10361_v53  ;;  %4170 = vlog2.f32 %v2902_v37 }
 0x2e6   : > { %v3280_v14 = vsel %vm3271_vm8, %v3190_v16, 0.0  ;;  %vm10421_vm4 = vcmp.ge.f32.partialorder %v10364_v18, 0.5  ;;  %v2927_v54 = vmul.f32 %v2918_v59, %v2909_v52  ;;  %v2928_v30 = vmul.f32 %v2919_v22, %v2910_v31  ;;  %v10428_v18 = vld [vmem:[#allocation96_spill] sm:$0xff] }
 0x2e7   : > { %vm9027_vm0 = vmor %vm10421_vm4, %vm2808_vm7  ;;  %4172 = vlog2.f32 %v2903_v2  ;;  %v3289_v15 = vadd.f32 %v3280_v14, %v3262_v0  ;;  %vm10424_vm11 = vcmp.eq.s32.totalorder %v8670_v44, 3  ;;  %v2929_v41 = vmul.f32 %v2920_v33, %v2911_v3  ;;  %v10438_v0 = vld [vmem:[#allocation103_spill] sm:$0xff] }
 0x2e8   : > { %v3307_v60 = vsel %vm10424_vm11, %v3217_v4, 0.0  ;;  %v2930_v63 = vmul.f32 %v2921_v27, %v2912_v26  ;;  %vm10425_vm8 = vcmp.ge.f32.partialorder %v8703_v13, 0.5  ;;  %v10429_v17 = vsub.f32 0.0, %v10428_v18 }
 0x2e9   : > { %vm9037_vm6 = vmor %vm10425_vm8, %vm2809_vm13  ;;  %v10432_v47 = vsub.f32 0.0, %v10431_v7  ;;  %v2976_v44 = vmul.f32 %v3655_v51, %v10433_v48  ;;  %v2977_v36 = vmul.f32 %v3656_v62, %v10434_v58  ;;  %v3316_v40 = vadd.f32 %v3307_v60, %v3289_v15 }
 0x2ea   : > { %v2970_v9 = vmul.f32 %v10430_v29, %v10429_v17  ;;  %vm10435_vm15 = vcmp.ge.f32.partialorder %v8709_v25, 0.5  ;;  %v3659_v1 = vsel %vm9027_vm0, 1.0, %v10361_v53  ;;  %v2978_v6 = vmul.f32 %v3657_v56, %v10438_v0 }
 0x2eb   : > { %v2971_v39 = vmul.f32 %v2958_v34, %v10432_v47  ;;  %vm9052_vm13 = vmor %vm10435_vm15, %vm2810_vm3  ;;  %v3415_v51 = vadd.f32 %v10440_v45, %v10439_v23  ;;  %vm10441_vm5 = vcmp.ge.f32.partialorder %v8726_v32, 0.5  ;;  %v2936_v25 = vmul.f32 %v2927_v54, %v2909_v52 }
 0x2ec   : > { %vm9066_vm7 = vmor %vm10441_vm5, %vm2811_vm9  ;;  %v2937_v38 = vmul.f32 %v2928_v30, %v2910_v31  ;;  %v2979_v37 = vmul.f32 %v3658_v11, %v2970_v9  ;;  %v2985_v2 = vadd.f32 %v2977_v36, %v2976_v44  ;;  %v3325_v61 = vsub.f32 %v3316_v40, %v8937_v20 }
 0x2ed   : > { %v2938_v19 = vmul.f32 %v2929_v41, %v2911_v3  ;;  %v2939_v24 = vmul.f32 %v2930_v63, %v2912_v26  ;;  %v3416_v57 = vadd.f32 %v10444_v35, %v3415_v51  ;;  %vm2812_vm3 = vcmp.lt.f32.partialorder %v8847_v5, 0.4  ;;  %v4167_v33 = vpop.eup %4166 }
 0x2ee   : > { %v3660_v32 = vsel %vm9037_vm6, 1.0, %v10361_v53  ;;  %v2980_v59 = vmul.f32 %v3659_v1, %v2971_v39  ;;  %v2986_v22 = vadd.f32 %v2985_v2, %v2978_v6  ;;  %v3334_v46 = vand.u32 2147483647, %v3325_v61  ;;  %v4169_v3 = vpop.eup %4168  ;;  %vm2821_vm9 = vmor %vm2785_vm14, %vm2812_vm3 }
 0x2ef   : > { %v3661_v52 = vsel %vm9052_vm13, 1.0, %v10361_v53  ;;  %v3662_v20 = vsel %vm9066_vm7, 1.0, %v10361_v53  ;;  %v3417_v31 = vadd.f32 %v8756_v8, %v3416_v57  ;;  %v2945_v26 = vsub.f32 0.0, %v2936_v25  ;;  %v4171_v34 = vpop.eup %4170 }
 0x2f0   : > { %v2946_v16 = vsub.f32 0.0, %v2937_v38  ;;  %v2960_v27 = vmul.f32 0.6931472, %v4167_v33  ;;  %v2987_v49 = vadd.f32 %v2986_v22, %v2979_v37  ;;  %v3352_v4 = vmul.f32 4.5, %v3334_v46 }
 0x2f1   : > { %v2947_v56 = vsub.f32 0.0, %v2938_v19  ;;  %v2948_v11 = vsub.f32 0.0, %v2939_v24  ;;  %v3418_v14 = vadd.f32 %v8761_v43, %v3417_v31  ;;  %v4173_v28 = vpop.eup %4172  ;;  %v2962_v54 = vmul.f32 0.6931472, %v4169_v3 }
 0x2f2   : > { %v2964_v30 = vmul.f32 0.6931472, %v4171_v34  ;;  %v2972_v8 = vmul.f32 %v2960_v27, %v2945_v26  ;;  %v2988_v15 = vadd.f32 %v2987_v49, %v2980_v59  ;;  %v3361_v60 = vmul.f32 %v3352_v4, %v3334_v46 }
 0x2f3   : > { %v3672_v41 = vadd.f32 -0.055555556, %v3334_v46  ;;  %v2966_v63 = vmul.f32 0.6931472, %v4173_v28  ;;  %v3419_v50 = vadd.f32 %v8767_v42, %v3418_v14  ;;  %vm3343_vm1 = vcmp.le.f32.partialorder %v3334_v46, 0.11111111 }
 0x2f4   : > { %v2973_v18 = vmul.f32 %v2962_v54, %v2946_v16  ;;  %v2974_v17 = vmul.f32 %v2964_v30, %v2947_v56  ;;  %v2981_v29 = vmul.f32 %v3660_v32, %v2972_v8  ;;  %v3663_v9 = vsel %vm2821_vm9, 1.0, %v10361_v53 }
 0x2f5   : > { %v3379_v43 = vsel %vm3343_vm1, %v3361_v60, %v3672_v41  ;;  %v2975_v7 = vmul.f32 %v2966_v63, %v2948_v11  ;;  %v3420_v5 = vadd.f32 %v8772_v10, %v3419_v50 }
 0x2f6   : > { %v3388_v47 = vmul.f32 %v8913_v12, %v3379_v43  ;;  %v2982_v39 = vmul.f32 %v3661_v52, %v2973_v18  ;;  %v2983_v48 = vmul.f32 %v3662_v20, %v2974_v17  ;;  %v2989_v44 = vadd.f32 %v2988_v15, %v2981_v29 }
 0x2f7   : > { %v2984_v36 = vmul.f32 %v3663_v9, %v2975_v7  ;;  %v3421_v13 = vadd.f32 %v8783_v55, %v3420_v5 }
 0x2f8   : > { %v3396_v58 = vadd.f32 %v8942_v21, %v3388_v47  ;;  %v2990_v42 = vadd.f32 %v2989_v44, %v2982_v39 }
 0x2f9   : > { %v3422_v53 = vadd.f32 %v8913_v12, %v3421_v13 }
 0x2fa   : > { %3397 = vadd.xlane.f32.xlu1 %v3396_v58  ;;  %v2991_v40 = vadd.f32 %v2990_v42, %v2983_v48 }
 0x2fc   : > { %v2992_v1 = vadd.f32 %v2991_v40, %v2984_v36 }
 0x2fe   : > { %2993 = vadd.xlane.f32.xlu0 %v2992_v1 }
 0x302   : > { %3423 = vadd.xlane.f32.xlu0 %v3422_v53 }
 0x387   : > { %v3398_v10 = vpop.xlane.xlu1 %3397 }
 0x388   : > { %v3399_v0 = vrot.slane %v3398_v10, 4 }
 0x38a   : > { %v3400_v6 = vadd.f32 %v3399_v0, %v3398_v10 }
 0x38b   : > { %v2994_v21 = vpop.xlane.xlu0 %2993 }
 0x38c   : > { %v3401_v23 = vrot.slane %v3400_v6, 2  ;;  %v2995_v45 = vrot.slane %v2994_v21, 4 }
 0x38e   : > { %v2996_v51 = vadd.f32 %v2995_v45, %v2994_v21  ;;  %v3402_v62 = vadd.f32 %v3401_v23, %v3400_v6 }
 0x38f   : > { %v3424_v25 = vpop.xlane.xlu0 %3423 }
 0x390   : > { %v2997_v55 = vrot.slane %v2996_v51, 2  ;;  %v3425_v38 = vrot.slane %v3424_v25, 4  ;;  %v3403_v12 = vrot.slane %v3402_v62, 1 }
 0x392   : > { %v3426_v37 = vadd.f32 %v3425_v38, %v3424_v25  ;;  %v2998_v2 = vadd.f32 %v2997_v55, %v2996_v51  ;;  %v3404_v57 = vadd.f32 %v3403_v12, %v3402_v62 }
 0x394   : > { %v3427_v61 = vrot.slane %v3426_v37, 2  ;;  %v2999_v19 = vrot.slane %v2998_v2, 1 }
 0x396   : > { %v3428_v24 = vadd.f32 %v3427_v61, %v3426_v37  ;;  %v3000_v35 = vadd.f32 %v2999_v19, %v2998_v2 }
 0x398   : > { %3782 = vpush %v3000_v35  ;;  %v3429_v32 = vrot.slane %v3428_v24, 1 }
 0x399   : > { %3784 = vpush %v3404_v57 }
 0x39a   : > { %v3430_v59 = vadd.f32 %v3429_v32, %v3428_v24 }
 0x39c   : > { %3786 = vpush %v3430_v59 }
 0x3c9   : > { %s3783_s15 = spop %3782 }
 0x3ca   : > { %s3407_s24 = sadd.f32 %s3783_s15, %s3406_s22  ;;  %s3785_s17 = spop %3784 }
 0x3cb   : > { %s3411_s14 = sadd.f32 %s3785_s17, %s3673_s27 }
 0x3cc   : > { %3409 = sst [smem:[#allocation2]] %s3407_s24  ;;  %3439 = sbr.rel (%p3675_p2) target bundleno = 1054 (0x41e), region = 64 }
 0x3cd   : > { %3413 = sst [smem:[#allocation2 + $0x1]] %s3411_s14  ;;  %s3787_s18 = spop %3786 }
 0x3ce   : > { %s3432_s5 = smul.f32 0.125, %s3787_s18  ;;  %s3441_s21 = sld [smem:[#allocation2]] (!%p3675_p2) }
 0x3cf   : > { %s3677_s3 = sld [smem:[#allocation2 + $0x1]] (!%p3675_p2) }
 0x3d0   : > { %s3433_s8 = sadd.f32 %s3674_s26, %s3432_s5 }
 0x3d2   : > { %3435 = sst [smem:[#allocation2 + $0x2]] %s3433_s8 }
 0x3d3   : > { %s3676_s13 = sld [smem:[#allocation2 + $0x2]] }
 0x3d9   : > { %s3442_s23 = smax.f32 %s4341_s25, %s3676_s13  ;;  %s3451_s2 = smul.f32 4.0, %s3676_s13 }
 0x3da   : > { %v3443_v22 = vstv %s3442_s23  ;;  %p3449_p10 = scmp.gt.f32.partialorder %s3676_s13, 0.0 }
 0x3db   : > { %4178 = vrcp.f32 %v3443_v22  ;;  %s3452_s4 = smax.f32 %s4341_s25, %s3451_s2 }
 0x3dc   : > { %v3453_v33 = vstv %s3452_s4 }
 0x3dd   : > { %4180 = vrcp.f32 %v3453_v33 }
 0x3e5   : > { %v4179_v46 = vpop.eup %4178 }
 0x3e6   : > { %3788 = vpush %v4179_v46 }
 0x3e7   : > { %v4181_v52 = vpop.eup %4180 }
 0x3e8   : > { %3790 = vpush %v4181_v52 }
 0x417   : > { %s3789_s0 = spop %3788 }
 0x418   : > { %s3446_s30 = smul.f32 %s3789_s0, %s3441_s21 }
 0x419   : > { %s3791_s20 = spop %3790 }
 0x41a   : > { %3448 = sst [smem:[%s3447_s6]] %s3446_s30  ;;  %s3456_s16 = smul.f32 %s3791_s20, %s3677_s3 }
 0x41c   : > { %s10464_s16 = smov (!%p3449_p10, %s3456_s16), 0.0 }
 0x41d   : > { %3459 = sst [smem:[%s3458_s1]] %s10464_s16 }
 0x41e PF: > { %s10445_s22 = sadd.s32 4294967295, %s4329_s12   ;;  %s4227_s24 = scalar_lea.hbm %s9176_s7, 16 }
 0x41f   : > { %p9101_p13 = scmp.eq.s32.totalorder %s10445_s22, 3  ;;  %p4228_p12 = scmp.ne.s32.totalorder %s9176_s7, %s4227_s24 }
 0x420   : > { %p4233_p7 = scmp.lt.u32.totalorder %s4227_s24, %s9176_s7 }
 0x421   : > { %p4229_p5 = pnand %p4228_p12, %p9101_p13 }
 0x423   : > { %p4230_p3 = pneg %p4229_p5 }
 0x425   : > { %p4235_p4 = pnand %p4233_p7, %p4230_p3 }
 0x427   : > { %4238 = shalt.err (!%p4235_p4)
}
 0x428   : > { %s4342_s5 = smov [#allocation8]   ;;  %s10447_s2 = sld [smem:[#allocation130_spill]] }
 0x429   : > { %3803 = dma.smem_to_hbm (%p9101_p13), %s4342_s5, 16, %s9176_s7, [#allocation5]  }
 0x42e   : > { %s4239_s4 = scalar_lea.hbm %s10447_s2, 16 }
 0x42f   : > { %p4240_p6 = scmp.ne.s32.totalorder %s10447_s2, %s4239_s4  ;;  %p4245_p11 = scmp.lt.u32.totalorder %s4239_s4, %s10447_s2 }
 0x431   : > { %p4241_p8 = pnand %p4240_p6, %p9101_p13 }
 0x433   : > { %p4242_p9 = pneg %p4241_p8 }
 0x435   : > { %p4247_p0 = pnand %p4245_p11, %p4242_p9 }
 0x437   : > { %4250 = shalt.err (!%p4247_p0)
}
 0x438   : > { %s4343_s20 = smov [#allocation9]  }
 0x439   : > { %3805 = dma.smem_to_hbm (%p9101_p13), %s4343_s20, 16, %s10447_s2, [#allocation10]  }
 0x43a   : > { %4292 = dma.done.wait (%p9101_p13), [#allocation5], 16  }
 0x43b   : > { %4294 = vsyncadd (%p9101_p13), [#allocation5], 4294967280 }
 0x43c   : > { %4296 = dma.done.wait (%p9101_p13), [#allocation10], 16  }
 0x43d   : > { %4298 = vsyncadd (%p9101_p13), [#allocation10], 4294967280 }
 0x43e   : > { %3486 = sfence }
 0x43f PF: > { %s25_s12 = sadd.s32 1, %s4329_s12   ;;  %s10448_s1 = sld [smem:[#allocation15_spill]] }
 0x440   : > { %p22_p1 = scmp.ge.s32.totalorder %s25_s12, 6   ;;  %s10449_s22 = sld [smem:[#allocation16_spill]] }
 0x441   : > { %s10450_s27 = smov %s4305_s28  ;;  %s10451_s28 = smov %s4309_s29 }
 0x442   : > { %s10452_s29 = smov %s4477_s19  ;;  %s10453_s30 = smov %s4321_s10 }
 0x443   : > { %s10454_s9 = smov %s4325_s11  ;;  %24 = sbr.rel (!%p22_p1) target bundleno = 17 (0x11), region = 120 }
 0x445   : > { %s10455_s10 = smov %s10448_s1 }
 0x446   : > { %s10456_s11 = smov %s10449_s22 }
 0x44a   :  { %3492 = vsyncpa [#allocation4], 1 }
 0x44b   :  { %3494 = vsyncpa [#allocation4 + $0x1], 1 }
 0x44c   :  { %3495 = vsyncpa [#allocation5], 1 }
 0x44d   :  { %3497 = vsyncpa [#allocation5 + $0x1], 1 }
 0x44e   :  { %3498 = vsyncpa [#allocation10], 1 }
 0x44f   :  { %3499 = vsyncpa [#allocation6], 1 }
 0x450   :  { %3501 = vsyncpa [#allocation6 + $0x1], 1 }

</bundles_post_ra>
